<compile_context>
chip_gen: v5e
topology: v5e:2x2
jax: 0.10.0
libtpu: 0.0.40
codegen_flags: <defaults>
</compile_context>

<pallas_src>
import functools

import jax
import jax.numpy as jnp
from jax import lax
from jax.experimental import pallas as pl
from jax.experimental.pallas import tpu as pltpu

# ----------------------------- synthetic configuration -----------------------------
B = 2                 # batch
N = 64                # input points
IN_CHANNEL = 4        # cfg.model.in_channel
WIDTH = 16            # cfg.model.width
DEPTH = 2             # cfg.model.depth  (number of MSG scales per SA module)
LAYERS = 2            # cfg.model.sa_config.local_aggregation.layers
NPOINTS = [32, 16, 8, 4]
RADII = [[0.2, 0.4], [0.4, 0.8], [0.8, 1.2], [1.2, 1.6]]
NSAMPLES = [[8, 8], [8, 8], [8, 8], [8, 8]]
NUM_CLASSES = 10

# block-diagonal scale packing requires equal neighbor counts across a level's scales
assert all(len(set(ns)) == 1 for ns in NSAMPLES)


# --------------------------------- the fused kernel ---------------------------------
def _assanet_fused_kernel(*refs, level_shapes, n_head_layers):
    """Whole-network feature path for one batch element (grid step).

    refs order (inputs, then the single output):
      feats_in (1,N,Cin), conv1_w, conv1_b,
      per level: [idx_s (1,P*K,1), gxyz_s (1,P*K,3)] * n_scales, [(w, b)] * n_layers,
      head: (w, b) * n_head_layers,
      out_ref (1,1,num_classes)

    level_shapes: tuple of (P, K, n_scales, n_layers) per level (la1 first, then SA).
    Weights are bf16 (BN scale pre-folded), biases f32.  All matmuls run bf16 on the
    MXU with f32 accumulation; elementwise math stays f32.
    """
    out_ref = refs[-1]
    it = iter(refs[:-1])

    def take():
        return next(it)

    # conv1: 1x1 Conv1d + folded BN + ReLU
    x_in = take()[0].astype(jnp.bfloat16)                              # (N, Cin)
    w = take()
    bias = take()
    feats = jnp.maximum(
        jnp.dot(x_in, w[...], preferred_element_type=jnp.float32) + bias[...], 0.0)

    # la1 + SA levels: in-kernel one-hot gather, packed shared-MLP stack, neighbor max
    for (p, k, n_scales, _n_layers) in level_shapes:
        s_pts = feats.shape[0]                       # support point count (prev level)
        feats_bf = feats.astype(jnp.bfloat16)
        pieces = []
        for _ in range(n_scales):
            idx_ref = take()
            gxyz_ref = take()
            idx = idx_ref[0]                                            # (P*K, 1) int32
            iota = lax.broadcasted_iota(jnp.int32, (p * k, s_pts), 1)
            onehot = jnp.where(idx == iota, 1.0, 0.0).astype(jnp.bfloat16)
            # gather = one-hot matmul on the MXU (grouped feats never touch HBM)
            gfeat = jnp.dot(onehot, feats_bf, preferred_element_type=jnp.float32)
            pieces.append(gxyz_ref[0])                                  # (P*K, 3) rel xyz
            pieces.append(gfeat)                                        # (P*K, C_prev)
        xg = jnp.concatenate(pieces, axis=-1)        # (P*K, n_scales*(3+C_prev)) packed
        for _ in range(_n_layers):
            w = take()
            bias = take()
            # block-diagonal weight => both MSG scales in one matmul; BN folded into w
            xg = jnp.maximum(
                jnp.dot(xg.astype(jnp.bfloat16), w[...],
                        preferred_element_type=jnp.float32) + bias[...], 0.0)
        # neighbor max over K; packed channels == concat across scales for free
        feats = jnp.max(xg.reshape(p, k, xg.shape[-1]), axis=1)         # (P, C_out)

    # classifier: global max over remaining points + MLP head (no ReLU on logits)
    xh = jnp.max(feats, axis=0, keepdims=True)                          # (1, C_last)
    for l in range(n_head_layers):
        w = take()
        bias = take()
        xh = jnp.dot(xh.astype(jnp.bfloat16), w[...],
                     preferred_element_type=jnp.float32) + bias[...]
        if l < n_head_layers - 1:
            xh = jnp.maximum(xh, 0.0)

    out_ref[0] = xh.astype(out_ref.dtype)


# ----------------------------- point-cloud glue (plain XLA) -------------------------
def farthest_point_sample(xyz, npoint):
    """xyz: (B, N, 3) -> indices (B, npoint). Deterministic start at index 0."""
    def one(x):
        n = x.shape[0]

        def body(i, carry):
            idxs, dist = carry
            cur = x[idxs[i - 1]]
            d = jnp.sum((x - cur) ** 2, axis=-1)
            dist = jnp.minimum(dist, d)
            nxt = jnp.argmax(dist).astype(jnp.int32)
            return idxs.at[i].set(nxt), dist

        idxs0 = jnp.zeros((npoint,), jnp.int32)
        dist0 = jnp.full((n,), 1e10, jnp.float32)
        idxs, _ = lax.fori_loop(1, npoint, body, (idxs0, dist0))
        return idxs

    return jax.vmap(one)(xyz)


def pairwise_sqdist(new_xyz, xyz):
    """(B, S, 3) x (B, N, 3) -> (B, S, N) squared distances (shared across MSG scales)."""
    return jnp.sum((new_xyz[:, :, None, :] - xyz[:, None, :, :]) ** 2, axis=-1)


def ball_query_from_d2(d2, radius, nsample):
    """PointNet++ ball query: first `nsample` in-ball points by index, padded with the
    first in-ball point (queries are drawn from the support set, so one always exists)."""
    n = d2.shape[-1]
    in_ball = d2 <= radius * radius
    arange = jnp.arange(n, dtype=jnp.int32)
    keys = jnp.where(in_ball, arange, arange + n)       # out-of-ball sorted after in-ball
    neg_topk, _ = lax.top_k(-keys, nsample)             # nsample smallest keys, ascending
    sel = (-neg_topk).astype(jnp.int32)
    valid = sel < n
    idx = jnp.where(valid, sel, sel - n)
    return jnp.where(valid, idx, idx[..., :1])


def _gather_points(x, idx):
    # x: (B, N, C), idx: (B, S, K) -> (B, S, K, C)
    return jax.vmap(lambda xb, ib: xb[ib])(x, idx)


def compute_geometry(xyz):
    """All FPS / ball-query / relative-xyz work (depends only on xyz), done once in XLA.

    Returns a list (one entry per level: la1 then 4 SA levels) of per-scale
    (idx (B, P*K, 1) int32, gxyz (B, P*K, 3) f32) pairs.
    """
    b = xyz.shape[0]
    levels = []

    # la1: query == support == xyz, single scale
    d2 = pairwise_sqdist(xyz, xyz)
    idx = ball_query_from_d2(d2, RADII[0][0], NSAMPLES[0][0])
    gxyz = _gather_points(xyz, idx) - xyz[:, :, None, :]
    levels.append([(idx.reshape(b, -1, 1), gxyz.reshape(b, -1, 3))])

    cur_xyz = xyz
    for k in range(len(NPOINTS)):
        fps_idx = farthest_point_sample(cur_xyz, NPOINTS[k])
        new_xyz = jax.vmap(lambda p, i: p[i])(cur_xyz, fps_idx)
        d2 = pairwise_sqdist(new_xyz, cur_xyz)                 # shared across scales
        scales = []
        for s in range(DEPTH):
            idx = ball_query_from_d2(d2, RADII[k][s], NSAMPLES[k][s])
            gxyz = _gather_points(cur_xyz, idx) - new_xyz[:, :, None, :]
            scales.append((idx.reshape(b, -1, 1), gxyz.reshape(b, -1, 3)))
        levels.append(scales)
        cur_xyz = new_xyz
    return levels


# ---------------------------------- parameters --------------------------------------
def _init_layer(key, cin, cout, unit_scale=False):
    kw, ks, kb = jax.random.split(key, 3)
    w = jax.random.normal(kw, (cin, cout), jnp.float32) / jnp.sqrt(float(cin))
    if unit_scale:
        scale = jnp.ones((1, cout), jnp.float32)
    else:
        scale = 1.0 + 0.1 * jax.random.normal(ks, (1, cout), jnp.float32)  # folded gamma/std
    bias = 0.1 * jax.random.normal(kb, (1, cout), jnp.float32)             # folded beta
    return (w, scale, bias)


def init_params(key):
    keys = iter(jax.random.split(key, 64))
    params = {}
    # conv1: Conv1d(in_channel, width, k=1, bias=False) + BN + ReLU
    params["conv1"] = _init_layer(next(keys), IN_CHANNEL, WIDTH)

    # la1: conv channels [width]*4 -> 3 shared-conv layers, first consumes rel-xyz(3)+feat
    la1, cin = [], 3 + WIDTH
    for _ in range(3):
        la1.append(_init_layer(next(keys), cin, WIDTH))
        cin = WIDTH
    params["la1"] = la1

    # SA modules (MSG): channel_list[k][s] = [width] + mlps[k][s], +3 for use_xyz
    sa, width = [], WIDTH
    for k in range(len(NPOINTS)):
        scale_c = WIDTH * (DEPTH ** k)
        scales = []
        for _ in range(DEPTH):
            layers, cin = [], width + 3
            for _ in range(LAYERS):
                layers.append(_init_layer(next(keys), cin, scale_c))
                cin = scale_c
            scales.append(layers)
        sa.append(scales)
        width = scale_c * DEPTH   # channel concat across scales

    params["sa"] = sa

    # classifier head on 256 = mlps[-1][:, -1].sum(); last layer is a plain linear
    head, cin = [], width
    for cout in (128, 64):
        head.append(_init_layer(next(keys), cin, cout))
        cin = cout
    head.append(_init_layer(next(keys), cin, NUM_CLASSES, unit_scale=True))
    params["head"] = head
    return params


def prepare_kernel_params(params):
    """One-time prep (outside the kernel): fold BN scale into the weights (w' = w*scale),
    cast weights to bf16 for the MXU, and pack each SA level's scales into block-diagonal
    weights + concatenated biases so both scales run as one matmul per layer."""
    def fold(layer):
        w, sc, b = layer
        return ((w * sc).astype(jnp.bfloat16), b.astype(jnp.float32))

    def pack_scales(scales):
        n_layers = len(scales[0])
        packed = []
        for l in range(n_layers):
            ws, bs = [], []
            for scale_layers in scales:
                w, sc, b = scale_layers[l]
                ws.append(w * sc)
                bs.append(b)
            cin_tot = sum(w.shape[0] for w in ws)
            cout_tot = sum(w.shape[1] for w in ws)
            wbd = jnp.zeros((cin_tot, cout_tot), jnp.float32)
            r = c = 0
            for w in ws:
                wbd = wbd.at[r:r + w.shape[0], c:c + w.shape[1]].set(w)
                r += w.shape[0]
                c += w.shape[1]
            packed.append((wbd.astype(jnp.bfloat16),
                           jnp.concatenate(bs, axis=-1).astype(jnp.float32)))
        return packed

    return {
        "conv1": fold(params["conv1"]),
        "levels": [[fold(l) for l in params["la1"]]]              # la1 = level 0 (1 scale)
                  + [pack_scales(scales) for scales in params["sa"]],
        "head": [fold(l) for l in params["head"]],
    }


# ----------------------------------- forward ----------------------------------------
def assanet_cls_forward(kparams, xyz, features):
    b, n, _ = xyz.shape
    feats_in = jnp.transpose(features, (0, 2, 1)).astype(jnp.float32)   # (B, N, Cin)

    # geometry path (xyz only) precomputed in XLA; feature path is one Pallas kernel
    geo_levels = compute_geometry(xyz)

    inputs, in_specs = [], []

    def add_bcast(arr):  # weights / biases: same block every grid step
        inputs.append(arr)
        in_specs.append(pl.BlockSpec(arr.shape, lambda i, _nd=arr.ndim: (0,) * _nd))

    def add_batched(arr):  # per-batch data: block (1, ...) indexed by grid step
        inputs.append(arr)
        in_specs.append(pl.BlockSpec((1,) + arr.shape[1:],
                                     lambda i, _nd=arr.ndim - 1: (i,) + (0,) * _nd))

    add_batched(feats_in)
    add_bcast(kparams["conv1"][0])
    add_bcast(kparams["conv1"][1])

    # static per-level shapes: (P, K, n_scales, n_layers)
    level_shapes = [(n, NSAMPLES[0][0], 1, len(kparams["levels"][0]))]
    for k in range(len(NPOINTS)):
        level_shapes.append(
            (NPOINTS[k], NSAMPLES[k][0], DEPTH, len(kparams["levels"][k + 1])))
    level_shapes = tuple(level_shapes)

    for lvl_geo, lvl_params in zip(geo_levels, kparams["levels"]):
        for (idx, gxyz) in lvl_geo:
            add_batched(idx)
            add_batched(gxyz)
        for (w, bias) in lvl_params:
            add_bcast(w)
            add_bcast(bias)
    for (w, bias) in kparams["head"]:
        add_bcast(w)
        add_bcast(bias)

    num_classes = kparams["head"][-1][0].shape[1]
    kernel = functools.partial(_assanet_fused_kernel,
                               level_shapes=level_shapes,
                               n_head_layers=len(kparams["head"]))

    out = pl.pallas_call(
        kernel,
        grid=(b,),                                   # batch across TCs on v7x
        in_specs=in_specs,
        out_specs=pl.BlockSpec((1, 1, num_classes), lambda i: (i, 0, 0)),
        out_shape=jax.ShapeDtypeStruct((b, 1, num_classes), jnp.float32),
        compiler_params=pltpu.CompilerParams(dimension_semantics=("parallel",)),
    )(*inputs)
    return out.reshape(b, num_classes)


# ------------------------------------- main ------------------------------------------
if __name__ == "__main__":
    key = jax.random.PRNGKey(0)
    kp, kx, kf = jax.random.split(key, 3)
    params = init_params(kp)
    kparams = prepare_kernel_params(params)    # fold BN + block-diag pack + bf16, once
    xyz = jax.random.uniform(kx, (B, N, 3), jnp.float32, minval=-1.0, maxval=1.0)
    features = jax.random.normal(kf, (B, IN_CHANNEL, N), jnp.float32)  # NCW like Conv1d

    logits = jax.jit(assanet_cls_forward)(kparams, xyz, features)
    jax.block_until_ready(logits)
    assert logits.shape == (B, NUM_CLASSES), logits.shape
    assert bool(jnp.all(jnp.isfinite(logits)))
    print("KERNEL_OK")
</pallas_src>

<mosaic_0001>
module attributes {stable_mosaic.version = 11 : i64} {
  func.func @_assanet_fused_kernel(%arg0: i32, %arg1: memref<1x64x4xf32, #tpu.memory_space<vmem>>, %arg2: memref<4x16xbf16, #tpu.memory_space<vmem>>, %arg3: memref<1x16xf32, #tpu.memory_space<vmem>>, %arg4: memref<1x512x1xi32, #tpu.memory_space<vmem>>, %arg5: memref<1x512x3xf32, #tpu.memory_space<vmem>>, %arg6: memref<19x16xbf16, #tpu.memory_space<vmem>>, %arg7: memref<1x16xf32, #tpu.memory_space<vmem>>, %arg8: memref<16x16xbf16, #tpu.memory_space<vmem>>, %arg9: memref<1x16xf32, #tpu.memory_space<vmem>>, %arg10: memref<16x16xbf16, #tpu.memory_space<vmem>>, %arg11: memref<1x16xf32, #tpu.memory_space<vmem>>, %arg12: memref<1x256x1xi32, #tpu.memory_space<vmem>>, %arg13: memref<1x256x3xf32, #tpu.memory_space<vmem>>, %arg14: memref<1x256x1xi32, #tpu.memory_space<vmem>>, %arg15: memref<1x256x3xf32, #tpu.memory_space<vmem>>, %arg16: memref<38x32xbf16, #tpu.memory_space<vmem>>, %arg17: memref<1x32xf32, #tpu.memory_space<vmem>>, %arg18: memref<32x32xbf16, #tpu.memory_space<vmem>>, %arg19: memref<1x32xf32, #tpu.memory_space<vmem>>, %arg20: memref<1x128x1xi32, #tpu.memory_space<vmem>>, %arg21: memref<1x128x3xf32, #tpu.memory_space<vmem>>, %arg22: memref<1x128x1xi32, #tpu.memory_space<vmem>>, %arg23: memref<1x128x3xf32, #tpu.memory_space<vmem>>, %arg24: memref<70x64xbf16, #tpu.memory_space<vmem>>, %arg25: memref<1x64xf32, #tpu.memory_space<vmem>>, %arg26: memref<64x64xbf16, #tpu.memory_space<vmem>>, %arg27: memref<1x64xf32, #tpu.memory_space<vmem>>, %arg28: memref<1x64x1xi32, #tpu.memory_space<vmem>>, %arg29: memref<1x64x3xf32, #tpu.memory_space<vmem>>, %arg30: memref<1x64x1xi32, #tpu.memory_space<vmem>>, %arg31: memref<1x64x3xf32, #tpu.memory_space<vmem>>, %arg32: memref<134x128xbf16, #tpu.memory_space<vmem>>, %arg33: memref<1x128xf32, #tpu.memory_space<vmem>>, %arg34: memref<128x128xbf16, #tpu.memory_space<vmem>>, %arg35: memref<1x128xf32, #tpu.memory_space<vmem>>, %arg36: memref<1x32x1xi32, #tpu.memory_space<vmem>>, %arg37: memref<1x32x3xf32, #tpu.memory_space<vmem>>, %arg38: memref<1x32x1xi32, #tpu.memory_space<vmem>>, %arg39: memref<1x32x3xf32, #tpu.memory_space<vmem>>, %arg40: memref<262x256xbf16, #tpu.memory_space<vmem>>, %arg41: memref<1x256xf32, #tpu.memory_space<vmem>>, %arg42: memref<256x256xbf16, #tpu.memory_space<vmem>>, %arg43: memref<1x256xf32, #tpu.memory_space<vmem>>, %arg44: memref<256x128xbf16, #tpu.memory_space<vmem>>, %arg45: memref<1x128xf32, #tpu.memory_space<vmem>>, %arg46: memref<128x64xbf16, #tpu.memory_space<vmem>>, %arg47: memref<1x64xf32, #tpu.memory_space<vmem>>, %arg48: memref<64x10xbf16, #tpu.memory_space<vmem>>, %arg49: memref<1x10xf32, #tpu.memory_space<vmem>>, %arg50: memref<1x1x10xf32, #tpu.memory_space<vmem>>) attributes {dimension_semantics = [#tpu.dimension_semantics<parallel>], iteration_bounds = array<i64: 2>, scalar_prefetch = 0 : i64, scratch_operands = 0 : i64, tpu.core_type = #tpu.core_type<tc>, window_params = [{transform_indices = @transform_0, window_bounds = array<i64: 1, 64, 4>}, {pipeline_mode = #tpu.pipeline_mode<synchronous>, transform_indices = @transform_1, window_bounds = array<i64: 4, 16>}, {pipeline_mode = #tpu.pipeline_mode<synchronous>, transform_indices = @transform_2, window_bounds = array<i64: 1, 16>}, {transform_indices = @transform_3, window_bounds = array<i64: 1, 512, 1>}, {transform_indices = @transform_4, window_bounds = array<i64: 1, 512, 3>}, {pipeline_mode = #tpu.pipeline_mode<synchronous>, transform_indices = @transform_5, window_bounds = array<i64: 19, 16>}, {pipeline_mode = #tpu.pipeline_mode<synchronous>, transform_indices = @transform_6, window_bounds = array<i64: 1, 16>}, {pipeline_mode = #tpu.pipeline_mode<synchronous>, transform_indices = @transform_7, window_bounds = array<i64: 16, 16>}, {pipeline_mode = #tpu.pipeline_mode<synchronous>, transform_indices = @transform_8, window_bounds = array<i64: 1, 16>}, {pipeline_mode = #tpu.pipeline_mode<synchronous>, transform_indices = @transform_9, window_bounds = array<i64: 16, 16>}, {pipeline_mode = #tpu.pipeline_mode<synchronous>, transform_indices = @transform_10, window_bounds = array<i64: 1, 16>}, {transform_indices = @transform_11, window_bounds = array<i64: 1, 256, 1>}, {transform_indices = @transform_12, window_bounds = array<i64: 1, 256, 3>}, {transform_indices = @transform_13, window_bounds = array<i64: 1, 256, 1>}, {transform_indices = @transform_14, window_bounds = array<i64: 1, 256, 3>}, {pipeline_mode = #tpu.pipeline_mode<synchronous>, transform_indices = @transform_15, window_bounds = array<i64: 38, 32>}, {pipeline_mode = #tpu.pipeline_mode<synchronous>, transform_indices = @transform_16, window_bounds = array<i64: 1, 32>}, {pipeline_mode = #tpu.pipeline_mode<synchronous>, transform_indices = @transform_17, window_bounds = array<i64: 32, 32>}, {pipeline_mode = #tpu.pipeline_mode<synchronous>, transform_indices = @transform_18, window_bounds = array<i64: 1, 32>}, {transform_indices = @transform_19, window_bounds = array<i64: 1, 128, 1>}, {transform_indices = @transform_20, window_bounds = array<i64: 1, 128, 3>}, {transform_indices = @transform_21, window_bounds = array<i64: 1, 128, 1>}, {transform_indices = @transform_22, window_bounds = array<i64: 1, 128, 3>}, {pipeline_mode = #tpu.pipeline_mode<synchronous>, transform_indices = @transform_23, window_bounds = array<i64: 70, 64>}, {pipeline_mode = #tpu.pipeline_mode<synchronous>, transform_indices = @transform_24, window_bounds = array<i64: 1, 64>}, {pipeline_mode = #tpu.pipeline_mode<synchronous>, transform_indices = @transform_25, window_bounds = array<i64: 64, 64>}, {pipeline_mode = #tpu.pipeline_mode<synchronous>, transform_indices = @transform_26, window_bounds = array<i64: 1, 64>}, {transform_indices = @transform_27, window_bounds = array<i64: 1, 64, 1>}, {transform_indices = @transform_28, window_bounds = array<i64: 1, 64, 3>}, {transform_indices = @transform_29, window_bounds = array<i64: 1, 64, 1>}, {transform_indices = @transform_30, window_bounds = array<i64: 1, 64, 3>}, {pipeline_mode = #tpu.pipeline_mode<synchronous>, transform_indices = @transform_31, window_bounds = array<i64: 134, 128>}, {pipeline_mode = #tpu.pipeline_mode<synchronous>, transform_indices = @transform_32, window_bounds = array<i64: 1, 128>}, {pipeline_mode = #tpu.pipeline_mode<synchronous>, transform_indices = @transform_33, window_bounds = array<i64: 128, 128>}, {pipeline_mode = #tpu.pipeline_mode<synchronous>, transform_indices = @transform_34, window_bounds = array<i64: 1, 128>}, {transform_indices = @transform_35, window_bounds = array<i64: 1, 32, 1>}, {transform_indices = @transform_36, window_bounds = array<i64: 1, 32, 3>}, {transform_indices = @transform_37, window_bounds = array<i64: 1, 32, 1>}, {transform_indices = @transform_38, window_bounds = array<i64: 1, 32, 3>}, {pipeline_mode = #tpu.pipeline_mode<synchronous>, transform_indices = @transform_39, window_bounds = array<i64: 262, 256>}, {pipeline_mode = #tpu.pipeline_mode<synchronous>, transform_indices = @transform_40, window_bounds = array<i64: 1, 256>}, {pipeline_mode = #tpu.pipeline_mode<synchronous>, transform_indices = @transform_41, window_bounds = array<i64: 256, 256>}, {pipeline_mode = #tpu.pipeline_mode<synchronous>, transform_indices = @transform_42, window_bounds = array<i64: 1, 256>}, {pipeline_mode = #tpu.pipeline_mode<synchronous>, transform_indices = @transform_43, window_bounds = array<i64: 256, 128>}, {pipeline_mode = #tpu.pipeline_mode<synchronous>, transform_indices = @transform_44, window_bounds = array<i64: 1, 128>}, {pipeline_mode = #tpu.pipeline_mode<synchronous>, transform_indices = @transform_45, window_bounds = array<i64: 128, 64>}, {pipeline_mode = #tpu.pipeline_mode<synchronous>, transform_indices = @transform_46, window_bounds = array<i64: 1, 64>}, {pipeline_mode = #tpu.pipeline_mode<synchronous>, transform_indices = @transform_47, window_bounds = array<i64: 64, 10>}, {pipeline_mode = #tpu.pipeline_mode<synchronous>, transform_indices = @transform_48, window_bounds = array<i64: 1, 10>}, {transform_indices = @transform_49, window_bounds = array<i64: 1, 1, 10>}]} {
    %c0 = arith.constant 0 : index
    %c0_0 = arith.constant 0 : index
    %c0_1 = arith.constant 0 : index
    %0 = vector.load %arg1[%c0, %c0_0, %c0_1] : memref<1x64x4xf32, #tpu.memory_space<vmem>>, vector<1x64x4xf32>
    %1 = vector.shape_cast %0 : vector<1x64x4xf32> to vector<64x4xf32>
    %2 = arith.truncf %1 : vector<64x4xf32> to vector<64x4xbf16>
    %c0_2 = arith.constant 0 : index
    %c0_3 = arith.constant 0 : index
    %3 = vector.load %arg2[%c0_2, %c0_3] : memref<4x16xbf16, #tpu.memory_space<vmem>>, vector<4x16xbf16>
    %cst = arith.constant dense<0.000000e+00> : vector<64x16xf32>
    %4 = tpu.matmul %2, %3, %cst {dimension_numbers = #tpu.dot_dimension_numbers<[1], [0], [0], [1], [0, 0, 1, 1], [], []>} : vector<64x4xbf16>, vector<4x16xbf16>, vector<64x16xf32> -> vector<64x16xf32>
    %c0_4 = arith.constant 0 : index
    %c0_5 = arith.constant 0 : index
    %5 = vector.load %arg3[%c0_4, %c0_5] : memref<1x16xf32, #tpu.memory_space<vmem>>, vector<1x16xf32>
    %6 = vector.broadcast %5 : vector<1x16xf32> to vector<64x16xf32>
    %7 = arith.addf %4, %6 : vector<64x16xf32>
    %cst_6 = arith.constant 0.000000e+00 : f32
    %8 = vector.broadcast %cst_6 : f32 to vector<64x16xf32>
    %9 = arith.maximumf %7, %8 : vector<64x16xf32>
    %10 = arith.truncf %9 : vector<64x16xf32> to vector<64x16xbf16>
    %c0_7 = arith.constant 0 : index
    %c0_8 = arith.constant 0 : index
    %c0_9 = arith.constant 0 : index
    %11 = vector.load %arg4[%c0_7, %c0_8, %c0_9] : memref<1x512x1xi32, #tpu.memory_space<vmem>>, vector<1x512x1xi32>
    %12 = vector.shape_cast %11 : vector<1x512x1xi32> to vector<512x1xi32>
    %13 = tpu.iota {dimensions = array<i32: 1>} : vector<512x64xi32>
    %14 = vector.broadcast %12 : vector<512x1xi32> to vector<512x64xi32>
    %15 = arith.cmpi eq, %14, %13 : vector<512x64xi32>
    %cst_10 = arith.constant 1.000000e+00 : f32
    %cst_11 = arith.constant 0.000000e+00 : f32
    %16 = vector.broadcast %cst_10 : f32 to vector<512x64xf32>
    %17 = vector.broadcast %cst_11 : f32 to vector<512x64xf32>
    %18 = arith.select %15, %16, %17 : vector<512x64xi1>, vector<512x64xf32>
    %19 = arith.truncf %18 : vector<512x64xf32> to vector<512x64xbf16>
    %cst_12 = arith.constant dense<0.000000e+00> : vector<512x16xf32>
    %20 = tpu.matmul %19, %10, %cst_12 {dimension_numbers = #tpu.dot_dimension_numbers<[1], [0], [0], [1], [0, 0, 1, 1], [], []>} : vector<512x64xbf16>, vector<64x16xbf16>, vector<512x16xf32> -> vector<512x16xf32>
    %c0_13 = arith.constant 0 : index
    %c0_14 = arith.constant 0 : index
    %c0_15 = arith.constant 0 : index
    %21 = vector.load %arg5[%c0_13, %c0_14, %c0_15] : memref<1x512x3xf32, #tpu.memory_space<vmem>>, vector<1x512x3xf32>
    %22 = vector.shape_cast %21 : vector<1x512x3xf32> to vector<512x3xf32>
    %23 = tpu.concatenate %22, %20 in 1 : vector<512x3xf32>, vector<512x16xf32> -> vector<512x19xf32>
    %24 = arith.truncf %23 : vector<512x19xf32> to vector<512x19xbf16>
    %c0_16 = arith.constant 0 : index
    %c0_17 = arith.constant 0 : index
    %25 = vector.load %arg6[%c0_16, %c0_17] : memref<19x16xbf16, #tpu.memory_space<vmem>>, vector<19x16xbf16>
    %cst_18 = arith.constant dense<0.000000e+00> : vector<512x16xf32>
    %26 = tpu.matmul %24, %25, %cst_18 {dimension_numbers = #tpu.dot_dimension_numbers<[1], [0], [0], [1], [0, 0, 1, 1], [], []>} : vector<512x19xbf16>, vector<19x16xbf16>, vector<512x16xf32> -> vector<512x16xf32>
    %c0_19 = arith.constant 0 : index
    %c0_20 = arith.constant 0 : index
    %27 = vector.load %arg7[%c0_19, %c0_20] : memref<1x16xf32, #tpu.memory_space<vmem>>, vector<1x16xf32>
    %28 = vector.broadcast %27 : vector<1x16xf32> to vector<512x16xf32>
    %29 = arith.addf %26, %28 : vector<512x16xf32>
    %cst_21 = arith.constant 0.000000e+00 : f32
    %30 = vector.broadcast %cst_21 : f32 to vector<512x16xf32>
    %31 = arith.maximumf %29, %30 : vector<512x16xf32>
    %32 = arith.truncf %31 : vector<512x16xf32> to vector<512x16xbf16>
    %c0_22 = arith.constant 0 : index
    %c0_23 = arith.constant 0 : index
    %33 = vector.load %arg8[%c0_22, %c0_23] : memref<16x16xbf16, #tpu.memory_space<vmem>>, vector<16x16xbf16>
    %cst_24 = arith.constant dense<0.000000e+00> : vector<512x16xf32>
    %34 = tpu.matmul %32, %33, %cst_24 {dimension_numbers = #tpu.dot_dimension_numbers<[1], [0], [0], [1], [0, 0, 1, 1], [], []>} : vector<512x16xbf16>, vector<16x16xbf16>, vector<512x16xf32> -> vector<512x16xf32>
    %c0_25 = arith.constant 0 : index
    %c0_26 = arith.constant 0 : index
    %35 = vector.load %arg9[%c0_25, %c0_26] : memref<1x16xf32, #tpu.memory_space<vmem>>, vector<1x16xf32>
    %36 = vector.broadcast %35 : vector<1x16xf32> to vector<512x16xf32>
    %37 = arith.addf %34, %36 : vector<512x16xf32>
    %cst_27 = arith.constant 0.000000e+00 : f32
    %38 = vector.broadcast %cst_27 : f32 to vector<512x16xf32>
    %39 = arith.maximumf %37, %38 : vector<512x16xf32>
    %40 = arith.truncf %39 : vector<512x16xf32> to vector<512x16xbf16>
    %c0_28 = arith.constant 0 : index
    %c0_29 = arith.constant 0 : index
    %41 = vector.load %arg10[%c0_28, %c0_29] : memref<16x16xbf16, #tpu.memory_space<vmem>>, vector<16x16xbf16>
    %cst_30 = arith.constant dense<0.000000e+00> : vector<512x16xf32>
    %42 = tpu.matmul %40, %41, %cst_30 {dimension_numbers = #tpu.dot_dimension_numbers<[1], [0], [0], [1], [0, 0, 1, 1], [], []>} : vector<512x16xbf16>, vector<16x16xbf16>, vector<512x16xf32> -> vector<512x16xf32>
    %c0_31 = arith.constant 0 : index
    %c0_32 = arith.constant 0 : index
    %43 = vector.load %arg11[%c0_31, %c0_32] : memref<1x16xf32, #tpu.memory_space<vmem>>, vector<1x16xf32>
    %44 = vector.broadcast %43 : vector<1x16xf32> to vector<512x16xf32>
    %45 = arith.addf %42, %44 : vector<512x16xf32>
    %cst_33 = arith.constant 0.000000e+00 : f32
    %46 = vector.broadcast %cst_33 : f32 to vector<512x16xf32>
    %47 = arith.maximumf %45, %46 : vector<512x16xf32>
    %48 = vector.shape_cast %47 : vector<512x16xf32> to vector<64x8x16xf32>
    %cst_34 = arith.constant dense<0xFF800000> : vector<64x16xf32>
    %49 = vector.multi_reduction <maximumf>, %48, %cst_34 [1] : vector<64x8x16xf32> to vector<64x16xf32>
    %50 = arith.truncf %49 : vector<64x16xf32> to vector<64x16xbf16>
    %c0_35 = arith.constant 0 : index
    %c0_36 = arith.constant 0 : index
    %c0_37 = arith.constant 0 : index
    %51 = vector.load %arg12[%c0_35, %c0_36, %c0_37] : memref<1x256x1xi32, #tpu.memory_space<vmem>>, vector<1x256x1xi32>
    %52 = vector.shape_cast %51 : vector<1x256x1xi32> to vector<256x1xi32>
    %53 = tpu.iota {dimensions = array<i32: 1>} : vector<256x64xi32>
    %54 = vector.broadcast %52 : vector<256x1xi32> to vector<256x64xi32>
    %55 = arith.cmpi eq, %54, %53 : vector<256x64xi32>
    %cst_38 = arith.constant 1.000000e+00 : f32
    %cst_39 = arith.constant 0.000000e+00 : f32
    %56 = vector.broadcast %cst_38 : f32 to vector<256x64xf32>
    %57 = vector.broadcast %cst_39 : f32 to vector<256x64xf32>
    %58 = arith.select %55, %56, %57 : vector<256x64xi1>, vector<256x64xf32>
    %59 = arith.truncf %58 : vector<256x64xf32> to vector<256x64xbf16>
    %cst_40 = arith.constant dense<0.000000e+00> : vector<256x16xf32>
    %60 = tpu.matmul %59, %50, %cst_40 {dimension_numbers = #tpu.dot_dimension_numbers<[1], [0], [0], [1], [0, 0, 1, 1], [], []>} : vector<256x64xbf16>, vector<64x16xbf16>, vector<256x16xf32> -> vector<256x16xf32>
    %c0_41 = arith.constant 0 : index
    %c0_42 = arith.constant 0 : index
    %c0_43 = arith.constant 0 : index
    %61 = vector.load %arg13[%c0_41, %c0_42, %c0_43] : memref<1x256x3xf32, #tpu.memory_space<vmem>>, vector<1x256x3xf32>
    %62 = vector.shape_cast %61 : vector<1x256x3xf32> to vector<256x3xf32>
    %c0_44 = arith.constant 0 : index
    %c0_45 = arith.constant 0 : index
    %c0_46 = arith.constant 0 : index
    %63 = vector.load %arg14[%c0_44, %c0_45, %c0_46] : memref<1x256x1xi32, #tpu.memory_space<vmem>>, vector<1x256x1xi32>
    %64 = vector.shape_cast %63 : vector<1x256x1xi32> to vector<256x1xi32>
    %65 = tpu.iota {dimensions = array<i32: 1>} : vector<256x64xi32>
    %66 = vector.broadcast %64 : vector<256x1xi32> to vector<256x64xi32>
    %67 = arith.cmpi eq, %66, %65 : vector<256x64xi32>
    %cst_47 = arith.constant 1.000000e+00 : f32
    %cst_48 = arith.constant 0.000000e+00 : f32
    %68 = vector.broadcast %cst_47 : f32 to vector<256x64xf32>
    %69 = vector.broadcast %cst_48 : f32 to vector<256x64xf32>
    %70 = arith.select %67, %68, %69 : vector<256x64xi1>, vector<256x64xf32>
    %71 = arith.truncf %70 : vector<256x64xf32> to vector<256x64xbf16>
    %cst_49 = arith.constant dense<0.000000e+00> : vector<256x16xf32>
    %72 = tpu.matmul %71, %50, %cst_49 {dimension_numbers = #tpu.dot_dimension_numbers<[1], [0], [0], [1], [0, 0, 1, 1], [], []>} : vector<256x64xbf16>, vector<64x16xbf16>, vector<256x16xf32> -> vector<256x16xf32>
    %c0_50 = arith.constant 0 : index
    %c0_51 = arith.constant 0 : index
    %c0_52 = arith.constant 0 : index
    %73 = vector.load %arg15[%c0_50, %c0_51, %c0_52] : memref<1x256x3xf32, #tpu.memory_space<vmem>>, vector<1x256x3xf32>
    %74 = vector.shape_cast %73 : vector<1x256x3xf32> to vector<256x3xf32>
    %75 = tpu.concatenate %62, %60, %74, %72 in 1 : vector<256x3xf32>, vector<256x16xf32>, vector<256x3xf32>, vector<256x16xf32> -> vector<256x38xf32>
    %76 = arith.truncf %75 : vector<256x38xf32> to vector<256x38xbf16>
    %c0_53 = arith.constant 0 : index
    %c0_54 = arith.constant 0 : index
    %77 = vector.load %arg16[%c0_53, %c0_54] : memref<38x32xbf16, #tpu.memory_space<vmem>>, vector<38x32xbf16>
    %cst_55 = arith.constant dense<0.000000e+00> : vector<256x32xf32>
    %78 = tpu.matmul %76, %77, %cst_55 {dimension_numbers = #tpu.dot_dimension_numbers<[1], [0], [0], [1], [0, 0, 1, 1], [], []>} : vector<256x38xbf16>, vector<38x32xbf16>, vector<256x32xf32> -> vector<256x32xf32>
    %c0_56 = arith.constant 0 : index
    %c0_57 = arith.constant 0 : index
    %79 = vector.load %arg17[%c0_56, %c0_57] : memref<1x32xf32, #tpu.memory_space<vmem>>, vector<1x32xf32>
    %80 = vector.broadcast %79 : vector<1x32xf32> to vector<256x32xf32>
    %81 = arith.addf %78, %80 : vector<256x32xf32>
    %cst_58 = arith.constant 0.000000e+00 : f32
    %82 = vector.broadcast %cst_58 : f32 to vector<256x32xf32>
    %83 = arith.maximumf %81, %82 : vector<256x32xf32>
    %84 = arith.truncf %83 : vector<256x32xf32> to vector<256x32xbf16>
    %c0_59 = arith.constant 0 : index
    %c0_60 = arith.constant 0 : index
    %85 = vector.load %arg18[%c0_59, %c0_60] : memref<32x32xbf16, #tpu.memory_space<vmem>>, vector<32x32xbf16>
    %cst_61 = arith.constant dense<0.000000e+00> : vector<256x32xf32>
    %86 = tpu.matmul %84, %85, %cst_61 {dimension_numbers = #tpu.dot_dimension_numbers<[1], [0], [0], [1], [0, 0, 1, 1], [], []>} : vector<256x32xbf16>, vector<32x32xbf16>, vector<256x32xf32> -> vector<256x32xf32>
    %c0_62 = arith.constant 0 : index
    %c0_63 = arith.constant 0 : index
    %87 = vector.load %arg19[%c0_62, %c0_63] : memref<1x32xf32, #tpu.memory_space<vmem>>, vector<1x32xf32>
    %88 = vector.broadcast %87 : vector<1x32xf32> to vector<256x32xf32>
    %89 = arith.addf %86, %88 : vector<256x32xf32>
    %cst_64 = arith.constant 0.000000e+00 : f32
    %90 = vector.broadcast %cst_64 : f32 to vector<256x32xf32>
    %91 = arith.maximumf %89, %90 : vector<256x32xf32>
    %92 = vector.shape_cast %91 : vector<256x32xf32> to vector<32x8x32xf32>
    %cst_65 = arith.constant dense<0xFF800000> : vector<32x32xf32>
    %93 = vector.multi_reduction <maximumf>, %92, %cst_65 [1] : vector<32x8x32xf32> to vector<32x32xf32>
    %94 = arith.truncf %93 : vector<32x32xf32> to vector<32x32xbf16>
    %c0_66 = arith.constant 0 : index
    %c0_67 = arith.constant 0 : index
    %c0_68 = arith.constant 0 : index
    %95 = vector.load %arg20[%c0_66, %c0_67, %c0_68] : memref<1x128x1xi32, #tpu.memory_space<vmem>>, vector<1x128x1xi32>
    %96 = vector.shape_cast %95 : vector<1x128x1xi32> to vector<128x1xi32>
    %97 = tpu.iota {dimensions = array<i32: 1>} : vector<128x32xi32>
    %98 = vector.broadcast %96 : vector<128x1xi32> to vector<128x32xi32>
    %99 = arith.cmpi eq, %98, %97 : vector<128x32xi32>
    %cst_69 = arith.constant 1.000000e+00 : f32
    %cst_70 = arith.constant 0.000000e+00 : f32
    %100 = vector.broadcast %cst_69 : f32 to vector<128x32xf32>
    %101 = vector.broadcast %cst_70 : f32 to vector<128x32xf32>
    %102 = arith.select %99, %100, %101 : vector<128x32xi1>, vector<128x32xf32>
    %103 = arith.truncf %102 : vector<128x32xf32> to vector<128x32xbf16>
    %cst_71 = arith.constant dense<0.000000e+00> : vector<128x32xf32>
    %104 = tpu.matmul %103, %94, %cst_71 {dimension_numbers = #tpu.dot_dimension_numbers<[1], [0], [0], [1], [0, 0, 1, 1], [], []>} : vector<128x32xbf16>, vector<32x32xbf16>, vector<128x32xf32> -> vector<128x32xf32>
    %c0_72 = arith.constant 0 : index
    %c0_73 = arith.constant 0 : index
    %c0_74 = arith.constant 0 : index
    %105 = vector.load %arg21[%c0_72, %c0_73, %c0_74] : memref<1x128x3xf32, #tpu.memory_space<vmem>>, vector<1x128x3xf32>
    %106 = vector.shape_cast %105 : vector<1x128x3xf32> to vector<128x3xf32>
    %c0_75 = arith.constant 0 : index
    %c0_76 = arith.constant 0 : index
    %c0_77 = arith.constant 0 : index
    %107 = vector.load %arg22[%c0_75, %c0_76, %c0_77] : memref<1x128x1xi32, #tpu.memory_space<vmem>>, vector<1x128x1xi32>
    %108 = vector.shape_cast %107 : vector<1x128x1xi32> to vector<128x1xi32>
    %109 = tpu.iota {dimensions = array<i32: 1>} : vector<128x32xi32>
    %110 = vector.broadcast %108 : vector<128x1xi32> to vector<128x32xi32>
    %111 = arith.cmpi eq, %110, %109 : vector<128x32xi32>
    %cst_78 = arith.constant 1.000000e+00 : f32
    %cst_79 = arith.constant 0.000000e+00 : f32
    %112 = vector.broadcast %cst_78 : f32 to vector<128x32xf32>
    %113 = vector.broadcast %cst_79 : f32 to vector<128x32xf32>
    %114 = arith.select %111, %112, %113 : vector<128x32xi1>, vector<128x32xf32>
    %115 = arith.truncf %114 : vector<128x32xf32> to vector<128x32xbf16>
    %cst_80 = arith.constant dense<0.000000e+00> : vector<128x32xf32>
    %116 = tpu.matmul %115, %94, %cst_80 {dimension_numbers = #tpu.dot_dimension_numbers<[1], [0], [0], [1], [0, 0, 1, 1], [], []>} : vector<128x32xbf16>, vector<32x32xbf16>, vector<128x32xf32> -> vector<128x32xf32>
    %c0_81 = arith.constant 0 : index
    %c0_82 = arith.constant 0 : index
    %c0_83 = arith.constant 0 : index
    %117 = vector.load %arg23[%c0_81, %c0_82, %c0_83] : memref<1x128x3xf32, #tpu.memory_space<vmem>>, vector<1x128x3xf32>
    %118 = vector.shape_cast %117 : vector<1x128x3xf32> to vector<128x3xf32>
    %119 = tpu.concatenate %106, %104, %118, %116 in 1 : vector<128x3xf32>, vector<128x32xf32>, vector<128x3xf32>, vector<128x32xf32> -> vector<128x70xf32>
    %120 = arith.truncf %119 : vector<128x70xf32> to vector<128x70xbf16>
    %c0_84 = arith.constant 0 : index
    %c0_85 = arith.constant 0 : index
    %121 = vector.load %arg24[%c0_84, %c0_85] : memref<70x64xbf16, #tpu.memory_space<vmem>>, vector<70x64xbf16>
    %cst_86 = arith.constant dense<0.000000e+00> : vector<128x64xf32>
    %122 = tpu.matmul %120, %121, %cst_86 {dimension_numbers = #tpu.dot_dimension_numbers<[1], [0], [0], [1], [0, 0, 1, 1], [], []>} : vector<128x70xbf16>, vector<70x64xbf16>, vector<128x64xf32> -> vector<128x64xf32>
    %c0_87 = arith.constant 0 : index
    %c0_88 = arith.constant 0 : index
    %123 = vector.load %arg25[%c0_87, %c0_88] : memref<1x64xf32, #tpu.memory_space<vmem>>, vector<1x64xf32>
    %124 = vector.broadcast %123 : vector<1x64xf32> to vector<128x64xf32>
    %125 = arith.addf %122, %124 : vector<128x64xf32>
    %cst_89 = arith.constant 0.000000e+00 : f32
    %126 = vector.broadcast %cst_89 : f32 to vector<128x64xf32>
    %127 = arith.maximumf %125, %126 : vector<128x64xf32>
    %128 = arith.truncf %127 : vector<128x64xf32> to vector<128x64xbf16>
    %c0_90 = arith.constant 0 : index
    %c0_91 = arith.constant 0 : index
    %129 = vector.load %arg26[%c0_90, %c0_91] : memref<64x64xbf16, #tpu.memory_space<vmem>>, vector<64x64xbf16>
    %cst_92 = arith.constant dense<0.000000e+00> : vector<128x64xf32>
    %130 = tpu.matmul %128, %129, %cst_92 {dimension_numbers = #tpu.dot_dimension_numbers<[1], [0], [0], [1], [0, 0, 1, 1], [], []>} : vector<128x64xbf16>, vector<64x64xbf16>, vector<128x64xf32> -> vector<128x64xf32>
    %c0_93 = arith.constant 0 : index
    %c0_94 = arith.constant 0 : index
    %131 = vector.load %arg27[%c0_93, %c0_94] : memref<1x64xf32, #tpu.memory_space<vmem>>, vector<1x64xf32>
    %132 = vector.broadcast %131 : vector<1x64xf32> to vector<128x64xf32>
    %133 = arith.addf %130, %132 : vector<128x64xf32>
    %cst_95 = arith.constant 0.000000e+00 : f32
    %134 = vector.broadcast %cst_95 : f32 to vector<128x64xf32>
    %135 = arith.maximumf %133, %134 : vector<128x64xf32>
    %136 = vector.shape_cast %135 : vector<128x64xf32> to vector<16x8x64xf32>
    %cst_96 = arith.constant dense<0xFF800000> : vector<16x64xf32>
    %137 = vector.multi_reduction <maximumf>, %136, %cst_96 [1] : vector<16x8x64xf32> to vector<16x64xf32>
    %138 = arith.truncf %137 : vector<16x64xf32> to vector<16x64xbf16>
    %c0_97 = arith.constant 0 : index
    %c0_98 = arith.constant 0 : index
    %c0_99 = arith.constant 0 : index
    %139 = vector.load %arg28[%c0_97, %c0_98, %c0_99] : memref<1x64x1xi32, #tpu.memory_space<vmem>>, vector<1x64x1xi32>
    %140 = vector.shape_cast %139 : vector<1x64x1xi32> to vector<64x1xi32>
    %141 = tpu.iota {dimensions = array<i32: 1>} : vector<64x16xi32>
    %142 = vector.broadcast %140 : vector<64x1xi32> to vector<64x16xi32>
    %143 = arith.cmpi eq, %142, %141 : vector<64x16xi32>
    %cst_100 = arith.constant 1.000000e+00 : f32
    %cst_101 = arith.constant 0.000000e+00 : f32
    %144 = vector.broadcast %cst_100 : f32 to vector<64x16xf32>
    %145 = vector.broadcast %cst_101 : f32 to vector<64x16xf32>
    %146 = arith.select %143, %144, %145 : vector<64x16xi1>, vector<64x16xf32>
    %147 = arith.truncf %146 : vector<64x16xf32> to vector<64x16xbf16>
    %cst_102 = arith.constant dense<0.000000e+00> : vector<64x64xf32>
    %148 = tpu.matmul %147, %138, %cst_102 {dimension_numbers = #tpu.dot_dimension_numbers<[1], [0], [0], [1], [0, 0, 1, 1], [], []>} : vector<64x16xbf16>, vector<16x64xbf16>, vector<64x64xf32> -> vector<64x64xf32>
    %c0_103 = arith.constant 0 : index
    %c0_104 = arith.constant 0 : index
    %c0_105 = arith.constant 0 : index
    %149 = vector.load %arg29[%c0_103, %c0_104, %c0_105] : memref<1x64x3xf32, #tpu.memory_space<vmem>>, vector<1x64x3xf32>
    %150 = vector.shape_cast %149 : vector<1x64x3xf32> to vector<64x3xf32>
    %c0_106 = arith.constant 0 : index
    %c0_107 = arith.constant 0 : index
    %c0_108 = arith.constant 0 : index
    %151 = vector.load %arg30[%c0_106, %c0_107, %c0_108] : memref<1x64x1xi32, #tpu.memory_space<vmem>>, vector<1x64x1xi32>
    %152 = vector.shape_cast %151 : vector<1x64x1xi32> to vector<64x1xi32>
    %153 = tpu.iota {dimensions = array<i32: 1>} : vector<64x16xi32>
    %154 = vector.broadcast %152 : vector<64x1xi32> to vector<64x16xi32>
    %155 = arith.cmpi eq, %154, %153 : vector<64x16xi32>
    %cst_109 = arith.constant 1.000000e+00 : f32
    %cst_110 = arith.constant 0.000000e+00 : f32
    %156 = vector.broadcast %cst_109 : f32 to vector<64x16xf32>
    %157 = vector.broadcast %cst_110 : f32 to vector<64x16xf32>
    %158 = arith.select %155, %156, %157 : vector<64x16xi1>, vector<64x16xf32>
    %159 = arith.truncf %158 : vector<64x16xf32> to vector<64x16xbf16>
    %cst_111 = arith.constant dense<0.000000e+00> : vector<64x64xf32>
    %160 = tpu.matmul %159, %138, %cst_111 {dimension_numbers = #tpu.dot_dimension_numbers<[1], [0], [0], [1], [0, 0, 1, 1], [], []>} : vector<64x16xbf16>, vector<16x64xbf16>, vector<64x64xf32> -> vector<64x64xf32>
    %c0_112 = arith.constant 0 : index
    %c0_113 = arith.constant 0 : index
    %c0_114 = arith.constant 0 : index
    %161 = vector.load %arg31[%c0_112, %c0_113, %c0_114] : memref<1x64x3xf32, #tpu.memory_space<vmem>>, vector<1x64x3xf32>
    %162 = vector.shape_cast %161 : vector<1x64x3xf32> to vector<64x3xf32>
    %163 = tpu.concatenate %150, %148, %162, %160 in 1 : vector<64x3xf32>, vector<64x64xf32>, vector<64x3xf32>, vector<64x64xf32> -> vector<64x134xf32>
    %164 = arith.truncf %163 : vector<64x134xf32> to vector<64x134xbf16>
    %c0_115 = arith.constant 0 : index
    %c0_116 = arith.constant 0 : index
    %165 = vector.load %arg32[%c0_115, %c0_116] : memref<134x128xbf16, #tpu.memory_space<vmem>>, vector<134x128xbf16>
    %cst_117 = arith.constant dense<0.000000e+00> : vector<64x128xf32>
    %166 = tpu.matmul %164, %165, %cst_117 {dimension_numbers = #tpu.dot_dimension_numbers<[1], [0], [0], [1], [0, 0, 1, 1], [], []>} : vector<64x134xbf16>, vector<134x128xbf16>, vector<64x128xf32> -> vector<64x128xf32>
    %c0_118 = arith.constant 0 : index
    %c0_119 = arith.constant 0 : index
    %167 = vector.load %arg33[%c0_118, %c0_119] : memref<1x128xf32, #tpu.memory_space<vmem>>, vector<1x128xf32>
    %168 = vector.broadcast %167 : vector<1x128xf32> to vector<64x128xf32>
    %169 = arith.addf %166, %168 : vector<64x128xf32>
    %cst_120 = arith.constant 0.000000e+00 : f32
    %170 = vector.broadcast %cst_120 : f32 to vector<64x128xf32>
    %171 = arith.maximumf %169, %170 : vector<64x128xf32>
    %172 = arith.truncf %171 : vector<64x128xf32> to vector<64x128xbf16>
    %c0_121 = arith.constant 0 : index
    %c0_122 = arith.constant 0 : index
    %173 = vector.load %arg34[%c0_121, %c0_122] : memref<128x128xbf16, #tpu.memory_space<vmem>>, vector<128x128xbf16>
    %cst_123 = arith.constant dense<0.000000e+00> : vector<64x128xf32>
    %174 = tpu.matmul %172, %173, %cst_123 {dimension_numbers = #tpu.dot_dimension_numbers<[1], [0], [0], [1], [0, 0, 1, 1], [], []>} : vector<64x128xbf16>, vector<128x128xbf16>, vector<64x128xf32> -> vector<64x128xf32>
    %c0_124 = arith.constant 0 : index
    %c0_125 = arith.constant 0 : index
    %175 = vector.load %arg35[%c0_124, %c0_125] : memref<1x128xf32, #tpu.memory_space<vmem>>, vector<1x128xf32>
    %176 = vector.broadcast %175 : vector<1x128xf32> to vector<64x128xf32>
    %177 = arith.addf %174, %176 : vector<64x128xf32>
    %cst_126 = arith.constant 0.000000e+00 : f32
    %178 = vector.broadcast %cst_126 : f32 to vector<64x128xf32>
    %179 = arith.maximumf %177, %178 : vector<64x128xf32>
    %180 = vector.shape_cast %179 : vector<64x128xf32> to vector<8x8x128xf32>
    %cst_127 = arith.constant dense<0xFF800000> : vector<8x128xf32>
    %181 = vector.multi_reduction <maximumf>, %180, %cst_127 [1] : vector<8x8x128xf32> to vector<8x128xf32>
    %182 = arith.truncf %181 : vector<8x128xf32> to vector<8x128xbf16>
    %c0_128 = arith.constant 0 : index
    %c0_129 = arith.constant 0 : index
    %c0_130 = arith.constant 0 : index
    %183 = vector.load %arg36[%c0_128, %c0_129, %c0_130] : memref<1x32x1xi32, #tpu.memory_space<vmem>>, vector<1x32x1xi32>
    %184 = vector.shape_cast %183 : vector<1x32x1xi32> to vector<32x1xi32>
    %185 = tpu.iota {dimensions = array<i32: 1>} : vector<32x8xi32>
    %186 = vector.broadcast %184 : vector<32x1xi32> to vector<32x8xi32>
    %187 = arith.cmpi eq, %186, %185 : vector<32x8xi32>
    %cst_131 = arith.constant 1.000000e+00 : f32
    %cst_132 = arith.constant 0.000000e+00 : f32
    %188 = vector.broadcast %cst_131 : f32 to vector<32x8xf32>
    %189 = vector.broadcast %cst_132 : f32 to vector<32x8xf32>
    %190 = arith.select %187, %188, %189 : vector<32x8xi1>, vector<32x8xf32>
    %191 = arith.truncf %190 : vector<32x8xf32> to vector<32x8xbf16>
    %cst_133 = arith.constant dense<0.000000e+00> : vector<32x128xf32>
    %192 = tpu.matmul %191, %182, %cst_133 {dimension_numbers = #tpu.dot_dimension_numbers<[1], [0], [0], [1], [0, 0, 1, 1], [], []>} : vector<32x8xbf16>, vector<8x128xbf16>, vector<32x128xf32> -> vector<32x128xf32>
    %c0_134 = arith.constant 0 : index
    %c0_135 = arith.constant 0 : index
    %c0_136 = arith.constant 0 : index
    %193 = vector.load %arg37[%c0_134, %c0_135, %c0_136] : memref<1x32x3xf32, #tpu.memory_space<vmem>>, vector<1x32x3xf32>
    %194 = vector.shape_cast %193 : vector<1x32x3xf32> to vector<32x3xf32>
    %c0_137 = arith.constant 0 : index
    %c0_138 = arith.constant 0 : index
    %c0_139 = arith.constant 0 : index
    %195 = vector.load %arg38[%c0_137, %c0_138, %c0_139] : memref<1x32x1xi32, #tpu.memory_space<vmem>>, vector<1x32x1xi32>
    %196 = vector.shape_cast %195 : vector<1x32x1xi32> to vector<32x1xi32>
    %197 = tpu.iota {dimensions = array<i32: 1>} : vector<32x8xi32>
    %198 = vector.broadcast %196 : vector<32x1xi32> to vector<32x8xi32>
    %199 = arith.cmpi eq, %198, %197 : vector<32x8xi32>
    %cst_140 = arith.constant 1.000000e+00 : f32
    %cst_141 = arith.constant 0.000000e+00 : f32
    %200 = vector.broadcast %cst_140 : f32 to vector<32x8xf32>
    %201 = vector.broadcast %cst_141 : f32 to vector<32x8xf32>
    %202 = arith.select %199, %200, %201 : vector<32x8xi1>, vector<32x8xf32>
    %203 = arith.truncf %202 : vector<32x8xf32> to vector<32x8xbf16>
    %cst_142 = arith.constant dense<0.000000e+00> : vector<32x128xf32>
    %204 = tpu.matmul %203, %182, %cst_142 {dimension_numbers = #tpu.dot_dimension_numbers<[1], [0], [0], [1], [0, 0, 1, 1], [], []>} : vector<32x8xbf16>, vector<8x128xbf16>, vector<32x128xf32> -> vector<32x128xf32>
    %c0_143 = arith.constant 0 : index
    %c0_144 = arith.constant 0 : index
    %c0_145 = arith.constant 0 : index
    %205 = vector.load %arg39[%c0_143, %c0_144, %c0_145] : memref<1x32x3xf32, #tpu.memory_space<vmem>>, vector<1x32x3xf32>
    %206 = vector.shape_cast %205 : vector<1x32x3xf32> to vector<32x3xf32>
    %207 = tpu.concatenate %194, %192, %206, %204 in 1 : vector<32x3xf32>, vector<32x128xf32>, vector<32x3xf32>, vector<32x128xf32> -> vector<32x262xf32>
    %208 = arith.truncf %207 : vector<32x262xf32> to vector<32x262xbf16>
    %c0_146 = arith.constant 0 : index
    %c0_147 = arith.constant 0 : index
    %209 = vector.load %arg40[%c0_146, %c0_147] : memref<262x256xbf16, #tpu.memory_space<vmem>>, vector<262x256xbf16>
    %cst_148 = arith.constant dense<0.000000e+00> : vector<32x256xf32>
    %210 = tpu.matmul %208, %209, %cst_148 {dimension_numbers = #tpu.dot_dimension_numbers<[1], [0], [0], [1], [0, 0, 1, 1], [], []>} : vector<32x262xbf16>, vector<262x256xbf16>, vector<32x256xf32> -> vector<32x256xf32>
    %c0_149 = arith.constant 0 : index
    %c0_150 = arith.constant 0 : index
    %211 = vector.load %arg41[%c0_149, %c0_150] : memref<1x256xf32, #tpu.memory_space<vmem>>, vector<1x256xf32>
    %212 = vector.broadcast %211 : vector<1x256xf32> to vector<32x256xf32>
    %213 = arith.addf %210, %212 : vector<32x256xf32>
    %cst_151 = arith.constant 0.000000e+00 : f32
    %214 = vector.broadcast %cst_151 : f32 to vector<32x256xf32>
    %215 = arith.maximumf %213, %214 : vector<32x256xf32>
    %216 = arith.truncf %215 : vector<32x256xf32> to vector<32x256xbf16>
    %c0_152 = arith.constant 0 : index
    %c0_153 = arith.constant 0 : index
    %217 = vector.load %arg42[%c0_152, %c0_153] : memref<256x256xbf16, #tpu.memory_space<vmem>>, vector<256x256xbf16>
    %cst_154 = arith.constant dense<0.000000e+00> : vector<32x256xf32>
    %218 = tpu.matmul %216, %217, %cst_154 {dimension_numbers = #tpu.dot_dimension_numbers<[1], [0], [0], [1], [0, 0, 1, 1], [], []>} : vector<32x256xbf16>, vector<256x256xbf16>, vector<32x256xf32> -> vector<32x256xf32>
    %c0_155 = arith.constant 0 : index
    %c0_156 = arith.constant 0 : index
    %219 = vector.load %arg43[%c0_155, %c0_156] : memref<1x256xf32, #tpu.memory_space<vmem>>, vector<1x256xf32>
    %220 = vector.broadcast %219 : vector<1x256xf32> to vector<32x256xf32>
    %221 = arith.addf %218, %220 : vector<32x256xf32>
    %cst_157 = arith.constant 0.000000e+00 : f32
    %222 = vector.broadcast %cst_157 : f32 to vector<32x256xf32>
    %223 = arith.maximumf %221, %222 : vector<32x256xf32>
    %224 = vector.shape_cast %223 : vector<32x256xf32> to vector<4x8x256xf32>
    %cst_158 = arith.constant dense<0xFF800000> : vector<4x256xf32>
    %225 = vector.multi_reduction <maximumf>, %224, %cst_158 [1] : vector<4x8x256xf32> to vector<4x256xf32>
    %cst_159 = arith.constant dense<0xFF800000> : vector<256xf32>
    %226 = vector.multi_reduction <maximumf>, %225, %cst_159 [0] : vector<4x256xf32> to vector<256xf32>
    %227 = vector.shape_cast %226 : vector<256xf32> to vector<1x256xf32>
    %228 = arith.truncf %227 : vector<1x256xf32> to vector<1x256xbf16>
    %c0_160 = arith.constant 0 : index
    %c0_161 = arith.constant 0 : index
    %229 = vector.load %arg44[%c0_160, %c0_161] : memref<256x128xbf16, #tpu.memory_space<vmem>>, vector<256x128xbf16>
    %cst_162 = arith.constant dense<0.000000e+00> : vector<1x128xf32>
    %230 = tpu.matmul %228, %229, %cst_162 {dimension_numbers = #tpu.dot_dimension_numbers<[1], [0], [0], [1], [0, 0, 1, 1], [], []>} : vector<1x256xbf16>, vector<256x128xbf16>, vector<1x128xf32> -> vector<1x128xf32>
    %c0_163 = arith.constant 0 : index
    %c0_164 = arith.constant 0 : index
    %231 = vector.load %arg45[%c0_163, %c0_164] : memref<1x128xf32, #tpu.memory_space<vmem>>, vector<1x128xf32>
    %232 = arith.addf %230, %231 : vector<1x128xf32>
    %cst_165 = arith.constant 0.000000e+00 : f32
    %233 = vector.broadcast %cst_165 : f32 to vector<1x128xf32>
    %234 = arith.maximumf %232, %233 : vector<1x128xf32>
    %235 = arith.truncf %234 : vector<1x128xf32> to vector<1x128xbf16>
    %c0_166 = arith.constant 0 : index
    %c0_167 = arith.constant 0 : index
    %236 = vector.load %arg46[%c0_166, %c0_167] : memref<128x64xbf16, #tpu.memory_space<vmem>>, vector<128x64xbf16>
    %cst_168 = arith.constant dense<0.000000e+00> : vector<1x64xf32>
    %237 = tpu.matmul %235, %236, %cst_168 {dimension_numbers = #tpu.dot_dimension_numbers<[1], [0], [0], [1], [0, 0, 1, 1], [], []>} : vector<1x128xbf16>, vector<128x64xbf16>, vector<1x64xf32> -> vector<1x64xf32>
    %c0_169 = arith.constant 0 : index
    %c0_170 = arith.constant 0 : index
    %238 = vector.load %arg47[%c0_169, %c0_170] : memref<1x64xf32, #tpu.memory_space<vmem>>, vector<1x64xf32>
    %239 = arith.addf %237, %238 : vector<1x64xf32>
    %cst_171 = arith.constant 0.000000e+00 : f32
    %240 = vector.broadcast %cst_171 : f32 to vector<1x64xf32>
    %241 = arith.maximumf %239, %240 : vector<1x64xf32>
    %242 = arith.truncf %241 : vector<1x64xf32> to vector<1x64xbf16>
    %c0_172 = arith.constant 0 : index
    %c0_173 = arith.constant 0 : index
    %243 = vector.load %arg48[%c0_172, %c0_173] : memref<64x10xbf16, #tpu.memory_space<vmem>>, vector<64x10xbf16>
    %cst_174 = arith.constant dense<0.000000e+00> : vector<1x10xf32>
    %244 = tpu.matmul %242, %243, %cst_174 {dimension_numbers = #tpu.dot_dimension_numbers<[1], [0], [0], [1], [0, 0, 1, 1], [], []>} : vector<1x64xbf16>, vector<64x10xbf16>, vector<1x10xf32> -> vector<1x10xf32>
    %c0_175 = arith.constant 0 : index
    %c0_176 = arith.constant 0 : index
    %245 = vector.load %arg49[%c0_175, %c0_176] : memref<1x10xf32, #tpu.memory_space<vmem>>, vector<1x10xf32>
    %246 = arith.addf %244, %245 : vector<1x10xf32>
    %c0_177 = arith.constant 0 : index
    %c0_178 = arith.constant 0 : index
    %c0_179 = arith.constant 0 : index
    %247 = vector.load %arg50[%c0_177, %c0_178, %c0_179] : memref<1x1x10xf32, #tpu.memory_space<vmem>>, vector<1x1x10xf32>
    %248 = vector.shape_cast %247 : vector<1x1x10xf32> to vector<1x10xf32>
    %249 = vector.shape_cast %246 : vector<1x10xf32> to vector<1x1x10xf32>
    tpu.vector_store %arg50[%c0_177, %c0_178, %c0_179], %249 {strides = array<i32>} : memref<1x1x10xf32, #tpu.memory_space<vmem>>, vector<1x1x10xf32>,
    return
  }
  func.func @transform_0(%arg0: i32) -> (i32, i32, i32) {
    %c0_i32 = arith.constant 0 : i32
    %c0_i32_0 = arith.constant 0 : i32
    %c0_i32_1 = arith.constant 0 : i32
    return %arg0, %c0_i32, %c0_i32_0 : i32, i32, i32
  }
  func.func @transform_1(%arg0: i32) -> (i32, i32) {
    %c0_i32 = arith.constant 0 : i32
    %c0_i32_0 = arith.constant 0 : i32
    %c0_i32_1 = arith.constant 0 : i32
    return %c0_i32, %c0_i32_0 : i32, i32
  }
  func.func @transform_2(%arg0: i32) -> (i32, i32) {
    %c0_i32 = arith.constant 0 : i32
    %c0_i32_0 = arith.constant 0 : i32
    %c0_i32_1 = arith.constant 0 : i32
    return %c0_i32, %c0_i32_0 : i32, i32
  }
  func.func @transform_3(%arg0: i32) -> (i32, i32, i32) {
    %c0_i32 = arith.constant 0 : i32
    %c0_i32_0 = arith.constant 0 : i32
    %c0_i32_1 = arith.constant 0 : i32
    return %arg0, %c0_i32, %c0_i32_0 : i32, i32, i32
  }
  func.func @transform_4(%arg0: i32) -> (i32, i32, i32) {
    %c0_i32 = arith.constant 0 : i32
    %c0_i32_0 = arith.constant 0 : i32
    %c0_i32_1 = arith.constant 0 : i32
    return %arg0, %c0_i32, %c0_i32_0 : i32, i32, i32
  }
  func.func @transform_5(%arg0: i32) -> (i32, i32) {
    %c0_i32 = arith.constant 0 : i32
    %c0_i32_0 = arith.constant 0 : i32
    %c0_i32_1 = arith.constant 0 : i32
    return %c0_i32, %c0_i32_0 : i32, i32
  }
  func.func @transform_6(%arg0: i32) -> (i32, i32) {
    %c0_i32 = arith.constant 0 : i32
    %c0_i32_0 = arith.constant 0 : i32
    %c0_i32_1 = arith.constant 0 : i32
    return %c0_i32, %c0_i32_0 : i32, i32
  }
  func.func @transform_7(%arg0: i32) -> (i32, i32) {
    %c0_i32 = arith.constant 0 : i32
    %c0_i32_0 = arith.constant 0 : i32
    %c0_i32_1 = arith.constant 0 : i32
    return %c0_i32, %c0_i32_0 : i32, i32
  }
  func.func @transform_8(%arg0: i32) -> (i32, i32) {
    %c0_i32 = arith.constant 0 : i32
    %c0_i32_0 = arith.constant 0 : i32
    %c0_i32_1 = arith.constant 0 : i32
    return %c0_i32, %c0_i32_0 : i32, i32
  }
  func.func @transform_9(%arg0: i32) -> (i32, i32) {
    %c0_i32 = arith.constant 0 : i32
    %c0_i32_0 = arith.constant 0 : i32
    %c0_i32_1 = arith.constant 0 : i32
    return %c0_i32, %c0_i32_0 : i32, i32
  }
  func.func @transform_10(%arg0: i32) -> (i32, i32) {
    %c0_i32 = arith.constant 0 : i32
    %c0_i32_0 = arith.constant 0 : i32
    %c0_i32_1 = arith.constant 0 : i32
    return %c0_i32, %c0_i32_0 : i32, i32
  }
  func.func @transform_11(%arg0: i32) -> (i32, i32, i32) {
    %c0_i32 = arith.constant 0 : i32
    %c0_i32_0 = arith.constant 0 : i32
    %c0_i32_1 = arith.constant 0 : i32
    return %arg0, %c0_i32, %c0_i32_0 : i32, i32, i32
  }
  func.func @transform_12(%arg0: i32) -> (i32, i32, i32) {
    %c0_i32 = arith.constant 0 : i32
    %c0_i32_0 = arith.constant 0 : i32
    %c0_i32_1 = arith.constant 0 : i32
    return %arg0, %c0_i32, %c0_i32_0 : i32, i32, i32
  }
  func.func @transform_13(%arg0: i32) -> (i32, i32, i32) {
    %c0_i32 = arith.constant 0 : i32
    %c0_i32_0 = arith.constant 0 : i32
    %c0_i32_1 = arith.constant 0 : i32
    return %arg0, %c0_i32, %c0_i32_0 : i32, i32, i32
  }
  func.func @transform_14(%arg0: i32) -> (i32, i32, i32) {
    %c0_i32 = arith.constant 0 : i32
    %c0_i32_0 = arith.constant 0 : i32
    %c0_i32_1 = arith.constant 0 : i32
    return %arg0, %c0_i32, %c0_i32_0 : i32, i32, i32
  }
  func.func @transform_15(%arg0: i32) -> (i32, i32) {
    %c0_i32 = arith.constant 0 : i32
    %c0_i32_0 = arith.constant 0 : i32
    %c0_i32_1 = arith.constant 0 : i32
    return %c0_i32, %c0_i32_0 : i32, i32
  }
  func.func @transform_16(%arg0: i32) -> (i32, i32) {
    %c0_i32 = arith.constant 0 : i32
    %c0_i32_0 = arith.constant 0 : i32
    %c0_i32_1 = arith.constant 0 : i32
    return %c0_i32, %c0_i32_0 : i32, i32
  }
  func.func @transform_17(%arg0: i32) -> (i32, i32) {
    %c0_i32 = arith.constant 0 : i32
    %c0_i32_0 = arith.constant 0 : i32
    %c0_i32_1 = arith.constant 0 : i32
    return %c0_i32, %c0_i32_0 : i32, i32
  }
  func.func @transform_18(%arg0: i32) -> (i32, i32) {
    %c0_i32 = arith.constant 0 : i32
    %c0_i32_0 = arith.constant 0 : i32
    %c0_i32_1 = arith.constant 0 : i32
    return %c0_i32, %c0_i32_0 : i32, i32
  }
  func.func @transform_19(%arg0: i32) -> (i32, i32, i32) {
    %c0_i32 = arith.constant 0 : i32
    %c0_i32_0 = arith.constant 0 : i32
    %c0_i32_1 = arith.constant 0 : i32
    return %arg0, %c0_i32, %c0_i32_0 : i32, i32, i32
  }
  func.func @transform_20(%arg0: i32) -> (i32, i32, i32) {
    %c0_i32 = arith.constant 0 : i32
    %c0_i32_0 = arith.constant 0 : i32
    %c0_i32_1 = arith.constant 0 : i32
    return %arg0, %c0_i32, %c0_i32_0 : i32, i32, i32
  }
  func.func @transform_21(%arg0: i32) -> (i32, i32, i32) {
    %c0_i32 = arith.constant 0 : i32
    %c0_i32_0 = arith.constant 0 : i32
    %c0_i32_1 = arith.constant 0 : i32
    return %arg0, %c0_i32, %c0_i32_0 : i32, i32, i32
  }
  func.func @transform_22(%arg0: i32) -> (i32, i32, i32) {
    %c0_i32 = arith.constant 0 : i32
    %c0_i32_0 = arith.constant 0 : i32
    %c0_i32_1 = arith.constant 0 : i32
    return %arg0, %c0_i32, %c0_i32_0 : i32, i32, i32
  }
  func.func @transform_23(%arg0: i32) -> (i32, i32) {
    %c0_i32 = arith.constant 0 : i32
    %c0_i32_0 = arith.constant 0 : i32
    %c0_i32_1 = arith.constant 0 : i32
    return %c0_i32, %c0_i32_0 : i32, i32
  }
  func.func @transform_24(%arg0: i32) -> (i32, i32) {
    %c0_i32 = arith.constant 0 : i32
    %c0_i32_0 = arith.constant 0 : i32
    %c0_i32_1 = arith.constant 0 : i32
    return %c0_i32, %c0_i32_0 : i32, i32
  }
  func.func @transform_25(%arg0: i32) -> (i32, i32) {
    %c0_i32 = arith.constant 0 : i32
    %c0_i32_0 = arith.constant 0 : i32
    %c0_i32_1 = arith.constant 0 : i32
    return %c0_i32, %c0_i32_0 : i32, i32
  }
  func.func @transform_26(%arg0: i32) -> (i32, i32) {
    %c0_i32 = arith.constant 0 : i32
    %c0_i32_0 = arith.constant 0 : i32
    %c0_i32_1 = arith.constant 0 : i32
    return %c0_i32, %c0_i32_0 : i32, i32
  }
  func.func @transform_27(%arg0: i32) -> (i32, i32, i32) {
    %c0_i32 = arith.constant 0 : i32
    %c0_i32_0 = arith.constant 0 : i32
    %c0_i32_1 = arith.constant 0 : i32
    return %arg0, %c0_i32, %c0_i32_0 : i32, i32, i32
  }
  func.func @transform_28(%arg0: i32) -> (i32, i32, i32) {
    %c0_i32 = arith.constant 0 : i32
    %c0_i32_0 = arith.constant 0 : i32
    %c0_i32_1 = arith.constant 0 : i32
    return %arg0, %c0_i32, %c0_i32_0 : i32, i32, i32
  }
  func.func @transform_29(%arg0: i32) -> (i32, i32, i32) {
    %c0_i32 = arith.constant 0 : i32
    %c0_i32_0 = arith.constant 0 : i32
    %c0_i32_1 = arith.constant 0 : i32
    return %arg0, %c0_i32, %c0_i32_0 : i32, i32, i32
  }
  func.func @transform_30(%arg0: i32) -> (i32, i32, i32) {
    %c0_i32 = arith.constant 0 : i32
    %c0_i32_0 = arith.constant 0 : i32
    %c0_i32_1 = arith.constant 0 : i32
    return %arg0, %c0_i32, %c0_i32_0 : i32, i32, i32
  }
  func.func @transform_31(%arg0: i32) -> (i32, i32) {
    %c0_i32 = arith.constant 0 : i32
    %c0_i32_0 = arith.constant 0 : i32
    %c0_i32_1 = arith.constant 0 : i32
    return %c0_i32, %c0_i32_0 : i32, i32
  }
  func.func @transform_32(%arg0: i32) -> (i32, i32) {
    %c0_i32 = arith.constant 0 : i32
    %c0_i32_0 = arith.constant 0 : i32
    %c0_i32_1 = arith.constant 0 : i32
    return %c0_i32, %c0_i32_0 : i32, i32
  }
  func.func @transform_33(%arg0: i32) -> (i32, i32) {
    %c0_i32 = arith.constant 0 : i32
    %c0_i32_0 = arith.constant 0 : i32
    %c0_i32_1 = arith.constant 0 : i32
    return %c0_i32, %c0_i32_0 : i32, i32
  }
  func.func @transform_34(%arg0: i32) -> (i32, i32) {
    %c0_i32 = arith.constant 0 : i32
    %c0_i32_0 = arith.constant 0 : i32
    %c0_i32_1 = arith.constant 0 : i32
    return %c0_i32, %c0_i32_0 : i32, i32
  }
  func.func @transform_35(%arg0: i32) -> (i32, i32, i32) {
    %c0_i32 = arith.constant 0 : i32
    %c0_i32_0 = arith.constant 0 : i32
    %c0_i32_1 = arith.constant 0 : i32
    return %arg0, %c0_i32, %c0_i32_0 : i32, i32, i32
  }
  func.func @transform_36(%arg0: i32) -> (i32, i32, i32) {
    %c0_i32 = arith.constant 0 : i32
    %c0_i32_0 = arith.constant 0 : i32
    %c0_i32_1 = arith.constant 0 : i32
    return %arg0, %c0_i32, %c0_i32_0 : i32, i32, i32
  }
  func.func @transform_37(%arg0: i32) -> (i32, i32, i32) {
    %c0_i32 = arith.constant 0 : i32
    %c0_i32_0 = arith.constant 0 : i32
    %c0_i32_1 = arith.constant 0 : i32
    return %arg0, %c0_i32, %c0_i32_0 : i32, i32, i32
  }
  func.func @transform_38(%arg0: i32) -> (i32, i32, i32) {
    %c0_i32 = arith.constant 0 : i32
    %c0_i32_0 = arith.constant 0 : i32
    %c0_i32_1 = arith.constant 0 : i32
    return %arg0, %c0_i32, %c0_i32_0 : i32, i32, i32
  }
  func.func @transform_39(%arg0: i32) -> (i32, i32) {
    %c0_i32 = arith.constant 0 : i32
    %c0_i32_0 = arith.constant 0 : i32
    %c0_i32_1 = arith.constant 0 : i32
    return %c0_i32, %c0_i32_0 : i32, i32
  }
  func.func @transform_40(%arg0: i32) -> (i32, i32) {
    %c0_i32 = arith.constant 0 : i32
    %c0_i32_0 = arith.constant 0 : i32
    %c0_i32_1 = arith.constant 0 : i32
    return %c0_i32, %c0_i32_0 : i32, i32
  }
  func.func @transform_41(%arg0: i32) -> (i32, i32) {
    %c0_i32 = arith.constant 0 : i32
    %c0_i32_0 = arith.constant 0 : i32
    %c0_i32_1 = arith.constant 0 : i32
    return %c0_i32, %c0_i32_0 : i32, i32
  }
  func.func @transform_42(%arg0: i32) -> (i32, i32) {
    %c0_i32 = arith.constant 0 : i32
    %c0_i32_0 = arith.constant 0 : i32
    %c0_i32_1 = arith.constant 0 : i32
    return %c0_i32, %c0_i32_0 : i32, i32
  }
  func.func @transform_43(%arg0: i32) -> (i32, i32) {
    %c0_i32 = arith.constant 0 : i32
    %c0_i32_0 = arith.constant 0 : i32
    %c0_i32_1 = arith.constant 0 : i32
    return %c0_i32, %c0_i32_0 : i32, i32
  }
  func.func @transform_44(%arg0: i32) -> (i32, i32) {
    %c0_i32 = arith.constant 0 : i32
    %c0_i32_0 = arith.constant 0 : i32
    %c0_i32_1 = arith.constant 0 : i32
    return %c0_i32, %c0_i32_0 : i32, i32
  }
  func.func @transform_45(%arg0: i32) -> (i32, i32) {
    %c0_i32 = arith.constant 0 : i32
    %c0_i32_0 = arith.constant 0 : i32
    %c0_i32_1 = arith.constant 0 : i32
    return %c0_i32, %c0_i32_0 : i32, i32
  }
  func.func @transform_46(%arg0: i32) -> (i32, i32) {
    %c0_i32 = arith.constant 0 : i32
    %c0_i32_0 = arith.constant 0 : i32
    %c0_i32_1 = arith.constant 0 : i32
    return %c0_i32, %c0_i32_0 : i32, i32
  }
  func.func @transform_47(%arg0: i32) -> (i32, i32) {
    %c0_i32 = arith.constant 0 : i32
    %c0_i32_0 = arith.constant 0 : i32
    %c0_i32_1 = arith.constant 0 : i32
    return %c0_i32, %c0_i32_0 : i32, i32
  }
  func.func @transform_48(%arg0: i32) -> (i32, i32) {
    %c0_i32 = arith.constant 0 : i32
    %c0_i32_0 = arith.constant 0 : i32
    %c0_i32_1 = arith.constant 0 : i32
    return %c0_i32, %c0_i32_0 : i32, i32
  }
  func.func @transform_49(%arg0: i32) -> (i32, i32, i32) {
    %c0_i32 = arith.constant 0 : i32
    %c0_i32_0 = arith.constant 0 : i32
    %c0_i32_1 = arith.constant 0 : i32
    return %arg0, %c0_i32, %c0_i32_0 : i32, i32, i32
  }
}

</mosaic_0001>

<bundles_post_ra>
// kernel: custom-call.34
= control target key start
LH: loop header
LB: loop body
LE: loop exit
PB: predicated region body
PF: predicated region fallthrough
CT: control target
= control target key end

     0   :  { %s6_s0 = inlined_call_operand.vmem [shape: f32[2,64], index: 0, kind: output, shape index: {}]  }

// kernel: custom-call.35
= control target key start
LH: loop header
LB: loop body
LE: loop exit
PB: predicated region body
PF: predicated region fallthrough
CT: control target
= control target key end

     0   :  { %s6_s0 = inlined_call_operand.vmem [shape: f32[2,32], index: 0, kind: output, shape index: {}]  }

// kernel: custom-call.36
= control target key start
LH: loop header
LB: loop body
LE: loop exit
PB: predicated region body
PF: predicated region fallthrough
CT: control target
= control target key end

     0   :  { %s6_s0 = inlined_call_operand.vmem [shape: f32[2,16], index: 0, kind: output, shape index: {}]  }

// kernel: custom-call.37
= control target key start
LH: loop header
LB: loop body
LE: loop exit
PB: predicated region body
PF: predicated region fallthrough
CT: control target
= control target key end

     0   :  { %s6_s0 = inlined_call_operand.vmem [shape: f32[2,8], index: 0, kind: output, shape index: {}]  }

// kernel: assanet_cls_forward.1
= control target key start
LH: loop header
LB: loop body
LE: loop exit
PB: predicated region body
PF: predicated region fallthrough
CT: control target
= control target key end

     0   :  { %s11768_s6 = smov 1   ;;  %s11769_s10 = smov 2   ;;  %s14428_s0 = inlined_call_operand.smem [shape: u32[50], index: -1, kind: input, shape index: {}] }
   0x1   :  { %s11836_s5 = sld [smem:[%s14428_s0]]   ;;  %s11770_s14 = smov 3  }
   0x2   :  { %s11841_s9 = sld [smem:[%s14428_s0 + %s11768_s6]]   ;;  %s11771_s18 = smov 4  }
   0x3   :  { %s11846_s13 = sld [smem:[%s14428_s0 + %s11769_s10]]   ;;  %s11772_s22 = smov 5  }
   0x4   :  { %s11851_s17 = sld [smem:[%s14428_s0 + %s11770_s14]]   ;;  %s11773_s26 = smov 6  }
   0x5   :  { %s11856_s21 = sld [smem:[%s14428_s0 + %s11771_s18]]   ;;  %s11774_s30 = smov 7  }
   0x6   :  { %s11861_s25 = sld [smem:[%s14428_s0 + %s11772_s22]]   ;;  %s11775_s4 = smov 8  }
   0x7   :  { %14461 = sst [smem:[#allocation5_spill]] %s11836_s5  ;;  %s11776_s10 = smov 9  }
   0x8   :  { %14462 = sst [smem:[#allocation6_spill]] %s11841_s9  ;;  %s11777_s15 = smov 10  }
   0x9   :  { %14463 = sst [smem:[#allocation7_spill]] %s11846_s13  ;;  %s11778_s20 = smov 11  }
   0xa   :  { %s11866_s29 = sld [smem:[%s14428_s0 + %s11773_s26]]   ;;  %s11779_s26 = smov 12  }
   0xb   :  { %s11871_s3 = sld [smem:[%s14428_s0 + %s11774_s30]]   ;;  %s11780_s1 = smov 13  }
   0xc   :  { %s11876_s8 = sld [smem:[%s14428_s0 + %s11775_s4]]   ;;  %s11781_s7 = smov 14  }
   0xd   :  { %s11881_s14 = sld [smem:[%s14428_s0 + %s11776_s10]]   ;;  %s11783_s22 = smov 16  }
   0xe   :  { %s11886_s19 = sld [smem:[%s14428_s0 + %s11777_s15]]   ;;  %s11782_s15 = smov 15  }
   0xf   :  { %s11891_s24 = sld [smem:[%s14428_s0 + %s11778_s20]]   ;;  %s11784_s28 = smov 17  }
  0x10   :  { %s11896_s30 = sld [smem:[%s14428_s0 + %s11779_s26]]  }
  0x11   :  { %14464 = sst [smem:[#allocation8_spill]] %s11871_s3 }
  0x12   :  { %14465 = sst [smem:[#allocation9_spill]] %s11876_s8 }
  0x13   :  { %s11901_s6 = sld [smem:[%s14428_s0 + %s11780_s1]]  }
  0x14   :  { %s11906_s12 = sld [smem:[%s14428_s0 + %s11781_s7]]   ;;  %s11785_s7 = smov 18  }
  0x15   :  { %s11911_s20 = sld [smem:[%s14428_s0 + %s11782_s15]]   ;;  %s11786_s15 = smov 19  }
  0x16   :  { %14466 = sst [smem:[#allocation10_spill]] %s11896_s30 }
  0x17   :  { %s11916_s27 = sld [smem:[%s14428_s0 + %s11783_s22]]   ;;  %s11787_s22 = smov 20  }
  0x18   :  { %s11921_s4 = sld [smem:[%s14428_s0 + %s11784_s28]]   ;;  %s11788_s28 = smov 21  }
  0x19   :  { %14467 = sst [smem:[#allocation11_spill]] %s11901_s6 }
  0x1a   :  { %14468 = sst [smem:[#allocation12_spill]] %s11906_s12 }
  0x1b   :  { %14469 = sst [smem:[#allocation13_spill]] %s11911_s20 }
  0x1c   :  { %s11926_s30 = sld [smem:[%s14428_s0 + %s11785_s7]]   ;;  %s11789_s7 = smov 22  }
  0x1d   :  { %14470 = sst [smem:[#allocation14_spill]] %s11916_s27 }
  0x1e   :  { %14471 = sst [smem:[#allocation15_spill]] %s11921_s4 }
  0x1f   :  { %s11931_s20 = sld [smem:[%s14428_s0 + %s11786_s15]]   ;;  %s11790_s15 = smov 23  }
  0x20   :  { %s11936_s27 = sld [smem:[%s14428_s0 + %s11787_s22]]   ;;  %s11791_s22 = smov 24  }
  0x21   :  { %s11941_s4 = sld [smem:[%s14428_s0 + %s11788_s28]]   ;;  %s11792_s28 = smov 25  }
  0x22   :  { %14472 = sst [smem:[#allocation16_spill]] %s11926_s30 }
  0x23   :  { %s11946_s30 = sld [smem:[%s14428_s0 + %s11789_s7]]   ;;  %s11793_s7 = smov 26  }
  0x25   :  { %14473 = sst [smem:[#allocation17_spill]] %s11931_s20 }
  0x26   :  { %14474 = sst [smem:[#allocation18_spill]] %s11936_s27 }
  0x27   :  { %14475 = sst [smem:[#allocation19_spill]] %s11941_s4 }
  0x28   :  { %s11951_s20 = sld [smem:[%s14428_s0 + %s11790_s15]]   ;;  %s11794_s15 = smov 27  }
  0x29   :  { %14476 = sst [smem:[#allocation20_spill]] %s11946_s30 }
  0x2a   :  { %s11956_s27 = sld [smem:[%s14428_s0 + %s11791_s22]]   ;;  %s11795_s22 = smov 28  }
  0x2b   :  { %s11961_s4 = sld [smem:[%s14428_s0 + %s11792_s28]]   ;;  %s11796_s28 = smov 29  }
  0x2c   :  { %s11966_s30 = sld [smem:[%s14428_s0 + %s11793_s7]]   ;;  %s11797_s7 = smov 30  }
  0x2e   :  { %14477 = sst [smem:[#allocation21_spill]] %s11951_s20 }
  0x2f   :  { %s11971_s20 = sld [smem:[%s14428_s0 + %s11794_s15]]   ;;  %s11798_s15 = smov 31  }
  0x30   :  { %14478 = sst [smem:[#allocation22_spill]] %s11956_s27 }
  0x31   :  { %14479 = sst [smem:[#allocation23_spill]] %s11961_s4 }
  0x32   :  { %14480 = sst [smem:[#allocation24_spill]] %s11966_s30 }
  0x33   :  { %s11976_s27 = sld [smem:[%s14428_s0 + %s11795_s22]]   ;;  %s11799_s22 = smov 32  }
  0x34   :  { %s11981_s4 = sld [smem:[%s14428_s0 + %s11796_s28]]   ;;  %s11800_s28 = smov 33  }
  0x35   :  { %14481 = sst [smem:[#allocation25_spill]] %s11971_s20 }
  0x36   :  { %s11986_s30 = sld [smem:[%s14428_s0 + %s11797_s7]]   ;;  %s11801_s7 = smov 34  }
  0x37   :  { %s11991_s20 = sld [smem:[%s14428_s0 + %s11798_s15]]   ;;  %s11802_s15 = smov 35  }
  0x39   :  { %14482 = sst [smem:[#allocation26_spill]] %s11976_s27 }
  0x3a   :  { %14483 = sst [smem:[#allocation27_spill]] %s11981_s4 }
  0x3b   :  { %s11996_s27 = sld [smem:[%s14428_s0 + %s11799_s22]]   ;;  %s11803_s22 = smov 36  }
  0x3c   :  { %14484 = sst [smem:[#allocation28_spill]] %s11986_s30 }
  0x3d   :  { %14485 = sst [smem:[#allocation29_spill]] %s11991_s20 }
  0x3e   :  { %s12001_s4 = sld [smem:[%s14428_s0 + %s11800_s28]]   ;;  %s11804_s28 = smov 37  }
  0x3f   :  { %s12006_s30 = sld [smem:[%s14428_s0 + %s11801_s7]]   ;;  %s11805_s7 = smov 38  }
  0x40   :  { %s12011_s20 = sld [smem:[%s14428_s0 + %s11802_s15]]   ;;  %s11806_s15 = smov 39  }
  0x41   :  { %14486 = sst [smem:[#allocation30_spill]] %s11996_s27 }
  0x42   :  { %s12016_s27 = sld [smem:[%s14428_s0 + %s11803_s22]]   ;;  %s11807_s22 = smov 40  }
  0x44   :  { %14487 = sst [smem:[#allocation31_spill]] %s12001_s4 }
  0x45   :  { %14488 = sst [smem:[#allocation32_spill]] %s12006_s30 }
  0x46   :  { %14489 = sst [smem:[#allocation33_spill]] %s12011_s20 }
  0x47   :  { %s12021_s4 = sld [smem:[%s14428_s0 + %s11804_s28]]   ;;  %s11808_s28 = smov 41  }
  0x48   :  { %14490 = sst [smem:[#allocation34_spill]] %s12016_s27 }
  0x49   :  { %s12026_s30 = sld [smem:[%s14428_s0 + %s11805_s7]]   ;;  %s11809_s7 = smov 42  }
  0x4a   :  { %s12031_s20 = sld [smem:[%s14428_s0 + %s11806_s15]]   ;;  %s11810_s15 = smov 43  }
  0x4b   :  { %s12036_s27 = sld [smem:[%s14428_s0 + %s11807_s22]]   ;;  %s11811_s22 = smov 44  }
  0x4d   :  { %14491 = sst [smem:[#allocation35_spill]] %s12021_s4 }
  0x4e   :  { %s12041_s4 = sld [smem:[%s14428_s0 + %s11808_s28]]   ;;  %s11812_s28 = smov 45  }
  0x4f   :  { %14492 = sst [smem:[#allocation36_spill]] %s12026_s30 }
  0x50   :  { %14493 = sst [smem:[#allocation37_spill]] %s12031_s20 }
  0x51   :  { %14494 = sst [smem:[#allocation38_spill]] %s12036_s27 }
  0x52   :  { %s12046_s30 = sld [smem:[%s14428_s0 + %s11809_s7]]   ;;  %s11813_s7 = smov 46  }
  0x53   :  { %s12051_s20 = sld [smem:[%s14428_s0 + %s11810_s15]]   ;;  %s11814_s15 = smov 47  }
  0x54   :  { %14495 = sst [smem:[#allocation39_spill]] %s12041_s4 }
  0x55   :  { %s12056_s27 = sld [smem:[%s14428_s0 + %s11811_s22]]   ;;  %s11815_s22 = smov 48  }
  0x56   :  { %s12061_s4 = sld [smem:[%s14428_s0 + %s11812_s28]]   ;;  %s11816_s28 = smov 49  }
  0x58   :  { %14496 = sst [smem:[#allocation40_spill]] %s12046_s30 }
  0x59   :  { %14497 = sst [smem:[#allocation41_spill]] %s12051_s20 }
  0x5a   :  { %s12066_s30 = sld [smem:[%s14428_s0 + %s11813_s7]]  }
  0x5b   :  { %14498 = sst [smem:[#allocation42_spill]] %s12056_s27 }
  0x5c   :  { %14499 = sst [smem:[#allocation43_spill]] %s12061_s4 }
  0x5d   :  { %s12071_s20 = sld [smem:[%s14428_s0 + %s11814_s15]]  }
  0x5e   :  { %s12076_s27 = sld [smem:[%s14428_s0 + %s11815_s22]]  }
  0x5f   :  { %s12081_s4 = sld [smem:[%s14428_s0 + %s11816_s28]]  }
  0x60   :  { %104 = vsyncpa [#allocation3], 0 }
  0x61   :  { %106 = vsyncpa [#allocation3 + $0x1], 0  ;;  %s12083_s7 = smov 0   ;;  %s12085_s10 = smov 0  }
  0x62   :  { %s12087_s11 = smov 0   ;;  %s12089_s15 = smov 0  }
  0x63 LB: > { %s14500_s8 = sld [smem:[#allocation9_spill]]  ;;  %s12104_s0 = sadd.s32 4294967295, %s11766_s15   ;;  %s11754_s7 = sphi %s12083_s7, %s14559_s7   ;;  %s11766_s15 = sphi %s12089_s15, %s14562_s15   ;;  %s11762_s11 = sphi %s12087_s11, %s14561_s11   ;;  %s11758_s10 = sphi %s12085_s10, %s14560_s10  }
  0x64   : > { %s10047_s16 = sadd.s32 4294967294, %s11766_s15   ;;  %s12108_s18 = sadd.s32 1, %s11766_s15  }
  0x65   : > { %s1243_s22 = sadd.s32 1, %s11762_s11  ;;  %s1240_s23 = ssub.s32 %s11766_s15, %s12108_s18 }
  0x66   : > { %p1253_p0 = scmp.ne.s32.totalorder %s11762_s11, %s11758_s10  ;;  %p1241_p1 = scmp.eq.s32.totalorder %s1240_s23, 0 }
  0x67   : > { %p1254_p2 = scmp.eq.s32.totalorder %s12104_s0, 1  ;;  %p1259_p3 = scmp.ne.s32.totalorder %s11758_s10, %s11754_s7 }
  0x68   : > { %p1260_p4 = scmp.eq.s32.totalorder %s10047_s16, 1  ;;  %p10050_p7 = scmp.ge.s32.totalorder %s11766_s15, 1 }
  0x69   : > { %s12119_s26 = scalar_select %p1241_p1, %s11762_s11, %s1243_s22  }
  0x6a   : > { %p12121_p5 = por %p1254_p2, %p1253_p0  ;;  %p12125_p6 = por %p1260_p4, %p1259_p3 }
  0x6b   : > { %p1520_p8 = scmp.lt.s32.totalorder %s11766_s15, 3 }
  0x6d   : > { %p1521_p9 = pnand %p10050_p7, %p1520_p8 }
  0x6e   : > { %s14503_s9 = sld [smem:[#allocation6_spill]] (!%p1521_p9)  ;;  %p1725_p10 = scmp.lt.s32.totalorder (!%p1521_p9), %s12104_s0, 1 }
  0x6f   : > { %1524 = sbr.rel (%p1521_p9) target bundleno = 4760 (0x1298), region = 216  ;;  %s14504_s5 = sld [smem:[#allocation5_spill]] (!%p1521_p9) }
  0x70   : > { %s14505_s13 = sld [smem:[#allocation7_spill]] (!%p1521_p9) }
  0x71   : > { %s14506_s3 = sld [smem:[#allocation8_spill]] (!%p1521_p9) }
  0x72   : > { %s14507_s6 = sld [smem:[#allocation11_spill]] (!%p1521_p9) }
  0x73   : > { %s14509_s12 = sld [smem:[#allocation12_spill]] (!%p1521_p9) }
  0x74   : > { %v1833_v0 = vld [vmem:[%s14503_s9] sm:$0x3]  ;;  %vm1851_vm0 = vcmask 1041408   ;;  %v11817_v1 = vmov 0   ;;  %s12135_s2 = scalar_select %p1725_p10, %s12104_s0, 1  ;;  %vm1838_vm1 = vcmask 31744  }
  0x75   : > { %11075 = vset.pattern.permute.xlu2 %v11817_v1  ;;  %11074 = vset.pattern.permute.xlu1 %v11817_v1  ;;  %v1853_v2 = vsel %vm1851_vm0, %v1833_v0, 0  ;;  %vm14454_vm4 = vcmask 523264  }
  0x76   : > { %1862 = vmatpush.bf16.msra.mxu0 %v1853_v2  ;;  %11073 = vset.pattern.permute.xlu0 %v11817_v1  ;;  %s10833_s16 = sshll.u32 %s12135_s2, 9  ;;  %s12139_s22 = sshll.u32 %s12135_s2, 6 }
  0x77   : > { %s12144_s23 = scalar_lea.vmem %s11851_s17, %s10833_s16  ;;  %s12150_s9 = scalar_lea.vmem %s14504_s5, %s12139_s22 }
  0x78   : > { %v1900_v3 = vld [vmem:[%s12144_s23 + $0x20] sm:$0xff]  ;;  %v1898_v4 = vld [vmem:[%s12144_s23 + $0x10] sm:$0xff]  ;;  %v1822_v6 = vld [vmem:[%s12150_s9 + $0x8] sm:$0xff]  ;;  %s14508_s5 = smov 3  }
  0x79   : > { %1975 = vperm.xlu2 %11075, %v1900_v3   ;;  %1969 = vperm.xlu1 %11074, %v1898_v4   ;;  %v1821_v5 = vld [vmem:[%s12150_s9] sm:$0xff]  ;;  %v1901_v9 = vld [vmem:[%s12144_s23 + $0x28] sm:$0xff]  ;;  %v1899_v10 = vld [vmem:[%s12144_s23 + $0x18] sm:$0xff] }
  0x7a   : > { %v1829_v7 = vpack.c.bf16 %v1822_v6, %v1821_v5  ;;  %v1896_v8 = vld [vmem:[%s12144_s23] sm:$0xff]  ;;  %v1897_v11 = vld [vmem:[%s12144_s23 + $0x8] sm:$0xff]  ;;  %v1823_v12 = vld [vmem:[%s12150_s9 + $0x10] sm:$0xff] }
  0x7b   : > { %1963 = vperm.xlu0 %11073, %v1896_v8   ;;  %v1824_v13 = vld [vmem:[%s12150_s9 + $0x18] sm:$0xff]  ;;  %v1904_v14 = vld [vmem:[%s12144_s23 + $0x40] sm:$0xff]  ;;  %v1902_v17 = vld [vmem:[%s12144_s23 + $0x30] sm:$0xff] }
  0x7c   : > { %10089 = vmatmul.msk.bf16.vlgmr.msra.gmra.mxu0 %vm1838_vm1, %v1829_v7  ;;  %v1903_v15 = vld [vmem:[%s12144_s23 + $0x38] sm:$0xff]  ;;  %v1830_v16 = vpack.c.bf16 %v1824_v13, %v1823_v12  ;;  %v1906_v19 = vld [vmem:[%s12144_s23 + $0x50] sm:$0xff]  ;;  %v1905_v20 = vld [vmem:[%s12144_s23 + $0x48] sm:$0xff] }
  0x7d   : > { %v1907_v18 = vld [vmem:[%s12144_s23 + $0x58] sm:$0xff]  ;;  %v1825_v21 = vld [vmem:[%s12150_s9 + $0x20] sm:$0xff]  ;;  %v1826_v22 = vld [vmem:[%s12150_s9 + $0x28] sm:$0xff] }
  0x7e   : > { %v1910_v23 = vld [vmem:[%s12144_s23 + $0x70] sm:$0xff]  ;;  %v1909_v24 = vld [vmem:[%s12144_s23 + $0x68] sm:$0xff]  ;;  %v1831_v25 = vpack.c.bf16 %v1826_v22, %v1825_v21  ;;  %v1908_v26 = vld [vmem:[%s12144_s23 + $0x60] sm:$0xff] }
  0x7f   : > { %v1913_v27 = vld [vmem:[%s12144_s23 + $0x88] sm:$0xff]  ;;  %v1912_v28 = vld [vmem:[%s12144_s23 + $0x80] sm:$0xff]  ;;  %v1911_v29 = vld [vmem:[%s12144_s23 + $0x78] sm:$0xff] }
  0x80   : > { %v1827_v30 = vld [vmem:[%s12150_s9 + $0x30] sm:$0xff]  ;;  %v1828_v31 = vld [vmem:[%s12150_s9 + $0x38] sm:$0xff]  ;;  %v1916_v32 = vld [vmem:[%s12144_s23 + $0xa0] sm:$0xff]  ;;  %s14441_s9 = smov 3  }
  0x81   : > { %1978 = vperm.xlu2 %11075, %v1901_v9   ;;  %1972 = vperm.xlu1 %11074, %v1899_v10   ;;  %v1915_v33 = vld [vmem:[%s12144_s23 + $0x98] sm:$0xff]  ;;  %v1832_v34 = vpack.c.bf16 %v1828_v31, %v1827_v30  ;;  %v1914_v35 = vld [vmem:[%s12144_s23 + $0x90] sm:$0xff]  ;;  %v1917_v38 = vld [vmem:[%s12144_s23 + $0xa8] sm:$0xff] }
  0x82   : > { %v1919_v36 = vld [vmem:[%s12144_s23 + $0xb8] sm:$0xff]  ;;  %v1918_v37 = vld [vmem:[%s12144_s23 + $0xb0] sm:$0xff]  ;;  %v1921_v39 = vld [vmem:[%s12144_s23 + $0xc8] sm:$0xff] }
  0x83   : > { %1966 = vperm.xlu0 %11073, %v1897_v11   ;;  %v1920_v40 = vld [vmem:[%s12144_s23 + $0xc0] sm:$0xff]  ;;  %v1923_v41 = vld [vmem:[%s12144_s23 + $0xd8] sm:$0xff]  ;;  %v1922_v42 = vld [vmem:[%s12144_s23 + $0xd0] sm:$0xff] }
  0x84   : > { %v1925_v43 = vld [vmem:[%s12144_s23 + $0xe8] sm:$0xff]  ;;  %v1924_v44 = vld [vmem:[%s12144_s23 + $0xe0] sm:$0xff]  ;;  %v1927_v45 = vld [vmem:[%s12144_s23 + $0xf8] sm:$0xff] }
  0x85   : > { %v1926_v46 = vld [vmem:[%s12144_s23 + $0xf0] sm:$0xff]  ;;  %v1929_v47 = vld [vmem:[%s12144_s23 + $0x108] sm:$0xff]  ;;  %v1928_v48 = vld [vmem:[%s12144_s23 + $0x100] sm:$0xff] }
  0x86   : > { %v1931_v49 = vld [vmem:[%s12144_s23 + $0x118] sm:$0xff]  ;;  %v1930_v50 = vld [vmem:[%s12144_s23 + $0x110] sm:$0xff]  ;;  %v1933_v51 = vld [vmem:[%s12144_s23 + $0x128] sm:$0xff] }
  0x87   : > { %v1932_v52 = vld [vmem:[%s12144_s23 + $0x120] sm:$0xff]  ;;  %v1935_v53 = vld [vmem:[%s12144_s23 + $0x138] sm:$0xff]  ;;  %v1934_v54 = vld [vmem:[%s12144_s23 + $0x130] sm:$0xff] }
  0x88   : > { %v1937_v55 = vld [vmem:[%s12144_s23 + $0x148] sm:$0xff]  ;;  %v1936_v56 = vld [vmem:[%s12144_s23 + $0x140] sm:$0xff]  ;;  %v1939_v58 = vld [vmem:[%s12144_s23 + $0x158] sm:$0xff] }
  0x89   : > { %1987 = vperm.xlu2 %11075, %v1904_v14   ;;  %1984 = vperm.xlu1 %11074, %v1903_v15   ;;  %v1938_v59 = vld [vmem:[%s12144_s23 + $0x150] sm:$0xff]  ;;  %v1941_v61 = vld [vmem:[%s12144_s23 + $0x168] sm:$0xff]  ;;  %v1940_v62 = vld [vmem:[%s12144_s23 + $0x160] sm:$0xff] }
  0x8a   : > { %v1943_v0 = vld [vmem:[%s12144_s23 + $0x178] sm:$0xff]  ;;  %v1942_v1 = vld [vmem:[%s12144_s23 + $0x170] sm:$0xff]  ;;  %v1945_v3 = vld [vmem:[%s12144_s23 + $0x188] sm:$0xff] }
  0x8b   : > { %1981 = vperm.xlu0 %11073, %v1902_v17   ;;  %v1944_v4 = vld [vmem:[%s12144_s23 + $0x180] sm:$0xff]  ;;  %v1947_v6 = vld [vmem:[%s12144_s23 + $0x198] sm:$0xff]  ;;  %v1946_v7 = vld [vmem:[%s12144_s23 + $0x190] sm:$0xff] }
  0x8c   : > { %10090 = vmatmul.msk.bf16.gmra.mxu0 %vm1838_vm1, %v1830_v16  ;;  %v1949_v9 = vld [vmem:[%s12144_s23 + $0x1a8] sm:$0xff]  ;;  %v1948_v10 = vld [vmem:[%s12144_s23 + $0x1a0] sm:$0xff]  ;;  %v1951_v13 = vld [vmem:[%s12144_s23 + $0x1b8] sm:$0xff] }
  0x8d   : > { %v11686_v12 = vld [vmem:[%s14505_s13] ss:$0 sm:$0xff]  ;;  %v1950_v14 = vld [vmem:[%s12144_s23 + $0x1b0] sm:$0xff] }
  0x91   : > { %1996 = vperm.xlu2 %11075, %v1907_v18   ;;  %1993 = vperm.xlu1 %11074, %v1906_v19  }
  0x93   : > { %1990 = vperm.xlu0 %11073, %v1905_v20  }
  0x99   : > { %2005 = vperm.xlu2 %11075, %v1910_v23   ;;  %2002 = vperm.xlu1 %11074, %v1909_v24  }
  0x9b   : > { %1999 = vperm.xlu0 %11073, %v1908_v26   ;;  %v1953_v26 = vld [vmem:[%s12144_s23 + $0x1c8] sm:$0xff] }
  0x9c   : > { %10091 = vmatmul.msk.bf16.gmra.mxu0 %vm1838_vm1, %v1831_v25 }
  0xa1   : > { %2014 = vperm.xlu2 %11075, %v1913_v27   ;;  %2011 = vperm.xlu1 %11074, %v1912_v28   ;;  %v1952_v27 = vld [vmem:[%s12144_s23 + $0x1c0] sm:$0xff]  ;;  %v1960_v28 = vlaneseq }
  0xa3   : > { %2008 = vperm.xlu0 %11073, %v1911_v29  }
  0xa9   : > { %2023 = vperm.xlu2 %11075, %v1916_v32   ;;  %2020 = vperm.xlu1 %11074, %v1915_v33  }
  0xab   : > { %2017 = vperm.xlu0 %11073, %v1914_v35  }
  0xac   : > { %10092 = vmatmul.msk.bf16.gmra.mxu0 %vm1838_vm1, %v1832_v34  ;;  %v12221_v34 = vand.u32 127, %v1960_v28 }
  0xb1   : > { %2032 = vperm.xlu2 %11075, %v1919_v36   ;;  %2029 = vperm.xlu1 %11074, %v1918_v37  }
  0xb3   : > { %2026 = vperm.xlu0 %11073, %v1917_v38  }
  0xb9   : > { %2038 = vperm.xlu2 %11075, %v1921_v39   ;;  %2035 = vperm.xlu1 %11074, %v1920_v40   ;;  %v1955_v40 = vld [vmem:[%s12144_s23 + $0x1d8] sm:$0xff] }
  0xc1   : > { %2044 = vperm.xlu2 %11075, %v1923_v41   ;;  %2041 = vperm.xlu1 %11074, %v1922_v42   ;;  %v1954_v41 = vld [vmem:[%s12144_s23 + $0x1d0] sm:$0xff] }
  0xc9   : > { %2050 = vperm.xlu2 %11075, %v1925_v43   ;;  %2047 = vperm.xlu1 %11074, %v1924_v44   ;;  %v11818_v43 = vmov 0.0  }
  0xd1   : > { %2056 = vperm.xlu2 %11075, %v1927_v45   ;;  %2053 = vperm.xlu1 %11074, %v1926_v46  }
  0xd9   : > { %2062 = vperm.xlu2 %11075, %v1929_v47   ;;  %2059 = vperm.xlu1 %11074, %v1928_v48  }
  0xe1   : > { %2068 = vperm.xlu2 %11075, %v1931_v49   ;;  %2065 = vperm.xlu1 %11074, %v1930_v50   ;;  %v1957_v49 = vld [vmem:[%s12144_s23 + $0x1e8] sm:$0xff]  ;;  %v1956_v50 = vld [vmem:[%s12144_s23 + $0x1e0] sm:$0xff] }
  0xe9   : > { %2074 = vperm.xlu2 %11075, %v1933_v51   ;;  %2071 = vperm.xlu1 %11074, %v1932_v52   ;;  %v1959_v52 = vld [vmem:[%s12144_s23 + $0x1f8] sm:$0xff] }
  0xeb   : > { %v1970_v47 = vpop.permute.xlu1 %1969 }
  0xec   : > { %vm2156_vm5 = vcmp.eq.s32.totalorder %v1970_v47, %v12221_v34 }
  0xed   : > { %v1964_v19 = vpop.permute.xlu0 %1963 }
  0xee   : > { %vm2154_vm2 = vcmp.eq.s32.totalorder %v1964_v19, %v12221_v34 }
  0xef   : > { %v2218_v44 = vsel %vm2154_vm2, 1.0, %v11818_v43 }
  0xf1   : > { %2080 = vperm.xlu2 %11075, %v1935_v53   ;;  %2077 = vperm.xlu1 %11074, %v1934_v54   ;;  %v1958_v53 = vld [vmem:[%s12144_s23 + $0x1f0] sm:$0xff]  ;;  %v2220_v54 = vsel %vm2156_vm5, 1.0, %v11818_v43  ;;  %s12322_s23 = scalar_lea.vmem %s11856_s21, %s10833_s16  ;;  %s12596_s16 = sshll.u32 %s12135_s2, 8 }
  0xf3   : > { %v1973_v51 = vpop.permute.xlu1 %1972 }
  0xf4   : > { %vm2157_vm6 = vcmp.eq.s32.totalorder %v1973_v51, %v12221_v34 }
  0xf5   : > { %v1967_v38 = vpop.permute.xlu0 %1966 }
  0xf6   : > { %vm2155_vm3 = vcmp.eq.s32.totalorder %v1967_v38, %v12221_v34 }
  0xf7   : > { %v2219_v45 = vsel %vm2155_vm3, 1.0, %v11818_v43 }
  0xf8   : > { %v2282_v48 = vpack.c.bf16 %v2219_v45, %v2218_v44 }
  0xf9   : > { %v1864_v57 = vpop.f32.mrf.mxu0  ;;  %2086 = vperm.xlu2 %11075, %v1937_v55   ;;  %2083 = vperm.xlu1 %11074, %v1936_v56   ;;  %v2221_v55 = vsel %vm2157_vm6, 1.0, %v11818_v43  ;;  %v1976_v56 = vpop.permute.xlu2 %1975 }
  0xfa   : > { %v1865_v35 = vadd.f32 %v11686_v12, %v1864_v57  ;;  %v2283_v57 = vpack.c.bf16 %v2221_v55, %v2220_v54  ;;  %vm2158_vm7 = vcmp.eq.s32.totalorder %v1976_v56, %v12221_v34 }
  0xfc   : > { %v1884_v42 = vmax.f32 %v1865_v35, 0.0 }
 0x101   : > { %v1866_v60 = vpop.f32.mrf.mxu0  ;;  %2092 = vperm.xlu2 %11075, %v1939_v58   ;;  %2089 = vperm.xlu1 %11074, %v1938_v59   ;;  %v1979_v58 = vpop.permute.xlu2 %1978  ;;  %v2222_v59 = vsel %vm2158_vm7, 1.0, %v11818_v43 }
 0x102   : > { %v1867_v31 = vadd.f32 %v11686_v12, %v1866_v60  ;;  %vm2159_vm8 = vcmp.eq.s32.totalorder %v1979_v58, %v12221_v34 }
 0x103   : > { %v2223_v60 = vsel %vm2159_vm8, 1.0, %v11818_v43 }
 0x104   : > { %v1885_v37 = vmax.f32 %v1867_v31, 0.0 }
 0x106   : > { %v1892_v46 = vpack.c.bf16 %v1885_v37, %v1884_v42 }
 0x109   : > { %v1869_v63 = vpop.f32.mrf.mxu0  ;;  %2098 = vperm.xlu2 %11075, %v1941_v61   ;;  %2095 = vperm.xlu1 %11074, %v1940_v62   ;;  %v2284_v61 = vpack.c.bf16 %v2223_v60, %v2222_v59  ;;  %v1985_v62 = vpop.permute.xlu1 %1984 }
 0x10a   : > { %v1870_v29 = vadd.f32 %v11686_v12, %v1869_v63  ;;  %v1982_v63 = vpop.permute.xlu0 %1981  ;;  %vm2161_vm9 = vcmp.eq.s32.totalorder %v1985_v62, %v12221_v34 }
 0x10b   : > { %vm2160_vm10 = vcmp.eq.s32.totalorder %v1982_v63, %v12221_v34 }
 0x10c   : > { %v1886_v36 = vmax.f32 %v1870_v29, 0.0 }
 0x111   : > { %v1871_v2 = vpop.f32.mrf.mxu0  ;;  %2104 = vperm.xlu2 %11075, %v1943_v0   ;;  %2101 = vperm.xlu1 %11074, %v1942_v1   ;;  %v2225_v0 = vsel %vm2161_vm9, 1.0, %v11818_v43  ;;  %v2224_v1 = vsel %vm2160_vm10, 1.0, %v11818_v43 }
 0x112   : > { %v1872_v23 = vadd.f32 %v11686_v12, %v1871_v2  ;;  %v2285_v2 = vpack.c.bf16 %v2225_v0, %v2224_v1 }
 0x114   : > { %v1887_v32 = vmax.f32 %v1872_v23, 0.0 }
 0x116   : > { %v1893_v39 = vpack.c.bf16 %v1887_v32, %v1886_v36 }
 0x119   : > { %v1874_v5 = vpop.f32.mrf.mxu0  ;;  %2110 = vperm.xlu2 %11075, %v1945_v3   ;;  %2107 = vperm.xlu1 %11074, %v1944_v4   ;;  %v1988_v3 = vpop.permute.xlu2 %1987 }
 0x11a   : > { %v1875_v20 = vadd.f32 %v11686_v12, %v1874_v5  ;;  %v1991_v4 = vpop.permute.xlu0 %1990  ;;  %vm2162_vm11 = vcmp.eq.s32.totalorder %v1988_v3, %v12221_v34 }
 0x11b   : > { %vm2163_vm12 = vcmp.eq.s32.totalorder %v1991_v4, %v12221_v34  ;;  %v2226_v5 = vsel %vm2162_vm11, 1.0, %v11818_v43 }
 0x11c   : > { %v1888_v30 = vmax.f32 %v1875_v20, 0.0 }
 0x121   : > { %v1876_v8 = vpop.f32.mrf.mxu0  ;;  %2116 = vperm.xlu2 %11075, %v1947_v6   ;;  %2113 = vperm.xlu1 %11074, %v1946_v7   ;;  %v2227_v6 = vsel %vm2163_vm12, 1.0, %v11818_v43 }
 0x122   : > { %v1877_v17 = vadd.f32 %v11686_v12, %v1876_v8  ;;  %v2286_v7 = vpack.c.bf16 %v2227_v6, %v2226_v5  ;;  %v1997_v8 = vpop.permute.xlu2 %1996 }
 0x123   : > { %vm2165_vm13 = vcmp.eq.s32.totalorder %v1997_v8, %v12221_v34 }
 0x124   : > { %v1889_v24 = vmax.f32 %v1877_v17, 0.0 }
 0x126   : > { %v1894_v33 = vpack.c.bf16 %v1889_v24, %v1888_v30 }
 0x129   : > { %v1879_v11 = vpop.f32.mrf.mxu0  ;;  %2122 = vperm.xlu2 %11075, %v1949_v9   ;;  %2119 = vperm.xlu1 %11074, %v1948_v10   ;;  %v1994_v9 = vpop.permute.xlu1 %1993  ;;  %v2229_v10 = vsel %vm2165_vm13, 1.0, %v11818_v43 }
 0x12a   : > { %v1880_v15 = vadd.f32 %v11686_v12, %v1879_v11  ;;  %vm2164_vm14 = vcmp.eq.s32.totalorder %v1994_v9, %v12221_v34 }
 0x12b   : > { %v2228_v11 = vsel %vm2164_vm14, 1.0, %v11818_v43 }
 0x12c   : > { %v1890_v21 = vmax.f32 %v1880_v15, 0.0 }
 0x131   : > { %v1881_v16 = vpop.f32.mrf.mxu0  ;;  %2128 = vperm.xlu2 %11075, %v1951_v13   ;;  %2125 = vperm.xlu1 %11074, %v1950_v14   ;;  %v2003_v13 = vpop.permute.xlu1 %2002 }
 0x132   : > { %v1882_v18 = vadd.f32 %v11686_v12, %v1881_v16  ;;  %v2287_v12 = vpack.c.bf16 %v2229_v10, %v2228_v11  ;;  %v2000_v14 = vpop.permute.xlu0 %1999  ;;  %vm2167_vm15 = vcmp.eq.s32.totalorder %v2003_v13, %v12221_v34  ;;  %v11820_v11 = vmov 65535  }
 0x133   : > { %vm2166_vm1 = vcmp.eq.s32.totalorder %v2000_v14, %v12221_v34  ;;  %v2231_v15 = vsel %vm2167_vm15, 1.0, %v11818_v43 }
 0x134   : > { %v1891_v22 = vmax.f32 %v1882_v18, 0.0  ;;  %v2230_v16 = vsel %vm2166_vm1, 1.0, %v11818_v43  ;;  %v2006_v18 = vpop.permute.xlu2 %2005 }
 0x135   : > { %v2288_v17 = vpack.c.bf16 %v2231_v15, %v2230_v16  ;;  %vm2168_vm2 = vcmp.eq.s32.totalorder %v2006_v18, %v12221_v34 }
 0x136   : > { %v1895_v25 = vpack.c.bf16 %v1891_v22, %v1890_v21  ;;  %v2232_v20 = vsel %vm2168_vm2, 1.0, %v11818_v43  ;;  %vm3110_vm2 = vcmask 1040384  }
 0x138   : > { %2415 = vmatpush.bf16.msra.mxu1 %v1895_v25 }
 0x139   : > { %2134 = vperm.xlu2 %11075, %v1953_v26   ;;  %2131 = vperm.xlu1 %11074, %v1952_v27   ;;  %v2012_v24 = vpop.permute.xlu1 %2011 }
 0x13a   : > { %v2009_v19 = vpop.permute.xlu0 %2008  ;;  %vm2170_vm6 = vcmp.eq.s32.totalorder %v2012_v24, %v12221_v34 }
 0x13b   : > { %vm2169_vm3 = vcmp.eq.s32.totalorder %v2009_v19, %v12221_v34  ;;  %v2234_v26 = vsel %vm2170_vm6, 1.0, %v11818_v43 }
 0x13c   : > { %2416 = vmatpush.bf16.msra.mxu1 %v1894_v33  ;;  %v2233_v21 = vsel %vm2169_vm3, 1.0, %v11818_v43  ;;  %v2015_v23 = vpop.permute.xlu2 %2014 }
 0x13d   : > { %v2289_v22 = vpack.c.bf16 %v2233_v21, %v2232_v20  ;;  %vm2171_vm5 = vcmp.eq.s32.totalorder %v2015_v23, %v12221_v34  ;;  %v10851_v20 = vld [vmem:[%s11861_s25] sm:$0xff] }
 0x13e   : > { %v2235_v25 = vsel %vm2171_vm5, 1.0, %v11818_v43 }
 0x13f   : > { %v2290_v28 = vpack.c.bf16 %v2235_v25, %v2234_v26 }
 0x140   : > { %2417 = vmatpush.bf16.msra.mxu1 %v1893_v39 }
 0x141   : > { %2140 = vperm.xlu2 %11075, %v1955_v40   ;;  %2137 = vperm.xlu1 %11074, %v1954_v41   ;;  %v2021_v31 = vpop.permute.xlu1 %2020 }
 0x142   : > { %v2018_v32 = vpop.permute.xlu0 %2017  ;;  %vm2173_vm7 = vcmp.eq.s32.totalorder %v2021_v31, %v12221_v34 }
 0x143   : > { %vm2172_vm8 = vcmp.eq.s32.totalorder %v2018_v32, %v12221_v34  ;;  %v2237_v33 = vsel %vm2173_vm7, 1.0, %v11818_v43 }
 0x144   : > { %2418 = vmatpush.bf16.msra.mxu1 %v1892_v46  ;;  %v2236_v35 = vsel %vm2172_vm8, 1.0, %v11818_v43  ;;  %v2024_v41 = vpop.permute.xlu2 %2023 }
 0x145   : > { %v2291_v37 = vpack.c.bf16 %v2237_v33, %v2236_v35  ;;  %vm2174_vm9 = vcmp.eq.s32.totalorder %v2024_v41, %v12221_v34 }
 0x146   : > { %v2238_v42 = vsel %vm2174_vm9, 1.0, %v11818_v43  ;;  %vm2900_vm9 = vcmask 23552  }
 0x147   : > { %10093 = vmatmul.msk.bf16.vlgmr.msra.gmra.mxu1 %vm14454_vm4, %v2282_v48 }
 0x149   : > { %2146 = vperm.xlu2 %11075, %v1957_v49   ;;  %2143 = vperm.xlu1 %11074, %v1956_v50   ;;  %v2030_v50 = vpop.permute.xlu1 %2029 }
 0x14a   : > { %v2027_v38 = vpop.permute.xlu0 %2026  ;;  %vm2176_vm12 = vcmp.eq.s32.totalorder %v2030_v50, %v12221_v34 }
 0x14b   : > { %vm2175_vm10 = vcmp.eq.s32.totalorder %v2027_v38, %v12221_v34  ;;  %v2581_v38 = vld [vmem:[%s12322_s23 + $0x8] sm:$0xff] }
 0x14c   : > { %v2239_v44 = vsel %vm2175_vm10, 1.0, %v11818_v43  ;;  %v2033_v49 = vpop.permute.xlu2 %2032  ;;  %vm3013_vm10 = vcmask 154624  }
 0x14d   : > { %v2292_v46 = vpack.c.bf16 %v2239_v44, %v2238_v42  ;;  %vm2177_vm11 = vcmp.eq.s32.totalorder %v2033_v49, %v12221_v34 }
 0x14e   : > { %v2241_v51 = vsel %vm2177_vm11, 1.0, %v11818_v43 }
 0x151   : > { %2152 = vperm.xlu2 %11075, %v1959_v52   ;;  %2149 = vperm.xlu1 %11074, %v1958_v53   ;;  %v2240_v52 = vsel %vm2176_vm12, 1.0, %v11818_v43  ;;  %v2036_v58 = vpop.permute.xlu1 %2035 }
 0x152   : > { %v2293_v54 = vpack.c.bf16 %v2241_v51, %v2240_v52  ;;  %vm2178_vm14 = vcmp.eq.s32.totalorder %v2036_v58, %v12221_v34 }
 0x153   : > { %v2242_v60 = vsel %vm2178_vm14, 1.0, %v11818_v43 }
 0x157   : > { %10094 = vmatmul.msk.bf16.gmra.mxu1 %vm14454_vm4, %v2283_v57  ;;  %v2039_v57 = vpop.permute.xlu2 %2038 }
 0x158   : > { %vm2179_vm13 = vcmp.eq.s32.totalorder %v2039_v57, %v12221_v34 }
 0x159   : > { %v2243_v59 = vsel %vm2179_vm13, 1.0, %v11818_v43 }
 0x15a   : > { %v2294_v62 = vpack.c.bf16 %v2243_v59, %v2242_v60 }
 0x15f   : > { %v2045_v1 = vpop.permute.xlu2 %2044 }
 0x160   : > { %vm2181_vm15 = vcmp.eq.s32.totalorder %v2045_v1, %v12221_v34 }
 0x161   : > { %v2245_v3 = vsel %vm2181_vm15, 1.0, %v11818_v43 }
 0x167   : > { %10095 = vmatmul.msk.bf16.gmra.mxu1 %vm14454_vm4, %v2284_v61  ;;  %v2051_v15 = vpop.permute.xlu2 %2050 }
 0x168   : > { %vm2183_vm3 = vcmp.eq.s32.totalorder %v2051_v15, %v12221_v34 }
 0x169   : > { %v2247_v18 = vsel %vm2183_vm3, 1.0, %v11818_v43 }
 0x16f   : > { %v2057_v25 = vpop.permute.xlu2 %2056 }
 0x177   : > { %10096 = vmatmul.msk.bf16.gmra.mxu1 %vm14454_vm4, %v2285_v2  ;;  %v2042_v2 = vpop.permute.xlu1 %2041  ;;  %v2063_v35 = vpop.permute.xlu2 %2062 }
 0x178   : > { %vm2180_vm1 = vcmp.eq.s32.totalorder %v2042_v2, %v12221_v34  ;;  %vm2187_vm7 = vcmp.eq.s32.totalorder %v2063_v35, %v12221_v34 }
 0x179   : > { %v2244_v4 = vsel %vm2180_vm1, 1.0, %v11818_v43 }
 0x17a   : > { %v2295_v6 = vpack.c.bf16 %v2245_v3, %v2244_v4 }
 0x17f   : > { %v2048_v16 = vpop.permute.xlu1 %2047  ;;  %v2069_v52 = vpop.permute.xlu2 %2068 }
 0x180   : > { %vm2182_vm5 = vcmp.eq.s32.totalorder %v2048_v16, %v12221_v34  ;;  %vm2189_vm11 = vcmp.eq.s32.totalorder %v2069_v52, %v12221_v34 }
 0x181   : > { %v2246_v19 = vsel %vm2182_vm5, 1.0, %v11818_v43 }
 0x187   : > { %10097 = vmatmul.msk.bf16.gmra.mxu1 %vm14454_vm4, %v2286_v7  ;;  %v2999_v7 = vld [vmem:[%s11861_s25 + $0x8] sm:$0x3]  ;;  %v2054_v26 = vpop.permute.xlu1 %2053  ;;  %v2075_v4 = vpop.permute.xlu2 %2074 }
 0x188   : > { %v3009_v8 = vunpack.c.l.b16 %v2999_v7  ;;  %vm2184_vm6 = vcmp.eq.s32.totalorder %v2054_v26, %v12221_v34  ;;  %vm2191_vm14 = vcmp.eq.s32.totalorder %v2075_v4, %v12221_v34  ;;  %v2585_v7 = vld [vmem:[%s12322_s23 + $0x28] sm:$0xff] }
 0x18a   : > { %v3011_v10 = vpack.c.b16 %v3009_v8, %v3009_v8 }
 0x18f   : > { %v2060_v31 = vpop.permute.xlu1 %2059 }
 0x190   : > { %vm2186_vm8 = vcmp.eq.s32.totalorder %v2060_v31, %v12221_v34 }
 0x197   : > { %10098 = vmatmul.msk.bf16.gmra.mxu1 %vm14454_vm4, %v2287_v12  ;;  %v3111_v12 = vsel %vm3110_vm2, 4294967295, %v11820_v11  ;;  %v2066_v49 = vpop.permute.xlu1 %2065  ;;  %v2255_v11 = vsel %vm2191_vm14, 1.0, %v11818_v43 }
 0x198   : > { %v3112_v14 = vsel %vm1851_vm0, %v3111_v12, 0  ;;  %vm2185_vm0 = vcmp.eq.s32.totalorder %v2057_v25, %v12221_v34  ;;  %vm2188_vm12 = vcmp.eq.s32.totalorder %v2066_v49, %v12221_v34 }
 0x199   : > { %v2252_v57 = vsel %vm2188_vm12, 1.0, %v11818_v43 }
 0x19f   : > { %v2072_v1 = vpop.permute.xlu1 %2071 }
 0x1a0   : > { %vm2190_vm13 = vcmp.eq.s32.totalorder %v2072_v1, %v12221_v34 }
 0x1a1   : > { %v2254_v8 = vsel %vm2190_vm13, 1.0, %v11818_v43 }
 0x1a2   : > { %v2300_v15 = vpack.c.bf16 %v2255_v11, %v2254_v8  ;;  %v2592_v8 = vld [vmem:[%s12322_s23 + $0x60] sm:$0xff] }
 0x1a7   : > { %10099 = vmatmul.msk.bf16.gmra.mxu1 %vm14454_vm4, %v2288_v17  ;;  %v3114_v17 = vand.u32 %v3112_v14, %v3011_v10 }
 0x1a9   : > { %3122 = vmatpush.bf16.msra.mxu2 %v3114_v17  ;;  %v2078_v17 = vpop.permute.xlu1 %2077 }
 0x1aa   : > { %vm2192_vm15 = vcmp.eq.s32.totalorder %v2078_v17, %v12221_v34 }
 0x1ad   : > { %3123 = vmatpush.bf16.msra.mxu2 %v10851_v20  ;;  %v2081_v20 = vpop.permute.xlu2 %2080 }
 0x1ae   : > { %vm2193_vm1 = vcmp.eq.s32.totalorder %v2081_v20, %v12221_v34 }
 0x1b7   : > { %10100 = vmatmul.msk.bf16.gmra.mxu1 %vm14454_vm4, %v2289_v22  ;;  %v2296_v22 = vpack.c.bf16 %v2247_v18, %v2246_v19 }
 0x1c4   : > { %v2420_v27 = vpop.f32.mrf.mxu1 }
 0x1c7   : > { %10101 = vmatmul.msk.bf16.gmra.mxu1 %vm14454_vm4, %v2290_v28  ;;  %v2248_v28 = vsel %vm2184_vm6, 1.0, %v11818_v43 }
 0x1cc   : > { %v2422_v29 = vpop.f32.mrf.mxu1 }
 0x1cd   : > { %v11076_v30 = vpack.i.bf16 %v2422_v29, %v2420_v27  ;;  %v2249_v27 = vsel %vm2185_vm0, 1.0, %v11818_v43 }
 0x1cf   : > { %11077 = vrot.lane.b32.xlu0 %v11076_v30, %s14441_s9  ;;  %v2297_v30 = vpack.c.bf16 %v2249_v27, %v2248_v28  ;;  %v2257_v27 = vsel %vm2193_vm1, 1.0, %v11818_v43  ;;  %vm14443_vm1 = vcmask 130048  }
 0x1d4   : > { %v2425_v36 = vpop.f32.mrf.mxu1 }
 0x1d7   : > { %10102 = vmatmul.msk.bf16.gmra.mxu1 %vm14454_vm4, %v2291_v37  ;;  %v2580_v37 = vld [vmem:[%s12322_s23] sm:$0xff] }
 0x1dc   : > { %v2427_v39 = vpop.f32.mrf.mxu1 }
 0x1dd   : > { %v11081_v40 = vpack.i.bf16 %v2427_v39, %v2425_v36  ;;  %v2251_v39 = vsel %vm2187_vm7, 1.0, %v11818_v43 }
 0x1df   : > { %11082 = vrot.lane.b32.xlu0 %v11081_v40, %s14441_s9  ;;  %v2250_v40 = vsel %vm2186_vm8, 1.0, %v11818_v43 }
 0x1e4   : > { %v2430_v45 = vpop.f32.mrf.mxu1 }
 0x1e7   : > { %10103 = vmatmul.msk.bf16.gmra.mxu1 %vm14454_vm4, %v2292_v46 }
 0x1ec   : > { %v2432_v47 = vpop.f32.mrf.mxu1 }
 0x1ed   : > { %v11086_v48 = vpack.i.bf16 %v2432_v47, %v2430_v45  ;;  %v2298_v47 = vpack.c.bf16 %v2251_v39, %v2250_v40  ;;  %v2588_v39 = vld [vmem:[%s12322_s23 + $0x40] sm:$0xff]  ;;  %v2589_v40 = vld [vmem:[%s12322_s23 + $0x48] sm:$0xff] }
 0x1ef   : > { %11087 = vrot.lane.b32.xlu0 %v11086_v48, %s14441_s9 }
 0x1f4   : > { %v2435_v53 = vpop.f32.mrf.mxu1 }
 0x1f7   : > { %10104 = vmatmul.msk.bf16.gmra.mxu1 %vm14454_vm4, %v2293_v54  ;;  %v2582_v54 = vld [vmem:[%s12322_s23 + $0x10] sm:$0xff] }
 0x1fc   : > { %v2437_v55 = vpop.f32.mrf.mxu1 }
 0x1fd   : > { %v11091_v56 = vpack.i.bf16 %v2437_v55, %v2435_v53  ;;  %v2583_v55 = vld [vmem:[%s12322_s23 + $0x18] sm:$0xff] }
 0x1ff   : > { %11092 = vrot.lane.b32.xlu0 %v11091_v56, %s14441_s9  ;;  %v2253_v56 = vsel %vm2189_vm11, 1.0, %v11818_v43 }
 0x204   : > { %v2440_v61 = vpop.f32.mrf.mxu1 }
 0x207   : > { %10105 = vmatmul.msk.bf16.gmra.mxu1 %vm14454_vm4, %v2294_v62 }
 0x20c   : > { %v2442_v63 = vpop.f32.mrf.mxu1 }
 0x20d   : > { %v11096_v0 = vpack.i.bf16 %v2442_v63, %v2440_v61  ;;  %v2299_v63 = vpack.c.bf16 %v2253_v56, %v2252_v57  ;;  %v2590_v56 = vld [vmem:[%s12322_s23 + $0x50] sm:$0xff]  ;;  %v2591_v57 = vld [vmem:[%s12322_s23 + $0x58] sm:$0xff] }
 0x20f   : > { %11097 = vrot.lane.b32.xlu0 %v11096_v0, %s14441_s9 }
 0x214   : > { %v2445_v5 = vpop.f32.mrf.mxu1 }
 0x217   : > { %10106 = vmatmul.msk.bf16.gmra.mxu1 %vm14454_vm4, %v2295_v6  ;;  %v2584_v6 = vld [vmem:[%s12322_s23 + $0x20] sm:$0xff] }
 0x21c   : > { %v2447_v9 = vpop.f32.mrf.mxu1 }
 0x21d   : > { %v11101_v13 = vpack.i.bf16 %v2447_v9, %v2445_v5 }
 0x21f   : > { %11102 = vrot.lane.b32.xlu0 %v11101_v13, %s14441_s9 }
 0x224   : > { %v2450_v21 = vpop.f32.mrf.mxu1 }
 0x227   : > { %10107 = vmatmul.msk.bf16.gmra.mxu1 %vm14454_vm4, %v2296_v22  ;;  %v2586_v22 = vld [vmem:[%s12322_s23 + $0x30] sm:$0xff] }
 0x22c   : > { %v2452_v23 = vpop.f32.mrf.mxu1 }
 0x22d   : > { %v11106_v24 = vpack.i.bf16 %v2452_v23, %v2450_v21  ;;  %v2587_v23 = vld [vmem:[%s12322_s23 + $0x38] sm:$0xff] }
 0x22f   : > { %11107 = vrot.lane.b32.xlu0 %v11106_v24, %s14441_s9  ;;  %v2256_v24 = vsel %vm2192_vm15, 1.0, %v11818_v43 }
 0x230   : > { %v2301_v31 = vpack.c.bf16 %v2257_v27, %v2256_v24  ;;  %v2594_v24 = vld [vmem:[%s12322_s23 + $0x70] sm:$0xff] }
 0x234   : > { %v2455_v29 = vpop.f32.mrf.mxu1 }
 0x237   : > { %10108 = vmatmul.msk.bf16.gmra.mxu1 %vm14454_vm4, %v2297_v30 }
 0x23c   : > { %v2457_v32 = vpop.f32.mrf.mxu1 }
 0x23d   : > { %v11111_v33 = vpack.i.bf16 %v2457_v32, %v2455_v29 }
 0x23f   : > { %11112 = vrot.lane.b32.xlu0 %v11111_v33, %s14441_s9  ;;  %v2084_v33 = vpop.permute.xlu1 %2083 }
 0x240   : > { %vm2194_vm2 = vcmp.eq.s32.totalorder %v2084_v33, %v12221_v34  ;;  %v10852_v33 = vld [vmem:[%s14506_s3] sm:$0xff]  ;;  %s12604_s3 = scalar_lea.vmem %s11891_s24, %s12596_s16 }
 0x241   : > { %v11078_v36 = vpop.permute.xlu0 %11077  ;;  %3497 = vmatpush.bf16.msra.mxu3 %v10852_v33 }
 0x242   : > { %v11080_v41 = vunpack.i.h.bf16 %v11078_v36  ;;  %v11079_v42 = vunpack.i.l.bf16 %v11078_v36 }
 0x244   : > { %v2460_v44 = vpop.f32.mrf.mxu1  ;;  %v2901_v45 = vsel %vm2900_vm9, %v2580_v37, %v11079_v42  ;;  %v2902_v46 = vsel %vm2900_vm9, %v2581_v38, %v11080_v41  ;;  %v2087_v37 = vpop.permute.xlu2 %2086  ;;  %v2258_v41 = vsel %vm2194_vm2, 1.0, %v11818_v43 }
 0x245   : > { %v2965_v48 = vpack.c.bf16 %v2902_v46, %v2901_v45  ;;  %vm2195_vm3 = vcmp.eq.s32.totalorder %v2087_v37, %v12221_v34 }
 0x246   : > { %v2259_v45 = vsel %vm2195_vm3, 1.0, %v11818_v43 }
 0x247   : > { %10109 = vmatmul.msk.bf16.gmra.mxu1 %vm14454_vm4, %v2298_v47  ;;  %10129 = vmatmul.msk.bf16.vlgmr.msra.gmra.mxu2 %vm3013_vm10, %v2965_v48  ;;  %v2302_v49 = vpack.c.bf16 %v2259_v45, %v2258_v41 }
 0x24c   : > { %v2462_v50 = vpop.f32.mrf.mxu1 }
 0x24d   : > { %v11116_v51 = vpack.i.bf16 %v2462_v50, %v2460_v44 }
 0x24f   : > { %11117 = vrot.lane.b32.xlu0 %v11116_v51, %s14441_s9  ;;  %v2090_v51 = vpop.permute.xlu1 %2089 }
 0x250   : > { %vm2196_vm5 = vcmp.eq.s32.totalorder %v2090_v51, %v12221_v34 }
 0x251   : > { %v11083_v53 = vpop.permute.xlu0 %11082 }
 0x252   : > { %v11085_v58 = vunpack.i.h.bf16 %v11083_v53  ;;  %v11084_v59 = vunpack.i.l.bf16 %v11083_v53 }
 0x254   : > { %v2465_v60 = vpop.f32.mrf.mxu1  ;;  %v2903_v61 = vsel %vm2900_vm9, %v2582_v54, %v11084_v59  ;;  %v2904_v62 = vsel %vm2900_vm9, %v2583_v55, %v11085_v58  ;;  %v2093_v54 = vpop.permute.xlu2 %2092  ;;  %v2260_v58 = vsel %vm2196_vm5, 1.0, %v11818_v43 }
 0x255   : > { %v2966_v0 = vpack.c.bf16 %v2904_v62, %v2903_v61  ;;  %vm2197_vm0 = vcmp.eq.s32.totalorder %v2093_v54, %v12221_v34 }
 0x256   : > { %v2261_v61 = vsel %vm2197_vm0, 1.0, %v11818_v43 }
 0x257   : > { %10110 = vmatmul.msk.bf16.gmra.mxu1 %vm14454_vm4, %v2299_v63  ;;  %10130 = vmatmul.msk.bf16.gmra.mxu2 %vm3013_vm10, %v2966_v0  ;;  %v2303_v1 = vpack.c.bf16 %v2261_v61, %v2260_v58 }
 0x25c   : > { %v2467_v2 = vpop.f32.mrf.mxu1 }
 0x25d   : > { %v11121_v3 = vpack.i.bf16 %v2467_v2, %v2465_v60 }
 0x25f   : > { %11122 = vrot.lane.b32.xlu0 %v11121_v3, %s14441_s9  ;;  %v2096_v3 = vpop.permute.xlu1 %2095 }
 0x260   : > { %vm2198_vm6 = vcmp.eq.s32.totalorder %v2096_v3, %v12221_v34 }
 0x261   : > { %v11088_v5 = vpop.permute.xlu0 %11087 }
 0x262   : > { %v11090_v9 = vunpack.i.h.bf16 %v11088_v5  ;;  %v11089_v10 = vunpack.i.l.bf16 %v11088_v5 }
 0x264   : > { %v2470_v12 = vpop.f32.mrf.mxu1  ;;  %v2905_v13 = vsel %vm2900_vm9, %v2584_v6, %v11089_v10  ;;  %v2906_v14 = vsel %vm2900_vm9, %v2585_v7, %v11090_v9  ;;  %v2099_v6 = vpop.permute.xlu2 %2098  ;;  %v2593_v9 = vld [vmem:[%s12322_s23 + $0x68] sm:$0xff]  ;;  %v2262_v10 = vsel %vm2198_vm6, 1.0, %v11818_v43 }
 0x265   : > { %v2967_v16 = vpack.c.bf16 %v2906_v14, %v2905_v13  ;;  %vm2199_vm7 = vcmp.eq.s32.totalorder %v2099_v6, %v12221_v34 }
 0x266   : > { %v2263_v13 = vsel %vm2199_vm7, 1.0, %v11818_v43 }
 0x267   : > { %10111 = vmatmul.msk.bf16.gmra.mxu1 %vm14454_vm4, %v2300_v15  ;;  %10131 = vmatmul.msk.bf16.gmra.mxu2 %vm3013_vm10, %v2967_v16  ;;  %v2304_v17 = vpack.c.bf16 %v2263_v13, %v2262_v10 }
 0x26c   : > { %v2472_v18 = vpop.f32.mrf.mxu1 }
 0x26d   : > { %v11126_v19 = vpack.i.bf16 %v2472_v18, %v2470_v12 }
 0x26f   : > { %11127 = vrot.lane.b32.xlu0 %v11126_v19, %s14441_s9  ;;  %v2102_v19 = vpop.permute.xlu1 %2101 }
 0x270   : > { %vm2200_vm8 = vcmp.eq.s32.totalorder %v2102_v19, %v12221_v34 }
 0x271   : > { %v11093_v21 = vpop.permute.xlu0 %11092 }
 0x272   : > { %v11095_v25 = vunpack.i.h.bf16 %v11093_v21  ;;  %v11094_v26 = vunpack.i.l.bf16 %v11093_v21 }
 0x274   : > { %v2475_v28 = vpop.f32.mrf.mxu1  ;;  %v2907_v29 = vsel %vm2900_vm9, %v2586_v22, %v11094_v26  ;;  %v2908_v30 = vsel %vm2900_vm9, %v2587_v23, %v11095_v25  ;;  %v2105_v22 = vpop.permute.xlu2 %2104  ;;  %v2595_v25 = vld [vmem:[%s12322_s23 + $0x78] sm:$0xff]  ;;  %v2264_v26 = vsel %vm2200_vm8, 1.0, %v11818_v43 }
 0x275   : > { %v2968_v32 = vpack.c.bf16 %v2908_v30, %v2907_v29  ;;  %vm2201_vm11 = vcmp.eq.s32.totalorder %v2105_v22, %v12221_v34  ;;  %v2601_v22 = vld [vmem:[%s12322_s23 + $0xa8] sm:$0xff] }
 0x276   : > { %v2265_v29 = vsel %vm2201_vm11, 1.0, %v11818_v43 }
 0x277   : > { %10112 = vmatmul.msk.bf16.gmra.mxu1 %vm14454_vm4, %v2301_v31  ;;  %10132 = vmatmul.msk.bf16.gmra.mxu2 %vm3013_vm10, %v2968_v32  ;;  %v2108_v37 = vpop.permute.xlu1 %2107 }
 0x278   : > { %vm2202_vm12 = vcmp.eq.s32.totalorder %v2108_v37, %v12221_v34 }
 0x279   : > { %v2266_v45 = vsel %vm2202_vm12, 1.0, %v11818_v43 }
 0x27c   : > { %v2477_v35 = vpop.f32.mrf.mxu1 }
 0x27d   : > { %v11131_v36 = vpack.i.bf16 %v2477_v35, %v2475_v28  ;;  %v2305_v35 = vpack.c.bf16 %v2265_v29, %v2264_v26 }
 0x27f   : > { %11132 = vrot.lane.b32.xlu0 %v11131_v36, %s14441_s9 }
 0x281   : > { %v11098_v38 = vpop.permute.xlu0 %11097 }
 0x282   : > { %v11100_v42 = vunpack.i.h.bf16 %v11098_v38  ;;  %v11099_v44 = vunpack.i.l.bf16 %v11098_v38 }
 0x284   : > { %v2480_v46 = vpop.f32.mrf.mxu1  ;;  %v2909_v47 = vsel %vm2900_vm9, %v2588_v39, %v11099_v44  ;;  %v2910_v48 = vsel %vm2900_vm9, %v2589_v40, %v11100_v42  ;;  %v2111_v40 = vpop.permute.xlu2 %2110  ;;  %v2596_v42 = vld [vmem:[%s12322_s23 + $0x80] sm:$0xff]  ;;  %v2597_v44 = vld [vmem:[%s12322_s23 + $0x88] sm:$0xff] }
 0x285   : > { %v2969_v50 = vpack.c.bf16 %v2910_v48, %v2909_v47  ;;  %vm2203_vm13 = vcmp.eq.s32.totalorder %v2111_v40, %v12221_v34 }
 0x286   : > { %v2267_v48 = vsel %vm2203_vm13, 1.0, %v11818_v43 }
 0x287   : > { %10113 = vmatmul.msk.bf16.gmra.mxu1 %vm14454_vm4, %v2302_v49  ;;  %10133 = vmatmul.msk.bf16.gmra.mxu2 %vm3013_vm10, %v2969_v50 }
 0x28c   : > { %v2482_v52 = vpop.f32.mrf.mxu1 }
 0x28d   : > { %v11136_v53 = vpack.i.bf16 %v2482_v52, %v2480_v46  ;;  %v2306_v52 = vpack.c.bf16 %v2267_v48, %v2266_v45 }
 0x28f   : > { %11137 = vrot.lane.b32.xlu0 %v11136_v53, %s14441_s9 }
 0x291   : > { %v11103_v55 = vpop.permute.xlu0 %11102 }
 0x292   : > { %v11105_v59 = vunpack.i.h.bf16 %v11103_v55  ;;  %v11104_v60 = vunpack.i.l.bf16 %v11103_v55  ;;  %v2114_v55 = vpop.permute.xlu1 %2113 }
 0x293   : > { %vm2204_vm14 = vcmp.eq.s32.totalorder %v2114_v55, %v12221_v34 }
 0x294   : > { %v2485_v62 = vpop.f32.mrf.mxu1  ;;  %v2911_v63 = vsel %vm2900_vm9, %v2590_v56, %v11104_v60  ;;  %v2912_v0 = vsel %vm2900_vm9, %v2591_v57, %v11105_v59  ;;  %v12425_v57 = vld [vmem:[%s11866_s29] ss:$0 sm:$0xff]  ;;  %v2117_v59 = vpop.permute.xlu2 %2116 }
 0x295   : > { %v2970_v2 = vpack.c.bf16 %v2912_v0, %v2911_v63  ;;  %vm2205_vm15 = vcmp.eq.s32.totalorder %v2117_v59, %v12221_v34  ;;  %v2599_v63 = vld [vmem:[%s12322_s23 + $0x98] sm:$0xff]  ;;  %v2268_v0 = vsel %vm2204_vm14, 1.0, %v11818_v43 }
 0x297   : > { %10114 = vmatmul.msk.bf16.gmra.mxu1 %vm14454_vm4, %v2303_v1  ;;  %10134 = vmatmul.msk.bf16.gmra.mxu2 %vm3013_vm10, %v2970_v2 }
 0x29c   : > { %v2487_v4 = vpop.f32.mrf.mxu1 }
 0x29d   : > { %v11141_v5 = vpack.i.bf16 %v2487_v4, %v2485_v62  ;;  %v2598_v62 = vld [vmem:[%s12322_s23 + $0x90] sm:$0xff] }
 0x29f   : > { %11142 = vrot.lane.b32.xlu0 %v11141_v5, %s14441_s9  ;;  %v2269_v5 = vsel %vm2205_vm15, 1.0, %v11818_v43 }
 0x2a1   : > { %v11108_v7 = vpop.permute.xlu0 %11107 }
 0x2a2   : > { %v11110_v11 = vunpack.i.h.bf16 %v11108_v7  ;;  %v11109_v12 = vunpack.i.l.bf16 %v11108_v7 }
 0x2a4   : > { %v2490_v14 = vpop.f32.mrf.mxu1  ;;  %v2913_v15 = vsel %vm2900_vm9, %v2592_v8, %v11109_v12  ;;  %v2914_v16 = vsel %vm2900_vm9, %v2593_v9, %v11110_v11  ;;  %v2307_v9 = vpack.c.bf16 %v2269_v5, %v2268_v0  ;;  %v2604_v5 = vld [vmem:[%s12322_s23 + $0xc0] sm:$0xff] }
 0x2a5   : > { %v2971_v18 = vpack.c.bf16 %v2914_v16, %v2913_v15  ;;  %v2120_v15 = vpop.permute.xlu1 %2119 }
 0x2a6   : > { %vm2206_vm2 = vcmp.eq.s32.totalorder %v2120_v15, %v12221_v34 }
 0x2a7   : > { %10115 = vmatmul.msk.bf16.gmra.mxu1 %vm14454_vm4, %v2304_v17  ;;  %10135 = vmatmul.msk.bf16.gmra.mxu2 %vm3013_vm10, %v2971_v18  ;;  %v2123_v18 = vpop.permute.xlu2 %2122 }
 0x2a8   : > { %vm2207_vm3 = vcmp.eq.s32.totalorder %v2123_v18, %v12221_v34 }
 0x2ac   : > { %v2492_v20 = vpop.f32.mrf.mxu1 }
 0x2ad   : > { %v11146_v21 = vpack.i.bf16 %v2492_v20, %v2490_v14 }
 0x2af   : > { %11147 = vrot.lane.b32.xlu0 %v11146_v21, %s14441_s9  ;;  %v2600_v21 = vld [vmem:[%s12322_s23 + $0xa0] sm:$0xff] }
 0x2b1   : > { %v11113_v23 = vpop.permute.xlu0 %11112 }
 0x2b2   : > { %v11115_v27 = vunpack.i.h.bf16 %v11113_v23  ;;  %v11114_v28 = vunpack.i.l.bf16 %v11113_v23  ;;  %v2270_v23 = vsel %vm2206_vm2, 1.0, %v11818_v43  ;;  %vm4944_vm2 = vcmask 1041409  }
 0x2b4   : > { %v2495_v30 = vpop.f32.mrf.mxu1  ;;  %v2915_v31 = vsel %vm2900_vm9, %v2594_v24, %v11114_v28  ;;  %v2916_v32 = vsel %vm2900_vm9, %v2595_v25, %v11115_v27  ;;  %v2271_v28 = vsel %vm2207_vm3, 1.0, %v11818_v43  ;;  %vm4946_vm3 = vcmask 1042434  }
 0x2b5   : > { %v2972_v36 = vpack.c.bf16 %v2916_v32, %v2915_v31  ;;  %v2308_v32 = vpack.c.bf16 %v2271_v28, %v2270_v23  ;;  %v2606_v28 = vld [vmem:[%s12322_s23 + $0xd0] sm:$0xff] }
 0x2b7   : > { %10116 = vmatmul.msk.bf16.gmra.mxu1 %vm14454_vm4, %v2305_v35  ;;  %10136 = vmatmul.msk.bf16.gmra.mxu2 %vm3013_vm10, %v2972_v36 }
 0x2bc   : > { %v2497_v38 = vpop.f32.mrf.mxu1 }
 0x2bd   : > { %v11151_v39 = vpack.i.bf16 %v2497_v38, %v2495_v30 }
 0x2bf   : > { %11152 = vrot.lane.b32.xlu0 %v11151_v39, %s14441_s9  ;;  %v2126_v39 = vpop.permute.xlu1 %2125 }
 0x2c0   : > { %vm2208_vm5 = vcmp.eq.s32.totalorder %v2126_v39, %v12221_v34 }
 0x2c1   : > { %v11118_v41 = vpop.permute.xlu0 %11117  ;;  %v2272_v48 = vsel %vm2208_vm5, 1.0, %v11818_v43  ;;  %vm4948_vm5 = vcmask 1043459  }
 0x2c2   : > { %v11120_v46 = vunpack.i.h.bf16 %v11118_v41  ;;  %v11119_v47 = vunpack.i.l.bf16 %v11118_v41 }
 0x2c4   : > { %v2500_v49 = vpop.f32.mrf.mxu1  ;;  %v2917_v50 = vsel %vm2900_vm9, %v2596_v42, %v11119_v47  ;;  %v2918_v51 = vsel %vm2900_vm9, %v2597_v44, %v11120_v46  ;;  %v2129_v42 = vpop.permute.xlu2 %2128  ;;  %v2602_v46 = vld [vmem:[%s12322_s23 + $0xb0] sm:$0xff]  ;;  %v2603_v47 = vld [vmem:[%s12322_s23 + $0xb8] sm:$0xff] }
 0x2c5   : > { %v2973_v53 = vpack.c.bf16 %v2918_v51, %v2917_v50  ;;  %vm2209_vm0 = vcmp.eq.s32.totalorder %v2129_v42, %v12221_v34 }
 0x2c7   : > { %10117 = vmatmul.msk.bf16.gmra.mxu1 %vm14454_vm4, %v2306_v52  ;;  %10137 = vmatmul.msk.bf16.gmra.mxu2 %vm3013_vm10, %v2973_v53  ;;  %v2273_v53 = vsel %vm2209_vm0, 1.0, %v11818_v43  ;;  %v2132_v0 = vpop.permute.xlu1 %2131  ;;  %vm4950_vm0 = vcmask 1044484  }
 0x2c8   : > { %vm2210_vm6 = vcmp.eq.s32.totalorder %v2132_v0, %v12221_v34 }
 0x2ca   : > { %v3125_v54 = vpop.f32.mrf.mxu2 }
 0x2cb   : > { %v3126_v60 = vadd.f32 %v12425_v57, %v3125_v54 }
 0x2cc   : > { %v2502_v56 = vpop.f32.mrf.mxu1 }
 0x2cd   : > { %v11156_v58 = vpack.i.bf16 %v2502_v56, %v2500_v49  ;;  %v3285_v10 = vmax.f32 %v3126_v60, 0.0 }
 0x2cf   : > { %11157 = vrot.lane.b32.xlu0 %v11156_v58, %s14441_s9  ;;  %v2309_v58 = vpack.c.bf16 %v2273_v53, %v2272_v48  ;;  %v2138_v23 = vpop.permute.xlu1 %2137  ;;  %v2608_v53 = vld [vmem:[%s12322_s23 + $0xe0] sm:$0xff] }
 0x2d0   : > { %vm2212_vm8 = vcmp.eq.s32.totalorder %v2138_v23, %v12221_v34 }
 0x2d1   : > { %v11123_v61 = vpop.permute.xlu0 %11122 }
 0x2d2   : > { %v11125_v1 = vunpack.i.h.bf16 %v11123_v61  ;;  %v11124_v2 = vunpack.i.l.bf16 %v11123_v61  ;;  %v3127_v3 = vpop.f32.mrf.mxu2 }
 0x2d3   : > { %v3128_v4 = vadd.f32 %v12425_v57, %v3127_v3  ;;  %v2135_v3 = vpop.permute.xlu2 %2134 }
 0x2d4   : > { %v2505_v6 = vpop.f32.mrf.mxu1  ;;  %v2919_v7 = vsel %vm2900_vm9, %v2598_v62, %v11124_v2  ;;  %v2920_v8 = vsel %vm2900_vm9, %v2599_v63, %v11125_v1  ;;  %vm2211_vm7 = vcmp.eq.s32.totalorder %v2135_v3, %v12221_v34 }
 0x2d5   : > { %v3286_v11 = vmax.f32 %v3128_v4, 0.0  ;;  %v2974_v12 = vpack.c.bf16 %v2920_v8, %v2919_v7  ;;  %v2274_v8 = vsel %vm2210_vm6, 1.0, %v11818_v43  ;;  %vm4952_vm6 = vcmask 1045509  }
 0x2d7   : > { %10118 = vmatmul.msk.bf16.gmra.mxu1 %vm14454_vm4, %v2307_v9  ;;  %10138 = vmatmul.msk.bf16.gmra.mxu2 %vm3013_vm10, %v2974_v12  ;;  %v3349_v13 = vpack.c.bf16 %v3286_v11, %v3285_v10  ;;  %v2144_v48 = vpop.permute.xlu1 %2143 }
 0x2d8   : > { %vm2214_vm12 = vcmp.eq.s32.totalorder %v2144_v48, %v12221_v34 }
 0x2d9   : > { %10165 = vmatmul.msk.bf16.vlgmr.msra.gmra.mxu3 %vm14443_vm1, %v3349_v13  ;;  %v2275_v13 = vsel %vm2211_vm7, 1.0, %v11818_v43  ;;  %vm4954_vm7 = vcmask 1046534  }
 0x2da   : > { %v3130_v14 = vpop.f32.mrf.mxu2 }
 0x2db   : > { %v3131_v19 = vadd.f32 %v12425_v57, %v3130_v14 }
 0x2dc   : > { %v2507_v16 = vpop.f32.mrf.mxu1 }
 0x2dd   : > { %v11161_v17 = vpack.i.bf16 %v2507_v16, %v2505_v6  ;;  %v3287_v33 = vmax.f32 %v3131_v19, 0.0  ;;  %v2605_v6 = vld [vmem:[%s12322_s23 + $0xc8] sm:$0xff] }
 0x2df   : > { %11162 = vrot.lane.b32.xlu0 %v11161_v17, %s14441_s9  ;;  %v2310_v17 = vpack.c.bf16 %v2275_v13, %v2274_v8  ;;  %v2150_v8 = vpop.permute.xlu1 %2149  ;;  %v2610_v13 = vld [vmem:[%s12322_s23 + $0xf0] sm:$0xff] }
 0x2e0   : > { %vm2216_vm14 = vcmp.eq.s32.totalorder %v2150_v8, %v12221_v34 }
 0x2e1   : > { %v11128_v20 = vpop.permute.xlu0 %11127 }
 0x2e2   : > { %v11130_v24 = vunpack.i.h.bf16 %v11128_v20  ;;  %v11129_v25 = vunpack.i.l.bf16 %v11128_v20  ;;  %v3132_v26 = vpop.f32.mrf.mxu2 }
 0x2e3   : > { %v3133_v27 = vadd.f32 %v12425_v57, %v3132_v26  ;;  %v2141_v26 = vpop.permute.xlu2 %2140 }
 0x2e4   : > { %v2510_v29 = vpop.f32.mrf.mxu1  ;;  %v2921_v30 = vsel %vm2900_vm9, %v2600_v21, %v11129_v25  ;;  %v2922_v31 = vsel %vm2900_vm9, %v2601_v22, %v11130_v24  ;;  %vm2213_vm11 = vcmp.eq.s32.totalorder %v2141_v26, %v12221_v34 }
 0x2e5   : > { %v3288_v35 = vmax.f32 %v3133_v27, 0.0  ;;  %v2975_v36 = vpack.c.bf16 %v2922_v31, %v2921_v30  ;;  %v2276_v31 = vsel %vm2212_vm8, 1.0, %v11818_v43  ;;  %vm14452_vm8 = vcmask 1047559  }
 0x2e7   : > { %10119 = vmatmul.msk.bf16.gmra.mxu1 %vm14454_vm4, %v2308_v32  ;;  %10139 = vmatmul.msk.bf16.gmra.mxu2 %vm3013_vm10, %v2975_v36  ;;  %v3350_v37 = vpack.c.bf16 %v3288_v35, %v3287_v33 }
 0x2e9   : > { %10166 = vmatmul.msk.bf16.gmra.mxu3 %vm14443_vm1, %v3350_v37  ;;  %v2277_v37 = vsel %vm2213_vm11, 1.0, %v11818_v43 }
 0x2ea   : > { %v3135_v38 = vpop.f32.mrf.mxu2 }
 0x2eb   : > { %v3136_v44 = vadd.f32 %v12425_v57, %v3135_v38 }
 0x2ec   : > { %v2512_v40 = vpop.f32.mrf.mxu1 }
 0x2ed   : > { %v11166_v41 = vpack.i.bf16 %v2512_v40, %v2510_v29  ;;  %v3289_v59 = vmax.f32 %v3136_v44, 0.0  ;;  %v2607_v29 = vld [vmem:[%s12322_s23 + $0xd8] sm:$0xff] }
 0x2ef   : > { %11167 = vrot.lane.b32.xlu0 %v11166_v41, %s14441_s9  ;;  %v2311_v41 = vpack.c.bf16 %v2277_v37, %v2276_v31 }
 0x2f1   : > { %v11133_v45 = vpop.permute.xlu0 %11132 }
 0x2f2   : > { %v11135_v49 = vunpack.i.h.bf16 %v11133_v45  ;;  %v11134_v50 = vunpack.i.l.bf16 %v11133_v45  ;;  %v3137_v51 = vpop.f32.mrf.mxu2 }
 0x2f3   : > { %v3138_v52 = vadd.f32 %v12425_v57, %v3137_v51  ;;  %v2147_v51 = vpop.permute.xlu2 %2146 }
 0x2f4   : > { %v2515_v54 = vpop.f32.mrf.mxu1  ;;  %v2923_v55 = vsel %vm2900_vm9, %v2602_v46, %v11134_v50  ;;  %v2924_v56 = vsel %vm2900_vm9, %v2603_v47, %v11135_v49  ;;  %vm2215_vm13 = vcmp.eq.s32.totalorder %v2147_v51, %v12221_v34 }
 0x2f5   : > { %v3290_v60 = vmax.f32 %v3138_v52, 0.0  ;;  %v2976_v61 = vpack.c.bf16 %v2924_v56, %v2923_v55  ;;  %v2278_v56 = vsel %vm2214_vm12, 1.0, %v11818_v43 }
 0x2f7   : > { %10120 = vmatmul.msk.bf16.gmra.mxu1 %vm14454_vm4, %v2309_v58  ;;  %10140 = vmatmul.msk.bf16.gmra.mxu2 %vm3013_vm10, %v2976_v61  ;;  %v3351_v62 = vpack.c.bf16 %v3290_v60, %v3289_v59 }
 0x2f9   : > { %10167 = vmatmul.msk.bf16.gmra.mxu3 %vm14443_vm1, %v3351_v62  ;;  %v2279_v62 = vsel %vm2215_vm13, 1.0, %v11818_v43 }
 0x2fa   : > { %v3140_v63 = vpop.f32.mrf.mxu2 }
 0x2fb   : > { %v3141_v4 = vadd.f32 %v12425_v57, %v3140_v63 }
 0x2fc   : > { %v2517_v1 = vpop.f32.mrf.mxu1 }
 0x2fd   : > { %v11171_v2 = vpack.i.bf16 %v2517_v1, %v2515_v54  ;;  %v3291_v18 = vmax.f32 %v3141_v4, 0.0  ;;  %v2609_v54 = vld [vmem:[%s12322_s23 + $0xe8] sm:$0xff] }
 0x2ff   : > { %11172 = vrot.lane.b32.xlu0 %v11171_v2, %s14441_s9  ;;  %v2312_v2 = vpack.c.bf16 %v2279_v62, %v2278_v56  ;;  %v2615_v56 = vld [vmem:[%s12322_s23 + $0x118] sm:$0xff] }
 0x301   : > { %v11138_v7 = vpop.permute.xlu0 %11137 }
 0x302   : > { %v11140_v9 = vunpack.i.h.bf16 %v11138_v7  ;;  %v11139_v10 = vunpack.i.l.bf16 %v11138_v7  ;;  %v3142_v11 = vpop.f32.mrf.mxu2 }
 0x303   : > { %v3143_v12 = vadd.f32 %v12425_v57, %v3142_v11  ;;  %v2153_v11 = vpop.permute.xlu2 %2152 }
 0x304   : > { %v2926_v14 = vsel %vm2900_vm9, %v2605_v6, %v11140_v9  ;;  %v2925_v15 = vsel %vm2900_vm9, %v2604_v5, %v11139_v10  ;;  %v2520_v16 = vpop.f32.mrf.mxu1  ;;  %vm2217_vm15 = vcmp.eq.s32.totalorder %v2153_v11, %v12221_v34 }
 0x305   : > { %v3292_v19 = vmax.f32 %v3143_v12, 0.0  ;;  %v2977_v20 = vpack.c.bf16 %v2926_v14, %v2925_v15  ;;  %v2611_v14 = vld [vmem:[%s12322_s23 + $0xf8] sm:$0xff] }
 0x307   : > { %10121 = vmatmul.msk.bf16.gmra.mxu1 %vm14454_vm4, %v2310_v17  ;;  %10141 = vmatmul.msk.bf16.gmra.mxu2 %vm3013_vm10, %v2977_v20  ;;  %v3352_v21 = vpack.c.bf16 %v3292_v19, %v3291_v18 }
 0x309   : > { %10168 = vmatmul.msk.bf16.gmra.mxu3 %vm14443_vm1, %v3352_v21  ;;  %v2281_v21 = vsel %vm2217_vm15, 1.0, %v11818_v43 }
 0x30a   : > { %v3145_v22 = vpop.f32.mrf.mxu2 }
 0x30b   : > { %v3146_v27 = vadd.f32 %v12425_v57, %v3145_v22 }
 0x30c   : > { %v2522_v24 = vpop.f32.mrf.mxu1 }
 0x30d   : > { %v11176_v25 = vpack.i.bf16 %v2522_v24, %v2520_v16  ;;  %v3293_v42 = vmax.f32 %v3146_v27, 0.0  ;;  %v2280_v16 = vsel %vm2216_vm14, 1.0, %v11818_v43 }
 0x30f   : > { %11177 = vrot.lane.b32.xlu0 %v11176_v25, %s14441_s9  ;;  %v2313_v25 = vpack.c.bf16 %v2281_v21, %v2280_v16 }
 0x311   : > { %v11143_v30 = vpop.permute.xlu0 %11142 }
 0x312   : > { %v11145_v32 = vunpack.i.h.bf16 %v11143_v30  ;;  %v11144_v33 = vunpack.i.l.bf16 %v11143_v30  ;;  %v3147_v35 = vpop.f32.mrf.mxu2 }
 0x313   : > { %v3148_v36 = vadd.f32 %v12425_v57, %v3147_v35  ;;  %v2612_v35 = vld [vmem:[%s12322_s23 + $0x100] sm:$0xff] }
 0x314   : > { %v2928_v38 = vsel %vm2900_vm9, %v2607_v29, %v11145_v32  ;;  %v2927_v39 = vsel %vm2900_vm9, %v2606_v28, %v11144_v33  ;;  %v2525_v40 = vpop.f32.mrf.mxu1 }
 0x315   : > { %v3294_v44 = vmax.f32 %v3148_v36, 0.0  ;;  %v2978_v45 = vpack.c.bf16 %v2928_v38, %v2927_v39  ;;  %v2613_v36 = vld [vmem:[%s12322_s23 + $0x108] sm:$0xff] }
 0x317   : > { %10122 = vmatmul.msk.bf16.gmra.mxu1 %vm14454_vm4, %v2311_v41  ;;  %10142 = vmatmul.msk.bf16.gmra.mxu2 %vm3013_vm10, %v2978_v45  ;;  %v3353_v46 = vpack.c.bf16 %v3294_v44, %v3293_v42 }
 0x319   : > { %10169 = vmatmul.msk.bf16.gmra.mxu3 %vm14443_vm1, %v3353_v46 }
 0x31a   : > { %v3150_v47 = vpop.f32.mrf.mxu2 }
 0x31b   : > { %v3151_v52 = vadd.f32 %v12425_v57, %v3150_v47 }
 0x31c   : > { %v2527_v49 = vpop.f32.mrf.mxu1 }
 0x31d   : > { %v11181_v50 = vpack.i.bf16 %v2527_v49, %v2525_v40  ;;  %v3295_v3 = vmax.f32 %v3151_v52, 0.0  ;;  %v10853_v49 = vld [vmem:[%s11881_s14] sm:$0xff] }
 0x31e   : > { %3870 = vmatpush.bf16.msrb.mxu0 %v10853_v49 }
 0x31f   : > { %11182 = vrot.lane.b32.xlu1 %v11181_v50, %s14441_s9 }
 0x321   : > { %v11148_v55 = vpop.permute.xlu0 %11147 }
 0x322   : > { %v11150_v58 = vunpack.i.h.bf16 %v11148_v55  ;;  %v11149_v59 = vunpack.i.l.bf16 %v11148_v55  ;;  %v3152_v60 = vpop.f32.mrf.mxu2  ;;  %v2614_v55 = vld [vmem:[%s12322_s23 + $0x110] sm:$0xff] }
 0x323   : > { %v3153_v61 = vadd.f32 %v12425_v57, %v3152_v60 }
 0x324   : > { %v2930_v63 = vsel %vm2900_vm9, %v2609_v54, %v11150_v58  ;;  %v2929_v0 = vsel %vm2900_vm9, %v2608_v53, %v11149_v59  ;;  %v2530_v1 = vpop.f32.mrf.mxu1 }
 0x325   : > { %v3296_v4 = vmax.f32 %v3153_v61, 0.0  ;;  %v2979_v5 = vpack.c.bf16 %v2930_v63, %v2929_v0 }
 0x327   : > { %10123 = vmatmul.msk.bf16.gmra.mxu1 %vm14454_vm4, %v2312_v2  ;;  %10143 = vmatmul.msk.bf16.gmra.mxu2 %vm3013_vm10, %v2979_v5  ;;  %v3354_v6 = vpack.c.bf16 %v3296_v4, %v3295_v3 }
 0x329   : > { %10170 = vmatmul.msk.bf16.gmra.mxu3 %vm14443_vm1, %v3354_v6 }
 0x32a   : > { %v3155_v7 = vpop.f32.mrf.mxu2 }
 0x32b   : > { %v3156_v12 = vadd.f32 %v12425_v57, %v3155_v7 }
 0x32c   : > { %v2532_v9 = vpop.f32.mrf.mxu1 }
 0x32d   : > { %v11186_v10 = vpack.i.bf16 %v2532_v9, %v2530_v1  ;;  %v3297_v26 = vmax.f32 %v3156_v12, 0.0  ;;  %v2616_v12 = vld [vmem:[%s12322_s23 + $0x120] sm:$0xff] }
 0x32f   : > { %11187 = vrot.lane.b32.xlu2 %v11186_v10, %s14441_s9  ;;  %v12545_v10 = vld [vmem:[%s14500_s8] ss:$0 sm:$0xff] }
 0x331   : > { %v11153_v15 = vpop.permute.xlu0 %11152 }
 0x332   : > { %v11155_v17 = vunpack.i.h.bf16 %v11153_v15  ;;  %v11154_v18 = vunpack.i.l.bf16 %v11153_v15  ;;  %v3157_v19 = vpop.f32.mrf.mxu2 }
 0x333   : > { %v3158_v20 = vadd.f32 %v12425_v57, %v3157_v19 }
 0x334   : > { %v2932_v22 = vsel %vm2900_vm9, %v2611_v14, %v11155_v17  ;;  %v2931_v23 = vsel %vm2900_vm9, %v2610_v13, %v11154_v18  ;;  %v2535_v24 = vpop.f32.mrf.mxu1  ;;  %v2617_v13 = vld [vmem:[%s12322_s23 + $0x128] sm:$0xff] }
 0x335   : > { %v3298_v27 = vmax.f32 %v3158_v20, 0.0  ;;  %v2980_v28 = vpack.c.bf16 %v2932_v22, %v2931_v23 }
 0x337   : > { %10124 = vmatmul.msk.bf16.gmra.mxu1 %vm14454_vm4, %v2313_v25  ;;  %10144 = vmatmul.msk.bf16.gmra.mxu2 %vm3013_vm10, %v2980_v28  ;;  %v3355_v29 = vpack.c.bf16 %v3298_v27, %v3297_v26 }
 0x339   : > { %10171 = vmatmul.msk.bf16.gmra.mxu3 %vm14443_vm1, %v3355_v29 }
 0x33a   : > { %v3160_v30 = vpop.f32.mrf.mxu2 }
 0x33b   : > { %v3161_v33 = vadd.f32 %v12425_v57, %v3160_v30 }
 0x33c   : > { %v2537_v31 = vpop.f32.mrf.mxu1 }
 0x33d   : > { %v11191_v32 = vpack.i.bf16 %v2537_v31, %v2535_v24  ;;  %v3299_v46 = vmax.f32 %v3161_v33, 0.0 }
 0x33f   : > { %11192 = vrot.lane.b32.xlu0 %v11191_v32, %s14441_s9 }
 0x341   : > { %v11158_v37 = vpop.permute.xlu0 %11157 }
 0x342   : > { %v11160_v38 = vunpack.i.h.bf16 %v11158_v37  ;;  %v11159_v39 = vunpack.i.l.bf16 %v11158_v37  ;;  %v3162_v40 = vpop.f32.mrf.mxu2 }
 0x343   : > { %v3163_v41 = vadd.f32 %v12425_v57, %v3162_v40 }
 0x344   : > { %v2934_v42 = vsel %vm2900_vm9, %v2613_v36, %v11160_v38  ;;  %v2933_v44 = vsel %vm2900_vm9, %v2612_v35, %v11159_v39  ;;  %v2540_v45 = vpop.f32.mrf.mxu1  ;;  %v2618_v38 = vld [vmem:[%s12322_s23 + $0x130] sm:$0xff]  ;;  %v2619_v39 = vld [vmem:[%s12322_s23 + $0x138] sm:$0xff] }
 0x345   : > { %v3300_v47 = vmax.f32 %v3163_v41, 0.0  ;;  %v2981_v48 = vpack.c.bf16 %v2934_v42, %v2933_v44 }
 0x347   : > { %10145 = vmatmul.msk.bf16.gmra.mxu2 %vm3013_vm10, %v2981_v48  ;;  %v3356_v50 = vpack.c.bf16 %v3300_v47, %v3299_v46 }
 0x349   : > { %10172 = vmatmul.msk.bf16.gmra.mxu3 %vm14443_vm1, %v3356_v50 }
 0x34a   : > { %v3165_v51 = vpop.f32.mrf.mxu2 }
 0x34b   : > { %v3166_v54 = vadd.f32 %v12425_v57, %v3165_v51 }
 0x34c   : > { %v2542_v52 = vpop.f32.mrf.mxu1 }
 0x34d   : > { %v11196_v53 = vpack.i.bf16 %v2542_v52, %v2540_v45  ;;  %v3301_v2 = vmax.f32 %v3166_v54, 0.0 }
 0x34f   : > { %11197 = vrot.lane.b32.xlu1 %v11196_v53, %s14441_s9 }
 0x351   : > { %v11163_v58 = vpop.permute.xlu0 %11162 }
 0x352   : > { %v11165_v59 = vunpack.i.h.bf16 %v11163_v58  ;;  %v11164_v60 = vunpack.i.l.bf16 %v11163_v58  ;;  %v3167_v61 = vpop.f32.mrf.mxu2 }
 0x353   : > { %v3168_v62 = vadd.f32 %v12425_v57, %v3167_v61 }
 0x354   : > { %v2936_v63 = vsel %vm2900_vm9, %v2615_v56, %v11165_v59  ;;  %v2935_v0 = vsel %vm2900_vm9, %v2614_v55, %v11164_v60  ;;  %v2545_v1 = vpop.f32.mrf.mxu1 }
 0x355   : > { %v3302_v3 = vmax.f32 %v3168_v62, 0.0  ;;  %v2982_v4 = vpack.c.bf16 %v2936_v63, %v2935_v0 }
 0x357   : > { %10146 = vmatmul.msk.bf16.gmra.mxu2 %vm3013_vm10, %v2982_v4  ;;  %v3357_v5 = vpack.c.bf16 %v3302_v3, %v3301_v2  ;;  %v2621_v2 = vld [vmem:[%s12322_s23 + $0x148] sm:$0xff] }
 0x359   : > { %10173 = vmatmul.msk.bf16.gmra.mxu3 %vm14443_vm1, %v3357_v5 }
 0x35a   : > { %v3170_v6 = vpop.f32.mrf.mxu2 }
 0x35b   : > { %v3171_v11 = vadd.f32 %v12425_v57, %v3170_v6 }
 0x35c   : > { %v2547_v7 = vpop.f32.mrf.mxu1  ;;  %v3499_v8 = vpop.f32.mrf.mxu3 }
 0x35d   : > { %v11201_v9 = vpack.i.bf16 %v2547_v7, %v2545_v1  ;;  %v3500_v18 = vadd.f32 %v12545_v10, %v3499_v8  ;;  %v3303_v24 = vmax.f32 %v3171_v11, 0.0  ;;  %v2620_v1 = vld [vmem:[%s12322_s23 + $0x140] sm:$0xff] }
 0x35f   : > { %11202 = vrot.lane.b32.xlu2 %v11201_v9, %s14441_s9  ;;  %v3659_v28 = vmax.f32 %v3500_v18, 0.0 }
 0x361   : > { %v11168_v14 = vpop.permute.xlu0 %11167 }
 0x362   : > { %v11170_v15 = vunpack.i.h.bf16 %v11168_v14  ;;  %v11169_v16 = vunpack.i.l.bf16 %v11168_v14  ;;  %v3172_v17 = vpop.f32.mrf.mxu2 }
 0x363   : > { %v3173_v19 = vadd.f32 %v12425_v57, %v3172_v17 }
 0x364   : > { %v2938_v20 = vsel %vm2900_vm9, %v2617_v13, %v11170_v15  ;;  %v2937_v21 = vsel %vm2900_vm9, %v2616_v12, %v11169_v16  ;;  %v2550_v22 = vpop.f32.mrf.mxu1  ;;  %v3501_v23 = vpop.f32.mrf.mxu3 }
 0x365   : > { %v3304_v25 = vmax.f32 %v3173_v19, 0.0  ;;  %v3502_v26 = vadd.f32 %v12545_v10, %v3501_v23  ;;  %v2983_v27 = vpack.c.bf16 %v2938_v20, %v2937_v21 }
 0x367   : > { %v3660_v29 = vmax.f32 %v3502_v26, 0.0  ;;  %10147 = vmatmul.msk.bf16.gmra.mxu2 %vm3013_vm10, %v2983_v27  ;;  %v3358_v30 = vpack.c.bf16 %v3304_v25, %v3303_v24  ;;  %v2622_v27 = vld [vmem:[%s12322_s23 + $0x150] sm:$0xff] }
 0x369   : > { %v3723_v31 = vpack.c.bf16 %v3660_v29, %v3659_v28  ;;  %10174 = vmatmul.msk.bf16.gmra.mxu3 %vm14443_vm1, %v3358_v30  ;;  %v2623_v28 = vld [vmem:[%s12322_s23 + $0x158] sm:$0xff] }
 0x36a   : > { %v3175_v32 = vpop.f32.mrf.mxu2 }
 0x36b   : > { %10201 = vmatmul.msk.bf16.vlgmr.msrb.gmra.mxu0 %vm14443_vm1, %v3723_v31  ;;  %v3176_v37 = vadd.f32 %v12425_v57, %v3175_v32 }
 0x36c   : > { %v2552_v33 = vpop.f32.mrf.mxu1  ;;  %v3504_v35 = vpop.f32.mrf.mxu3 }
 0x36d   : > { %v11206_v36 = vpack.i.bf16 %v2552_v33, %v2550_v22  ;;  %v3505_v45 = vadd.f32 %v12545_v10, %v3504_v35  ;;  %v3305_v51 = vmax.f32 %v3176_v37, 0.0 }
 0x36f   : > { %11207 = vrot.lane.b32.xlu0 %v11206_v36, %s14441_s9  ;;  %v3661_v55 = vmax.f32 %v3505_v45, 0.0 }
 0x371   : > { %v11173_v40 = vpop.permute.xlu0 %11172 }
 0x372   : > { %v11175_v41 = vunpack.i.h.bf16 %v11173_v40  ;;  %v11174_v42 = vunpack.i.l.bf16 %v11173_v40  ;;  %v3177_v44 = vpop.f32.mrf.mxu2 }
 0x373   : > { %v3178_v46 = vadd.f32 %v12425_v57, %v3177_v44 }
 0x374   : > { %v2940_v47 = vsel %vm2900_vm9, %v2619_v39, %v11175_v41  ;;  %v2939_v48 = vsel %vm2900_vm9, %v2618_v38, %v11174_v42  ;;  %v2555_v49 = vpop.f32.mrf.mxu1  ;;  %v3506_v50 = vpop.f32.mrf.mxu3 }
 0x375   : > { %v3306_v52 = vmax.f32 %v3178_v46, 0.0  ;;  %v3507_v53 = vadd.f32 %v12545_v10, %v3506_v50  ;;  %v2984_v54 = vpack.c.bf16 %v2940_v47, %v2939_v48 }
 0x377   : > { %v3662_v56 = vmax.f32 %v3507_v53, 0.0  ;;  %10148 = vmatmul.msk.bf16.gmra.mxu2 %vm3013_vm10, %v2984_v54  ;;  %v3359_v58 = vpack.c.bf16 %v3306_v52, %v3305_v51 }
 0x379   : > { %10175 = vmatmul.msk.bf16.gmra.mxu3 %vm14443_vm1, %v3359_v58  ;;  %v3724_v59 = vpack.c.bf16 %v3662_v56, %v3661_v55  ;;  %v2624_v56 = vld [vmem:[%s12322_s23 + $0x160] sm:$0xff]  ;;  %v2625_v58 = vld [vmem:[%s12322_s23 + $0x168] sm:$0xff] }
 0x37a   : > { %v3180_v60 = vpop.f32.mrf.mxu2 }
 0x37b   : > { %10202 = vmatmul.msk.bf16.gmra.mxu0 %vm14443_vm1, %v3724_v59  ;;  %v3181_v0 = vadd.f32 %v12425_v57, %v3180_v60 }
 0x37c   : > { %v2557_v61 = vpop.f32.mrf.mxu1  ;;  %v3509_v62 = vpop.f32.mrf.mxu3 }
 0x37d   : > { %v11211_v63 = vpack.i.bf16 %v2557_v61, %v2555_v49  ;;  %v3510_v7 = vadd.f32 %v12545_v10, %v3509_v62  ;;  %v3307_v14 = vmax.f32 %v3181_v0, 0.0 }
 0x37f   : > { %11212 = vrot.lane.b32.xlu1 %v11211_v63, %s14441_s9  ;;  %v3663_v18 = vmax.f32 %v3510_v7, 0.0 }
 0x381   : > { %v11178_v3 = vpop.permute.xlu0 %11177 }
 0x382   : > { %v11180_v4 = vunpack.i.h.bf16 %v11178_v3  ;;  %v11179_v5 = vunpack.i.l.bf16 %v11178_v3  ;;  %v3182_v6 = vpop.f32.mrf.mxu2  ;;  %v4608_v3 = vld [vmem:[%s12604_s3] sm:$0xff] }
 0x383   : > { %v3183_v8 = vadd.f32 %v12425_v57, %v3182_v6 }
 0x384   : > { %v2942_v9 = vsel %vm2900_vm9, %v2621_v2, %v11180_v4  ;;  %v2941_v11 = vsel %vm2900_vm9, %v2620_v1, %v11179_v5  ;;  %v2560_v12 = vpop.f32.mrf.mxu1  ;;  %v3511_v13 = vpop.f32.mrf.mxu3 }
 0x385   : > { %v3308_v15 = vmax.f32 %v3183_v8, 0.0  ;;  %v3512_v16 = vadd.f32 %v12545_v10, %v3511_v13  ;;  %v2985_v17 = vpack.c.bf16 %v2942_v9, %v2941_v11 }
 0x387   : > { %v3664_v19 = vmax.f32 %v3512_v16, 0.0  ;;  %10149 = vmatmul.msk.bf16.gmra.mxu2 %vm3013_vm10, %v2985_v17  ;;  %v3360_v20 = vpack.c.bf16 %v3308_v15, %v3307_v14 }
 0x389   : > { %10176 = vmatmul.msk.bf16.gmra.mxu3 %vm14443_vm1, %v3360_v20  ;;  %v3725_v21 = vpack.c.bf16 %v3664_v19, %v3663_v18  ;;  %v11188_v50 = vpop.permute.xlu2 %11187  ;;  %v2626_v19 = vld [vmem:[%s12322_s23 + $0x170] sm:$0xff]  ;;  %v2627_v20 = vld [vmem:[%s12322_s23 + $0x178] sm:$0xff] }
 0x38a   : > { %v3185_v22 = vpop.f32.mrf.mxu2  ;;  %v11190_v54 = vunpack.i.h.bf16 %v11188_v50  ;;  %v11189_v55 = vunpack.i.l.bf16 %v11188_v50  ;;  %v2628_v50 = vld [vmem:[%s12322_s23 + $0x180] sm:$0xff] }
 0x38b   : > { %10203 = vmatmul.msk.bf16.gmra.mxu0 %vm14443_vm1, %v3725_v21  ;;  %v3186_v26 = vadd.f32 %v12425_v57, %v3185_v22 }
 0x38c   : > { %v2562_v23 = vpop.f32.mrf.mxu1  ;;  %v3514_v24 = vpop.f32.mrf.mxu3  ;;  %v2946_v60 = vsel %vm2900_vm9, %v2625_v58, %v11190_v54  ;;  %v2945_v61 = vsel %vm2900_vm9, %v2624_v56, %v11189_v55 }
 0x38d   : > { %v11216_v25 = vpack.i.bf16 %v2562_v23, %v2560_v12  ;;  %v3515_v33 = vadd.f32 %v12545_v10, %v3514_v24  ;;  %v3309_v40 = vmax.f32 %v3186_v26, 0.0  ;;  %v2987_v7 = vpack.c.bf16 %v2946_v60, %v2945_v61 }
 0x38f   : > { %11217 = vrot.lane.b32.xlu2 %v11216_v25, %s14441_s9  ;;  %v3665_v45 = vmax.f32 %v3515_v33, 0.0 }
 0x391   : > { %v11183_v29 = vpop.permute.xlu1 %11182 }
 0x392   : > { %v11185_v30 = vunpack.i.h.bf16 %v11183_v29  ;;  %v11184_v31 = vunpack.i.l.bf16 %v11183_v29  ;;  %v3187_v32 = vpop.f32.mrf.mxu2 }
 0x393   : > { %v3188_v35 = vadd.f32 %v12425_v57, %v3187_v32 }
 0x394   : > { %v2944_v36 = vsel %vm2900_vm9, %v2623_v28, %v11185_v30  ;;  %v2943_v37 = vsel %vm2900_vm9, %v2622_v27, %v11184_v31  ;;  %v2565_v38 = vpop.f32.mrf.mxu1  ;;  %v3516_v39 = vpop.f32.mrf.mxu3 }
 0x395   : > { %v3310_v41 = vmax.f32 %v3188_v35, 0.0  ;;  %v3517_v42 = vadd.f32 %v12545_v10, %v3516_v39  ;;  %v2986_v44 = vpack.c.bf16 %v2944_v36, %v2943_v37  ;;  %v4609_v37 = vld [vmem:[%s12604_s3 + $0x8] sm:$0xff] }
 0x397   : > { %v3361_v46 = vpack.c.bf16 %v3310_v41, %v3309_v40  ;;  %v3666_v47 = vmax.f32 %v3517_v42, 0.0  ;;  %10150 = vmatmul.msk.bf16.gmra.mxu2 %vm3013_vm10, %v2986_v44 }
 0x399   : > { %10177 = vmatmul.msk.bf16.gmra.mxu3 %vm14443_vm1, %v3361_v46  ;;  %v3726_v48 = vpack.c.bf16 %v3666_v47, %v3665_v45  ;;  %v4613_v46 = vld [vmem:[%s12604_s3 + $0x28] sm:$0xff] }
 0x39a   : > { %v3190_v49 = vpop.f32.mrf.mxu2 }
 0x39b   : > { %10204 = vmatmul.msk.bf16.gmra.mxu0 %vm14443_vm1, %v3726_v48  ;;  %v3191_v59 = vadd.f32 %v12425_v57, %v3190_v49  ;;  %v4610_v48 = vld [vmem:[%s12604_s3 + $0x10] sm:$0xff] }
 0x39c   : > { %v2567_v51 = vpop.f32.mrf.mxu1  ;;  %v3519_v52 = vpop.f32.mrf.mxu3 }
 0x39d   : > { %v11221_v53 = vpack.i.bf16 %v2567_v51, %v2565_v38  ;;  %v3520_v63 = vadd.f32 %v12545_v10, %v3519_v52  ;;  %v3311_v4 = vmax.f32 %v3191_v59, 0.0  ;;  %v2629_v51 = vld [vmem:[%s12322_s23 + $0x188] sm:$0xff] }
 0x39f   : > { %11222 = vrot.lane.b32.xlu0 %v11221_v53, %s14441_s9  ;;  %v3667_v8 = vmax.f32 %v3520_v63, 0.0  ;;  %s12616_s9 = scalar_lea.vmem %s14507_s6, %s12596_s16  ;;  %s12790_s6 = scalar_lea.vmem %s14509_s12, %s12596_s16 }
 0x3a0   : > { %v5185_v16 = vld [vmem:[%s12616_s9 + $0x8] sm:$0xff]  ;;  %v5186_v31 = vld [vmem:[%s12616_s9 + $0x10] sm:$0xff]  ;;  %s14511_s12 = sld [smem:[#allocation13_spill]] }
 0x3a2   : > { %v3192_v62 = vpop.f32.mrf.mxu2 }
 0x3a3   : > { %v3193_v0 = vadd.f32 %v12425_v57, %v3192_v62  ;;  %v4614_v62 = vld [vmem:[%s12604_s3 + $0x30] sm:$0xff] }
 0x3a4   : > { %v2570_v1 = vpop.f32.mrf.mxu1  ;;  %v3521_v2 = vpop.f32.mrf.mxu3 }
 0x3a5   : > { %v3312_v5 = vmax.f32 %v3193_v0, 0.0  ;;  %v3522_v6 = vadd.f32 %v12545_v10, %v3521_v2 }
 0x3a7   : > { %v3362_v9 = vpack.c.bf16 %v3312_v5, %v3311_v4  ;;  %v3668_v11 = vmax.f32 %v3522_v6, 0.0  ;;  %10151 = vmatmul.msk.bf16.gmra.mxu2 %vm3013_vm10, %v2987_v7  ;;  %4641 = vperm.xlu0 %11073, %v4608_v3   ;;  %v5187_v3 = vld [vmem:[%s12616_s9 + $0x18] sm:$0xff]  ;;  %v5184_v4 = vld [vmem:[%s12616_s9] sm:$0xff] }
 0x3a9   : > { %10178 = vmatmul.msk.bf16.gmra.mxu3 %vm14443_vm1, %v3362_v9  ;;  %v3727_v12 = vpack.c.bf16 %v3668_v11, %v3667_v8 }
 0x3aa   : > { %v3195_v13 = vpop.f32.mrf.mxu2 }
 0x3ab   : > { %10205 = vmatmul.msk.bf16.gmra.mxu0 %vm14443_vm1, %v3727_v12  ;;  %v3196_v18 = vadd.f32 %v12425_v57, %v3195_v13  ;;  %v5191_v13 = vld [vmem:[%s12616_s9 + $0x38] sm:$0xff] }
 0x3ac   : > { %v2572_v14 = vpop.f32.mrf.mxu1  ;;  %v3524_v15 = vpop.f32.mrf.mxu3 }
 0x3ad   : > { %v11226_v17 = vpack.i.bf16 %v2572_v14, %v2570_v1  ;;  %v3525_v25 = vadd.f32 %v12545_v10, %v3524_v15  ;;  %v3313_v32 = vmax.f32 %v3196_v18, 0.0  ;;  %v5188_v14 = vld [vmem:[%s12616_s9 + $0x20] sm:$0xff]  ;;  %v4611_v15 = vld [vmem:[%s12604_s3 + $0x18] sm:$0xff]  ;;  %v2630_v18 = vld [vmem:[%s12322_s23 + $0x190] sm:$0xff] }
 0x3af   : > { %5220 = vperm.xlu0 %11073, %v5185_v16   ;;  %11227 = vrot.lane.b32.xlu1 %v11226_v17, %s14508_s5  ;;  %v3669_v38 = vmax.f32 %v3525_v25, 0.0 }
 0x3b1   : > { %v11193_v21 = vpop.permute.xlu0 %11192 }
 0x3b2   : > { %v11195_v22 = vunpack.i.h.bf16 %v11193_v21  ;;  %v11194_v23 = vunpack.i.l.bf16 %v11193_v21  ;;  %v3197_v24 = vpop.f32.mrf.mxu2 }
 0x3b3   : > { %v3198_v26 = vadd.f32 %v12425_v57, %v3197_v24 }
 0x3b4   : > { %v2948_v27 = vsel %vm2900_vm9, %v2627_v20, %v11195_v22  ;;  %v2947_v28 = vsel %vm2900_vm9, %v2626_v19, %v11194_v23  ;;  %v2575_v29 = vpop.f32.mrf.mxu1  ;;  %v3526_v30 = vpop.f32.mrf.mxu3  ;;  %v2631_v19 = vld [vmem:[%s12322_s23 + $0x198] sm:$0xff] }
 0x3b5   : > { %v3314_v33 = vmax.f32 %v3198_v26, 0.0  ;;  %v3527_v35 = vadd.f32 %v12545_v10, %v3526_v30  ;;  %v2988_v36 = vpack.c.bf16 %v2948_v27, %v2947_v28  ;;  %v5192_v27 = vld [vmem:[%s12616_s9 + $0x40] sm:$0xff] }
 0x3b7   : > { %v3363_v39 = vpack.c.bf16 %v3314_v33, %v3313_v32  ;;  %v3670_v40 = vmax.f32 %v3527_v35, 0.0  ;;  %10152 = vmatmul.msk.bf16.gmra.mxu2 %vm3013_vm10, %v2988_v36  ;;  %5223 = vperm.xlu0 %11073, %v5186_v31   ;;  %v4615_v32 = vld [vmem:[%s12604_s3 + $0x38] sm:$0xff]  ;;  %v4612_v33 = vld [vmem:[%s12604_s3 + $0x20] sm:$0xff] }
 0x3b8   : > { %4644 = vperm.xlu1 %11074, %v4609_v37  }
 0x3b9   : > { %10179 = vmatmul.msk.bf16.gmra.mxu3 %vm14443_vm1, %v3363_v39  ;;  %v3728_v41 = vpack.c.bf16 %v3670_v40, %v3669_v38  ;;  %v11203_v11 = vpop.permute.xlu2 %11202  ;;  %v4619_v40 = vld [vmem:[%s12604_s3 + $0x58] sm:$0xff] }
 0x3ba   : > { %v3200_v42 = vpop.f32.mrf.mxu2  ;;  %v11205_v16 = vunpack.i.h.bf16 %v11203_v11  ;;  %v11204_v17 = vunpack.i.l.bf16 %v11203_v11 }
 0x3bb   : > { %10206 = vmatmul.msk.bf16.gmra.mxu0 %vm14443_vm1, %v3728_v41  ;;  %v3201_v49 = vadd.f32 %v12425_v57, %v3200_v42  ;;  %v4616_v41 = vld [vmem:[%s12604_s3 + $0x40] sm:$0xff]  ;;  %v5189_v42 = vld [vmem:[%s12616_s9 + $0x28] sm:$0xff] }
 0x3bc   : > { %v2577_v44 = vpop.f32.mrf.mxu1  ;;  %v3529_v45 = vpop.f32.mrf.mxu3  ;;  %v2952_v21 = vsel %vm2900_vm9, %v2631_v19, %v11205_v16  ;;  %v2951_v22 = vsel %vm2900_vm9, %v2630_v18, %v11204_v17 }
 0x3bd   : > { %v11231_v47 = vpack.i.bf16 %v2577_v44, %v2575_v29  ;;  %v3530_v56 = vadd.f32 %v12545_v10, %v3529_v45  ;;  %v3315_v63 = vmax.f32 %v3201_v49, 0.0  ;;  %v2990_v31 = vpack.c.bf16 %v2952_v21, %v2951_v22  ;;  %v12672_v44 = vld [vmem:[%s11866_s29] ss:$0 sm:$0xff]  ;;  %v2634_v21 = vld [vmem:[%s12322_s23 + $0x1b0] sm:$0xff]  ;;  %v2635_v22 = vld [vmem:[%s12322_s23 + $0x1b8] sm:$0xff] }
 0x3bf   : > { %4656 = vperm.xlu0 %11073, %v4613_v46   ;;  %11232 = vrot.lane.b32.xlu2 %v11231_v47, %s14508_s5  ;;  %v3671_v5 = vmax.f32 %v3530_v56, 0.0  ;;  %v2632_v46 = vld [vmem:[%s12322_s23 + $0x1a0] sm:$0xff]  ;;  %v2633_v47 = vld [vmem:[%s12322_s23 + $0x1a8] sm:$0xff] }
 0x3c0   : > { %4647 = vperm.xlu1 %11074, %v4610_v48  }
 0x3c1   : > { %v11198_v52 = vpop.permute.xlu1 %11197 }
 0x3c2   : > { %v11200_v53 = vunpack.i.h.bf16 %v11198_v52  ;;  %v11199_v54 = vunpack.i.l.bf16 %v11198_v52  ;;  %v3202_v55 = vpop.f32.mrf.mxu2 }
 0x3c3   : > { %v3203_v58 = vadd.f32 %v12425_v57, %v3202_v55 }
 0x3c4   : > { %v2950_v59 = vsel %vm2900_vm9, %v2629_v51, %v11200_v53  ;;  %v2949_v60 = vsel %vm2900_vm9, %v2628_v50, %v11199_v54  ;;  %v3531_v61 = vpop.f32.mrf.mxu3 }
 0x3c5   : > { %v3316_v0 = vmax.f32 %v3203_v58, 0.0  ;;  %v3532_v1 = vadd.f32 %v12545_v10, %v3531_v61  ;;  %v2989_v2 = vpack.c.bf16 %v2950_v59, %v2949_v60  ;;  %v4620_v58 = vld [vmem:[%s12604_s3 + $0x60] sm:$0xff] }
 0x3c7   : > { %v3364_v6 = vpack.c.bf16 %v3316_v0, %v3315_v63  ;;  %v3672_v7 = vmax.f32 %v3532_v1, 0.0  ;;  %10153 = vmatmul.msk.bf16.gmra.mxu2 %vm3013_vm10, %v2989_v2  ;;  %4659 = vperm.xlu0 %11073, %v4614_v62   ;;  %v5193_v63 = vld [vmem:[%s12616_s9 + $0x48] sm:$0xff]  ;;  %v5190_v0 = vld [vmem:[%s12616_s9 + $0x30] sm:$0xff]  ;;  %v12686_v1 = vld [vmem:[%s11886_s19] ss:$0 sm:$0xff] }
 0x3c8   : > { %5226 = vperm.xlu1 %11074, %v5187_v3   ;;  %5217 = vperm.xlu2 %11075, %v5184_v4  }
 0x3c9   : > { %10180 = vmatmul.msk.bf16.gmra.mxu3 %vm14443_vm1, %v3364_v6  ;;  %v3729_v8 = vpack.c.bf16 %v3672_v7, %v3671_v5 }
 0x3ca   : > { %v3205_v9 = vpop.f32.mrf.mxu2 }
 0x3cb   : > { %10207 = vmatmul.msk.bf16.gmra.mxu0 %vm14443_vm1, %v3729_v8  ;;  %v3206_v20 = vadd.f32 %v12425_v57, %v3205_v9 }
 0x3cc   : > { %v3534_v12 = vpop.f32.mrf.mxu3 }
 0x3cd   : > { %v3535_v24 = vadd.f32 %v12545_v10, %v3534_v12  ;;  %v3317_v28 = vmax.f32 %v3206_v20, 0.0  ;;  %v5197_v12 = vld [vmem:[%s12616_s9 + $0x68] sm:$0xff] }
 0x3cf   : > { %5238 = vperm.xlu0 %11073, %v5191_v13   ;;  %v3673_v35 = vmax.f32 %v3535_v24, 0.0 }
 0x3d0   : > { %5229 = vperm.xlu1 %11074, %v5188_v14   ;;  %4650 = vperm.xlu2 %11075, %v4611_v15   ;;  %v5194_v14 = vld [vmem:[%s12616_s9 + $0x50] sm:$0xff]  ;;  %v4617_v15 = vld [vmem:[%s12604_s3 + $0x48] sm:$0xff] }
 0x3d2   : > { %v3207_v23 = vpop.f32.mrf.mxu2 }
 0x3d3   : > { %v3208_v25 = vadd.f32 %v12425_v57, %v3207_v23 }
 0x3d4   : > { %v3536_v26 = vpop.f32.mrf.mxu3 }
 0x3d5   : > { %v3318_v29 = vmax.f32 %v3208_v25, 0.0  ;;  %v3537_v30 = vadd.f32 %v12545_v10, %v3536_v26 }
 0x3d7   : > { %v3365_v36 = vpack.c.bf16 %v3318_v29, %v3317_v28  ;;  %v3674_v37 = vmax.f32 %v3537_v30, 0.0  ;;  %10154 = vmatmul.msk.bf16.gmra.mxu2 %vm3013_vm10, %v2990_v31  ;;  %5241 = vperm.xlu0 %11073, %v5192_v27  }
 0x3d8   : > { %4662 = vperm.xlu1 %11074, %v4615_v32   ;;  %4653 = vperm.xlu2 %11075, %v4612_v33  }
 0x3d9   : > { %10181 = vmatmul.msk.bf16.gmra.mxu3 %vm14443_vm1, %v3365_v36  ;;  %v3730_v57 = vpack.c.bf16 %v3674_v37, %v3673_v35  ;;  %v5198_v37 = vld [vmem:[%s12616_s9 + $0x70] sm:$0xff] }
 0x3da   : > { %v3210_v38 = vpop.f32.mrf.mxu2 }
 0x3db   : > { %10208 = vmatmul.msk.bf16.gmra.mxu0 %vm14443_vm1, %v3730_v57  ;;  %v3211_v45 = vadd.f32 %v12672_v44, %v3210_v38 }
 0x3dc   : > { %v3539_v39 = vpop.f32.mrf.mxu3 }
 0x3dd   : > { %v3540_v52 = vadd.f32 %v12545_v10, %v3539_v39  ;;  %v3319_v59 = vmax.f32 %v3211_v45, 0.0 }
 0x3df   : > { %4674 = vperm.xlu0 %11073, %v4619_v40   ;;  %v3675_v2 = vmax.f32 %v3540_v52, 0.0 }
 0x3e0   : > { %4665 = vperm.xlu1 %11074, %v4616_v41   ;;  %5232 = vperm.xlu2 %11075, %v5189_v42   ;;  %v4621_v41 = vld [vmem:[%s12604_s3 + $0x68] sm:$0xff]  ;;  %v4618_v42 = vld [vmem:[%s12604_s3 + $0x50] sm:$0xff] }
 0x3e1   : > { %v11208_v48 = vpop.permute.xlu0 %11207 }
 0x3e2   : > { %v11210_v49 = vunpack.i.h.bf16 %v11208_v48  ;;  %v11209_v50 = vunpack.i.l.bf16 %v11208_v48  ;;  %v3212_v51 = vpop.f32.mrf.mxu2 }
 0x3e3   : > { %v3213_v53 = vadd.f32 %v12672_v44, %v3212_v51 }
 0x3e4   : > { %v2954_v54 = vsel %vm2900_vm9, %v2633_v47, %v11210_v49  ;;  %v2953_v55 = vsel %vm2900_vm9, %v2632_v46, %v11209_v50  ;;  %v3541_v56 = vpop.f32.mrf.mxu3 }
 0x3e5   : > { %v3320_v60 = vmax.f32 %v3213_v53, 0.0  ;;  %v3542_v61 = vadd.f32 %v12545_v10, %v3541_v56  ;;  %v2991_v62 = vpack.c.bf16 %v2954_v54, %v2953_v55 }
 0x3e7   : > { %v3366_v3 = vpack.c.bf16 %v3320_v60, %v3319_v59  ;;  %v3676_v4 = vmax.f32 %v3542_v61, 0.0  ;;  %10155 = vmatmul.msk.bf16.gmra.mxu2 %vm3013_vm10, %v2991_v62  ;;  %4677 = vperm.xlu0 %11073, %v4620_v58   ;;  %v4625_v62 = vld [vmem:[%s12604_s3 + $0x88] sm:$0xff] }
 0x3e8   : > { %5244 = vperm.xlu1 %11074, %v5193_v63   ;;  %5235 = vperm.xlu2 %11075, %v5190_v0   ;;  %v3872_v5 = vpop.f32.mrf.mxu0 }
 0x3e9   : > { %v3731_v6 = vpack.c.bf16 %v3676_v4, %v3675_v2  ;;  %v3873_v7 = vadd.f32 %v12686_v1, %v3872_v5  ;;  %10182 = vmatmul.msk.bf16.gmra.mxu3 %vm14443_vm1, %v3366_v3  ;;  %v11218_v54 = vpop.permute.xlu2 %11217  ;;  %v4622_v3 = vld [vmem:[%s12604_s3 + $0x70] sm:$0xff]  ;;  %v5195_v4 = vld [vmem:[%s12616_s9 + $0x58] sm:$0xff]  ;;  %v2636_v5 = vld [vmem:[%s12322_s23 + $0x1c0] sm:$0xff] }
 0x3ea   : > { %v3215_v8 = vpop.f32.mrf.mxu2  ;;  %v11220_v63 = vunpack.i.h.bf16 %v11218_v54  ;;  %v11219_v0 = vunpack.i.l.bf16 %v11218_v54 }
 0x3eb   : > { %v4032_v9 = vmax.f32 %v3873_v7, 0.0  ;;  %10209 = vmatmul.msk.bf16.gmra.mxu0 %vm14443_vm1, %v3731_v6  ;;  %v3216_v18 = vadd.f32 %v12672_v44, %v3215_v8  ;;  %v2637_v6 = vld [vmem:[%s12322_s23 + $0x1c8] sm:$0xff] }
 0x3ec   : > { %v3544_v11 = vpop.f32.mrf.mxu3 }
 0x3ed   : > { %v4096_v13 = vsel %vm14443_vm1, %v4032_v9, -inf  ;;  %v3545_v28 = vadd.f32 %v12545_v10, %v3544_v11  ;;  %v3321_v32 = vmax.f32 %v3216_v18, 0.0 }
 0x3ee   : > { %v4097_v16 = vrot.slane %v4096_v13, 4 }
 0x3ef   : > { %5256 = vperm.xlu0 %11073, %v5197_v12   ;;  %v3677_v46 = vmax.f32 %v3545_v28, 0.0 }
 0x3f0   : > { %v4098_v17 = vmax.f32 %v4096_v13, %v4097_v16  ;;  %5247 = vperm.xlu1 %11074, %v5194_v14   ;;  %4668 = vperm.xlu2 %11075, %v4617_v15   ;;  %v3874_v19 = vpop.f32.mrf.mxu0  ;;  %v2958_v14 = vsel %vm2900_vm9, %v2637_v6, %v11220_v63  ;;  %v2957_v15 = vsel %vm2900_vm9, %v2636_v5, %v11219_v0  ;;  %v2638_v6 = vld [vmem:[%s12322_s23 + $0x1d0] sm:$0xff] }
 0x3f1   : > { %v3875_v20 = vadd.f32 %v12686_v1, %v3874_v19  ;;  %v11213_v23 = vpop.permute.xlu1 %11212  ;;  %v2993_v28 = vpack.c.bf16 %v2958_v14, %v2957_v15 }
 0x3f2   : > { %v4099_v24 = vrot.slane %v4098_v17, 2  ;;  %v11215_v25 = vunpack.i.h.bf16 %v11213_v23  ;;  %v11214_v26 = vunpack.i.l.bf16 %v11213_v23  ;;  %v3217_v27 = vpop.f32.mrf.mxu2 }
 0x3f3   : > { %v4033_v29 = vmax.f32 %v3875_v20, 0.0  ;;  %v3218_v30 = vadd.f32 %v12672_v44, %v3217_v27 }
 0x3f4   : > { %v4100_v31 = vmax.f32 %v4098_v17, %v4099_v24  ;;  %v2956_v33 = vsel %vm2900_vm9, %v2635_v22, %v11215_v25  ;;  %v2955_v35 = vsel %vm2900_vm9, %v2634_v21, %v11214_v26  ;;  %v3546_v36 = vpop.f32.mrf.mxu3 }
 0x3f5   : > { %v4103_v57 = vsel %vm14443_vm1, %v4033_v29, -inf  ;;  %v3322_v38 = vmax.f32 %v3218_v30, 0.0  ;;  %v3547_v39 = vadd.f32 %v12545_v10, %v3546_v36  ;;  %v2992_v40 = vpack.c.bf16 %v2956_v33, %v2955_v35  ;;  %v4626_v29 = vld [vmem:[%s12604_s3 + $0x90] sm:$0xff]  ;;  %v5199_v35 = vld [vmem:[%s12616_s9 + $0x78] sm:$0xff]  ;;  %v5196_v36 = vld [vmem:[%s12616_s9 + $0x60] sm:$0xff] }
 0x3f6   : > { %v4104_v45 = vrot.slane %v4103_v57, 4  ;;  %v4101_v49 = vrot.slane %v4100_v31, 1 }
 0x3f7   : > { %v3367_v47 = vpack.c.bf16 %v3322_v38, %v3321_v32  ;;  %v3678_v48 = vmax.f32 %v3547_v39, 0.0  ;;  %10156 = vmatmul.msk.bf16.gmra.mxu2 %vm3013_vm10, %v2992_v40  ;;  %5259 = vperm.xlu0 %11073, %v5198_v37  }
 0x3f8   : > { %v4105_v50 = vmax.f32 %v4103_v57, %v4104_v45  ;;  %4680 = vperm.xlu1 %11074, %v4621_v41   ;;  %4671 = vperm.xlu2 %11075, %v4618_v42   ;;  %v3877_v51 = vpop.f32.mrf.mxu0  ;;  %v4102_v59 = vmax.f32 %v4100_v31, %v4101_v49 }
 0x3f9   : > { %v3732_v52 = vpack.c.bf16 %v3678_v48, %v3677_v46  ;;  %v3878_v53 = vadd.f32 %v12686_v1, %v3877_v51  ;;  %10183 = vmatmul.msk.bf16.gmra.mxu3 %vm14443_vm1, %v3367_v47 }
 0x3fa   : > { %v4106_v55 = vrot.slane %v4105_v50, 2  ;;  %v3220_v56 = vpop.f32.mrf.mxu2  ;;  %v4544_v9 = vpack.c.bf16 %v4102_v59, %v4102_v59  ;;  %v5200_v59 = vld [vmem:[%s12616_s9 + $0x80] sm:$0xff] }
 0x3fb   : > { %v4034_v58 = vmax.f32 %v3878_v53, 0.0  ;;  %10210 = vmatmul.msk.bf16.gmra.mxu0 %vm14443_vm1, %v3732_v52  ;;  %v3221_v16 = vadd.f32 %v12672_v44, %v3220_v56  ;;  %v5203_v56 = vld [vmem:[%s12616_s9 + $0x98] sm:$0xff] }
 0x3fc   : > { %v4107_v60 = vmax.f32 %v4105_v50, %v4106_v55  ;;  %v3549_v61 = vpop.f32.mrf.mxu3  ;;  %v4880_v24 = vunpack.c.l.b16 %v4544_v9 }
 0x3fd   : > { %v4110_v2 = vsel %vm14443_vm1, %v4034_v58, -inf  ;;  %v3550_v21 = vadd.f32 %v12545_v10, %v3549_v61  ;;  %v3323_v30 = vmax.f32 %v3221_v16, 0.0 }
 0x3fe   : > { %v4108_v7 = vrot.slane %v4107_v60, 1  ;;  %v4111_v8 = vrot.slane %v4110_v2, 4 }
 0x3ff   : > { %4692 = vperm.xlu0 %11073, %v4625_v62   ;;  %v3679_v39 = vmax.f32 %v3550_v21, 0.0 }
 0x400   : > { %v4109_v11 = vmax.f32 %v4107_v60, %v4108_v7  ;;  %v4112_v12 = vmax.f32 %v4110_v2, %v4111_v8  ;;  %4683 = vperm.xlu1 %11074, %v4622_v3   ;;  %5250 = vperm.xlu2 %11075, %v5195_v4   ;;  %v3879_v13 = vpop.f32.mrf.mxu0  ;;  %v4623_v60 = vld [vmem:[%s12604_s3 + $0x78] sm:$0xff] }
 0x401   : > { %v3880_v17 = vadd.f32 %v12686_v1, %v3879_v13  ;;  %v2639_v7 = vld [vmem:[%s12322_s23 + $0x1d8] sm:$0xff] }
 0x402   : > { %v4545_v18 = vpack.c.bf16 %v4109_v11, %v4109_v11  ;;  %v4113_v19 = vrot.slane %v4112_v12, 2  ;;  %v3222_v20 = vpop.f32.mrf.mxu2 }
 0x403   : > { %v4035_v22 = vmax.f32 %v3880_v17, 0.0  ;;  %v3223_v23 = vadd.f32 %v12672_v44, %v3222_v20 }
 0x404   : > { %v4881_v25 = vunpack.c.l.b16 %v4545_v18  ;;  %v4114_v26 = vmax.f32 %v4112_v12, %v4113_v19  ;;  %v3551_v27 = vpop.f32.mrf.mxu3 }
 0x405   : > { %v4117_v31 = vsel %vm14443_vm1, %v4035_v22, -inf  ;;  %v3324_v32 = vmax.f32 %v3223_v23, 0.0  ;;  %v3552_v33 = vadd.f32 %v12545_v10, %v3551_v27 }
 0x406   : > { %v4945_v37 = vsel %vm4944_vm2, %v4881_v25, %v4880_v24  ;;  %v4115_v57 = vrot.slane %v4114_v26, 1  ;;  %v4118_v38 = vrot.slane %v4117_v31, 4  ;;  %v5204_v24 = vld [vmem:[%s12616_s9 + $0xa0] sm:$0xff] }
 0x407   : > { %v3368_v40 = vpack.c.bf16 %v3324_v32, %v3323_v30  ;;  %v3680_v41 = vmax.f32 %v3552_v33, 0.0  ;;  %10157 = vmatmul.msk.bf16.gmra.mxu2 %vm3013_vm10, %v2993_v28  ;;  %4695 = vperm.xlu0 %11073, %v4626_v29   ;;  %v4627_v29 = vld [vmem:[%s12604_s3 + $0x98] sm:$0xff]  ;;  %v4624_v30 = vld [vmem:[%s12604_s3 + $0x80] sm:$0xff] }
 0x408   : > { %v4116_v42 = vmax.f32 %v4114_v26, %v4115_v57  ;;  %v4119_v45 = vmax.f32 %v4117_v31, %v4118_v38  ;;  %5262 = vperm.xlu1 %11074, %v5199_v35   ;;  %5253 = vperm.xlu2 %11075, %v5196_v36   ;;  %v3882_v46 = vpop.f32.mrf.mxu0 }
 0x409   : > { %v3733_v47 = vpack.c.bf16 %v3680_v41, %v3679_v39  ;;  %v3883_v48 = vadd.f32 %v12686_v1, %v3882_v46  ;;  %10184 = vmatmul.msk.bf16.gmra.mxu3 %vm14443_vm1, %v3368_v40 }
 0x40a   : > { %v4546_v49 = vpack.c.bf16 %v4116_v42, %v4116_v42  ;;  %v4120_v50 = vrot.slane %v4119_v45, 2  ;;  %v3225_v51 = vpop.f32.mrf.mxu2 }
 0x40b   : > { %v4036_v52 = vmax.f32 %v3883_v48, 0.0  ;;  %10211 = vmatmul.msk.bf16.gmra.mxu0 %vm14443_vm1, %v3733_v47  ;;  %v3226_v0 = vadd.f32 %v12672_v44, %v3225_v51 }
 0x40c   : > { %v4882_v53 = vunpack.c.l.b16 %v4546_v49  ;;  %v4121_v54 = vmax.f32 %v4119_v45, %v4120_v50  ;;  %v3554_v55 = vpop.f32.mrf.mxu3  ;;  %v4631_v50 = vld [vmem:[%s12604_s3 + $0xb8] sm:$0xff] }
 0x40d   : > { %v4124_v58 = vsel %vm14443_vm1, %v4036_v52, -inf  ;;  %v3325_v15 = vmax.f32 %v3226_v0, 0.0  ;;  %v3555_v16 = vadd.f32 %v12545_v10, %v3554_v55  ;;  %v4628_v52 = vld [vmem:[%s12604_s3 + $0xa0] sm:$0xff] }
 0x40e   : > { %v4947_v61 = vsel %vm4946_vm3, %v4882_v53, %v4945_v37  ;;  %v4122_v62 = vrot.slane %v4121_v54, 1  ;;  %v4125_v63 = vrot.slane %v4124_v58, 4  ;;  %v5201_v53 = vld [vmem:[%s12616_s9 + $0x88] sm:$0xff] }
 0x40f   : > { %5274 = vperm.xlu0 %11073, %v5203_v56   ;;  %v3681_v35 = vmax.f32 %v3555_v16, 0.0  ;;  %v4632_v16 = vld [vmem:[%s12604_s3 + $0xc0] sm:$0xff] }
 0x410   : > { %v4123_v2 = vmax.f32 %v4121_v54, %v4122_v62  ;;  %v4126_v3 = vmax.f32 %v4124_v58, %v4125_v63  ;;  %5265 = vperm.xlu1 %11074, %v5200_v59   ;;  %4686 = vperm.xlu2 %11075, %v4623_v60   ;;  %v3884_v4 = vpop.f32.mrf.mxu0  ;;  %v2641_v62 = vld [vmem:[%s12322_s23 + $0x1e8] sm:$0xff] }
 0x411   : > { %v3885_v5 = vadd.f32 %v12686_v1, %v3884_v4  ;;  %v11223_v8 = vpop.permute.xlu0 %11222 }
 0x412   : > { %v4547_v9 = vpack.c.bf16 %v4123_v2, %v4123_v2  ;;  %v4127_v11 = vrot.slane %v4126_v3, 2  ;;  %v11225_v12 = vunpack.i.h.bf16 %v11223_v8  ;;  %v11224_v13 = vunpack.i.l.bf16 %v11223_v8  ;;  %v3227_v14 = vpop.f32.mrf.mxu2 }
 0x413   : > { %v4037_v17 = vmax.f32 %v3885_v5, 0.0  ;;  %v3228_v18 = vadd.f32 %v12672_v44, %v3227_v14 }
 0x414   : > { %v4883_v19 = vunpack.c.l.b16 %v4547_v9  ;;  %v4128_v20 = vmax.f32 %v4126_v3, %v4127_v11  ;;  %v2960_v21 = vsel %vm2900_vm9, %v2639_v7, %v11225_v12  ;;  %v2959_v22 = vsel %vm2900_vm9, %v2638_v6, %v11224_v13  ;;  %v3556_v23 = vpop.f32.mrf.mxu3  ;;  %v2640_v3 = vld [vmem:[%s12322_s23 + $0x1e0] sm:$0xff] }
 0x415   : > { %v4131_v25 = vsel %vm14443_vm1, %v4037_v17, -inf  ;;  %v3326_v26 = vmax.f32 %v3228_v18, 0.0  ;;  %v3557_v27 = vadd.f32 %v12545_v10, %v3556_v23  ;;  %v2994_v28 = vpack.c.bf16 %v2960_v21, %v2959_v22  ;;  %v12768_v12 = vld [vmem:[%s14500_s8] ss:$0 sm:$0xff] }
 0x416   : > { %v4129_v31 = vrot.slane %v4128_v20, 1  ;;  %v4132_v32 = vrot.slane %v4131_v25, 4  ;;  %v4949_v33 = vsel %vm4948_vm5, %v4883_v19, %v4947_v61 }
 0x417   : > { %v3369_v36 = vpack.c.bf16 %v3326_v26, %v3325_v15  ;;  %v3682_v37 = vmax.f32 %v3557_v27, 0.0  ;;  %5277 = vperm.xlu0 %11073, %v5204_v24   ;;  %10158 = vmatmul.msk.bf16.gmra.mxu2 %vm3013_vm10, %v2994_v28 }
 0x418   : > { %v4130_v57 = vmax.f32 %v4128_v20, %v4129_v31  ;;  %v4133_v38 = vmax.f32 %v4131_v25, %v4132_v32  ;;  %4698 = vperm.xlu1 %11074, %v4627_v29   ;;  %4689 = vperm.xlu2 %11075, %v4624_v30   ;;  %v3887_v10 = vpop.f32.mrf.mxu0  ;;  %v5205_v20 = vld [vmem:[%s12616_s9 + $0xa8] sm:$0xff]  ;;  %v5202_v25 = vld [vmem:[%s12616_s9 + $0x90] sm:$0xff] }
 0x419   : > { %v3734_v39 = vpack.c.bf16 %v3682_v37, %v3681_v35  ;;  %v3888_v40 = vadd.f32 %v12686_v1, %v3887_v10  ;;  %10185 = vmatmul.msk.bf16.gmra.mxu3 %vm14443_vm1, %v3369_v36 }
 0x41a   : > { %v4548_v41 = vpack.c.bf16 %v4130_v57, %v4130_v57  ;;  %v4134_v42 = vrot.slane %v4133_v38, 2  ;;  %v3230_v45 = vpop.f32.mrf.mxu2  ;;  %v11233_v57 = vpop.permute.xlu2 %11232 }
 0x41b   : > { %v4038_v46 = vmax.f32 %v3888_v40, 0.0  ;;  %10212 = vmatmul.msk.bf16.gmra.mxu0 %vm14443_vm1, %v3734_v39  ;;  %v3231_v6 = vadd.f32 %v12672_v44, %v3230_v45 }
 0x41c   : > { %v4884_v47 = vunpack.c.l.b16 %v4548_v41  ;;  %v4135_v48 = vmax.f32 %v4133_v38, %v4134_v42  ;;  %v3559_v49 = vpop.f32.mrf.mxu3 }
 0x41d   : > { %v4138_v51 = vsel %vm14443_vm1, %v4038_v46, -inf  ;;  %v3560_v13 = vadd.f32 %v12768_v12, %v3559_v49  ;;  %v3327_v26 = vmax.f32 %v3231_v6, 0.0  ;;  %v11235_v46 = vunpack.i.h.bf16 %v11233_v57  ;;  %v2643_v49 = vld [vmem:[%s12322_s23 + $0x1f8] sm:$0xff] }
 0x41e   : > { %v4136_v54 = vrot.slane %v4135_v48, 1  ;;  %v4139_v55 = vrot.slane %v4138_v51, 4  ;;  %v4951_v56 = vsel %vm4950_vm0, %v4884_v47, %v4949_v33 }
 0x41f   : > { %4710 = vperm.xlu0 %11073, %v4631_v50   ;;  %v3683_v30 = vmax.f32 %v3560_v13, 0.0  ;;  %v11234_v50 = vunpack.i.l.bf16 %v11233_v57 }
 0x420   : > { %v4137_v58 = vmax.f32 %v4135_v48, %v4136_v54  ;;  %v4140_v59 = vmax.f32 %v4138_v51, %v4139_v55  ;;  %4701 = vperm.xlu1 %11074, %v4628_v52   ;;  %5268 = vperm.xlu2 %11075, %v5201_v53   ;;  %v3889_v60 = vpop.f32.mrf.mxu0  ;;  %v5206_v48 = vld [vmem:[%s12616_s9 + $0xb0] sm:$0xff]  ;;  %v4629_v53 = vld [vmem:[%s12604_s3 + $0xa8] sm:$0xff] }
 0x421   : > { %v3890_v61 = vadd.f32 %v12686_v1, %v3889_v60  ;;  %v11228_v63 = vpop.permute.xlu1 %11227  ;;  %v2642_v55 = vld [vmem:[%s12322_s23 + $0x1f0] sm:$0xff]  ;;  %v2964_v60 = vsel %vm2900_vm9, %v2643_v49, %v11235_v46  ;;  %s14444_s23 = smov 19  }
 0x422   : > { %v4549_v0 = vpack.c.bf16 %v4137_v58, %v4137_v58  ;;  %v4141_v2 = vrot.slane %v4140_v59, 2  ;;  %v11230_v4 = vunpack.i.h.bf16 %v11228_v63  ;;  %v3232_v5 = vpop.f32.mrf.mxu2  ;;  %v11229_v8 = vunpack.i.l.bf16 %v11228_v63  ;;  %v5530_v63 = vld [vmem:[%s12790_s6 + $0x8] sm:$0xff] }
 0x423   : > { %v4039_v7 = vmax.f32 %v3890_v61, 0.0  ;;  %v3233_v19 = vadd.f32 %v12672_v44, %v3232_v5 }
 0x424   : > { %v4885_v9 = vunpack.c.l.b16 %v4549_v0  ;;  %v4142_v11 = vmax.f32 %v4140_v59, %v4141_v2  ;;  %v2962_v14 = vsel %vm2900_vm9, %v2641_v62, %v11230_v4  ;;  %v3561_v15 = vpop.f32.mrf.mxu3  ;;  %v2961_v18 = vsel %vm2900_vm9, %v2640_v3, %v11229_v8  ;;  %v5529_v62 = vld [vmem:[%s12790_s6] sm:$0xff] }
 0x425   : > { %v4145_v17 = vsel %vm14443_vm1, %v4039_v7, -inf  ;;  %v3562_v23 = vadd.f32 %v12768_v12, %v3561_v15  ;;  %v2995_v24 = vpack.c.bf16 %v2962_v14, %v2961_v18  ;;  %v3328_v27 = vmax.f32 %v3233_v19, 0.0 }
 0x426   : > { %v4143_v21 = vrot.slane %v4142_v11, 1  ;;  %v4146_v22 = vrot.slane %v4145_v17, 4  ;;  %v4953_v28 = vsel %vm4952_vm6, %v4885_v9, %v4951_v56  ;;  %v2963_v0 = vsel %vm2900_vm9, %v2642_v55, %v11234_v50 }
 0x427   : > { %4713 = vperm.xlu0 %11073, %v4632_v16   ;;  %v3684_v32 = vmax.f32 %v3562_v23, 0.0  ;;  %10159 = vmatmul.msk.bf16.gmra.mxu2 %vm3013_vm10, %v2995_v24  ;;  %v3370_v35 = vpack.c.bf16 %v3328_v27, %v3327_v26  ;;  %v11236_v13 = vpack.i.bf16 %v5530_v63, %v5529_v62  ;;  %v2996_v16 = vpack.c.bf16 %v2964_v60, %v2963_v0 }
 0x428   : > { %v4144_v29 = vmax.f32 %v4142_v11, %v4143_v21  ;;  %v4147_v31 = vmax.f32 %v4145_v17, %v4146_v22  ;;  %5280 = vperm.xlu1 %11074, %v5205_v20   ;;  %v3892_v33 = vpop.f32.mrf.mxu0  ;;  %5271 = vperm.xlu2 %11075, %v5202_v25   ;;  %v4630_v20 = vld [vmem:[%s12604_s3 + $0xb0] sm:$0xff] }
 0x429   : > { %v3893_v36 = vadd.f32 %v12686_v1, %v3892_v33  ;;  %v3735_v10 = vpack.c.bf16 %v3684_v32, %v3683_v30  ;;  %10186 = vmatmul.msk.bf16.gmra.mxu3 %vm14443_vm1, %v3370_v35 }
 0x42a   : > { %v4550_v37 = vpack.c.bf16 %v4144_v29, %v4144_v29  ;;  %v4148_v38 = vrot.slane %v4147_v31, 2  ;;  %v3235_v40 = vpop.f32.mrf.mxu2 }
 0x42b   : > { %v4040_v39 = vmax.f32 %v3893_v36, 0.0  ;;  %10213 = vmatmul.msk.bf16.gmra.mxu0 %vm14443_vm1, %v3735_v10  ;;  %v3236_v3 = vadd.f32 %v12672_v44, %v3235_v40  ;;  %v5207_v40 = vld [vmem:[%s12616_s9 + $0xb8] sm:$0xff] }
 0x42c   : > { %v4886_v41 = vunpack.c.l.b16 %v4550_v37  ;;  %v4149_v42 = vmax.f32 %v4147_v31, %v4148_v38  ;;  %v3564_v45 = vpop.f32.mrf.mxu3  ;;  %v4633_v38 = vld [vmem:[%s12604_s3 + $0xc8] sm:$0xff] }
 0x42d   : > { %v4152_v47 = vsel %vm14443_vm1, %v4040_v39, -inf  ;;  %v3565_v5 = vadd.f32 %v12768_v12, %v3564_v45  ;;  %v3329_v17 = vmax.f32 %v3236_v3, 0.0  ;;  %v5208_v3 = vld [vmem:[%s12616_s9 + $0xc0] sm:$0xff] }
 0x42e   : > { %v4150_v51 = vrot.slane %v4149_v42, 1  ;;  %v4153_v52 = vrot.slane %v4152_v47, 4  ;;  %v4955_v54 = vsel %vm4954_vm7, %v4886_v41, %v4953_v28 }
 0x42f   : > { %v3685_v22 = vmax.f32 %v3565_v5, 0.0 }
 0x430   : > { %v4154_v56 = vmax.f32 %v4152_v47, %v4153_v52  ;;  %5283 = vperm.xlu1 %11074, %v5206_v48   ;;  %v3894_v58 = vpop.f32.mrf.mxu0  ;;  %v4151_v59 = vmax.f32 %v4149_v42, %v4150_v51  ;;  %4704 = vperm.xlu2 %11075, %v4629_v53  }
 0x431   : > { %v3895_v61 = vadd.f32 %v12686_v1, %v3894_v58 }
 0x432   : > { %v4155_v2 = vrot.slane %v4154_v56, 2  ;;  %v4551_v4 = vpack.c.bf16 %v4151_v59, %v4151_v59  ;;  %v3237_v7 = vpop.f32.mrf.mxu2 }
 0x433   : > { %v4041_v6 = vmax.f32 %v3895_v61, 0.0  ;;  %v3238_v9 = vadd.f32 %v12672_v44, %v3237_v7  ;;  %v4634_v61 = vld [vmem:[%s12604_s3 + $0xd0] sm:$0xff] }
 0x434   : > { %v4156_v8 = vmax.f32 %v4154_v56, %v4155_v2  ;;  %v3566_v11 = vpop.f32.mrf.mxu3  ;;  %v4887_v21 = vunpack.c.l.b16 %v4551_v4 }
 0x435   : > { %v4159_v14 = vsel %vm14443_vm1, %v4041_v6, -inf  ;;  %v3567_v15 = vadd.f32 %v12768_v12, %v3566_v11  ;;  %v3330_v19 = vmax.f32 %v3238_v9, 0.0 }
 0x436   : > { %v4160_v18 = vrot.slane %v4159_v14, 4  ;;  %v4157_v24 = vrot.slane %v4156_v8, 1  ;;  %v12809_v30 = vsel %vm14452_vm8, %v4887_v21, %v4955_v54 }
 0x437   : > { %v3686_v23 = vmax.f32 %v3567_v15, 0.0  ;;  %v3371_v26 = vpack.c.bf16 %v3330_v19, %v3329_v17  ;;  %10160 = vmatmul.msk.bf16.gmra.mxu2 %vm3013_vm10, %v2996_v16 }
 0x438   : > { %v4161_v25 = vmax.f32 %v4159_v14, %v4160_v18  ;;  %11237 = vrot.lane.b32.xlu1 %v11236_v13, %s14444_s23  ;;  %v3897_v27 = vpop.f32.mrf.mxu0  ;;  %4707 = vperm.xlu2 %11075, %v4630_v20   ;;  %v4158_v35 = vmax.f32 %v4156_v8, %v4157_v24  ;;  %s14448_s23 = smov 22  }
 0x439   : > { %v3736_v28 = vpack.c.bf16 %v3686_v23, %v3685_v22  ;;  %v3898_v29 = vadd.f32 %v12686_v1, %v3897_v27  ;;  %10187 = vmatmul.msk.bf16.gmra.mxu3 %vm14443_vm1, %v3371_v26 }
 0x43a   : > { %v4162_v31 = vrot.slane %v4161_v25, 2  ;;  %v3240_v33 = vpop.f32.mrf.mxu2  ;;  %v4552_v41 = vpack.c.bf16 %v4158_v35, %v4158_v35 }
 0x43b   : > { %v4042_v32 = vmax.f32 %v3898_v29, 0.0  ;;  %10214 = vmatmul.msk.bf16.gmra.mxu0 %vm14443_vm1, %v3736_v28  ;;  %v3241_v50 = vadd.f32 %v12672_v44, %v3240_v33 }
 0x43c   : > { %v4163_v36 = vmax.f32 %v4161_v25, %v4162_v31  ;;  %v3569_v37 = vpop.f32.mrf.mxu3  ;;  %v4888_v53 = vunpack.c.l.b16 %v4552_v41 }
 0x43d   : > { %v4166_v57 = vsel %vm14443_vm1, %v4042_v32, -inf  ;;  %v3570_v56 = vadd.f32 %v12768_v12, %v3569_v37  ;;  %v3331_v4 = vmax.f32 %v3241_v50, 0.0 }
 0x43e   : > { %v4164_v10 = vrot.slane %v4163_v36, 1  ;;  %v4167_v39 = vrot.slane %v4166_v57, 4 }
 0x43f   : > { %v3687_v7 = vmax.f32 %v3570_v56, 0.0 }
 0x440   : > { %v4165_v42 = vmax.f32 %v4163_v36, %v4164_v10  ;;  %v4168_v45 = vmax.f32 %v4166_v57, %v4167_v39  ;;  %4716 = vperm.xlu1 %11074, %v4633_v38   ;;  %v3899_v46 = vpop.f32.mrf.mxu0  ;;  %5286 = vperm.xlu2 %11075, %v5207_v40  }
 0x441   : > { %v3900_v47 = vadd.f32 %v12686_v1, %v3899_v46 }
 0x442   : > { %v4553_v48 = vpack.c.bf16 %v4165_v42, %v4165_v42  ;;  %v4169_v49 = vrot.slane %v4168_v45, 2  ;;  %v3242_v52 = vpop.f32.mrf.mxu2 }
 0x443   : > { %v4043_v51 = vmax.f32 %v3900_v47, 0.0  ;;  %v3243_v60 = vadd.f32 %v12672_v44, %v3242_v52 }
 0x444   : > { %v4889_v54 = vunpack.c.l.b16 %v4553_v48  ;;  %v4170_v55 = vmax.f32 %v4168_v45, %v4169_v49  ;;  %v3571_v58 = vpop.f32.mrf.mxu3 }
 0x445   : > { %v4173_v59 = vsel %vm14443_vm1, %v4043_v51, -inf  ;;  %v3572_v2 = vadd.f32 %v12768_v12, %v3571_v58  ;;  %v3332_v5 = vmax.f32 %v3243_v60, 0.0 }
 0x446   : > { %v4958_v62 = vsel %vm4944_vm2, %v4889_v54, %v4888_v53  ;;  %v4171_v63 = vrot.slane %v4170_v55, 1  ;;  %v4174_v0 = vrot.slane %v4173_v59, 4 }
 0x447   : > { %v3688_v9 = vmax.f32 %v3572_v2, 0.0  ;;  %v3372_v13 = vpack.c.bf16 %v3332_v5, %v3331_v4 }
 0x448   : > { %v4172_v6 = vmax.f32 %v4170_v55, %v4171_v63  ;;  %v4175_v8 = vmax.f32 %v4173_v59, %v4174_v0  ;;  %4719 = vperm.xlu1 %11074, %v4634_v61   ;;  %v3902_v11 = vpop.f32.mrf.mxu0  ;;  %5289 = vperm.xlu2 %11075, %v5208_v3  }
 0x449   : > { %v3903_v14 = vadd.f32 %v12686_v1, %v3902_v11  ;;  %v3737_v17 = vpack.c.bf16 %v3688_v9, %v3687_v7  ;;  %10188 = vmatmul.msk.bf16.gmra.mxu3 %vm14443_vm1, %v3372_v13 }
 0x44a   : > { %v4554_v15 = vpack.c.bf16 %v4172_v6, %v4172_v6  ;;  %v4176_v16 = vrot.slane %v4175_v8, 2  ;;  %v3245_v19 = vpop.f32.mrf.mxu2 }
 0x44b   : > { %v4044_v18 = vmax.f32 %v3903_v14, 0.0  ;;  %10215 = vmatmul.msk.bf16.gmra.mxu0 %vm14443_vm1, %v3737_v17  ;;  %v3246_v35 = vadd.f32 %v12672_v44, %v3245_v19 }
 0x44c   : > { %v4890_v20 = vunpack.c.l.b16 %v4554_v15  ;;  %v4177_v21 = vmax.f32 %v4175_v8, %v4176_v16  ;;  %v3574_v22 = vpop.f32.mrf.mxu3 }
 0x44d   : > { %v4180_v23 = vsel %vm14443_vm1, %v4044_v18, -inf  ;;  %v3575_v10 = vadd.f32 %v12768_v12, %v3574_v22  ;;  %v3333_v48 = vmax.f32 %v3246_v35, 0.0 }
 0x44e   : > { %v4959_v24 = vsel %vm4946_vm3, %v4890_v20, %v4958_v62  ;;  %v4178_v25 = vrot.slane %v4177_v21, 1  ;;  %v4181_v26 = vrot.slane %v4180_v23, 4 }
 0x44f   : > { %v3689_v51 = vmax.f32 %v3575_v10, 0.0 }
 0x450   : > { %v4179_v27 = vmax.f32 %v4177_v21, %v4178_v25  ;;  %v4182_v28 = vmax.f32 %v4180_v23, %v4181_v26  ;;  %v3904_v29 = vpop.f32.mrf.mxu0 }
 0x451   : > { %v3905_v31 = vadd.f32 %v12686_v1, %v3904_v29 }
 0x452   : > { %v4555_v32 = vpack.c.bf16 %v4179_v27, %v4179_v27  ;;  %v4183_v33 = vrot.slane %v4182_v28, 2  ;;  %v3247_v37 = vpop.f32.mrf.mxu2 }
 0x453   : > { %v4045_v36 = vmax.f32 %v3905_v31, 0.0  ;;  %v3248_v41 = vadd.f32 %v12672_v44, %v3247_v37 }
 0x454   : > { %v4891_v57 = vunpack.c.l.b16 %v4555_v32  ;;  %v4184_v38 = vmax.f32 %v4182_v28, %v4183_v33  ;;  %v3576_v39 = vpop.f32.mrf.mxu3 }
 0x455   : > { %v4187_v40 = vsel %vm14443_vm1, %v4045_v36, -inf  ;;  %v3577_v46 = vadd.f32 %v12768_v12, %v3576_v39  ;;  %v3334_v49 = vmax.f32 %v3248_v41, 0.0 }
 0x456   : > { %v4185_v42 = vrot.slane %v4184_v38, 1  ;;  %v4188_v45 = vrot.slane %v4187_v40, 4  ;;  %v4960_v47 = vsel %vm4948_vm5, %v4891_v57, %v4959_v24 }
 0x457   : > { %v3690_v53 = vmax.f32 %v3577_v46, 0.0  ;;  %v3373_v55 = vpack.c.bf16 %v3334_v49, %v3333_v48 }
 0x458   : > { %v4186_v50 = vmax.f32 %v4184_v38, %v4185_v42  ;;  %v4189_v52 = vmax.f32 %v4187_v40, %v4188_v45  ;;  %v3907_v54 = vpop.f32.mrf.mxu0 }
 0x459   : > { %v3908_v56 = vadd.f32 %v12686_v1, %v3907_v54  ;;  %v3738_v60 = vpack.c.bf16 %v3690_v53, %v3689_v51  ;;  %10189 = vmatmul.msk.bf16.gmra.mxu3 %vm14443_vm1, %v3373_v55 }
 0x45a   : > { %v4556_v58 = vpack.c.bf16 %v4186_v50, %v4186_v50  ;;  %v4190_v59 = vrot.slane %v4189_v52, 2  ;;  %v3250_v62 = vpop.f32.mrf.mxu2 }
 0x45b   : > { %v4046_v61 = vmax.f32 %v3908_v56, 0.0  ;;  %10216 = vmatmul.msk.bf16.gmra.mxu0 %vm14443_vm1, %v3738_v60  ;;  %v3251_v15 = vadd.f32 %v12672_v44, %v3250_v62 }
 0x45c   : > { %v4892_v63 = vunpack.c.l.b16 %v4556_v58  ;;  %v4191_v0 = vmax.f32 %v4189_v52, %v4190_v59  ;;  %v3579_v2 = vpop.f32.mrf.mxu3 }
 0x45d   : > { %v4194_v3 = vsel %vm14443_vm1, %v4046_v61, -inf  ;;  %v3580_v20 = vadd.f32 %v12768_v12, %v3579_v2  ;;  %v3335_v28 = vmax.f32 %v3251_v15, 0.0 }
 0x45e   : > { %v4192_v4 = vrot.slane %v4191_v0, 1  ;;  %v4195_v5 = vrot.slane %v4194_v3, 4  ;;  %v4961_v6 = vsel %vm4950_vm0, %v4892_v63, %v4960_v47 }
 0x45f   : > { %v3691_v32 = vmax.f32 %v3580_v20, 0.0 }
 0x460   : > { %v4193_v7 = vmax.f32 %v4191_v0, %v4192_v4  ;;  %v4196_v8 = vmax.f32 %v4194_v3, %v4195_v5  ;;  %v3909_v9 = vpop.f32.mrf.mxu0 }
 0x461   : > { %v3910_v11 = vadd.f32 %v12686_v1, %v3909_v9 }
 0x462   : > { %v4557_v13 = vpack.c.bf16 %v4193_v7, %v4193_v7  ;;  %v4197_v14 = vrot.slane %v4196_v8, 2  ;;  %v3252_v17 = vpop.f32.mrf.mxu2 }
 0x463   : > { %v4047_v16 = vmax.f32 %v3910_v11, 0.0  ;;  %v3253_v23 = vadd.f32 %v12672_v44, %v3252_v17 }
 0x464   : > { %v4893_v18 = vunpack.c.l.b16 %v4557_v13  ;;  %v4198_v19 = vmax.f32 %v4196_v8, %v4197_v14  ;;  %v3581_v21 = vpop.f32.mrf.mxu3 }
 0x465   : > { %v4201_v22 = vsel %vm14443_vm1, %v4047_v16, -inf  ;;  %v3582_v26 = vadd.f32 %v12768_v12, %v3581_v21  ;;  %v3336_v29 = vmax.f32 %v3253_v23, 0.0 }
 0x466   : > { %v4199_v24 = vrot.slane %v4198_v19, 1  ;;  %v4202_v25 = vrot.slane %v4201_v22, 4  ;;  %v4962_v27 = vsel %vm4952_vm6, %v4893_v18, %v4961_v6 }
 0x467   : > { %v3692_v35 = vmax.f32 %v3582_v26, 0.0  ;;  %v3374_v37 = vpack.c.bf16 %v3336_v29, %v3335_v28 }
 0x468   : > { %v4200_v31 = vmax.f32 %v4198_v19, %v4199_v24  ;;  %v4203_v33 = vmax.f32 %v4201_v22, %v4202_v25  ;;  %v3912_v36 = vpop.f32.mrf.mxu0 }
 0x469   : > { %v3913_v57 = vadd.f32 %v12686_v1, %v3912_v36  ;;  %v3739_v39 = vpack.c.bf16 %v3692_v35, %v3691_v32  ;;  %10190 = vmatmul.msk.bf16.gmra.mxu3 %vm14443_vm1, %v3374_v37  ;;  %v12873_v36 = vld [vmem:[%s11866_s29] ss:$0 sm:$0xff] }
 0x46a   : > { %v4558_v38 = vpack.c.bf16 %v4200_v31, %v4200_v31  ;;  %v4204_v10 = vrot.slane %v4203_v33, 2  ;;  %v3255_v41 = vpop.f32.mrf.mxu2  ;;  %v12869_v31 = vld [vmem:[%s11886_s19] ss:$0 sm:$0xff] }
 0x46b   : > { %v4048_v40 = vmax.f32 %v3913_v57, 0.0  ;;  %10217 = vmatmul.msk.bf16.gmra.mxu0 %vm14443_vm1, %v3739_v39  ;;  %v3256_v56 = vadd.f32 %v12672_v44, %v3255_v41 }
 0x46c   : > { %v4894_v42 = vunpack.c.l.b16 %v4558_v38  ;;  %v4205_v45 = vmax.f32 %v4203_v33, %v4204_v10  ;;  %v3584_v46 = vpop.f32.mrf.mxu3 }
 0x46d   : > { %v4208_v47 = vsel %vm14443_vm1, %v4048_v40, -inf  ;;  %v3585_v59 = vadd.f32 %v12768_v12, %v3584_v46  ;;  %v3337_v4 = vmax.f32 %v3256_v56, 0.0 }
 0x46e   : > { %v4206_v48 = vrot.slane %v4205_v45, 1  ;;  %v4209_v49 = vrot.slane %v4208_v47, 4  ;;  %v4963_v50 = vsel %vm4954_vm7, %v4894_v42, %v4962_v27 }
 0x46f   : > { %v3693_v8 = vmax.f32 %v3585_v59, 0.0 }
 0x470   : > { %v4210_v51 = vmax.f32 %v4208_v47, %v4209_v49  ;;  %v3914_v52 = vpop.f32.mrf.mxu0  ;;  %v4207_v53 = vmax.f32 %v4205_v45, %v4206_v48 }
 0x471   : > { %v3915_v54 = vadd.f32 %v12686_v1, %v3914_v52 }
 0x472   : > { %v4211_v55 = vrot.slane %v4210_v51, 2  ;;  %v4559_v58 = vpack.c.bf16 %v4207_v53, %v4207_v53  ;;  %v3257_v61 = vpop.f32.mrf.mxu2 }
 0x473   : > { %v4049_v60 = vmax.f32 %v3915_v54, 0.0  ;;  %v3258_v63 = vadd.f32 %v12672_v44, %v3257_v61 }
 0x474   : > { %v4212_v62 = vmax.f32 %v4210_v51, %v4211_v55  ;;  %v3586_v0 = vpop.f32.mrf.mxu3  ;;  %v4895_v7 = vunpack.c.l.b16 %v4559_v58 }
 0x475   : > { %v4215_v2 = vsel %vm14443_vm1, %v4049_v60, -inf  ;;  %v3587_v3 = vadd.f32 %v12768_v12, %v3586_v0  ;;  %v3338_v6 = vmax.f32 %v3258_v63, 0.0 }
 0x476   : > { %v4216_v5 = vrot.slane %v4215_v2, 4  ;;  %v4213_v11 = vrot.slane %v4212_v62, 1  ;;  %v4964_v16 = vsel %vm14452_vm8, %v4895_v7, %v4963_v50 }
 0x477   : > { %v3694_v9 = vmax.f32 %v3587_v3, 0.0  ;;  %v3375_v14 = vpack.c.bf16 %v3338_v6, %v3337_v4  ;;  %v12863_v18 = vpack.c.b16 %v4964_v16, %v12809_v30 }
 0x478   : > { %v4217_v13 = vmax.f32 %v4215_v2, %v4216_v5  ;;  %v3917_v15 = vpop.f32.mrf.mxu0  ;;  %v4214_v22 = vmax.f32 %v4212_v62, %v4213_v11 }
 0x479   : > { %v3740_v17 = vpack.c.bf16 %v3694_v9, %v3693_v8  ;;  %v3918_v44 = vadd.f32 %v12686_v1, %v3917_v15  ;;  %10191 = vmatmul.msk.bf16.gmra.mxu3 %vm14443_vm1, %v3375_v14 }
 0x47a   : > { %v4218_v19 = vrot.slane %v4217_v13, 2  ;;  %v3260_v21 = vpop.f32.mrf.mxu2  ;;  %v4560_v1 = vpack.c.bf16 %v4214_v22, %v4214_v22 }
 0x47b   : > { %v4050_v20 = vmax.f32 %v3918_v44, 0.0  ;;  %10218 = vmatmul.msk.bf16.gmra.mxu0 %vm14443_vm1, %v3740_v17  ;;  %v3261_v37 = vadd.f32 %v12873_v36, %v3260_v21 }
 0x47c   : > { %v4219_v23 = vmax.f32 %v4217_v13, %v4218_v19  ;;  %v3589_v24 = vpop.f32.mrf.mxu3  ;;  %v4896_v10 = vunpack.c.l.b16 %v4560_v1 }
 0x47d   : > { %v4222_v25 = vsel %vm14443_vm1, %v4050_v20, -inf  ;;  %v3590_v42 = vadd.f32 %v12768_v12, %v3589_v24  ;;  %v3339_v50 = vmax.f32 %v3261_v37, 0.0 }
 0x47e   : > { %v4220_v26 = vrot.slane %v4219_v23, 1  ;;  %v4223_v27 = vrot.slane %v4222_v25, 4 }
 0x47f   : > { %v3695_v56 = vmax.f32 %v3590_v42, 0.0 }
 0x480   : > { %v4221_v28 = vmax.f32 %v4219_v23, %v4220_v26  ;;  %v4224_v30 = vmax.f32 %v4222_v25, %v4223_v27  ;;  %v3919_v29 = vpop.f32.mrf.mxu0 }
 0x481   : > { %v3920_v32 = vadd.f32 %v12869_v31, %v3919_v29 }
 0x482   : > { %v4561_v33 = vpack.c.bf16 %v4221_v28, %v4221_v28  ;;  %v4225_v35 = vrot.slane %v4224_v30, 2  ;;  %v3262_v38 = vpop.f32.mrf.mxu2 }
 0x483   : > { %v4051_v57 = vmax.f32 %v3920_v32, 0.0  ;;  %v3263_v46 = vadd.f32 %v12873_v36, %v3262_v38 }
 0x484   : > { %v4897_v39 = vunpack.c.l.b16 %v4561_v33  ;;  %v4226_v40 = vmax.f32 %v4224_v30, %v4225_v35  ;;  %v3591_v41 = vpop.f32.mrf.mxu3 }
 0x485   : > { %v4229_v45 = vsel %vm14443_vm1, %v4051_v57, -inf  ;;  %v3340_v51 = vmax.f32 %v3263_v46, 0.0  ;;  %v3592_v52 = vadd.f32 %v12768_v12, %v3591_v41 }
 0x486   : > { %v4965_v47 = vsel %vm4944_vm2, %v4897_v39, %v4896_v10  ;;  %v4227_v48 = vrot.slane %v4226_v40, 1  ;;  %v4230_v49 = vrot.slane %v4229_v45, 4 }
 0x487   : > { %v3376_v58 = vpack.c.bf16 %v3340_v51, %v3339_v50  ;;  %v3696_v59 = vmax.f32 %v3592_v52, 0.0 }
 0x488   : > { %v4228_v53 = vmax.f32 %v4226_v40, %v4227_v48  ;;  %v4231_v54 = vmax.f32 %v4229_v45, %v4230_v49  ;;  %v3922_v55 = vpop.f32.mrf.mxu0 }
 0x489   : > { %v3923_v60 = vadd.f32 %v12869_v31, %v3922_v55  ;;  %v3741_v63 = vpack.c.bf16 %v3696_v59, %v3695_v56  ;;  %10192 = vmatmul.msk.bf16.gmra.mxu3 %vm14443_vm1, %v3376_v58 }
 0x48a   : > { %v4562_v61 = vpack.c.bf16 %v4228_v53, %v4228_v53  ;;  %v4232_v62 = vrot.slane %v4231_v54, 2  ;;  %v3265_v2 = vpop.f32.mrf.mxu2 }
 0x48b   : > { %v4052_v0 = vmax.f32 %v3923_v60, 0.0  ;;  %10219 = vmatmul.msk.bf16.gmra.mxu0 %vm14443_vm1, %v3741_v63  ;;  %v3266_v44 = vadd.f32 %v12873_v36, %v3265_v2 }
 0x48c   : > { %v4898_v3 = vunpack.c.l.b16 %v4562_v61  ;;  %v4233_v4 = vmax.f32 %v4231_v54, %v4232_v62  ;;  %v3594_v5 = vpop.f32.mrf.mxu3 }
 0x48d   : > { %v4236_v6 = vsel %vm14443_vm1, %v4052_v0, -inf  ;;  %v3595_v23 = vadd.f32 %v12768_v12, %v3594_v5  ;;  %v3341_v30 = vmax.f32 %v3266_v44, 0.0 }
 0x48e   : > { %v4966_v7 = vsel %vm4946_vm3, %v4898_v3, %v4965_v47  ;;  %v4234_v8 = vrot.slane %v4233_v4, 1  ;;  %v4237_v9 = vrot.slane %v4236_v6, 4 }
 0x48f   : > { %v3697_v35 = vmax.f32 %v3595_v23, 0.0 }
 0x490   : > { %v4235_v11 = vmax.f32 %v4233_v4, %v4234_v8  ;;  %v4238_v13 = vmax.f32 %v4236_v6, %v4237_v9  ;;  %v3924_v14 = vpop.f32.mrf.mxu0 }
 0x491   : > { %v3925_v15 = vadd.f32 %v12869_v31, %v3924_v14 }
 0x492   : > { %v4563_v16 = vpack.c.bf16 %v4235_v11, %v4235_v11  ;;  %v4239_v17 = vrot.slane %v4238_v13, 2  ;;  %v3267_v20 = vpop.f32.mrf.mxu2 }
 0x493   : > { %v4053_v19 = vmax.f32 %v3925_v15, 0.0  ;;  %v3268_v26 = vadd.f32 %v12873_v36, %v3267_v20 }
 0x494   : > { %v4899_v21 = vunpack.c.l.b16 %v4563_v16  ;;  %v4240_v22 = vmax.f32 %v4238_v13, %v4239_v17  ;;  %v3596_v24 = vpop.f32.mrf.mxu3 }
 0x495   : > { %v4243_v25 = vsel %vm14443_vm1, %v4053_v19, -inf  ;;  %v3597_v28 = vadd.f32 %v12768_v12, %v3596_v24  ;;  %v3342_v29 = vmax.f32 %v3268_v26, 0.0 }
 0x496   : > { %v4241_v27 = vrot.slane %v4240_v22, 1  ;;  %v4244_v1 = vrot.slane %v4243_v25, 4  ;;  %v4967_v32 = vsel %vm4948_vm5, %v4899_v21, %v4966_v7 }
 0x497   : > { %v3698_v57 = vmax.f32 %v3597_v28, 0.0  ;;  %v3377_v10 = vpack.c.bf16 %v3342_v29, %v3341_v30 }
 0x498   : > { %v4242_v33 = vmax.f32 %v4240_v22, %v4241_v27  ;;  %v4245_v37 = vmax.f32 %v4243_v25, %v4244_v1  ;;  %v3927_v38 = vpop.f32.mrf.mxu0 }
 0x499   : > { %v3928_v39 = vadd.f32 %v12869_v31, %v3927_v38  ;;  %v3742_v42 = vpack.c.bf16 %v3698_v57, %v3697_v35  ;;  %10193 = vmatmul.msk.bf16.gmra.mxu3 %vm14443_vm1, %v3377_v10 }
 0x49a   : > { %v4564_v40 = vpack.c.bf16 %v4242_v33, %v4242_v33  ;;  %v4246_v41 = vrot.slane %v4245_v37, 2  ;;  %v3270_v46 = vpop.f32.mrf.mxu2 }
 0x49b   : > { %v4054_v45 = vmax.f32 %v3928_v39, 0.0  ;;  %10220 = vmatmul.msk.bf16.gmra.mxu0 %vm14443_vm1, %v3742_v42  ;;  %v3271_v61 = vadd.f32 %v12873_v36, %v3270_v46 }
 0x49c   : > { %v4900_v47 = vunpack.c.l.b16 %v4564_v40  ;;  %v4247_v48 = vmax.f32 %v4245_v37, %v4246_v41  ;;  %v3599_v49 = vpop.f32.mrf.mxu3 }
 0x49d   : > { %v4250_v50 = vsel %vm14443_vm1, %v4054_v45, -inf  ;;  %v3600_v3 = vadd.f32 %v12768_v12, %v3599_v49  ;;  %v3343_v13 = vmax.f32 %v3271_v61, 0.0 }
 0x49e   : > { %v4248_v51 = vrot.slane %v4247_v48, 1  ;;  %v4251_v52 = vrot.slane %v4250_v50, 4  ;;  %v4968_v53 = vsel %vm4950_vm0, %v4900_v47, %v4967_v32 }
 0x49f   : > { %v3699_v16 = vmax.f32 %v3600_v3, 0.0 }
 0x4a0   : > { %v4249_v54 = vmax.f32 %v4247_v48, %v4248_v51  ;;  %v4252_v55 = vmax.f32 %v4250_v50, %v4251_v52  ;;  %v3929_v56 = vpop.f32.mrf.mxu0 }
 0x4a1   : > { %v3930_v58 = vadd.f32 %v12869_v31, %v3929_v56 }
 0x4a2   : > { %v4565_v59 = vpack.c.bf16 %v4249_v54, %v4249_v54  ;;  %v4253_v60 = vrot.slane %v4252_v55, 2  ;;  %v3272_v63 = vpop.f32.mrf.mxu2 }
 0x4a3   : > { %v4055_v62 = vmax.f32 %v3930_v58, 0.0  ;;  %v3273_v6 = vadd.f32 %v12873_v36, %v3272_v63 }
 0x4a4   : > { %v4901_v0 = vunpack.c.l.b16 %v4565_v59  ;;  %v4254_v2 = vmax.f32 %v4252_v55, %v4253_v60  ;;  %v3601_v4 = vpop.f32.mrf.mxu3 }
 0x4a5   : > { %v4257_v5 = vsel %vm14443_vm1, %v4055_v62, -inf  ;;  %v3602_v9 = vadd.f32 %v12768_v12, %v3601_v4  ;;  %v3344_v14 = vmax.f32 %v3273_v6, 0.0 }
 0x4a6   : > { %v4255_v7 = vrot.slane %v4254_v2, 1  ;;  %v4258_v8 = vrot.slane %v4257_v5, 4  ;;  %v4969_v11 = vsel %vm4952_vm6, %v4901_v0, %v4968_v53 }
 0x4a7   : > { %v3700_v44 = vmax.f32 %v3602_v9, 0.0  ;;  %v3378_v19 = vpack.c.bf16 %v3344_v14, %v3343_v13 }
 0x4a8   : > { %v4256_v15 = vmax.f32 %v4254_v2, %v4255_v7  ;;  %v4259_v17 = vmax.f32 %v4257_v5, %v4258_v8  ;;  %v3932_v20 = vpop.f32.mrf.mxu0 }
 0x4a9   : > { %v3743_v23 = vpack.c.bf16 %v3700_v44, %v3699_v16  ;;  %v3933_v24 = vadd.f32 %v12869_v31, %v3932_v20  ;;  %10194 = vmatmul.msk.bf16.gmra.mxu3 %vm14443_vm1, %v3378_v19 }
 0x4aa   : > { %v4566_v21 = vpack.c.bf16 %v4256_v15, %v4256_v15  ;;  %v4260_v22 = vrot.slane %v4259_v17, 2  ;;  %v3275_v25 = vpop.f32.mrf.mxu2 }
 0x4ab   : > { %v4056_v1 = vmax.f32 %v3933_v24, 0.0  ;;  %10221 = vmatmul.msk.bf16.gmra.mxu0 %vm14443_vm1, %v3743_v23  ;;  %v3276_v38 = vadd.f32 %v12873_v36, %v3275_v25 }
 0x4ac   : > { %v4902_v26 = vunpack.c.l.b16 %v4566_v21  ;;  %v4261_v27 = vmax.f32 %v4259_v17, %v4260_v22  ;;  %v3604_v29 = vpop.f32.mrf.mxu3 }
 0x4ad   : > { %v4264_v30 = vsel %vm14443_vm1, %v4056_v1, -inf  ;;  %v3605_v48 = vadd.f32 %v12768_v12, %v3604_v29  ;;  %v3345_v49 = vmax.f32 %v3276_v38, 0.0 }
 0x4ae   : > { %v4262_v28 = vrot.slane %v4261_v27, 1  ;;  %v4970_v32 = vsel %vm4954_vm7, %v4902_v26, %v4969_v11  ;;  %v4265_v33 = vrot.slane %v4264_v30, 4 }
 0x4af   : > { %v3701_v59 = vmax.f32 %v3605_v48, 0.0 }
 0x4b0   : > { %v4263_v35 = vmax.f32 %v4261_v27, %v4262_v28  ;;  %v4266_v37 = vmax.f32 %v4264_v30, %v4265_v33  ;;  %v3934_v57 = vpop.f32.mrf.mxu0 }
 0x4b1   : > { %v3935_v10 = vadd.f32 %v12869_v31, %v3934_v57 }
 0x4b2   : > { %v4567_v39 = vpack.c.bf16 %v4263_v35, %v4263_v35  ;;  %v4267_v40 = vrot.slane %v4266_v37, 2  ;;  %v3277_v41 = vpop.f32.mrf.mxu2 }
 0x4b3   : > { %v4057_v42 = vmax.f32 %v3935_v10, 0.0  ;;  %v3278_v45 = vadd.f32 %v12873_v36, %v3277_v41 }
 0x4b4   : > { %v4903_v46 = vunpack.c.l.b16 %v4567_v39  ;;  %v4268_v47 = vmax.f32 %v4266_v37, %v4267_v40  ;;  %v3606_v52 = vpop.f32.mrf.mxu3 }
 0x4b5   : > { %v4271_v50 = vsel %vm14443_vm1, %v4057_v42, -inf  ;;  %v3346_v51 = vmax.f32 %v3278_v45, 0.0  ;;  %v3607_v55 = vadd.f32 %v12768_v12, %v3606_v52 }
 0x4b6   : > { %v12916_v53 = vsel %vm14452_vm8, %v4903_v46, %v4970_v32  ;;  %v4272_v54 = vrot.slane %v4271_v50, 4  ;;  %v4269_v58 = vrot.slane %v4268_v47, 1 }
 0x4b7   : > { %v3379_v56 = vpack.c.bf16 %v3346_v51, %v3345_v49  ;;  %v3702_v61 = vmax.f32 %v3607_v55, 0.0 }
 0x4b8   : > { %v4273_v60 = vmax.f32 %v4271_v50, %v4272_v54  ;;  %v3937_v62 = vpop.f32.mrf.mxu0  ;;  %v4270_v5 = vmax.f32 %v4268_v47, %v4269_v58 }
 0x4b9   : > { %v3938_v63 = vadd.f32 %v12869_v31, %v3937_v62  ;;  %v3744_v2 = vpack.c.bf16 %v3702_v61, %v3701_v59  ;;  %10195 = vmatmul.msk.bf16.gmra.mxu3 %vm14443_vm1, %v3379_v56 }
 0x4ba   : > { %v4274_v0 = vrot.slane %v4273_v60, 2  ;;  %v3280_v3 = vpop.f32.mrf.mxu2  ;;  %v4568_v13 = vpack.c.bf16 %v4270_v5, %v4270_v5 }
 0x4bb   : > { %v4058_v4 = vmax.f32 %v3938_v63, 0.0  ;;  %10222 = vmatmul.msk.bf16.gmra.mxu0 %vm14443_vm1, %v3744_v2  ;;  %v3281_v17 = vadd.f32 %v12873_v36, %v3280_v3 }
 0x4bc   : > { %v4275_v6 = vmax.f32 %v4273_v60, %v4274_v0  ;;  %v3609_v8 = vpop.f32.mrf.mxu3  ;;  %v4904_v24 = vunpack.c.l.b16 %v4568_v13 }
 0x4bd   : > { %v4278_v7 = vsel %vm14443_vm1, %v4058_v4, -inf  ;;  %v3610_v27 = vadd.f32 %v12768_v12, %v3609_v8  ;;  %v3347_v1 = vmax.f32 %v3281_v17, 0.0 }
 0x4be   : > { %v4276_v9 = vrot.slane %v4275_v6, 1  ;;  %v4279_v11 = vrot.slane %v4278_v7, 4 }
 0x4bf   : > { %v3703_v10 = vmax.f32 %v3610_v27, 0.0 }
 0x4c0   : > { %v4277_v14 = vmax.f32 %v4275_v6, %v4276_v9  ;;  %v4280_v15 = vmax.f32 %v4278_v7, %v4279_v11  ;;  %v3939_v16 = vpop.f32.mrf.mxu0 }
 0x4c1   : > { %v3940_v44 = vadd.f32 %v12869_v31, %v3939_v16 }
 0x4c2   : > { %v4569_v19 = vpack.c.bf16 %v4277_v14, %v4277_v14  ;;  %v4281_v20 = vrot.slane %v4280_v15, 2  ;;  %v3282_v21 = vpop.f32.mrf.mxu2 }
 0x4c3   : > { %v4059_v22 = vmax.f32 %v3940_v44, 0.0  ;;  %v3283_v23 = vadd.f32 %v12873_v36, %v3282_v21 }
 0x4c4   : > { %v4905_v25 = vunpack.c.l.b16 %v4569_v19  ;;  %v4282_v26 = vmax.f32 %v4280_v15, %v4281_v20  ;;  %v3611_v29 = vpop.f32.mrf.mxu3 }
 0x4c5   : > { %v4285_v28 = vsel %vm14443_vm1, %v4059_v22, -inf  ;;  %v3348_v30 = vmax.f32 %v3283_v23, 0.0  ;;  %v3612_v37 = vadd.f32 %v12768_v12, %v3611_v29 }
 0x4c6   : > { %v4972_v32 = vsel %vm4944_vm2, %v4905_v25, %v4904_v24  ;;  %v4283_v33 = vrot.slane %v4282_v26, 1  ;;  %v4286_v35 = vrot.slane %v4285_v28, 4 }
 0x4c7   : > { %v3380_v57 = vpack.c.bf16 %v3348_v30, %v3347_v1  ;;  %v3704_v39 = vmax.f32 %v3612_v37, 0.0 }
 0x4c8   : > { %v4284_v38 = vmax.f32 %v4282_v26, %v4283_v33  ;;  %v4287_v36 = vmax.f32 %v4285_v28, %v4286_v35  ;;  %v3942_v40 = vpop.f32.mrf.mxu0 }
 0x4c9   : > { %v3943_v41 = vadd.f32 %v12869_v31, %v3942_v40  ;;  %v3745_v46 = vpack.c.bf16 %v3704_v39, %v3703_v10  ;;  %10196 = vmatmul.msk.bf16.gmra.mxu3 %vm14443_vm1, %v3380_v57 }
 0x4ca   : > { %v4570_v42 = vpack.c.bf16 %v4284_v38, %v4284_v38  ;;  %v4288_v45 = vrot.slane %v4287_v36, 2  ;;  %v12946_v38 = vld [vmem:[%s14500_s8] ss:$0 sm:$0xff]  ;;  %s14510_s8 = smov 19  }
 0x4cb   : > { %v4060_v47 = vmax.f32 %v3943_v41, 0.0  ;;  %10223 = vmatmul.msk.bf16.gmra.mxu0 %vm14443_vm1, %v3745_v46 }
 0x4cc   : > { %v4906_v48 = vunpack.c.l.b16 %v4570_v42  ;;  %v4289_v49 = vmax.f32 %v4287_v36, %v4288_v45  ;;  %v3614_v51 = vpop.f32.mrf.mxu3 }
 0x4cd   : > { %v4292_v50 = vsel %vm14443_vm1, %v4060_v47, -inf  ;;  %v3615_v3 = vadd.f32 %v12768_v12, %v3614_v51 }
 0x4ce   : > { %v4973_v52 = vsel %vm4946_vm3, %v4906_v48, %v4972_v32  ;;  %v4290_v54 = vrot.slane %v4289_v49, 1  ;;  %v4293_v55 = vrot.slane %v4292_v50, 4 }
 0x4cf   : > { %v3705_v13 = vmax.f32 %v3615_v3, 0.0 }
 0x4d0   : > { %v4291_v56 = vmax.f32 %v4289_v49, %v4290_v54  ;;  %v4294_v58 = vmax.f32 %v4292_v50, %v4293_v55  ;;  %v3944_v59 = vpop.f32.mrf.mxu0 }
 0x4d1   : > { %v3945_v60 = vadd.f32 %v12869_v31, %v3944_v59 }
 0x4d2   : > { %v4571_v61 = vpack.c.bf16 %v4291_v56, %v4291_v56  ;;  %v4295_v62 = vrot.slane %v4294_v58, 2 }
 0x4d3   : > { %v4061_v63 = vmax.f32 %v3945_v60, 0.0 }
 0x4d4   : > { %v4907_v0 = vunpack.c.l.b16 %v4571_v61  ;;  %v4296_v2 = vmax.f32 %v4294_v58, %v4295_v62  ;;  %v3616_v5 = vpop.f32.mrf.mxu3 }
 0x4d5   : > { %v4299_v4 = vsel %vm14443_vm1, %v4061_v63, -inf  ;;  %v3617_v8 = vadd.f32 %v12768_v12, %v3616_v5 }
 0x4d6   : > { %v4297_v6 = vrot.slane %v4296_v2, 1  ;;  %v4300_v7 = vrot.slane %v4299_v4, 4  ;;  %v4974_v9 = vsel %vm4948_vm5, %v4907_v0, %v4973_v52 }
 0x4d7   : > { %v3706_v15 = vmax.f32 %v3617_v8, 0.0 }
 0x4d8   : > { %v4298_v11 = vmax.f32 %v4296_v2, %v4297_v6  ;;  %v4301_v14 = vmax.f32 %v4299_v4, %v4300_v7  ;;  %v3947_v16 = vpop.f32.mrf.mxu0 }
 0x4d9   : > { %v3948_v17 = vadd.f32 %v12869_v31, %v3947_v16  ;;  %v3746_v20 = vpack.c.bf16 %v3706_v15, %v3705_v13 }
 0x4da   : > { %v4572_v44 = vpack.c.bf16 %v4298_v11, %v4298_v11  ;;  %v4302_v19 = vrot.slane %v4301_v14, 2 }
 0x4db   : > { %v4062_v21 = vmax.f32 %v3948_v17, 0.0  ;;  %10224 = vmatmul.msk.bf16.gmra.mxu0 %vm14443_vm1, %v3746_v20 }
 0x4dc   : > { %v4908_v22 = vunpack.c.l.b16 %v4572_v44  ;;  %v4303_v23 = vmax.f32 %v4301_v14, %v4302_v19  ;;  %v3619_v24 = vpop.f32.mrf.mxu3 }
 0x4dd   : > { %v4306_v12 = vsel %vm14443_vm1, %v4062_v21, -inf  ;;  %v3620_v10 = vadd.f32 %v12946_v38, %v3619_v24 }
 0x4de   : > { %v4304_v25 = vrot.slane %v4303_v23, 1  ;;  %v4307_v26 = vrot.slane %v4306_v12, 4  ;;  %v4975_v27 = vsel %vm4950_vm0, %v4908_v22, %v4974_v9 }
 0x4df   : > { %v3707_v47 = vmax.f32 %v3620_v10, 0.0 }
 0x4e0   : > { %v4305_v1 = vmax.f32 %v4303_v23, %v4304_v25  ;;  %v4308_v28 = vmax.f32 %v4306_v12, %v4307_v26  ;;  %v3949_v30 = vpop.f32.mrf.mxu0 }
 0x4e1   : > { %v3950_v29 = vadd.f32 %v12869_v31, %v3949_v30 }
 0x4e2   : > { %v4573_v32 = vpack.c.bf16 %v4305_v1, %v4305_v1  ;;  %v4309_v33 = vrot.slane %v4308_v28, 2 }
 0x4e3   : > { %v4063_v35 = vmax.f32 %v3950_v29, 0.0 }
 0x4e4   : > { %v4909_v37 = vunpack.c.l.b16 %v4573_v32  ;;  %v4310_v57 = vmax.f32 %v4308_v28, %v4309_v33  ;;  %v3621_v39 = vpop.f32.mrf.mxu3 }
 0x4e5   : > { %v4313_v36 = vsel %vm14443_vm1, %v4063_v35, -inf  ;;  %v3622_v42 = vadd.f32 %v12946_v38, %v3621_v39 }
 0x4e6   : > { %v4311_v40 = vrot.slane %v4310_v57, 1  ;;  %v4314_v41 = vrot.slane %v4313_v36, 4  ;;  %v4976_v45 = vsel %vm4952_vm6, %v4909_v37, %v4975_v27 }
 0x4e7   : > { %v3708_v49 = vmax.f32 %v3622_v42, 0.0 }
 0x4e8   : > { %v4312_v46 = vmax.f32 %v4310_v57, %v4311_v40  ;;  %v4315_v48 = vmax.f32 %v4313_v36, %v4314_v41  ;;  %v3952_v50 = vpop.f32.mrf.mxu0 }
 0x4e9   : > { %v3953_v51 = vadd.f32 %v12869_v31, %v3952_v50  ;;  %v3747_v55 = vpack.c.bf16 %v3708_v49, %v3707_v47 }
 0x4ea   : > { %v4574_v52 = vpack.c.bf16 %v4312_v46, %v4312_v46  ;;  %v4316_v54 = vrot.slane %v4315_v48, 2 }
 0x4eb   : > { %v4064_v56 = vmax.f32 %v3953_v51, 0.0  ;;  %10225 = vmatmul.msk.bf16.gmra.mxu0 %vm14443_vm1, %v3747_v55 }
 0x4ec   : > { %v4910_v58 = vunpack.c.l.b16 %v4574_v52  ;;  %v4317_v59 = vmax.f32 %v4315_v48, %v4316_v54  ;;  %v3624_v61 = vpop.f32.mrf.mxu3 }
 0x4ed   : > { %v4320_v60 = vsel %vm14443_vm1, %v4064_v56, -inf  ;;  %v3625_v11 = vadd.f32 %v12946_v38, %v3624_v61 }
 0x4ee   : > { %v4318_v62 = vrot.slane %v4317_v59, 1  ;;  %v4321_v63 = vrot.slane %v4320_v60, 4  ;;  %v4977_v0 = vsel %vm4954_vm7, %v4910_v58, %v4976_v45 }
 0x4ef   : > { %v3709_v21 = vmax.f32 %v3625_v11, 0.0 }
 0x4f0   : > { %v4322_v2 = vmax.f32 %v4320_v60, %v4321_v63  ;;  %v3954_v3 = vpop.f32.mrf.mxu0  ;;  %v4319_v4 = vmax.f32 %v4317_v59, %v4318_v62 }
 0x4f1   : > { %v3955_v5 = vadd.f32 %v12869_v31, %v3954_v3 }
 0x4f2   : > { %v4323_v6 = vrot.slane %v4322_v2, 2  ;;  %v4575_v7 = vpack.c.bf16 %v4319_v4, %v4319_v4 }
 0x4f3   : > { %v4065_v8 = vmax.f32 %v3955_v5, 0.0 }
 0x4f4   : > { %v4324_v9 = vmax.f32 %v4322_v2, %v4323_v6  ;;  %v4911_v13 = vunpack.c.l.b16 %v4575_v7  ;;  %v3626_v15 = vpop.f32.mrf.mxu3 }
 0x4f5   : > { %v4327_v14 = vsel %vm14443_vm1, %v4065_v8, -inf  ;;  %v3627_v17 = vadd.f32 %v12946_v38, %v3626_v15 }
 0x4f6   : > { %v4328_v16 = vrot.slane %v4327_v14, 4  ;;  %v4978_v44 = vsel %vm14452_vm8, %v4911_v13, %v4977_v0  ;;  %v4325_v20 = vrot.slane %v4324_v9, 1 }
 0x4f7   : > { %v12962_v19 = vpack.c.b16 %v4978_v44, %v12916_v53  ;;  %v3710_v23 = vmax.f32 %v3627_v17, 0.0 }
 0x4f8   : > { %v4329_v22 = vmax.f32 %v4327_v14, %v4328_v16  ;;  %v3957_v12 = vpop.f32.mrf.mxu0  ;;  %v4326_v1 = vmax.f32 %v4324_v9, %v4325_v20 }
 0x4f9   : > { %v3958_v24 = vadd.f32 %v12869_v31, %v3957_v12  ;;  %v3748_v26 = vpack.c.bf16 %v3710_v23, %v3709_v21 }
 0x4fa   : > { %v4330_v25 = vrot.slane %v4329_v22, 2  ;;  %v4576_v33 = vpack.c.bf16 %v4326_v1, %v4326_v1 }
 0x4fb   : > { %v4066_v27 = vmax.f32 %v3958_v24, 0.0  ;;  %10226 = vmatmul.msk.bf16.gmra.mxu0 %vm14443_vm1, %v3748_v26 }
 0x4fc   : > { %v4331_v28 = vmax.f32 %v4329_v22, %v4330_v25  ;;  %v3629_v29 = vpop.f32.mrf.mxu3  ;;  %v4912_v41 = vunpack.c.l.b16 %v4576_v33 }
 0x4fd   : > { %v4334_v30 = vsel %vm14443_vm1, %v4066_v27, -inf  ;;  %v3630_v46 = vadd.f32 %v12946_v38, %v3629_v29 }
 0x4fe   : > { %v4332_v32 = vrot.slane %v4331_v28, 1  ;;  %v4335_v53 = vrot.slane %v4334_v30, 4 }
 0x4ff   : > { %v3711_v55 = vmax.f32 %v3630_v46, 0.0 }
 0x500   : > { %v4333_v35 = vmax.f32 %v4331_v28, %v4332_v32  ;;  %v4336_v37 = vmax.f32 %v4334_v30, %v4335_v53  ;;  %v3959_v57 = vpop.f32.mrf.mxu0 }
 0x501   : > { %v3960_v10 = vadd.f32 %v12869_v31, %v3959_v57 }
 0x502   : > { %v4577_v36 = vpack.c.bf16 %v4333_v35, %v4333_v35  ;;  %v4337_v39 = vrot.slane %v4336_v37, 2 }
 0x503   : > { %v4067_v40 = vmax.f32 %v3960_v10, 0.0 }
 0x504   : > { %v4913_v42 = vunpack.c.l.b16 %v4577_v36  ;;  %v4338_v45 = vmax.f32 %v4336_v37, %v4337_v39  ;;  %v3631_v48 = vpop.f32.mrf.mxu3 }
 0x505   : > { %v4341_v47 = vsel %vm14443_vm1, %v4067_v40, -inf  ;;  %v3632_v52 = vadd.f32 %v12946_v38, %v3631_v48 }
 0x506   : > { %v4979_v49 = vsel %vm4944_vm2, %v4913_v42, %v4912_v41  ;;  %v4339_v50 = vrot.slane %v4338_v45, 1  ;;  %v4342_v51 = vrot.slane %v4341_v47, 4 }
 0x507   : > { %v3712_v58 = vmax.f32 %v3632_v52, 0.0 }
 0x508   : > { %v4340_v54 = vmax.f32 %v4338_v45, %v4339_v50  ;;  %v4343_v56 = vmax.f32 %v4341_v47, %v4342_v51  ;;  %v3962_v59 = vpop.f32.mrf.mxu0 }
 0x509   : > { %v3749_v62 = vpack.c.bf16 %v3712_v58, %v3711_v55  ;;  %v3963_v63 = vadd.f32 %v12869_v31, %v3962_v59 }
 0x50a   : > { %v4578_v60 = vpack.c.bf16 %v4340_v54, %v4340_v54  ;;  %v4344_v61 = vrot.slane %v4343_v56, 2 }
 0x50b   : > { %v4068_v3 = vmax.f32 %v3963_v63, 0.0  ;;  %10227 = vmatmul.msk.bf16.gmra.mxu0 %vm14443_vm1, %v3749_v62 }
 0x50c   : > { %v4914_v0 = vunpack.c.l.b16 %v4578_v60  ;;  %v4345_v2 = vmax.f32 %v4343_v56, %v4344_v61  ;;  %v3634_v4 = vpop.f32.mrf.mxu3 }
 0x50d   : > { %v4348_v7 = vsel %vm14443_vm1, %v4068_v3, -inf  ;;  %v3635_v44 = vadd.f32 %v12946_v38, %v3634_v4 }
 0x50e   : > { %v4980_v5 = vsel %vm4946_vm3, %v4914_v0, %v4979_v49  ;;  %v4346_v6 = vrot.slane %v4345_v2, 1  ;;  %v4349_v8 = vrot.slane %v4348_v7, 4 }
 0x50f   : > { %v3713_v27 = vmax.f32 %v3635_v44, 0.0 }
 0x510   : > { %v4347_v9 = vmax.f32 %v4345_v2, %v4346_v6  ;;  %v4350_v11 = vmax.f32 %v4348_v7, %v4349_v8  ;;  %v3964_v13 = vpop.f32.mrf.mxu0 }
 0x511   : > { %v3965_v15 = vadd.f32 %v12869_v31, %v3964_v13 }
 0x512   : > { %v4579_v14 = vpack.c.bf16 %v4347_v9, %v4347_v9  ;;  %v4351_v16 = vrot.slane %v4350_v11, 2 }
 0x513   : > { %v4069_v20 = vmax.f32 %v3965_v15, 0.0 }
 0x514   : > { %v4915_v17 = vunpack.c.l.b16 %v4579_v14  ;;  %v4352_v21 = vmax.f32 %v4350_v11, %v4351_v16  ;;  %v3636_v22 = vpop.f32.mrf.mxu3 }
 0x515   : > { %v4355_v23 = vsel %vm14443_vm1, %v4069_v20, -inf  ;;  %v3637_v12 = vadd.f32 %v12946_v38, %v3636_v22 }
 0x516   : > { %v4981_v24 = vsel %vm4948_vm5, %v4915_v17, %v4980_v5  ;;  %v4353_v25 = vrot.slane %v4352_v21, 1  ;;  %v4356_v26 = vrot.slane %v4355_v23, 4 }
 0x517   : > { %v3714_v1 = vmax.f32 %v3637_v12, 0.0 }
 0x518   : > { %v4354_v28 = vmax.f32 %v4352_v21, %v4353_v25  ;;  %v4357_v30 = vmax.f32 %v4355_v23, %v4356_v26  ;;  %v3967_v29 = vpop.f32.mrf.mxu0 }
 0x519   : > { %v3750_v32 = vpack.c.bf16 %v3714_v1, %v3713_v27  ;;  %v3968_v53 = vadd.f32 %v12869_v31, %v3967_v29 }
 0x51a   : > { %v4580_v33 = vpack.c.bf16 %v4354_v28, %v4354_v28  ;;  %v4358_v35 = vrot.slane %v4357_v30, 2 }
 0x51b   : > { %v4070_v37 = vmax.f32 %v3968_v53, 0.0  ;;  %10228 = vmatmul.msk.bf16.gmra.mxu0 %vm14443_vm1, %v3750_v32 }
 0x51c   : > { %v4916_v57 = vunpack.c.l.b16 %v4580_v33  ;;  %v4359_v10 = vmax.f32 %v4357_v30, %v4358_v35  ;;  %v3639_v36 = vpop.f32.mrf.mxu3 }
 0x51d   : > { %v4362_v39 = vsel %vm14443_vm1, %v4070_v37, -inf  ;;  %v3640_v51 = vadd.f32 %v12946_v38, %v3639_v36 }
 0x51e   : > { %v4360_v40 = vrot.slane %v4359_v10, 1  ;;  %v4363_v41 = vrot.slane %v4362_v39, 4  ;;  %v4982_v42 = vsel %vm4950_vm0, %v4916_v57, %v4981_v24 }
 0x51f   : > { %v3715_v63 = vmax.f32 %v3640_v51, 0.0 }
 0x520   : > { %v4361_v45 = vmax.f32 %v4359_v10, %v4360_v40  ;;  %v4364_v46 = vmax.f32 %v4362_v39, %v4363_v41  ;;  %v3969_v47 = vpop.f32.mrf.mxu0 }
 0x521   : > { %v3970_v48 = vadd.f32 %v12869_v31, %v3969_v47 }
 0x522   : > { %v4581_v49 = vpack.c.bf16 %v4361_v45, %v4361_v45  ;;  %v4365_v50 = vrot.slane %v4364_v46, 2 }
 0x523   : > { %v4071_v52 = vmax.f32 %v3970_v48, 0.0 }
 0x524   : > { %v4917_v54 = vunpack.c.l.b16 %v4581_v49  ;;  %v4366_v55 = vmax.f32 %v4364_v46, %v4365_v50  ;;  %v3641_v56 = vpop.f32.mrf.mxu3 }
 0x525   : > { %v4369_v58 = vsel %vm14443_vm1, %v4071_v52, -inf  ;;  %v3642_v59 = vadd.f32 %v12946_v38, %v3641_v56 }
 0x526   : > { %v4367_v60 = vrot.slane %v4366_v55, 1  ;;  %v4370_v61 = vrot.slane %v4369_v58, 4  ;;  %v4983_v62 = vsel %vm4952_vm6, %v4917_v54, %v4982_v42 }
 0x527   : > { %v3716_v0 = vmax.f32 %v3642_v59, 0.0 }
 0x528   : > { %v4368_v2 = vmax.f32 %v4366_v55, %v4367_v60  ;;  %v4371_v3 = vmax.f32 %v4369_v58, %v4370_v61  ;;  %v3972_v4 = vpop.f32.mrf.mxu0 }
 0x529   : > { %v3751_v5 = vpack.c.bf16 %v3716_v0, %v3715_v63  ;;  %v3973_v6 = vadd.f32 %v12869_v31, %v3972_v4 }
 0x52a   : > { %v4582_v7 = vpack.c.bf16 %v4368_v2, %v4368_v2  ;;  %v4372_v8 = vrot.slane %v4371_v3, 2 }
 0x52b   : > { %v4072_v9 = vmax.f32 %v3973_v6, 0.0  ;;  %10229 = vmatmul.msk.bf16.gmra.mxu0 %vm14443_vm1, %v3751_v5 }
 0x52c   : > { %v4918_v11 = vunpack.c.l.b16 %v4582_v7  ;;  %v4373_v13 = vmax.f32 %v4371_v3, %v4372_v8  ;;  %v3644_v14 = vpop.f32.mrf.mxu3 }
 0x52d   : > { %v4376_v15 = vsel %vm14443_vm1, %v4072_v9, -inf  ;;  %v3645_v24 = vadd.f32 %v12946_v38, %v3644_v14 }
 0x52e   : > { %v4374_v16 = vrot.slane %v4373_v13, 1  ;;  %v4984_v17 = vsel %vm4954_vm7, %v4918_v11, %v4983_v62  ;;  %v4377_v44 = vrot.slane %v4376_v15, 4 }
 0x52f   : > { %v3717_v53 = vmax.f32 %v3645_v24, 0.0 }
 0x530   : > { %v3974_v20 = vpop.f32.mrf.mxu0  ;;  %v4375_v21 = vmax.f32 %v4373_v13, %v4374_v16  ;;  %v4378_v12 = vmax.f32 %v4376_v15, %v4377_v44 }
 0x531   : > { %v3975_v22 = vadd.f32 %v12869_v31, %v3974_v20 }
 0x532   : > { %v4583_v23 = vpack.c.bf16 %v4375_v21, %v4375_v21  ;;  %v4379_v32 = vrot.slane %v4378_v12, 2 }
 0x533   : > { %v4073_v25 = vmax.f32 %v3975_v22, 0.0 }
 0x534   : > { %v3646_v26 = vpop.f32.mrf.mxu3  ;;  %v4919_v27 = vunpack.c.l.b16 %v4583_v23  ;;  %v4380_v39 = vmax.f32 %v4378_v12, %v4379_v32 }
 0x535   : > { %v4383_v1 = vsel %vm14443_vm1, %v4073_v25, -inf  ;;  %v3647_v28 = vadd.f32 %v12946_v38, %v3646_v26 }
 0x536   : > { %v4384_v30 = vrot.slane %v4383_v1, 4  ;;  %v12999_v29 = vsel %vm14452_vm8, %v4919_v27, %v4984_v17  ;;  %v4381_v48 = vrot.slane %v4380_v39, 1 }
 0x537   : > { %v3718_v33 = vmax.f32 %v3647_v28, 0.0 }
 0x538   : > { %v4385_v35 = vmax.f32 %v4383_v1, %v4384_v30  ;;  %v3977_v37 = vpop.f32.mrf.mxu0  ;;  %v4382_v55 = vmax.f32 %v4380_v39, %v4381_v48 }
 0x539   : > { %v3752_v57 = vpack.c.bf16 %v3718_v33, %v3717_v53  ;;  %v3978_v10 = vadd.f32 %v12869_v31, %v3977_v37 }
 0x53a   : > { %v4386_v36 = vrot.slane %v4385_v35, 2  ;;  %v4584_v3 = vpack.c.bf16 %v4382_v55, %v4382_v55 }
 0x53b   : > { %v4074_v40 = vmax.f32 %v3978_v10, 0.0  ;;  %10230 = vmatmul.msk.bf16.gmra.mxu0 %vm14443_vm1, %v3752_v57 }
 0x53c   : > { %v4387_v41 = vmax.f32 %v4385_v35, %v4386_v36  ;;  %v3649_v42 = vpop.f32.mrf.mxu3  ;;  %v4920_v16 = vunpack.c.l.b16 %v4584_v3 }
 0x53d   : > { %v4390_v45 = vsel %vm14443_vm1, %v4074_v40, -inf  ;;  %v3650_v56 = vadd.f32 %v12946_v38, %v3649_v42 }
 0x53e   : > { %v4388_v46 = vrot.slane %v4387_v41, 1  ;;  %v4391_v47 = vrot.slane %v4390_v45, 4 }
 0x53f   : > { %v3719_v4 = vmax.f32 %v3650_v56, 0.0 }
 0x540   : > { %v4392_v49 = vmax.f32 %v4390_v45, %v4391_v47  ;;  %v3979_v50 = vpop.f32.mrf.mxu0  ;;  %v4389_v51 = vmax.f32 %v4387_v41, %v4388_v46 }
 0x541   : > { %v3980_v52 = vadd.f32 %v12869_v31, %v3979_v50 }
 0x542   : > { %v4393_v54 = vrot.slane %v4392_v49, 2  ;;  %v4585_v61 = vpack.c.bf16 %v4389_v51, %v4389_v51 }
 0x543   : > { %v4075_v58 = vmax.f32 %v3980_v52, 0.0 }
 0x544   : > { %v4394_v59 = vmax.f32 %v4392_v49, %v4393_v54  ;;  %v3651_v60 = vpop.f32.mrf.mxu3  ;;  %v4921_v9 = vunpack.c.l.b16 %v4585_v61 }
 0x545   : > { %v4397_v62 = vsel %vm14443_vm1, %v4075_v58, -inf  ;;  %v3652_v63 = vadd.f32 %v12946_v38, %v3651_v60 }
 0x546   : > { %v4395_v0 = vrot.slane %v4394_v59, 1  ;;  %v4398_v2 = vrot.slane %v4397_v62, 4  ;;  %v4986_v22 = vsel %vm4944_vm2, %v4921_v9, %v4920_v16 }
 0x547   : > { %v3720_v5 = vmax.f32 %v3652_v63, 0.0 }
 0x548   : > { %v4396_v6 = vmax.f32 %v4394_v59, %v4395_v0  ;;  %v4399_v7 = vmax.f32 %v4397_v62, %v4398_v2  ;;  %v3982_v8 = vpop.f32.mrf.mxu0  ;;  %v13023_v0 = vld [vmem:[%s11886_s19] ss:$0 sm:$0xff] }
 0x549   : > { %v3753_v11 = vpack.c.bf16 %v3720_v5, %v3719_v4  ;;  %v3983_v13 = vadd.f32 %v12869_v31, %v3982_v8 }
 0x54a   : > { %v4586_v14 = vpack.c.bf16 %v4396_v6, %v4396_v6  ;;  %v4400_v15 = vrot.slane %v4399_v7, 2 }
 0x54b   : > { %v4076_v17 = vmax.f32 %v3983_v13, 0.0  ;;  %10231 = vmatmul.msk.bf16.gmra.mxu0 %vm14443_vm1, %v3753_v11 }
 0x54c   : > { %v4922_v44 = vunpack.c.l.b16 %v4586_v14  ;;  %v4401_v20 = vmax.f32 %v4399_v7, %v4400_v15  ;;  %v3654_v21 = vpop.f32.mrf.mxu3 }
 0x54d   : > { %v4404_v23 = vsel %vm14443_vm1, %v4076_v17, -inf  ;;  %v3655_v32 = vadd.f32 %v12946_v38, %v3654_v21 }
 0x54e   : > { %v4987_v12 = vsel %vm4946_vm3, %v4922_v44, %v4986_v22  ;;  %v4402_v24 = vrot.slane %v4401_v20, 1  ;;  %v4405_v25 = vrot.slane %v4404_v23, 4 }
 0x54f   : > { %v3721_v40 = vmax.f32 %v3655_v32, 0.0 }
 0x550   : > { %v4406_v26 = vmax.f32 %v4404_v23, %v4405_v25  ;;  %v3984_v27 = vpop.f32.mrf.mxu0  ;;  %v4403_v1 = vmax.f32 %v4401_v20, %v4402_v24 }
 0x551   : > { %v3985_v28 = vadd.f32 %v12869_v31, %v3984_v27 }
 0x552   : > { %v4407_v30 = vrot.slane %v4406_v26, 2  ;;  %v4587_v37 = vpack.c.bf16 %v4403_v1, %v4403_v1 }
 0x553   : > { %v4077_v53 = vmax.f32 %v3985_v28, 0.0 }
 0x554   : > { %v4408_v33 = vmax.f32 %v4406_v26, %v4407_v30  ;;  %v3656_v35 = vpop.f32.mrf.mxu3  ;;  %v4923_v47 = vunpack.c.l.b16 %v4587_v37 }
 0x555   : > { %v4411_v57 = vsel %vm14443_vm1, %v4077_v53, -inf  ;;  %v3657_v10 = vadd.f32 %v12946_v38, %v3656_v35 }
 0x556   : > { %v4409_v36 = vrot.slane %v4408_v33, 1  ;;  %v4412_v39 = vrot.slane %v4411_v57, 4  ;;  %v4988_v56 = vsel %vm4948_vm5, %v4923_v47, %v4987_v12 }
 0x557   : > { %v3722_v41 = vmax.f32 %v3657_v10, 0.0 }
 0x558   : > { %v4410_v42 = vmax.f32 %v4408_v33, %v4409_v36  ;;  %v4413_v45 = vmax.f32 %v4411_v57, %v4412_v39  ;;  %v3987_v46 = vpop.f32.mrf.mxu0 }
 0x559   : > { %v3754_v48 = vpack.c.bf16 %v3722_v41, %v3721_v40  ;;  %v3988_v49 = vadd.f32 %v12869_v31, %v3987_v46 }
 0x55a   : > { %v4588_v50 = vpack.c.bf16 %v4410_v42, %v4410_v42  ;;  %v4414_v51 = vrot.slane %v4413_v45, 2 }
 0x55b   : > { %v4078_v52 = vmax.f32 %v3988_v49, 0.0  ;;  %10232 = vmatmul.msk.bf16.gmra.mxu0 %vm14443_vm1, %v3754_v48 }
 0x55c   : > { %v4924_v54 = vunpack.c.l.b16 %v4588_v50  ;;  %v4415_v55 = vmax.f32 %v4413_v45, %v4414_v51 }
 0x55d   : > { %v4418_v38 = vsel %vm14443_vm1, %v4078_v52, -inf }
 0x55e   : > { %v4416_v58 = vrot.slane %v4415_v55, 1  ;;  %v4419_v59 = vrot.slane %v4418_v38, 4  ;;  %v4989_v60 = vsel %vm4950_vm0, %v4924_v54, %v4988_v56 }
 0x560   : > { %v4420_v61 = vmax.f32 %v4418_v38, %v4419_v59  ;;  %v3989_v62 = vpop.f32.mrf.mxu0  ;;  %v4417_v63 = vmax.f32 %v4415_v55, %v4416_v58 }
 0x561   : > { %v3990_v31 = vadd.f32 %v13023_v0, %v3989_v62 }
 0x562   : > { %v4421_v2 = vrot.slane %v4420_v61, 2  ;;  %v4589_v5 = vpack.c.bf16 %v4417_v63, %v4417_v63 }
 0x563   : > { %v4079_v3 = vmax.f32 %v3990_v31, 0.0 }
 0x564   : > { %v4422_v4 = vmax.f32 %v4420_v61, %v4421_v2  ;;  %v4925_v14 = vunpack.c.l.b16 %v4589_v5 }
 0x565   : > { %v4425_v6 = vsel %vm14443_vm1, %v4079_v3, -inf }
 0x566   : > { %v4423_v7 = vrot.slane %v4422_v4, 1  ;;  %v4426_v8 = vrot.slane %v4425_v6, 4  ;;  %v4990_v23 = vsel %vm4952_vm6, %v4925_v14, %v4989_v60 }
 0x568   : > { %v4424_v9 = vmax.f32 %v4422_v4, %v4423_v7  ;;  %v4427_v11 = vmax.f32 %v4425_v6, %v4426_v8  ;;  %v3992_v13 = vpop.f32.mrf.mxu0 }
 0x569   : > { %v3993_v15 = vadd.f32 %v13023_v0, %v3992_v13 }
 0x56a   : > { %v4590_v16 = vpack.c.bf16 %v4424_v9, %v4424_v9  ;;  %v4428_v17 = vrot.slane %v4427_v11, 2 }
 0x56b   : > { %v4080_v44 = vmax.f32 %v3993_v15, 0.0 }
 0x56c   : > { %v4926_v20 = vunpack.c.l.b16 %v4590_v16  ;;  %v4429_v21 = vmax.f32 %v4427_v11, %v4428_v17 }
 0x56d   : > { %v4432_v22 = vsel %vm14443_vm1, %v4080_v44, -inf }
 0x56e   : > { %v4430_v12 = vrot.slane %v4429_v21, 1  ;;  %v4991_v24 = vsel %vm4954_vm7, %v4926_v20, %v4990_v23  ;;  %v4433_v25 = vrot.slane %v4432_v22, 4 }
 0x570   : > { %v3994_v26 = vpop.f32.mrf.mxu0  ;;  %v4431_v27 = vmax.f32 %v4429_v21, %v4430_v12  ;;  %v4434_v30 = vmax.f32 %v4432_v22, %v4433_v25 }
 0x571   : > { %v3995_v1 = vadd.f32 %v13023_v0, %v3994_v26 }
 0x572   : > { %v4591_v28 = vpack.c.bf16 %v4431_v27, %v4431_v27  ;;  %v4435_v57 = vrot.slane %v4434_v30, 2 }
 0x573   : > { %v4081_v32 = vmax.f32 %v3995_v1, 0.0 }
 0x574   : > { %v4927_v53 = vunpack.c.l.b16 %v4591_v28  ;;  %v4436_v42 = vmax.f32 %v4434_v30, %v4435_v57 }
 0x575   : > { %v4439_v33 = vsel %vm14443_vm1, %v4081_v32, -inf }
 0x576   : > { %v4440_v35 = vrot.slane %v4439_v33, 4  ;;  %v4992_v37 = vsel %vm14452_vm8, %v4927_v53, %v4991_v24  ;;  %v4437_v50 = vrot.slane %v4436_v42, 1 }
 0x577   : > { %v13035_v10 = vpack.c.b16 %v4992_v37, %v12999_v29 }
 0x578   : > { %v4441_v36 = vmax.f32 %v4439_v33, %v4440_v35  ;;  %v3997_v39 = vpop.f32.mrf.mxu0  ;;  %v4438_v38 = vmax.f32 %v4436_v42, %v4437_v50 }
 0x579   : > { %v3998_v40 = vadd.f32 %v13023_v0, %v3997_v39 }
 0x57a   : > { %v4442_v41 = vrot.slane %v4441_v36, 2  ;;  %v4592_v63 = vpack.c.bf16 %v4438_v38, %v4438_v38 }
 0x57b   : > { %v4082_v45 = vmax.f32 %v3998_v40, 0.0 }
 0x57c   : > { %v4443_v46 = vmax.f32 %v4441_v36, %v4442_v41  ;;  %v4928_v8 = vunpack.c.l.b16 %v4592_v63 }
 0x57d   : > { %v4446_v47 = vsel %vm14443_vm1, %v4082_v45, -inf }
 0x57e   : > { %v4444_v48 = vrot.slane %v4443_v46, 1  ;;  %v4447_v49 = vrot.slane %v4446_v47, 4 }
 0x580   : > { %v4448_v51 = vmax.f32 %v4446_v47, %v4447_v49  ;;  %v3999_v52 = vpop.f32.mrf.mxu0  ;;  %v4445_v54 = vmax.f32 %v4443_v46, %v4444_v48 }
 0x581   : > { %v4000_v55 = vadd.f32 %v13023_v0, %v3999_v52 }
 0x582   : > { %v4449_v29 = vrot.slane %v4448_v51, 2  ;;  %v4593_v59 = vpack.c.bf16 %v4445_v54, %v4445_v54 }
 0x583   : > { %v4083_v56 = vmax.f32 %v4000_v55, 0.0 }
 0x584   : > { %v4450_v58 = vmax.f32 %v4448_v51, %v4449_v29  ;;  %v4929_v4 = vunpack.c.l.b16 %v4593_v59 }
 0x585   : > { %v4453_v60 = vsel %vm14443_vm1, %v4083_v56, -inf }
 0x586   : > { %v4451_v61 = vrot.slane %v4450_v58, 1  ;;  %v4454_v62 = vrot.slane %v4453_v60, 4  ;;  %v4993_v14 = vsel %vm4944_vm2, %v4929_v4, %v4928_v8 }
 0x588   : > { %v4452_v31 = vmax.f32 %v4450_v58, %v4451_v61  ;;  %v4455_v2 = vmax.f32 %v4453_v60, %v4454_v62  ;;  %v4002_v3 = vpop.f32.mrf.mxu0 }
 0x589   : > { %v4003_v5 = vadd.f32 %v13023_v0, %v4002_v3 }
 0x58a   : > { %v4594_v6 = vpack.c.bf16 %v4452_v31, %v4452_v31  ;;  %v4456_v7 = vrot.slane %v4455_v2, 2 }
 0x58b   : > { %v4084_v9 = vmax.f32 %v4003_v5, 0.0 }
 0x58c   : > { %v4930_v11 = vunpack.c.l.b16 %v4594_v6  ;;  %v4457_v13 = vmax.f32 %v4455_v2, %v4456_v7 }
 0x58d   : > { %v4460_v15 = vsel %vm14443_vm1, %v4084_v9, -inf }
 0x58e   : > { %v4994_v16 = vsel %vm4946_vm3, %v4930_v11, %v4993_v14  ;;  %v4458_v17 = vrot.slane %v4457_v13, 1  ;;  %v4461_v44 = vrot.slane %v4460_v15, 4 }
 0x590   : > { %v4462_v20 = vmax.f32 %v4460_v15, %v4461_v44  ;;  %v4004_v21 = vpop.f32.mrf.mxu0  ;;  %v4459_v22 = vmax.f32 %v4457_v13, %v4458_v17 }
 0x591   : > { %v4005_v23 = vadd.f32 %v13023_v0, %v4004_v21 }
 0x592   : > { %v4463_v12 = vrot.slane %v4462_v20, 2  ;;  %v4595_v26 = vpack.c.bf16 %v4459_v22, %v4459_v22 }
 0x593   : > { %v4085_v24 = vmax.f32 %v4005_v23, 0.0 }
 0x594   : > { %v4464_v25 = vmax.f32 %v4462_v20, %v4463_v12  ;;  %v4931_v33 = vunpack.c.l.b16 %v4595_v26 }
 0x595   : > { %v4467_v27 = vsel %vm14443_vm1, %v4085_v24, -inf }
 0x596   : > { %v4465_v1 = vrot.slane %v4464_v25, 1  ;;  %v4468_v28 = vrot.slane %v4467_v27, 4  ;;  %v4995_v42 = vsel %vm4948_vm5, %v4931_v33, %v4994_v16 }
 0x598   : > { %v4466_v30 = vmax.f32 %v4464_v25, %v4465_v1  ;;  %v4469_v32 = vmax.f32 %v4467_v27, %v4468_v28  ;;  %v4007_v53 = vpop.f32.mrf.mxu0 }
 0x599   : > { %v4008_v35 = vadd.f32 %v13023_v0, %v4007_v53 }
 0x59a   : > { %v4596_v37 = vpack.c.bf16 %v4466_v30, %v4466_v30  ;;  %v4470_v57 = vrot.slane %v4469_v32, 2 }
 0x59b   : > { %v4086_v36 = vmax.f32 %v4008_v35, 0.0 }
 0x59c   : > { %v4932_v39 = vunpack.c.l.b16 %v4596_v37  ;;  %v4471_v40 = vmax.f32 %v4469_v32, %v4470_v57 }
 0x59d   : > { %v4474_v41 = vsel %vm14443_vm1, %v4086_v36, -inf }
 0x59e   : > { %v4472_v45 = vrot.slane %v4471_v40, 1  ;;  %v4475_v46 = vrot.slane %v4474_v41, 4  ;;  %v4996_v47 = vsel %vm4950_vm0, %v4932_v39, %v4995_v42 }
 0x5a0   : > { %v4476_v48 = vmax.f32 %v4474_v41, %v4475_v46  ;;  %v4009_v49 = vpop.f32.mrf.mxu0  ;;  %v4473_v50 = vmax.f32 %v4471_v40, %v4472_v45 }
 0x5a1   : > { %v4010_v9 = vadd.f32 %v13023_v0, %v4009_v49 }
 0x5a2   : > { %v4477_v51 = vrot.slane %v4476_v48, 2  ;;  %v4597_v54 = vpack.c.bf16 %v4473_v50, %v4473_v50 }
 0x5a3   : > { %v4087_v17 = vmax.f32 %v4010_v9, 0.0 }
 0x5a4   : > { %v4478_v52 = vmax.f32 %v4476_v48, %v4477_v51  ;;  %v4933_v56 = vunpack.c.l.b16 %v4597_v54 }
 0x5a5   : > { %v4481_v26 = vsel %vm14443_vm1, %v4087_v17, -inf }
 0x5a6   : > { %v4479_v55 = vrot.slane %v4478_v52, 1  ;;  %v4997_v60 = vsel %vm4952_vm6, %v4933_v56, %v4996_v47  ;;  %v4482_v53 = vrot.slane %v4481_v26, 4 }
 0x5a8   : > { %v4480_v29 = vmax.f32 %v4478_v52, %v4479_v55  ;;  %v4012_v38 = vpop.f32.mrf.mxu0  ;;  %v4483_v45 = vmax.f32 %v4481_v26, %v4482_v53 }
 0x5a9   : > { %v4013_v4 = vadd.f32 %v13023_v0, %v4012_v38 }
 0x5aa   : > { %v4598_v58 = vpack.c.bf16 %v4480_v29, %v4480_v29  ;;  %v4484_v55 = vrot.slane %v4483_v45, 2 }
 0x5ab   : > { %v4088_v13 = vmax.f32 %v4013_v4, 0.0 }
 0x5ac   : > { %v4934_v59 = vunpack.c.l.b16 %v4598_v58 }
 0x5ad   : > { %v4488_v20 = vsel %vm14443_vm1, %v4088_v13, -inf }
 0x5ae   : > { %v13053_v61 = vsel %vm4954_vm7, %v4934_v59, %v4997_v60  ;;  %v4489_v27 = vrot.slane %v4488_v20, 4 }
 0x5b0   : > { %v4014_v62 = vpop.f32.mrf.mxu0  ;;  %v4490_v37 = vmax.f32 %v4488_v20, %v4489_v27 }
 0x5b1   : > { %v4015_v2 = vadd.f32 %v13023_v0, %v4014_v62 }
 0x5b2   : > { %v4491_v48 = vrot.slane %v4490_v37, 2 }
 0x5b3   : > { %v4089_v7 = vmax.f32 %v4015_v2, 0.0 }
 0x5b4   : > { %v4492_v56 = vmax.f32 %v4490_v37, %v4491_v48 }
 0x5b5   : > { %v4495_v16 = vsel %vm14443_vm1, %v4089_v7, -inf }
 0x5b6   : > { %v4496_v22 = vrot.slane %v4495_v16, 4 }
 0x5b8   : > { %v4017_v63 = vpop.f32.mrf.mxu0  ;;  %v4497_v32 = vmax.f32 %v4495_v16, %v4496_v22 }
 0x5b9   : > { %v4018_v3 = vadd.f32 %v13023_v0, %v4017_v63 }
 0x5ba   : > { %v4498_v40 = vrot.slane %v4497_v32, 2 }
 0x5bb   : > { %v4090_v11 = vmax.f32 %v4018_v3, 0.0  ;;  %v4485_v3 = vmax.f32 %v4483_v45, %v4484_v55  ;;  %v4642_v55 = vpop.permute.xlu0 %4641 }
 0x5bc   : > { %v4499_v52 = vmax.f32 %v4497_v32, %v4498_v40  ;;  %vm4736_vm14 = vcmp.eq.s32.totalorder %v4642_v55, %v12221_v34 }
 0x5bd   : > { %v4502_v44 = vsel %vm14443_vm1, %v4090_v11, -inf  ;;  %v4486_v16 = vrot.slane %v4485_v3, 1 }
 0x5be   : > { %v4503_v24 = vrot.slane %v4502_v44, 4  ;;  %v4500_v62 = vrot.slane %v4499_v52, 1 }
 0x5bf   : > { %v4487_v32 = vmax.f32 %v4485_v3, %v4486_v16 }
 0x5c0   : > { %v4019_v31 = vpop.f32.mrf.mxu0  ;;  %v4504_v33 = vmax.f32 %v4502_v44, %v4503_v24  ;;  %v4501_v13 = vmax.f32 %v4499_v52, %v4500_v62 }
 0x5c1   : > { %v4020_v5 = vadd.f32 %v13023_v0, %v4019_v31 }
 0x5c2   : > { %v4505_v46 = vrot.slane %v4504_v33, 2  ;;  %v4601_v24 = vpack.c.bf16 %v4501_v13, %v4501_v13 }
 0x5c3   : > { %v4091_v14 = vmax.f32 %v4020_v5, 0.0 }
 0x5c4   : > { %v4506_v29 = vmax.f32 %v4504_v33, %v4505_v46  ;;  %v4937_v33 = vunpack.c.l.b16 %v4601_v24 }
 0x5c5   : > { %v4509_v21 = vsel %vm14443_vm1, %v4091_v14, -inf }
 0x5c6   : > { %v4510_v1 = vrot.slane %v4509_v21, 4  ;;  %v4507_v4 = vrot.slane %v4506_v29, 1 }
 0x5c8   : > { %v4022_v6 = vpop.f32.mrf.mxu0  ;;  %v4511_v57 = vmax.f32 %v4509_v21, %v4510_v1  ;;  %v4508_v17 = vmax.f32 %v4506_v29, %v4507_v4 }
 0x5c9   : > { %v4023_v8 = vadd.f32 %v13023_v0, %v4022_v6  ;;  %v4493_v6 = vrot.slane %v4492_v56, 1 }
 0x5ca   : > { %v4512_v49 = vrot.slane %v4511_v57, 2  ;;  %v4602_v26 = vpack.c.bf16 %v4508_v17, %v4508_v17 }
 0x5cb   : > { %v4092_v15 = vmax.f32 %v4023_v8, 0.0  ;;  %v4494_v20 = vmax.f32 %v4492_v56, %v4493_v6 }
 0x5cc   : > { %v4513_v58 = vmax.f32 %v4511_v57, %v4512_v49  ;;  %v4938_v57 = vunpack.c.l.b16 %v4602_v26 }
 0x5cd   : > { %v4516_v23 = vsel %vm14443_vm1, %v4092_v15, -inf  ;;  %v4600_v1 = vpack.c.bf16 %v4494_v20, %v4494_v20 }
 0x5ce   : > { %v4517_v28 = vrot.slane %v4516_v23, 4  ;;  %v4514_v7 = vrot.slane %v4513_v58, 1 }
 0x5d0   : > { %v4024_v12 = vpop.f32.mrf.mxu0  ;;  %v4518_v39 = vmax.f32 %v4516_v23, %v4517_v28  ;;  %v4515_v21 = vmax.f32 %v4513_v58, %v4514_v7 }
 0x5d1   : > { %v4025_v25 = vadd.f32 %v13023_v0, %v4024_v12 }
 0x5d2   : > { %v4519_v50 = vrot.slane %v4518_v39, 2  ;;  %v4603_v28 = vpack.c.bf16 %v4515_v21, %v4515_v21 }
 0x5d3   : > { %v4093_v30 = vmax.f32 %v4025_v25, 0.0 }
 0x5d4   : > { %v4520_v60 = vmax.f32 %v4518_v39, %v4519_v50  ;;  %v4936_v39 = vunpack.c.l.b16 %v4600_v1  ;;  %v4939_v40 = vunpack.c.l.b16 %v4603_v28 }
 0x5d5   : > { %v4523_v35 = vsel %vm14443_vm1, %v4093_v30, -inf }
 0x5d6   : > { %v4524_v36 = vrot.slane %v4523_v35, 4  ;;  %v4521_v9 = vrot.slane %v4520_v60, 1  ;;  %v5000_v46 = vsel %vm4944_vm2, %v4937_v33, %v4936_v39 }
 0x5d7   : > { %v5001_v49 = vsel %vm4946_vm3, %v4938_v57, %v5000_v46 }
 0x5d8   : > { %v4525_v41 = vmax.f32 %v4523_v35, %v4524_v36  ;;  %v4027_v42 = vpop.f32.mrf.mxu0  ;;  %v4522_v12 = vmax.f32 %v4520_v60, %v4521_v9 }
 0x5d9   : > { %v4028_v47 = vadd.f32 %v13023_v0, %v4027_v42  ;;  %v4599_v42 = vpack.c.bf16 %v4487_v32, %v4487_v32 }
 0x5da   : > { %v4526_v54 = vrot.slane %v4525_v41, 2  ;;  %v4604_v53 = vpack.c.bf16 %v4522_v12, %v4522_v12 }
 0x5db   : > { %v4094_v51 = vmax.f32 %v4028_v47, 0.0  ;;  %v4935_v52 = vunpack.c.l.b16 %v4599_v42 }
 0x5dc   : > { %v4527_v63 = vmax.f32 %v4525_v41, %v4526_v54  ;;  %v4940_v45 = vunpack.c.l.b16 %v4604_v53  ;;  %v5002_v54 = vsel %vm4948_vm5, %v4939_v40, %v5001_v49 }
 0x5dd   : > { %v4530_v38 = vsel %vm14443_vm1, %v4094_v51, -inf }
 0x5de   : > { %v4531_v59 = vrot.slane %v4530_v38, 4  ;;  %v4528_v14 = vrot.slane %v4527_v63, 1  ;;  %v5003_v29 = vsel %vm4950_vm0, %v4940_v45, %v5002_v54 }
 0x5e0   : > { %v4532_v31 = vmax.f32 %v4530_v38, %v4531_v59  ;;  %v4029_v2 = vpop.f32.mrf.mxu0  ;;  %v4529_v25 = vmax.f32 %v4527_v63, %v4528_v14  ;;  %v4999_v59 = vsel %vm14452_vm8, %v4935_v52, %v13053_v61  ;;  %v4645_v63 = vpop.permute.xlu1 %4644 }
 0x5e1   : > { %v4030_v5 = vadd.f32 %v13023_v0, %v4029_v2  ;;  %v5218_v2 = vpop.permute.xlu2 %5217  ;;  %vm4737_vm13 = vcmp.eq.s32.totalorder %v4645_v63, %v12221_v34 }
 0x5e2   : > { %v4533_v8 = vrot.slane %v4532_v31, 2  ;;  %v4605_v35 = vpack.c.bf16 %v4529_v25, %v4529_v25  ;;  %vm5312_vm12 = vcmp.eq.s32.totalorder %v5218_v2, %v12221_v34  ;;  %v4769_v4 = vsel %vm4737_vm13, 1.0, %v11818_v43 }
 0x5e3   : > { %v4095_v11 = vmax.f32 %v4030_v5, 0.0  ;;  %v5344_v3 = vsel %vm5312_vm12, 1.0, %v11818_v43 }
 0x5e4   : > { %v4534_v15 = vmax.f32 %v4532_v31, %v4533_v8  ;;  %v4941_v47 = vunpack.c.l.b16 %v4605_v35  ;;  %v5221_v31 = vpop.permute.xlu0 %5220 }
 0x5e5   : > { %v4537_v44 = vsel %vm14443_vm1, %v4095_v11, -inf  ;;  %vm5313_vm11 = vcmp.eq.s32.totalorder %v5221_v31, %v12221_v34 }
 0x5e6   : > { %v4535_v22 = vrot.slane %v4534_v15, 1  ;;  %v4538_v23 = vrot.slane %v4537_v44, 4  ;;  %v5004_v56 = vsel %vm4952_vm6, %v4941_v47, %v5003_v29  ;;  %v5345_v61 = vsel %vm5313_vm11, 1.0, %v11818_v43 }
 0x5e7   : > { %v5376_v6 = vpack.c.bf16 %v5345_v61, %v5344_v3 }
 0x5e8   : > { %v4539_v0 = vmax.f32 %v4537_v44, %v4538_v23  ;;  %v4536_v27 = vmax.f32 %v4534_v15, %v4535_v22  ;;  %v4648_v5 = vpop.permute.xlu1 %4647 }
 0x5e9   : > { %vm4738_vm15 = vcmp.eq.s32.totalorder %v4648_v5, %v12221_v34 }
 0x5ea   : > { %v4540_v30 = vrot.slane %v4539_v0, 2  ;;  %v4606_v36 = vpack.c.bf16 %v4536_v27, %v4536_v27  ;;  %v4770_v11 = vsel %vm4738_vm15, 1.0, %v11818_v43 }
 0x5ec   : > { %v4541_v37 = vmax.f32 %v4539_v0, %v4540_v30  ;;  %v4942_v50 = vunpack.c.l.b16 %v4606_v36  ;;  %v5224_v9 = vpop.permute.xlu0 %5223 }
 0x5ed   : > { %vm5314_vm12 = vcmp.eq.s32.totalorder %v5224_v9, %v12221_v34 }
 0x5ee   : > { %v4542_v41 = vrot.slane %v4541_v37, 1  ;;  %v5005_v58 = vsel %vm4954_vm7, %v4942_v50, %v5004_v56  ;;  %v5346_v13 = vsel %vm5314_vm12, 1.0, %v11818_v43 }
 0x5f0   : > { %v4543_v48 = vmax.f32 %v4541_v37, %v4542_v41  ;;  %v5227_v8 = vpop.permute.xlu1 %5226 }
 0x5f1   : > { %vm5315_vm11 = vcmp.eq.s32.totalorder %v5227_v8, %v12221_v34 }
 0x5f2   : > { %v4607_v51 = vpack.c.bf16 %v4543_v48, %v4543_v48 }
 0x5f4   : > { %v4943_v38 = vunpack.c.l.b16 %v4607_v51  ;;  %v4657_v44 = vpop.permute.xlu0 %4656 }
 0x5f6   : > { %v5006_v60 = vsel %vm14452_vm8, %v4943_v38, %v5005_v58 }
 0x5f7   : > { %v5010_v62 = vpack.c.b16 %v5006_v60, %v4999_v59 }
 0x5f8   : > { %v5230_v20 = vpop.permute.xlu1 %5229 }
 0x5f9   : > { %5067 = vmatpush.bf16.msrb.mxu3 %v5010_v62  ;;  %5444 = vmatpush.bf16.msrb.mxu2 %v5010_v62 }
 0x5fc   : > { %v4660_v12 = vpop.permute.xlu0 %4659 }
 0x5fd   : > { %5068 = vmatpush.bf16.msrb.mxu3 %v13035_v10  ;;  %5445 = vmatpush.bf16.msrb.mxu2 %v13035_v10  ;;  %v4768_v10 = vsel %vm4736_vm14, 1.0, %v11818_v43  ;;  %vm4741_vm14 = vcmp.eq.s32.totalorder %v4657_v44, %v12221_v34  ;;  %vm4742_vm1 = vcmp.eq.s32.totalorder %v4660_v12, %v12221_v34 }
 0x5fe   : > { %v4800_v7 = vpack.c.bf16 %v4769_v4, %v4768_v10  ;;  %v4773_v22 = vsel %vm4741_vm14, 1.0, %v11818_v43  ;;  %v4774_v35 = vsel %vm4742_vm1, 1.0, %v11818_v43 }
 0x600   : > { %v4663_v27 = vpop.permute.xlu1 %4662 }
 0x601   : > { %5069 = vmatpush.bf16.msrb.mxu3 %v12962_v19  ;;  %5446 = vmatpush.bf16.msrb.mxu2 %v12962_v19  ;;  %v4651_v19 = vpop.permute.xlu2 %4650 }
 0x602   : > { %vm4739_vm13 = vcmp.eq.s32.totalorder %v4651_v19, %v12221_v34 }
 0x603   : > { %v4771_v14 = vsel %vm4739_vm13, 1.0, %v11818_v43 }
 0x604   : > { %v4801_v16 = vpack.c.bf16 %v4771_v14, %v4770_v11  ;;  %v5239_v1 = vpop.permute.xlu0 %5238 }
 0x605   : > { %5070 = vmatpush.bf16.msrb.mxu3 %v12863_v18  ;;  %5447 = vmatpush.bf16.msrb.mxu2 %v12863_v18  ;;  %v5347_v18 = vsel %vm5315_vm11, 1.0, %v11818_v43  ;;  %vm5316_vm11 = vcmp.eq.s32.totalorder %v5230_v20, %v12221_v34  ;;  %vm5319_vm13 = vcmp.eq.s32.totalorder %v5239_v1, %v12221_v34 }
 0x606   : > { %v5377_v17 = vpack.c.bf16 %v5347_v18, %v5346_v13  ;;  %v5348_v24 = vsel %vm5316_vm11, 1.0, %v11818_v43  ;;  %v5351_v30 = vsel %vm5319_vm13, 1.0, %v11818_v43 }
 0x608   : > { %10233 = vmatmul.msk.bf16.vlgmr.msrb.gmra.mxu3 %vm14454_vm4, %v4800_v7  ;;  %10249 = vmatmul.msk.bf16.vlgmr.msrb.gmra.mxu2 %vm14454_vm4, %v5376_v6  ;;  %v4666_v33 = vpop.permute.xlu1 %4665 }
 0x609   : > { %v4654_v15 = vpop.permute.xlu2 %4653  ;;  %vm4744_vm11 = vcmp.eq.s32.totalorder %v4666_v33, %v12221_v34 }
 0x60a   : > { %vm4740_vm15 = vcmp.eq.s32.totalorder %v4654_v15, %v12221_v34  ;;  %v4776_v41 = vsel %vm4744_vm11, 1.0, %v11818_v43 }
 0x60b   : > { %v4772_v23 = vsel %vm4740_vm15, 1.0, %v11818_v43  ;;  %vm4743_vm15 = vcmp.eq.s32.totalorder %v4663_v27, %v12221_v34 }
 0x60c   : > { %v4802_v0 = vpack.c.bf16 %v4773_v22, %v4772_v23  ;;  %v4775_v53 = vsel %vm4743_vm15, 1.0, %v11818_v43  ;;  %v5242_v40 = vpop.permute.xlu0 %5241 }
 0x60d   : > { %v4803_v57 = vpack.c.bf16 %v4775_v53, %v4774_v35  ;;  %vm5320_vm13 = vcmp.eq.s32.totalorder %v5242_v40, %v12221_v34 }
 0x60e   : > { %v5352_v45 = vsel %vm5320_vm13, 1.0, %v11818_v43 }
 0x610   : > { %v5245_v39 = vpop.permute.xlu1 %5244 }
 0x611   : > { %v5233_v21 = vpop.permute.xlu2 %5232 }
 0x612   : > { %vm5317_vm12 = vcmp.eq.s32.totalorder %v5233_v21, %v12221_v34 }
 0x613   : > { %v5349_v25 = vsel %vm5317_vm12, 1.0, %v11818_v43  ;;  %vm5321_vm12 = vcmp.eq.s32.totalorder %v5245_v39, %v12221_v34 }
 0x614   : > { %v5378_v26 = vpack.c.bf16 %v5349_v25, %v5348_v24  ;;  %v5353_v42 = vsel %vm5321_vm12, 1.0, %v11818_v43  ;;  %v4675_v50 = vpop.permute.xlu0 %4674 }
 0x615   : > { %v5380_v49 = vpack.c.bf16 %v5353_v42, %v5352_v45  ;;  %vm4747_vm1 = vcmp.eq.s32.totalorder %v4675_v50, %v12221_v34  ;;  %v5531_v42 = vld [vmem:[%s12790_s6 + $0x10] sm:$0xff]  ;;  %v5532_v45 = vld [vmem:[%s12790_s6 + $0x18] sm:$0xff]  ;;  %v5209_v50 = vld [vmem:[%s12616_s9 + $0xc8] sm:$0xff] }
 0x616   : > { %v4779_v54 = vsel %vm4747_vm1, 1.0, %v11818_v43 }
 0x618   : > { %10234 = vmatmul.msk.bf16.gmra.mxu3 %vm14454_vm4, %v4801_v16  ;;  %10250 = vmatmul.msk.bf16.gmra.mxu2 %vm14454_vm4, %v5377_v17  ;;  %v5248_v51 = vpop.permute.xlu1 %5247 }
 0x619   : > { %v5236_v28 = vpop.permute.xlu2 %5235  ;;  %vm5322_vm11 = vcmp.eq.s32.totalorder %v5248_v51, %v12221_v34 }
 0x61a   : > { %vm5318_vm14 = vcmp.eq.s32.totalorder %v5236_v28, %v12221_v34  ;;  %v5354_v38 = vsel %vm5322_vm11, 1.0, %v11818_v43 }
 0x61b   : > { %v5350_v32 = vsel %vm5318_vm14, 1.0, %v11818_v43 }
 0x61c   : > { %v5379_v37 = vpack.c.bf16 %v5351_v30, %v5350_v32  ;;  %v4678_v29 = vpop.permute.xlu0 %4677 }
 0x620   : > { %v4681_v60 = vpop.permute.xlu1 %4680 }
 0x621   : > { %v4669_v36 = vpop.permute.xlu2 %4668  ;;  %vm4749_vm1 = vcmp.eq.s32.totalorder %v4681_v60, %v12221_v34 }
 0x622   : > { %vm4745_vm14 = vcmp.eq.s32.totalorder %v4669_v36, %v12221_v34  ;;  %v4781_v61 = vsel %vm4749_vm1, 1.0, %v11818_v43 }
 0x623   : > { %v4777_v46 = vsel %vm4745_vm14, 1.0, %v11818_v43 }
 0x624   : > { %v4804_v48 = vpack.c.bf16 %v4777_v46, %v4776_v41  ;;  %v5257_v62 = vpop.permute.xlu0 %5256 }
 0x625   : > { %vm5325_vm13 = vcmp.eq.s32.totalorder %v5257_v62, %v12221_v34 }
 0x626   : > { %v5357_v31 = vsel %vm5325_vm13, 1.0, %v11818_v43 }
 0x628   : > { %10235 = vmatmul.msk.bf16.gmra.mxu3 %vm14454_vm4, %v4802_v0  ;;  %10251 = vmatmul.msk.bf16.gmra.mxu2 %vm14454_vm4, %v5378_v26  ;;  %v4684_v3 = vpop.permute.xlu1 %4683 }
 0x629   : > { %v4672_v47 = vpop.permute.xlu2 %4671  ;;  %vm4750_vm11 = vcmp.eq.s32.totalorder %v4684_v3, %v12221_v34 }
 0x62a   : > { %vm4746_vm15 = vcmp.eq.s32.totalorder %v4672_v47, %v12221_v34  ;;  %v4782_v8 = vsel %vm4750_vm11, 1.0, %v11818_v43  ;;  %v11251_v47 = vpack.i.bf16 %v5532_v45, %v5531_v42  ;;  %v4639_v45 = vld [vmem:[%s12604_s3 + $0xf8] sm:$0xff] }
 0x62b   : > { %v4778_v55 = vsel %vm4746_vm15, 1.0, %v11818_v43  ;;  %vm4748_vm15 = vcmp.eq.s32.totalorder %v4678_v29, %v12221_v34 }
 0x62c   : > { %v4805_v58 = vpack.c.bf16 %v4779_v54, %v4778_v55  ;;  %v4780_v4 = vsel %vm4748_vm15, 1.0, %v11818_v43  ;;  %v5260_v19 = vpop.permute.xlu0 %5259 }
 0x62d   : > { %v4806_v10 = vpack.c.bf16 %v4781_v61, %v4780_v4  ;;  %vm5326_vm13 = vcmp.eq.s32.totalorder %v5260_v19, %v12221_v34  ;;  %v5533_v19 = vld [vmem:[%s12790_s6 + $0x20] sm:$0xff] }
 0x62e   : > { %v5358_v11 = vsel %vm5326_vm13, 1.0, %v11818_v43 }
 0x630   : > { %v5263_v7 = vpop.permute.xlu1 %5262 }
 0x631   : > { %v5251_v52 = vpop.permute.xlu2 %5250 }
 0x632   : > { %vm5323_vm12 = vcmp.eq.s32.totalorder %v5251_v52, %v12221_v34 }
 0x633   : > { %v5355_v56 = vsel %vm5323_vm12, 1.0, %v11818_v43  ;;  %vm5327_vm12 = vcmp.eq.s32.totalorder %v5263_v7, %v12221_v34 }
 0x634   : > { %v5381_v59 = vpack.c.bf16 %v5355_v56, %v5354_v38  ;;  %v5359_v9 = vsel %vm5327_vm12, 1.0, %v11818_v43  ;;  %v4693_v16 = vpop.permute.xlu0 %4692  ;;  %v4635_v56 = vld [vmem:[%s12604_s3 + $0xd8] sm:$0xff] }
 0x635   : > { %v5383_v15 = vpack.c.bf16 %v5359_v9, %v5358_v11  ;;  %vm4753_vm1 = vcmp.eq.s32.totalorder %v4693_v16, %v12221_v34 }
 0x636   : > { %v4785_v20 = vsel %vm4753_vm1, 1.0, %v11818_v43 }
 0x638   : > { %10236 = vmatmul.msk.bf16.gmra.mxu3 %vm14454_vm4, %v4803_v57  ;;  %10252 = vmatmul.msk.bf16.gmra.mxu2 %vm14454_vm4, %v5379_v37  ;;  %v5266_v17 = vpop.permute.xlu1 %5265 }
 0x639   : > { %v5254_v63 = vpop.permute.xlu2 %5253  ;;  %vm5328_vm11 = vcmp.eq.s32.totalorder %v5266_v17, %v12221_v34 }
 0x63a   : > { %vm5324_vm14 = vcmp.eq.s32.totalorder %v5254_v63, %v12221_v34  ;;  %v5360_v23 = vsel %vm5328_vm11, 1.0, %v11818_v43 }
 0x63b   : > { %v5356_v2 = vsel %vm5324_vm14, 1.0, %v11818_v43 }
 0x63c   : > { %v5382_v5 = vpack.c.bf16 %v5357_v31, %v5356_v2  ;;  %v4696_v22 = vpop.permute.xlu0 %4695 }
 0x640   : > { %v4699_v0 = vpop.permute.xlu1 %4698 }
 0x641   : > { %v4687_v6 = vpop.permute.xlu2 %4686  ;;  %vm4755_vm1 = vcmp.eq.s32.totalorder %v4699_v0, %v12221_v34  ;;  %v5212_v0 = vld [vmem:[%s12616_s9 + $0xe0] sm:$0xff] }
 0x642   : > { %vm4751_vm14 = vcmp.eq.s32.totalorder %v4687_v6, %v12221_v34  ;;  %v4787_v33 = vsel %vm4755_vm1, 1.0, %v11818_v43 }
 0x643   : > { %v4783_v18 = vsel %vm4751_vm14, 1.0, %v11818_v43 }
 0x644   : > { %v4807_v14 = vpack.c.bf16 %v4783_v18, %v4782_v8  ;;  %v5275_v1 = vpop.permute.xlu0 %5274  ;;  %v5534_v8 = vld [vmem:[%s12790_s6 + $0x28] sm:$0xff] }
 0x645   : > { %vm5331_vm13 = vcmp.eq.s32.totalorder %v5275_v1, %v12221_v34  ;;  %v11266_v11 = vpack.i.bf16 %v5534_v8, %v5533_v19  ;;  %v5535_v1 = vld [vmem:[%s12790_s6 + $0x30] sm:$0xff] }
 0x646   : > { %v5363_v32 = vsel %vm5331_vm13, 1.0, %v11818_v43 }
 0x648   : > { %10237 = vmatmul.msk.bf16.gmra.mxu3 %vm14454_vm4, %v4804_v48  ;;  %10253 = vmatmul.msk.bf16.gmra.mxu2 %vm14454_vm4, %v5380_v49  ;;  %v4702_v30 = vpop.permute.xlu1 %4701 }
 0x649   : > { %v4690_v13 = vpop.permute.xlu2 %4689  ;;  %vm4756_vm11 = vcmp.eq.s32.totalorder %v4702_v30, %v12221_v34 }
 0x64a   : > { %vm4752_vm15 = vcmp.eq.s32.totalorder %v4690_v13, %v12221_v34  ;;  %v4788_v54 = vsel %vm4756_vm11, 1.0, %v11818_v43 }
 0x64b   : > { %v4784_v21 = vsel %vm4752_vm15, 1.0, %v11818_v43  ;;  %vm4754_vm15 = vcmp.eq.s32.totalorder %v4696_v22, %v12221_v34 }
 0x64c   : > { %v4808_v24 = vpack.c.bf16 %v4785_v20, %v4784_v21  ;;  %v4786_v39 = vsel %vm4754_vm15, 1.0, %v11818_v43  ;;  %v5278_v52 = vpop.permute.xlu0 %5277 }
 0x64d   : > { %v4809_v41 = vpack.c.bf16 %v4787_v33, %v4786_v39  ;;  %vm5332_vm13 = vcmp.eq.s32.totalorder %v5278_v52, %v12221_v34  ;;  %v5538_v52 = vld [vmem:[%s12790_s6 + $0x48] sm:$0xff] }
 0x64e   : > { %v5364_v60 = vsel %vm5332_vm13, 1.0, %v11818_v43 }
 0x650   : > { %v5281_v51 = vpop.permute.xlu1 %5280 }
 0x651   : > { %v5269_v44 = vpop.permute.xlu2 %5268 }
 0x652   : > { %vm5329_vm12 = vcmp.eq.s32.totalorder %v5269_v44, %v12221_v34 }
 0x653   : > { %v5361_v12 = vsel %vm5329_vm12, 1.0, %v11818_v43  ;;  %vm5333_vm12 = vcmp.eq.s32.totalorder %v5281_v51, %v12221_v34  ;;  %v5537_v51 = vld [vmem:[%s12790_s6 + $0x40] sm:$0xff] }
 0x654   : > { %v5384_v25 = vpack.c.bf16 %v5361_v12, %v5360_v23  ;;  %v5365_v55 = vsel %vm5333_vm12, 1.0, %v11818_v43  ;;  %v4711_v6 = vpop.permute.xlu0 %4710 }
 0x655   : > { %v5386_v2 = vpack.c.bf16 %v5365_v55, %v5364_v60  ;;  %vm4759_vm1 = vcmp.eq.s32.totalorder %v4711_v6, %v12221_v34 }
 0x656   : > { %v4791_v18 = vsel %vm4759_vm1, 1.0, %v11818_v43  ;;  %vm14447_vm1 = vcmask 1042432  }
 0x658   : > { %10238 = vmatmul.msk.bf16.gmra.mxu3 %vm14454_vm4, %v4805_v58  ;;  %10254 = vmatmul.msk.bf16.gmra.mxu2 %vm14454_vm4, %v5381_v59  ;;  %v5210_v58 = vld [vmem:[%s12616_s9 + $0xd0] sm:$0xff]  ;;  %v5284_v61 = vpop.permute.xlu1 %5283 }
 0x659   : > { %v5272_v28 = vpop.permute.xlu2 %5271  ;;  %vm5334_vm11 = vcmp.eq.s32.totalorder %v5284_v61, %v12221_v34 }
 0x65a   : > { %vm5330_vm14 = vcmp.eq.s32.totalorder %v5272_v28, %v12221_v34  ;;  %v5536_v28 = vld [vmem:[%s12790_s6 + $0x38] sm:$0xff] }
 0x65b   : > { %v5362_v53 = vsel %vm5330_vm14, 1.0, %v11818_v43  ;;  %v11281_v33 = vpack.i.bf16 %v5536_v28, %v5535_v1  ;;  %v5548_v1 = vld [vmem:[%s12790_s6 + $0x98] sm:$0xff] }
 0x65c   : > { %v5385_v40 = vpack.c.bf16 %v5363_v32, %v5362_v53 }
 0x660   : > { %v13215_v9 = vpop.permute.xlu1 %11237 }
 0x661   : > { %v4705_v46 = vpop.permute.xlu2 %4704 }
 0x662   : > { %vm4757_vm14 = vcmp.eq.s32.totalorder %v4705_v46, %v12221_v34 }
 0x663   : > { %v4789_v62 = vsel %vm4757_vm14, 1.0, %v11818_v43 }
 0x664   : > { %v4810_v31 = vpack.c.bf16 %v4789_v62, %v4788_v54  ;;  %v11301_v54 = vpack.i.bf16 %v5538_v52, %v5537_v51 }
 0x668   : > { %10239 = vmatmul.msk.bf16.gmra.mxu3 %vm14454_vm4, %v4806_v10  ;;  %10255 = vmatmul.msk.bf16.gmra.mxu2 %vm14454_vm4, %v5382_v5  ;;  %v5211_v10 = vld [vmem:[%s12616_s9 + $0xd8] sm:$0xff] }
 0x669   : > { %v4708_v63 = vpop.permute.xlu2 %4707 }
 0x66a   : > { %vm4758_vm15 = vcmp.eq.s32.totalorder %v4708_v63, %v12221_v34 }
 0x66b   : > { %v4790_v13 = vsel %vm4758_vm15, 1.0, %v11818_v43 }
 0x66c   : > { %v4811_v21 = vpack.c.bf16 %v4791_v18, %v4790_v13  ;;  %v10854_v18 = vld [vmem:[%s14511_s12] sm:$0xff]  ;;  %v5543_v13 = vld [vmem:[%s12790_s6 + $0x70] sm:$0xff] }
 0x671   : > { %v5287_v7 = vpop.permute.xlu2 %5286 }
 0x672   : > { %vm5335_vm12 = vcmp.eq.s32.totalorder %v5287_v7, %v12221_v34  ;;  %v10855_v7 = vld [vmem:[%s14511_s12 + $0x8] sm:$0xff] }
 0x673   : > { %v5367_v20 = vsel %vm5335_vm12, 1.0, %v11818_v43  ;;  %vm6009_vm12 = vcmask 179200  }
 0x678   : > { %10240 = vmatmul.msk.bf16.gmra.mxu3 %vm14454_vm4, %v4807_v14  ;;  %10256 = vmatmul.msk.bf16.gmra.mxu2 %vm14454_vm4, %v5383_v15  ;;  %v5366_v14 = vsel %vm5334_vm11, 1.0, %v11818_v43 }
 0x679   : > { %v5387_v22 = vpack.c.bf16 %v5367_v20, %v5366_v14  ;;  %v13258_v6 = vpop.permute.xlu2 %5289  ;;  %v5544_v14 = vld [vmem:[%s12790_s6 + $0x78] sm:$0xff] }
 0x688   : > { %10241 = vmatmul.msk.bf16.gmra.mxu3 %vm14454_vm4, %v4808_v24  ;;  %10257 = vmatmul.msk.bf16.gmra.mxu2 %vm14454_vm4, %v5384_v25  ;;  %v4637_v24 = vld [vmem:[%s12604_s3 + $0xe8] sm:$0xff]  ;;  %v4636_v25 = vld [vmem:[%s12604_s3 + $0xe0] sm:$0xff] }
 0x68b   : > { %v5072_v26 = vpop.f32.mrf.mxu3  ;;  %v5449_v27 = vpop.f32.mrf.mxu2 }
 0x693   : > { %v5074_v35 = vpop.f32.mrf.mxu3  ;;  %v5451_v37 = vpop.f32.mrf.mxu2 }
 0x694   : > { %v11241_v57 = vpack.i.bf16 %v5074_v35, %v5072_v26  ;;  %v11246_v36 = vpack.i.bf16 %v5451_v37, %v5449_v27  ;;  %v4717_v26 = vpop.permute.xlu1 %4716  ;;  %v4714_v27 = vpop.permute.xlu0 %4713  ;;  %v5213_v35 = vld [vmem:[%s12616_s9 + $0xe8] sm:$0xff] }
 0x695   : > { %vm4761_vm13 = vcmp.eq.s32.totalorder %v4717_v26, %v12221_v34  ;;  %vm4760_vm14 = vcmp.eq.s32.totalorder %v4714_v27, %v12221_v34  ;;  %v5547_v27 = vld [vmem:[%s12790_s6 + $0x90] sm:$0xff] }
 0x696   : > { %11247 = vrot.lane.b32.xlu2 %v11246_v36, %s14448_s23  ;;  %11242 = vrot.lane.b32.xlu0 %v11241_v57, %s14508_s5  ;;  %v4793_v30 = vsel %vm4761_vm13, 1.0, %v11818_v43  ;;  %v4792_v57 = vsel %vm4760_vm14, 1.0, %v11818_v43  ;;  %vm6082_vm13 = vcmask 310272   ;;  %vm5336_vm14 = vcmp.eq.s32.totalorder %v13258_v6, %v12221_v34 }
 0x697   : > { %v4812_v36 = vpack.c.bf16 %v4793_v30, %v4792_v57 }
 0x698   : > { %10242 = vmatmul.msk.bf16.gmra.mxu3 %vm14454_vm4, %v4809_v41  ;;  %10258 = vmatmul.msk.bf16.gmra.mxu2 %vm14454_vm4, %v5385_v40  ;;  %v4638_v41 = vld [vmem:[%s12604_s3 + $0xf0] sm:$0xff]  ;;  %s14512_s3 = sld [smem:[#allocation10_spill]] }
 0x69b   : > { %v5077_v48 = vpop.f32.mrf.mxu3  ;;  %v5454_v49 = vpop.f32.mrf.mxu2 }
 0x69c   : > { %v4720_v26 = vpop.permute.xlu1 %4719 }
 0x69d   : > { %vm4762_vm15 = vcmp.eq.s32.totalorder %v4720_v26, %v12221_v34  ;;  %v5556_v26 = vld [vmem:[%s12790_s6 + $0xd8] sm:$0xff] }
 0x69e   : > { %11252 = vrot.lane.b32.xlu2 %v11251_v47, %s14510_s8  ;;  %5292 = vperm.xlu0 %11073, %v5209_v50   ;;  %v4794_v30 = vsel %vm4762_vm15, 1.0, %v11818_v43 }
 0x6a3   : > { %v5079_v29 = vpop.f32.mrf.mxu3  ;;  %v5456_v38 = vpop.f32.mrf.mxu2 }
 0x6a4   : > { %v11256_v59 = vpack.i.bf16 %v5079_v29, %v5077_v48  ;;  %v11261_v5 = vpack.i.bf16 %v5456_v38, %v5454_v49  ;;  %v5214_v48 = vld [vmem:[%s12616_s9 + $0xf0] sm:$0xff]  ;;  %v5215_v49 = vld [vmem:[%s12616_s9 + $0xf8] sm:$0xff]  ;;  %s13281_s9 = scalar_lea.vmem %s14512_s3, %s12596_s16  ;;  %s13361_s16 = sshll.u32 %s12135_s2, 7 }
 0x6a6   : > { %4722 = vperm.xlu2 %11075, %v4635_v56   ;;  %5295 = vperm.xlu0 %11073, %v5210_v58   ;;  %v5539_v56 = vld [vmem:[%s12790_s6 + $0x50] sm:$0xff]  ;;  %v5540_v58 = vld [vmem:[%s12790_s6 + $0x58] sm:$0xff] }
 0x6a7   : > { %11257 = vrot.lane.b32.xlu1 %v11256_v59, %s14508_s5  ;;  %v6062_v59 = vld [vmem:[%s14511_s12 + $0x10] sm:$0x7]  ;;  %v11316_v62 = vpack.i.bf16 %v5540_v58, %v5539_v56  ;;  %s14519_s12 = sld [smem:[#allocation20_spill]] }
 0x6a8   : > { %10243 = vmatmul.msk.bf16.gmra.mxu3 %vm14454_vm4, %v4810_v31  ;;  %10259 = vmatmul.msk.bf16.gmra.mxu2 %vm14454_vm4, %v5386_v2  ;;  %v6076_v60 = vunpack.c.l.b16 %v6062_v59 }
 0x6aa   : > { %v6079_v2 = vpack.c.b16 %v6076_v60, %v6076_v60 }
 0x6ab   : > { %v5082_v3 = vpop.f32.mrf.mxu3  ;;  %v5459_v4 = vpop.f32.mrf.mxu2 }
 0x6ad   : > { %s13565_s13 = scalar_lea.vmem %s14519_s12, %s13361_s16  ;;  %s11823_s12 = smov 35  }
 0x6ae   : > { %11262 = vrot.lane.b32.xlu0 %v11261_v5, %s14448_s23  ;;  %v5541_v5 = vld [vmem:[%s12790_s6 + $0x60] sm:$0xff] }
 0x6af   : > { %5298 = vperm.xlu1 %11074, %v5211_v10   ;;  %v5542_v10 = vld [vmem:[%s12790_s6 + $0x68] sm:$0xff] }
 0x6b0   : > { %v11331_v19 = vpack.i.bf16 %v5542_v10, %v5541_v5 }
 0x6b3   : > { %v5084_v15 = vpop.f32.mrf.mxu3  ;;  %v5461_v16 = vpop.f32.mrf.mxu2 }
 0x6b4   : > { %v11271_v17 = vpack.i.bf16 %v5084_v15, %v5082_v3  ;;  %v11276_v44 = vpack.i.bf16 %v5461_v16, %v5459_v4  ;;  %v6133_v4 = vsel %vm14447_vm1, %v6079_v2, 0  ;;  %v11346_v16 = vpack.i.bf16 %v5544_v14, %v5543_v13 }
 0x6b5   : > { %6140 = vmatpush.bf16.msrb.mxu1 %v6133_v4  ;;  %v5368_v2 = vsel %vm5336_vm14, 1.0, %v11818_v43 }
 0x6b6   : > { %11267 = vrot.lane.b32.xlu0 %v11266_v11, %s14510_s8  ;;  %11272 = vrot.lane.b32.xlu2 %v11271_v17, %s14508_s5 }
 0x6b7   : > { %11277 = vrot.lane.b32.xlu1 %v11276_v44, %s14448_s23 }
 0x6b8   : > { %10244 = vmatmul.msk.bf16.gmra.mxu3 %vm14454_vm4, %v4811_v21  ;;  %10260 = vmatmul.msk.bf16.gmra.mxu2 %vm14454_vm4, %v5387_v22  ;;  %v5545_v22 = vld [vmem:[%s12790_s6 + $0x80] sm:$0xff] }
 0x6b9   : > { %6141 = vmatpush.bf16.msrb.mxu1 %v10855_v7 }
 0x6bb   : > { %v5087_v23 = vpop.f32.mrf.mxu3  ;;  %v5464_v12 = vpop.f32.mrf.mxu2 }
 0x6bd   : > { %6142 = vmatpush.bf16.msrb.mxu1 %v10854_v18 }
 0x6be   : > { %4728 = vperm.xlu0 %11073, %v4637_v24   ;;  %4725 = vperm.xlu2 %11075, %v4636_v25  }
 0x6bf   : > { %5301 = vperm.xlu1 %11074, %v5212_v0  }
 0x6c3   : > { %v5089_v32 = vpop.f32.mrf.mxu3  ;;  %v5466_v53 = vpop.f32.mrf.mxu2 }
 0x6c4   : > { %v11286_v37 = vpack.i.bf16 %v5089_v32, %v5087_v23  ;;  %v11291_v42 = vpack.i.bf16 %v5466_v53, %v5464_v12  ;;  %v5546_v23 = vld [vmem:[%s12790_s6 + $0x88] sm:$0xff]  ;;  %v11376_v53 = vpack.i.bf16 %v5548_v1, %v5547_v27 }
 0x6c5   : > { %v11361_v24 = vpack.i.bf16 %v5546_v23, %v5545_v22 }
 0x6c6   : > { %5304 = vperm.xlu2 %11075, %v5213_v35   ;;  %11287 = vrot.lane.b32.xlu0 %v11286_v37, %s14508_s5 }
 0x6c7   : > { %11282 = vrot.lane.b32.xlu1 %v11281_v33, %s14510_s8 }
 0x6c8   : > { %10245 = vmatmul.msk.bf16.gmra.mxu3 %vm14454_vm4, %v4812_v36 }
 0x6cb   : > { %v5092_v39 = vpop.f32.mrf.mxu3  ;;  %v5469_v40 = vpop.f32.mrf.mxu2 }
 0x6ce   : > { %11292 = vrot.lane.b32.xlu2 %v11291_v42, %s14448_s23  ;;  %4731 = vperm.xlu0 %11073, %v4638_v41   ;;  %v5152_v41 = vld [vmem:[%s13281_s9] sm:$0xff]  ;;  %v5153_v42 = vld [vmem:[%s13281_s9 + $0x8] sm:$0xff] }
 0x6cf   : > { %4734 = vperm.xlu1 %11074, %v4639_v45  }
 0x6d3   : > { %v5094_v46 = vpop.f32.mrf.mxu3  ;;  %v5471_v47 = vpop.f32.mrf.mxu2 }
 0x6d4   : > { %v11296_v50 = vpack.i.bf16 %v5094_v46, %v5092_v39  ;;  %v11306_v38 = vpack.i.bf16 %v5471_v47, %v5469_v40  ;;  %v5549_v39 = vld [vmem:[%s12790_s6 + $0xa0] sm:$0xff]  ;;  %v5550_v40 = vld [vmem:[%s12790_s6 + $0xa8] sm:$0xff] }
 0x6d6   : > { %5307 = vperm.xlu2 %11075, %v5214_v48   ;;  %5310 = vperm.xlu0 %11073, %v5215_v49   ;;  %v11240_v48 = vunpack.i.h.bf16 %v13215_v9  ;;  %v11239_v49 = vunpack.i.l.bf16 %v13215_v9 }
 0x6d7   : > { %11297 = vrot.lane.b32.xlu1 %v11296_v50, %s14508_s5  ;;  %v11391_v50 = vpack.i.bf16 %v5550_v40, %v5549_v39 }
 0x6db   : > { %v5097_v55 = vpop.f32.mrf.mxu3  ;;  %v5474_v29 = vpop.f32.mrf.mxu2 }
 0x6de   : > { %11302 = vrot.lane.b32.xlu2 %v11301_v54, %s14510_s8  ;;  %11307 = vrot.lane.b32.xlu0 %v11306_v38, %s14448_s23 }
 0x6e3   : > { %v5099_v63 = vpop.f32.mrf.mxu3  ;;  %v5476_v31 = vpop.f32.mrf.mxu2 }
 0x6e4   : > { %v11311_v61 = vpack.i.bf16 %v5099_v63, %v5097_v55  ;;  %v11321_v3 = vpack.i.bf16 %v5476_v31, %v5474_v29  ;;  %v5552_v63 = vld [vmem:[%s12790_s6 + $0xb8] sm:$0xff] }
 0x6e6   : > { %11317 = vrot.lane.b32.xlu2 %v11316_v62, %s14510_s8  ;;  %11322 = vrot.lane.b32.xlu0 %v11321_v3, %s14448_s23  ;;  %v5551_v62 = vld [vmem:[%s12790_s6 + $0xb0] sm:$0xff] }
 0x6e7   : > { %11312 = vrot.lane.b32.xlu1 %v11311_v61, %s14508_s5  ;;  %v11406_v3 = vpack.i.bf16 %v5552_v63, %v5551_v62 }
 0x6eb   : > { %v5102_v8 = vpop.f32.mrf.mxu3  ;;  %v5479_v11 = vpop.f32.mrf.mxu2 }
 0x6ee   : > { %11332 = vrot.lane.b32.xlu2 %v11331_v19, %s14510_s8  ;;  %v5553_v19 = vld [vmem:[%s12790_s6 + $0xc0] sm:$0xff] }
 0x6f0   : > { %v11248_v15 = vpop.permute.xlu2 %11247 }
 0x6f1   : > { %v11250_v51 = vunpack.i.h.bf16 %v11248_v15  ;;  %v11249_v52 = vunpack.i.l.bf16 %v11248_v15 }
 0x6f3   : > { %v5104_v17 = vpop.f32.mrf.mxu3  ;;  %v5481_v44 = vpop.f32.mrf.mxu2 }
 0x6f4   : > { %v11326_v20 = vpack.i.bf16 %v5104_v17, %v5102_v8  ;;  %v11336_v21 = vpack.i.bf16 %v5481_v44, %v5479_v11  ;;  %v5554_v8 = vld [vmem:[%s12790_s6 + $0xc8] sm:$0xff] }
 0x6f5   : > { %v11421_v14 = vpack.i.bf16 %v5554_v8, %v5553_v19 }
 0x6f6   : > { %11347 = vrot.lane.b32.xlu2 %v11346_v16, %s14510_s8  ;;  %11337 = vrot.lane.b32.xlu0 %v11336_v21, %s14448_s23  ;;  %v5155_v21 = vld [vmem:[%s13281_s9 + $0x18] sm:$0xff] }
 0x6f7   : > { %11327 = vrot.lane.b32.xlu1 %v11326_v20, %s14508_s5  ;;  %v5154_v20 = vld [vmem:[%s13281_s9 + $0x10] sm:$0xff] }
 0x6f8   : > { %v13270_v12 = vpop.permute.xlu2 %11252 }
 0x6f9   : > { %v11255_v22 = vunpack.i.h.bf16 %v13270_v12  ;;  %v11254_v23 = vunpack.i.l.bf16 %v13270_v12 }
 0x6fb   : > { %v5107_v25 = vpop.f32.mrf.mxu3  ;;  %v5484_v0 = vpop.f32.mrf.mxu2 }
 0x6fe   : > { %11362 = vrot.lane.b32.xlu2 %v11361_v24, %s14510_s8 }
 0x700   : > { %v4723_v28 = vpop.permute.xlu2 %4722 }
 0x701   : > { %vm4763_vm11 = vcmp.eq.s32.totalorder %v4723_v28, %v12221_v34 }
 0x702   : > { %v4795_v32 = vsel %vm4763_vm11, 1.0, %v11818_v43 }
 0x703   : > { %v4813_v33 = vpack.c.bf16 %v4795_v32, %v4794_v30  ;;  %v5109_v35 = vpop.f32.mrf.mxu3  ;;  %v5486_v37 = vpop.f32.mrf.mxu2 }
 0x704   : > { %v11341_v57 = vpack.i.bf16 %v5109_v35, %v5107_v25  ;;  %v11351_v36 = vpack.i.bf16 %v5486_v37, %v5484_v0  ;;  %v5555_v0 = vld [vmem:[%s12790_s6 + $0xd0] sm:$0xff] }
 0x705   : > { %10246 = vmatmul.msk.bf16.gmra.mxu3 %vm14454_vm4, %v4813_v33  ;;  %v11436_v12 = vpack.i.bf16 %v5556_v26, %v5555_v0  ;;  %v5159_v0 = vld [vmem:[%s13281_s9 + $0x38] sm:$0xff] }
 0x706   : > { %11377 = vrot.lane.b32.xlu2 %v11376_v53, %s14510_s8  ;;  %11352 = vrot.lane.b32.xlu0 %v11351_v36, %s14448_s23 }
 0x707   : > { %11342 = vrot.lane.b32.xlu1 %v11341_v57, %s14508_s5 }
 0x708   : > { %v11243_v45 = vpop.permute.xlu0 %11242 }
 0x709   : > { %v11245_v46 = vunpack.i.h.bf16 %v11243_v45  ;;  %v11244_v47 = vunpack.i.l.bf16 %v11243_v45 }
 0x70b   : > { %v5946_v54 = vsel %vm2900_vm9, %v5153_v42, %v11245_v46  ;;  %v5945_v55 = vsel %vm2900_vm9, %v5152_v41, %v11244_v47  ;;  %v5112_v29 = vpop.f32.mrf.mxu3  ;;  %v5489_v38 = vpop.f32.mrf.mxu2 }
 0x70c   : > { %v5978_v56 = vsel %vm3013_vm10, %v5946_v54, %v11240_v48  ;;  %v5977_v58 = vsel %vm3013_vm10, %v5945_v55, %v11239_v49  ;;  %v5557_v48 = vld [vmem:[%s12790_s6 + $0xe0] sm:$0xff]  ;;  %v5558_v49 = vld [vmem:[%s12790_s6 + $0xe8] sm:$0xff] }
 0x70d   : > { %v6011_v59 = vsel %vm6009_vm12, %v5978_v56, %v11250_v51  ;;  %v6010_v9 = vsel %vm6009_vm12, %v5977_v58, %v11249_v52  ;;  %v5156_v54 = vld [vmem:[%s13281_s9 + $0x20] sm:$0xff]  ;;  %v5157_v55 = vld [vmem:[%s13281_s9 + $0x28] sm:$0xff] }
 0x70e   : > { %11392 = vrot.lane.b32.xlu2 %v11391_v50, %s14510_s8  ;;  %v6042_v60 = vpack.c.bf16 %v6011_v59, %v6010_v9  ;;  %v11451_v59 = vpack.i.bf16 %v5558_v49, %v5557_v48 }
 0x710   : > { %v5293_v31 = vpop.permute.xlu0 %5292  ;;  %10273 = vmatmul.msk.bf16.vlgmr.msrb.gmra.mxu1 %vm6082_vm13, %v6042_v60  ;;  %v11273_v11 = vpop.permute.xlu2 %11272 }
 0x711   : > { %vm5337_vm15 = vcmp.eq.s32.totalorder %v5293_v31, %v12221_v34  ;;  %v11275_v50 = vunpack.i.h.bf16 %v11273_v11  ;;  %v11274_v51 = vunpack.i.l.bf16 %v11273_v11 }
 0x712   : > { %v5369_v61 = vsel %vm5337_vm15, 1.0, %v11818_v43 }
 0x713   : > { %v5388_v4 = vpack.c.bf16 %v5369_v61, %v5368_v2  ;;  %v5114_v5 = vpop.f32.mrf.mxu3  ;;  %v5491_v10 = vpop.f32.mrf.mxu2  ;;  %v5950_v9 = vsel %vm2900_vm9, %v5157_v55, %v11275_v50  ;;  %v5949_v60 = vsel %vm2900_vm9, %v5156_v54, %v11274_v51 }
 0x714   : > { %v11356_v7 = vpack.i.bf16 %v5114_v5, %v5112_v29  ;;  %v11366_v6 = vpack.i.bf16 %v5491_v10, %v5489_v38  ;;  %v5560_v5 = vld [vmem:[%s12790_s6 + $0xf8] sm:$0xff] }
 0x715   : > { %10261 = vmatmul.msk.bf16.gmra.mxu2 %vm14454_vm4, %v5388_v4  ;;  %v5559_v4 = vld [vmem:[%s12790_s6 + $0xf0] sm:$0xff]  ;;  %s14513_s6 = sld [smem:[#allocation17_spill]] }
 0x716   : > { %11407 = vrot.lane.b32.xlu2 %v11406_v3, %s14510_s8  ;;  %11367 = vrot.lane.b32.xlu0 %v11366_v6, %s14448_s23 }
 0x717   : > { %11357 = vrot.lane.b32.xlu1 %v11356_v7, %s14508_s5 }
 0x718   : > { %v5296_v18 = vpop.permute.xlu0 %5295  ;;  %v4726_v32 = vpop.permute.xlu2 %4725 }
 0x719   : > { %v11258_v13 = vpop.permute.xlu1 %11257  ;;  %vm5338_vm11 = vcmp.eq.s32.totalorder %v5296_v18, %v12221_v34  ;;  %vm4764_vm15 = vcmp.eq.s32.totalorder %v4726_v32, %v12221_v34 }
 0x71a   : > { %v11260_v15 = vunpack.i.h.bf16 %v11258_v13  ;;  %v11259_v16 = vunpack.i.l.bf16 %v11258_v13  ;;  %v5370_v35 = vsel %vm5338_vm11, 1.0, %v11818_v43  ;;  %v4796_v19 = vsel %vm4764_vm15, 1.0, %v11818_v43 }
 0x71b   : > { %v5117_v17 = vpop.f32.mrf.mxu3  ;;  %v5494_v44 = vpop.f32.mrf.mxu2  ;;  %s13370_s3 = scalar_lea.vmem %s14513_s6, %s13361_s16 }
 0x71c   : > { %v5948_v24 = vsel %vm2900_vm9, %v5155_v21, %v11260_v15  ;;  %v5947_v25 = vsel %vm2900_vm9, %v5154_v20, %v11259_v16  ;;  %v11466_v16 = vpack.i.bf16 %v5560_v5, %v5559_v4  ;;  %v6720_v54 = vld [vmem:[%s13370_s3 + $0x10] sm:$0xff] }
 0x71d   : > { %v5979_v53 = vsel %vm3013_vm10, %v5947_v25, %v11254_v23  ;;  %v5980_v33 = vsel %vm3013_vm10, %v5948_v24, %v11255_v22  ;;  %v5158_v25 = vld [vmem:[%s13281_s9 + $0x30] sm:$0xff] }
 0x71e   : > { %11422 = vrot.lane.b32.xlu2 %v11421_v14, %s14510_s8 }
 0x720   : > { %v11263_v27 = vpop.permute.xlu0 %11262  ;;  %v5305_v62 = vpop.permute.xlu2 %5304 }
 0x721   : > { %v11265_v1 = vunpack.i.h.bf16 %v11263_v27  ;;  %v11264_v28 = vunpack.i.l.bf16 %v11263_v27  ;;  %v5299_v30 = vpop.permute.xlu1 %5298  ;;  %vm5341_vm11 = vcmp.eq.s32.totalorder %v5305_v62, %v12221_v34 }
 0x722   : > { %vm5339_vm14 = vcmp.eq.s32.totalorder %v5299_v30, %v12221_v34  ;;  %v5373_v11 = vsel %vm5341_vm11, 1.0, %v11818_v43 }
 0x723   : > { %v6012_v37 = vsel %vm6009_vm12, %v5979_v53, %v11264_v28  ;;  %v6013_v57 = vsel %vm6009_vm12, %v5980_v33, %v11265_v1  ;;  %v5371_v36 = vsel %vm5339_vm14, 1.0, %v11818_v43  ;;  %v5119_v39 = vpop.f32.mrf.mxu3  ;;  %v5496_v40 = vpop.f32.mrf.mxu2 }
 0x724   : > { %v5389_v41 = vpack.c.bf16 %v5371_v36, %v5370_v35  ;;  %v11371_v42 = vpack.i.bf16 %v5119_v39, %v5117_v17  ;;  %v11381_v45 = vpack.i.bf16 %v5496_v40, %v5494_v44  ;;  %v6043_v46 = vpack.c.bf16 %v6013_v57, %v6012_v37 }
 0x726   : > { %10262 = vmatmul.msk.bf16.gmra.mxu2 %vm14454_vm4, %v5389_v41  ;;  %10274 = vmatmul.msk.bf16.gmra.mxu1 %vm6082_vm13, %v6043_v46 }
 0x727   : > { %11437 = vrot.lane.b32.xlu2 %v11436_v12, %s14510_s8  ;;  %11382 = vrot.lane.b32.xlu0 %v11381_v45, %s14448_s23  ;;  %v6719_v12 = vld [vmem:[%s13370_s3 + $0x8] sm:$0xff] }
 0x728   : > { %11372 = vrot.lane.b32.xlu1 %v11371_v42, %s14508_s5  ;;  %v11268_v47 = vpop.permute.xlu0 %11267  ;;  %v11293_v22 = vpop.permute.xlu2 %11292 }
 0x729   : > { %v11278_v52 = vpop.permute.xlu1 %11277  ;;  %v11270_v29 = vunpack.i.h.bf16 %v11268_v47  ;;  %v11269_v38 = vunpack.i.l.bf16 %v11268_v47  ;;  %v11295_v57 = vunpack.i.h.bf16 %v11293_v22  ;;  %v11294_v36 = vunpack.i.l.bf16 %v11293_v22 }
 0x72a   : > { %v11280_v63 = vunpack.i.h.bf16 %v11278_v52  ;;  %v11279_v31 = vunpack.i.l.bf16 %v11278_v52 }
 0x72b   : > { %v5122_v56 = vpop.f32.mrf.mxu3  ;;  %v5499_v58 = vpop.f32.mrf.mxu2  ;;  %v5981_v2 = vsel %vm3013_vm10, %v5949_v60, %v11269_v38  ;;  %v5982_v61 = vsel %vm3013_vm10, %v5950_v9, %v11270_v29 }
 0x72c   : > { %v6014_v10 = vsel %vm6009_vm12, %v5981_v2, %v11279_v31  ;;  %v6015_v7 = vsel %vm6009_vm12, %v5982_v61, %v11280_v63  ;;  %v5160_v63 = vld [vmem:[%s13281_s9 + $0x40] sm:$0xff]  ;;  %v5161_v31 = vld [vmem:[%s13281_s9 + $0x48] sm:$0xff] }
 0x72d   : > { %v6044_v17 = vpack.c.bf16 %v6015_v7, %v6014_v10 }
 0x72f   : > { %11452 = vrot.lane.b32.xlu2 %v11451_v59, %s14510_s8 }
 0x730   : > { %v4729_v3 = vpop.permute.xlu0 %4728  ;;  %v5308_v41 = vpop.permute.xlu2 %5307 }
 0x731   : > { %vm4765_vm14 = vcmp.eq.s32.totalorder %v4729_v3, %v12221_v34  ;;  %v5302_v6 = vpop.permute.xlu1 %5301  ;;  %vm5342_vm11 = vcmp.eq.s32.totalorder %v5308_v41, %v12221_v34 }
 0x732   : > { %v4797_v8 = vsel %vm4765_vm14, 1.0, %v11818_v43  ;;  %vm5340_vm1 = vcmp.eq.s32.totalorder %v5302_v6, %v12221_v34 }
 0x733   : > { %v4814_v18 = vpack.c.bf16 %v4797_v8, %v4796_v19  ;;  %v5372_v13 = vsel %vm5340_vm1, 1.0, %v11818_v43  ;;  %v5124_v14 = vpop.f32.mrf.mxu3  ;;  %v5501_v15 = vpop.f32.mrf.mxu2 }
 0x734   : > { %v5390_v44 = vpack.c.bf16 %v5373_v11, %v5372_v13  ;;  %v11386_v20 = vpack.i.bf16 %v5124_v14, %v5122_v56  ;;  %v11396_v21 = vpack.i.bf16 %v5501_v15, %v5499_v58  ;;  %v5374_v56 = vsel %vm5342_vm11, 1.0, %v11818_v43 }
 0x735   : > { %10247 = vmatmul.msk.bf16.gmra.mxu3 %vm14454_vm4, %v4814_v18 }
 0x736   : > { %10263 = vmatmul.msk.bf16.gmra.mxu2 %vm14454_vm4, %v5390_v44  ;;  %10275 = vmatmul.msk.bf16.gmra.mxu1 %vm6082_vm13, %v6044_v17  ;;  %v5162_v44 = vld [vmem:[%s13281_s9 + $0x50] sm:$0xff] }
 0x737   : > { %11467 = vrot.lane.b32.xlu2 %v11466_v16, %s14510_s8  ;;  %11397 = vrot.lane.b32.xlu0 %v11396_v21, %s14448_s23  ;;  %s14514_s8 = sld [smem:[#allocation19_spill]] }
 0x738   : > { %11387 = vrot.lane.b32.xlu1 %v11386_v20, %s14508_s5  ;;  %v11288_v23 = vpop.permute.xlu0 %11287  ;;  %v11303_v61 = vpop.permute.xlu2 %11302  ;;  %v5163_v20 = vld [vmem:[%s13281_s9 + $0x58] sm:$0xff] }
 0x739   : > { %v11283_v24 = vpop.permute.xlu1 %11282  ;;  %v11290_v26 = vunpack.i.h.bf16 %v11288_v23  ;;  %v11289_v27 = vunpack.i.l.bf16 %v11288_v23  ;;  %v11305_v3 = vunpack.i.h.bf16 %v11303_v61  ;;  %v11304_v4 = vunpack.i.l.bf16 %v11303_v61 }
 0x73a   : > { %v11285_v1 = vunpack.i.h.bf16 %v11283_v24  ;;  %v11284_v28 = vunpack.i.l.bf16 %v11283_v24 }
 0x73b   : > { %v5127_v30 = vpop.f32.mrf.mxu3  ;;  %v5504_v32 = vpop.f32.mrf.mxu2  ;;  %v5952_v53 = vsel %vm2900_vm9, %v5159_v0, %v11290_v26  ;;  %v5951_v33 = vsel %vm2900_vm9, %v5158_v25, %v11289_v27 }
 0x73c   : > { %v5984_v35 = vsel %vm3013_vm10, %v5952_v53, %v11285_v1  ;;  %v5983_v37 = vsel %vm3013_vm10, %v5951_v33, %v11284_v28  ;;  %v6725_v1 = vld [vmem:[%s13370_s3 + $0x38] sm:$0xff] }
 0x73d   : > { %v6016_v45 = vsel %vm6009_vm12, %v5983_v37, %v11294_v36  ;;  %v6017_v46 = vsel %vm6009_vm12, %v5984_v35, %v11295_v57  ;;  %s13392_s6 = scalar_lea.vmem %s14514_s8, %s13361_s16  ;;  %v6726_v37 = vld [vmem:[%s13370_s3 + $0x40] sm:$0xff]  ;;  %s14515_s8 = sld [smem:[#allocation15_spill]] }
 0x73e   : > { %v6045_v55 = vpack.c.bf16 %v6017_v46, %v6016_v45  ;;  %v7010_v2 = vld [vmem:[%s13392_s6 + $0x18] sm:$0xff]  ;;  %v7011_v17 = vld [vmem:[%s13392_s6 + $0x20] sm:$0xff] }
 0x73f   : > { %6738 = vperm.xlu2 %11075, %v6719_v12   ;;  %v5164_v36 = vld [vmem:[%s13281_s9 + $0x60] sm:$0xff] }
 0x740   : > { %v4732_v39 = vpop.permute.xlu0 %4731  ;;  %v11318_v22 = vpop.permute.xlu2 %11317 }
 0x741   : > { %v4735_v40 = vpop.permute.xlu1 %4734  ;;  %vm4766_vm1 = vcmp.eq.s32.totalorder %v4732_v39, %v12221_v34  ;;  %v11320_v25 = vunpack.i.h.bf16 %v11318_v22  ;;  %v11319_v0 = vunpack.i.l.bf16 %v11318_v22  ;;  %v5165_v39 = vld [vmem:[%s13281_s9 + $0x68] sm:$0xff] }
 0x742   : > { %vm4767_vm15 = vcmp.eq.s32.totalorder %v4735_v40, %v12221_v34  ;;  %v4798_v42 = vsel %vm4766_vm1, 1.0, %v11818_v43  ;;  %vm6292_vm1 = vcmask 261120  }
 0x743   : > { %v4799_v47 = vsel %vm4767_vm15, 1.0, %v11818_v43  ;;  %v5129_v48 = vpop.f32.mrf.mxu3  ;;  %v5506_v49 = vpop.f32.mrf.mxu2 }
 0x744   : > { %v4815_v50 = vpack.c.bf16 %v4799_v47, %v4798_v42  ;;  %v11401_v51 = vpack.i.bf16 %v5129_v48, %v5127_v30  ;;  %v11411_v52 = vpack.i.bf16 %v5506_v49, %v5504_v32 }
 0x746   : > { %10248 = vmatmul.msk.bf16.gmra.mxu3 %vm14454_vm4, %v4815_v50  ;;  %11412 = vrot.lane.b32.xlu0 %v11411_v52, %s14448_s23  ;;  %v7016_v50 = vld [vmem:[%s13392_s6 + $0x48] sm:$0xff]  ;;  %s14516_s23 = sld [smem:[#allocation14_spill]] }
 0x747   : > { %6741 = vperm.xlu2 %11075, %v6720_v54   ;;  %10276 = vmatmul.msk.bf16.gmra.mxu1 %vm6082_vm13, %v6045_v55 }
 0x748   : > { %11402 = vrot.lane.b32.xlu1 %v11401_v51, %s14508_s5  ;;  %v5311_v29 = vpop.permute.xlu0 %5310  ;;  %v11333_v41 = vpop.permute.xlu2 %11332 }
 0x749   : > { %vm5343_vm14 = vcmp.eq.s32.totalorder %v5311_v29, %v12221_v34  ;;  %v11298_v38 = vpop.permute.xlu1 %11297  ;;  %v11335_v46 = vunpack.i.h.bf16 %v11333_v41  ;;  %v11334_v47 = vunpack.i.l.bf16 %v11333_v41 }
 0x74a   : > { %v5375_v58 = vsel %vm5343_vm14, 1.0, %v11818_v43  ;;  %v11300_v9 = vunpack.i.h.bf16 %v11298_v38  ;;  %v11299_v60 = vunpack.i.l.bf16 %v11298_v38 }
 0x74b   : > { %v5391_v59 = vpack.c.bf16 %v5375_v58, %v5374_v56  ;;  %v5132_v62 = vpop.f32.mrf.mxu3  ;;  %v7017_v58 = vld [vmem:[%s13392_s6 + $0x50] sm:$0xff] }
 0x74c   : > { %v5954_v5 = vsel %vm2900_vm9, %v5161_v31, %v11300_v9  ;;  %v5953_v10 = vsel %vm2900_vm9, %v5160_v63, %v11299_v60  ;;  %v10857_v9 = vld [vmem:[%s14515_s8 + $0x8] sm:$0xff]  ;;  %v5166_v60 = vld [vmem:[%s13281_s9 + $0x70] sm:$0xff]  ;;  %v10856_v31 = vld [vmem:[%s14515_s8] sm:$0xff]  ;;  %s14517_s8 = smov 22  }
 0x74d   : > { %10264 = vmatmul.msk.bf16.gmra.mxu2 %vm14454_vm4, %v5391_v59  ;;  %v5985_v8 = vsel %vm3013_vm10, %v5953_v10, %v11304_v4  ;;  %v5986_v11 = vsel %vm3013_vm10, %v5954_v5, %v11305_v3  ;;  %6347 = vmatpush.bf16.msra.mxu0 %v10857_v9 }
 0x74f   : > { %7033 = vperm.xlu2 %11075, %v7010_v2  }
 0x750   : > { %v11308_v7 = vpop.permute.xlu0 %11307  ;;  %v11348_v2 = vpop.permute.xlu2 %11347 }
 0x751   : > { %v11310_v6 = vunpack.i.h.bf16 %v11308_v7  ;;  %v11309_v19 = vunpack.i.l.bf16 %v11308_v7  ;;  %v11350_v4 = vunpack.i.h.bf16 %v11348_v2  ;;  %v11349_v5 = vunpack.i.l.bf16 %v11348_v2  ;;  %6348 = vmatpush.bf16.msra.mxu0 %v10856_v31 }
 0x753   : > { %v6018_v18 = vsel %vm6009_vm12, %v5985_v8, %v11309_v19  ;;  %v6019_v13 = vsel %vm6009_vm12, %v5986_v11, %v11310_v6  ;;  %v5134_v14 = vpop.f32.mrf.mxu3  ;;  %v6731_v6 = vld [vmem:[%s13370_s3 + $0x68] sm:$0xff] }
 0x754   : > { %v6046_v15 = vpack.c.bf16 %v6019_v13, %v6018_v18  ;;  %v11416_v16 = vpack.i.bf16 %v5134_v14, %v5132_v62  ;;  %v5167_v62 = vld [vmem:[%s13281_s9 + $0x78] sm:$0xff] }
 0x756   : > { %11417 = vrot.lane.b32.xlu1 %v11416_v16, %s14508_s5  ;;  %v6732_v16 = vld [vmem:[%s13370_s3 + $0x70] sm:$0xff] }
 0x757   : > { %7036 = vperm.xlu2 %11075, %v7011_v17   ;;  %10277 = vmatmul.msk.bf16.gmra.mxu1 %vm6082_vm13, %v6046_v15 }
 0x758   : > { %v11323_v28 = vpop.permute.xlu0 %11322 }
 0x759   : > { %v11313_v21 = vpop.permute.xlu1 %11312  ;;  %v11325_v53 = vunpack.i.h.bf16 %v11323_v28  ;;  %v11324_v33 = vunpack.i.l.bf16 %v11323_v28  ;;  %v7022_v28 = vld [vmem:[%s13392_s6 + $0x78] sm:$0xff] }
 0x75a   : > { %v11315_v23 = vunpack.i.h.bf16 %v11313_v21  ;;  %v11314_v24 = vunpack.i.l.bf16 %v11313_v21  ;;  %v5169_v21 = vld [vmem:[%s13281_s9 + $0x88] sm:$0xff] }
 0x75c   : > { %v5956_v26 = vsel %vm2900_vm9, %v5163_v20, %v11315_v23  ;;  %v5955_v27 = vsel %vm2900_vm9, %v5162_v44, %v11314_v24  ;;  %v5168_v20 = vld [vmem:[%s13281_s9 + $0x80] sm:$0xff]  ;;  %v11363_v23 = vpop.permute.xlu2 %11362 }
 0x75d   : > { %v5988_v30 = vsel %vm3013_vm10, %v5956_v26, %v11320_v25  ;;  %v5987_v32 = vsel %vm3013_vm10, %v5955_v27, %v11319_v0  ;;  %v11365_v0 = vunpack.i.h.bf16 %v11363_v23  ;;  %v11364_v26 = vunpack.i.l.bf16 %v11363_v23 }
 0x75e   : > { %v6020_v12 = vsel %vm6009_vm12, %v5987_v32, %v11324_v33  ;;  %v6021_v35 = vsel %vm6009_vm12, %v5988_v30, %v11325_v53 }
 0x75f   : > { %6756 = vperm.xlu2 %11075, %v6725_v1   ;;  %v6047_v57 = vpack.c.bf16 %v6021_v35, %v6020_v12 }
 0x767   : > { %6759 = vperm.xlu2 %11075, %v6726_v37   ;;  %10278 = vmatmul.msk.bf16.gmra.mxu1 %vm6082_vm13, %v6047_v57  ;;  %v13452_v37 = vld [vmem:[%s14516_s23] ss:$0 sm:$0xff] }
 0x768   : > { %v11338_v51 = vpop.permute.xlu0 %11337 }
 0x769   : > { %v11328_v40 = vpop.permute.xlu1 %11327  ;;  %v11340_v55 = vunpack.i.h.bf16 %v11338_v51  ;;  %v11339_v29 = vunpack.i.l.bf16 %v11338_v51 }
 0x76a   : > { %v11330_v42 = vunpack.i.h.bf16 %v11328_v40  ;;  %v11329_v45 = vunpack.i.l.bf16 %v11328_v40 }
 0x76c   : > { %v5958_v48 = vsel %vm2900_vm9, %v5165_v39, %v11330_v42  ;;  %v5957_v49 = vsel %vm2900_vm9, %v5164_v36, %v11329_v45 }
 0x76d   : > { %v5990_v52 = vsel %vm3013_vm10, %v5958_v48, %v11335_v46  ;;  %v5989_v54 = vsel %vm3013_vm10, %v5957_v49, %v11334_v47 }
 0x76e   : > { %v6022_v38 = vsel %vm6009_vm12, %v5989_v54, %v11339_v29  ;;  %v6023_v56 = vsel %vm6009_vm12, %v5990_v52, %v11340_v55  ;;  %v5170_v52 = vld [vmem:[%s13281_s9 + $0x90] sm:$0xff]  ;;  %v5171_v54 = vld [vmem:[%s13281_s9 + $0x98] sm:$0xff] }
 0x76f   : > { %7051 = vperm.xlu2 %11075, %v7016_v50   ;;  %v6048_v59 = vpack.c.bf16 %v6023_v56, %v6022_v38  ;;  %v11378_v50 = vpop.permute.xlu2 %11377 }
 0x770   : > { %v11380_v29 = vunpack.i.h.bf16 %v11378_v50  ;;  %v11379_v38 = vunpack.i.l.bf16 %v11378_v50 }
 0x777   : > { %7054 = vperm.xlu2 %11075, %v7017_v58   ;;  %10279 = vmatmul.msk.bf16.gmra.mxu1 %vm6082_vm13, %v6048_v59 }
 0x778   : > { %v11353_v19 = vpop.permute.xlu0 %11352 }
 0x779   : > { %v11343_v63 = vpop.permute.xlu1 %11342  ;;  %v11355_v18 = vunpack.i.h.bf16 %v11353_v19  ;;  %v11354_v13 = vunpack.i.l.bf16 %v11353_v19  ;;  %v11393_v19 = vpop.permute.xlu2 %11392 }
 0x77a   : > { %v11345_v61 = vunpack.i.h.bf16 %v11343_v63  ;;  %v11344_v3 = vunpack.i.l.bf16 %v11343_v63 }
 0x77c   : > { %v5960_v10 = vsel %vm2900_vm9, %v5167_v62, %v11345_v61  ;;  %v5959_v7 = vsel %vm2900_vm9, %v5166_v60, %v11344_v3 }
 0x77d   : > { %v5992_v8 = vsel %vm3013_vm10, %v5960_v10, %v11350_v4  ;;  %v5991_v11 = vsel %vm3013_vm10, %v5959_v7, %v11349_v5 }
 0x77e   : > { %v6024_v14 = vsel %vm6009_vm12, %v5991_v11, %v11354_v13  ;;  %v6025_v15 = vsel %vm6009_vm12, %v5992_v8, %v11355_v18  ;;  %v5173_v11 = vld [vmem:[%s13281_s9 + $0xa8] sm:$0xff]  ;;  %v11395_v13 = vunpack.i.h.bf16 %v11393_v19 }
 0x77f   : > { %6774 = vperm.xlu2 %11075, %v6731_v6   ;;  %v6049_v17 = vpack.c.bf16 %v6025_v15, %v6024_v14  ;;  %v11394_v14 = vunpack.i.l.bf16 %v11393_v19  ;;  %v5172_v15 = vld [vmem:[%s13281_s9 + $0xa0] sm:$0xff] }
 0x787   : > { %6777 = vperm.xlu2 %11075, %v6732_v16   ;;  %10280 = vmatmul.msk.bf16.gmra.mxu1 %vm6082_vm13, %v6049_v17 }
 0x788   : > { %v5137_v44 = vpop.f32.mrf.mxu3  ;;  %v11368_v30 = vpop.permute.xlu0 %11367 }
 0x789   : > { %v11358_v22 = vpop.permute.xlu1 %11357  ;;  %v11370_v12 = vunpack.i.h.bf16 %v11368_v30  ;;  %v11369_v35 = vunpack.i.l.bf16 %v11368_v30 }
 0x78a   : > { %v11360_v24 = vunpack.i.h.bf16 %v11358_v22  ;;  %v11359_v25 = vunpack.i.l.bf16 %v11358_v22 }
 0x78c   : > { %v5962_v27 = vsel %vm2900_vm9, %v5169_v21, %v11360_v24  ;;  %v5961_v1 = vsel %vm2900_vm9, %v5168_v20, %v11359_v25 }
 0x78d   : > { %v6144_v32 = vpop.f32.mrf.mxu1  ;;  %v5994_v53 = vsel %vm3013_vm10, %v5962_v27, %v11365_v0  ;;  %v5993_v33 = vsel %vm3013_vm10, %v5961_v1, %v11364_v26 }
 0x78e   : > { %v6026_v39 = vsel %vm6009_vm12, %v5993_v33, %v11369_v35  ;;  %v6027_v40 = vsel %vm6009_vm12, %v5994_v53, %v11370_v12  ;;  %v6145_v41 = vadd.f32 %v13452_v37, %v6144_v32 }
 0x78f   : > { %7069 = vperm.xlu2 %11075, %v7022_v28   ;;  %v6050_v45 = vpack.c.bf16 %v6027_v40, %v6026_v39  ;;  %v11408_v39 = vpop.permute.xlu2 %11407 }
 0x790   : > { %v5139_v57 = vpop.f32.mrf.mxu3  ;;  %v6224_v47 = vmax.f32 %v6145_v41, 0.0  ;;  %v5174_v41 = vld [vmem:[%s13281_s9 + $0xb0] sm:$0xff] }
 0x791   : > { %v11431_v36 = vpack.i.bf16 %v5139_v57, %v5137_v44 }
 0x793   : > { %11432 = vrot.lane.b32.xlu1 %v11431_v36, %s14508_s5 }
 0x795   : > { %v6146_v42 = vpop.f32.mrf.mxu1 }
 0x796   : > { %v6147_v46 = vadd.f32 %v13452_v37, %v6146_v42  ;;  %v5175_v42 = vld [vmem:[%s13281_s9 + $0xb8] sm:$0xff] }
 0x797   : > { %10281 = vmatmul.msk.bf16.gmra.mxu1 %vm6082_vm13, %v6050_v45 }
 0x798   : > { %v6225_v48 = vmax.f32 %v6147_v46, 0.0  ;;  %v5509_v49 = vpop.f32.mrf.mxu2  ;;  %v11410_v46 = vunpack.i.h.bf16 %v11408_v39 }
 0x799   : > { %v11383_v59 = vpop.permute.xlu0 %11382 }
 0x79a   : > { %v6256_v51 = vpack.c.bf16 %v6225_v48, %v6224_v47  ;;  %v11373_v55 = vpop.permute.xlu1 %11372  ;;  %v11385_v31 = vunpack.i.h.bf16 %v11383_v59  ;;  %v11384_v2 = vunpack.i.l.bf16 %v11383_v59  ;;  %v11409_v47 = vunpack.i.l.bf16 %v11408_v39  ;;  %v6723_v39 = vld [vmem:[%s13370_s3 + $0x28] sm:$0xff] }
 0x79b   : > { %v11375_v56 = vunpack.i.h.bf16 %v11373_v55  ;;  %v11374_v58 = vunpack.i.l.bf16 %v11373_v55 }
 0x79c   : > { %10297 = vmatmul.msk.bf16.vlgmr.msra.gmra.mxu0 %vm6292_vm1, %v6256_v51 }
 0x79d   : > { %v5964_v9 = vsel %vm2900_vm9, %v5171_v54, %v11375_v56  ;;  %v5963_v60 = vsel %vm2900_vm9, %v5170_v52, %v11374_v58 }
 0x79e   : > { %v5996_v62 = vsel %vm3013_vm10, %v5964_v9, %v11380_v29  ;;  %v5995_v63 = vsel %vm3013_vm10, %v5963_v60, %v11379_v38 }
 0x79f   : > { %v6028_v4 = vsel %vm6009_vm12, %v5995_v63, %v11384_v2  ;;  %v6029_v5 = vsel %vm6009_vm12, %v5996_v62, %v11385_v31 }
 0x7a0   : > { %v5511_v61 = vpop.f32.mrf.mxu2  ;;  %v6051_v7 = vpack.c.bf16 %v6029_v5, %v6028_v4 }
 0x7a1   : > { %v11426_v3 = vpack.i.bf16 %v5511_v61, %v5509_v49 }
 0x7a3   : > { %v6149_v10 = vpop.f32.mrf.mxu1  ;;  %11427 = vrot.lane.b32.xlu0 %v11426_v3, %s14517_s8 }
 0x7a4   : > { %v6150_v8 = vadd.f32 %v13452_v37, %v6149_v10 }
 0x7a6   : > { %v6226_v23 = vmax.f32 %v6150_v8, 0.0 }
 0x7a7   : > { %10282 = vmatmul.msk.bf16.gmra.mxu1 %vm6082_vm13, %v6051_v7 }
 0x7a9   : > { %v5514_v6 = vpop.f32.mrf.mxu2  ;;  %v11398_v21 = vpop.permute.xlu0 %11397 }
 0x7aa   : > { %v11388_v18 = vpop.permute.xlu1 %11387  ;;  %v11400_v27 = vunpack.i.h.bf16 %v11398_v21  ;;  %v11399_v1 = vunpack.i.l.bf16 %v11398_v21 }
 0x7ab   : > { %v11390_v16 = vunpack.i.h.bf16 %v11388_v18  ;;  %v6151_v17 = vpop.f32.mrf.mxu1  ;;  %v11389_v44 = vunpack.i.l.bf16 %v11388_v18 }
 0x7ac   : > { %v6152_v20 = vadd.f32 %v13452_v37, %v6151_v17 }
 0x7ad   : > { %v5966_v22 = vsel %vm2900_vm9, %v5173_v11, %v11390_v16  ;;  %v5965_v24 = vsel %vm2900_vm9, %v5172_v15, %v11389_v44 }
 0x7ae   : > { %v6227_v25 = vmax.f32 %v6152_v20, 0.0  ;;  %v5998_v0 = vsel %vm3013_vm10, %v5966_v22, %v11395_v13  ;;  %v5997_v26 = vsel %vm3013_vm10, %v5965_v24, %v11394_v14  ;;  %v6718_v20 = vld [vmem:[%s13370_s3] sm:$0xff] }
 0x7af   : > { %v6030_v53 = vsel %vm6009_vm12, %v5997_v26, %v11399_v1  ;;  %v6031_v33 = vsel %vm6009_vm12, %v5998_v0, %v11400_v27  ;;  %v7007_v0 = vld [vmem:[%s13392_s6] sm:$0xff]  ;;  %v7008_v27 = vld [vmem:[%s13392_s6 + $0x8] sm:$0xff] }
 0x7b0   : > { %v6257_v28 = vpack.c.bf16 %v6227_v25, %v6226_v23  ;;  %v6052_v35 = vpack.c.bf16 %v6031_v33, %v6030_v53 }
 0x7b1   : > { %v5516_v30 = vpop.f32.mrf.mxu2 }
 0x7b2   : > { %v11441_v32 = vpack.i.bf16 %v5516_v30, %v5514_v6  ;;  %10298 = vmatmul.msk.bf16.gmra.mxu0 %vm6292_vm1, %v6257_v28  ;;  %v6721_v28 = vld [vmem:[%s13370_s3 + $0x18] sm:$0xff]  ;;  %v7009_v30 = vld [vmem:[%s13392_s6 + $0x10] sm:$0xff] }
 0x7b3   : > { %v6154_v12 = vpop.f32.mrf.mxu1 }
 0x7b4   : > { %11442 = vrot.lane.b32.xlu0 %v11441_v32, %s14517_s8  ;;  %v6155_v40 = vadd.f32 %v13452_v37, %v6154_v12 }
 0x7b6   : > { %v6228_v29 = vmax.f32 %v6155_v40, 0.0 }
 0x7b7   : > { %10283 = vmatmul.msk.bf16.gmra.mxu1 %vm6082_vm13, %v6052_v35 }
 0x7b8   : > { %v5142_v57 = vpop.f32.mrf.mxu3  ;;  %v11413_v52 = vpop.permute.xlu0 %11412 }
 0x7b9   : > { %v5519_v36 = vpop.f32.mrf.mxu2  ;;  %v11415_v59 = vunpack.i.h.bf16 %v11413_v52  ;;  %v11414_v9 = vunpack.i.l.bf16 %v11413_v52  ;;  %v7014_v52 = vld [vmem:[%s13392_s6 + $0x38] sm:$0xff] }
 0x7ba   : > { %v11403_v45 = vpop.permute.xlu1 %11402 }
 0x7bb   : > { %v11405_v48 = vunpack.i.h.bf16 %v11403_v45  ;;  %v11404_v49 = vunpack.i.l.bf16 %v11403_v45  ;;  %v6156_v50 = vpop.f32.mrf.mxu1 }
 0x7bc   : > { %v6157_v51 = vadd.f32 %v13452_v37, %v6156_v50  ;;  %v7013_v50 = vld [vmem:[%s13392_s6 + $0x30] sm:$0xff] }
 0x7bd   : > { %v5968_v54 = vsel %vm2900_vm9, %v5175_v42, %v11405_v48  ;;  %v5967_v55 = vsel %vm2900_vm9, %v5174_v41, %v11404_v49  ;;  %v7012_v41 = vld [vmem:[%s13392_s6 + $0x28] sm:$0xff]  ;;  %v6724_v42 = vld [vmem:[%s13370_s3 + $0x30] sm:$0xff] }
 0x7be   : > { %v6229_v38 = vmax.f32 %v6157_v51, 0.0  ;;  %v6000_v56 = vsel %vm3013_vm10, %v5968_v54, %v11410_v46  ;;  %v5999_v58 = vsel %vm3013_vm10, %v5967_v55, %v11409_v47  ;;  %v6727_v55 = vld [vmem:[%s13370_s3 + $0x48] sm:$0xff] }
 0x7bf   : > { %v6032_v61 = vsel %vm6009_vm12, %v5999_v58, %v11414_v9  ;;  %v6033_v3 = vsel %vm6009_vm12, %v6000_v56, %v11415_v59 }
 0x7c0   : > { %v6258_v60 = vpack.c.bf16 %v6229_v38, %v6228_v29  ;;  %v5144_v62 = vpop.f32.mrf.mxu3  ;;  %v6053_v5 = vpack.c.bf16 %v6033_v3, %v6032_v61  ;;  %v7015_v29 = vld [vmem:[%s13392_s6 + $0x40] sm:$0xff]  ;;  %v5177_v61 = vld [vmem:[%s13281_s9 + $0xc8] sm:$0xff] }
 0x7c1   : > { %v5521_v63 = vpop.f32.mrf.mxu2  ;;  %v11446_v31 = vpack.i.bf16 %v5144_v62, %v5142_v57  ;;  %v6722_v57 = vld [vmem:[%s13370_s3 + $0x20] sm:$0xff] }
 0x7c2   : > { %v11456_v2 = vpack.i.bf16 %v5521_v63, %v5519_v36  ;;  %10299 = vmatmul.msk.bf16.gmra.mxu0 %vm6292_vm1, %v6258_v60 }
 0x7c3   : > { %11447 = vrot.lane.b32.xlu1 %v11446_v31, %s14508_s5  ;;  %v6728_v31 = vld [vmem:[%s13370_s3 + $0x50] sm:$0xff] }
 0x7c4   : > { %11457 = vrot.lane.b32.xlu0 %v11456_v2, %s14517_s8  ;;  %v6159_v4 = vpop.f32.mrf.mxu1  ;;  %v5176_v2 = vld [vmem:[%s13281_s9 + $0xc0] sm:$0xff] }
 0x7c5   : > { %v6160_v7 = vadd.f32 %v13452_v37, %v6159_v4  ;;  %v6729_v4 = vld [vmem:[%s13370_s3 + $0x58] sm:$0xff] }
 0x7c7   : > { %10284 = vmatmul.msk.bf16.gmra.mxu1 %vm6082_vm13, %v6053_v5  ;;  %v6230_v8 = vmax.f32 %v6160_v7, 0.0  ;;  %v11423_v5 = vpop.permute.xlu2 %11422 }
 0x7c8   : > { %v11418_v58 = vpop.permute.xlu1 %11417  ;;  %v11424_v7 = vunpack.i.l.bf16 %v11423_v5 }
 0x7c9   : > { %v5147_v10 = vpop.f32.mrf.mxu3  ;;  %v11420_v62 = vunpack.i.h.bf16 %v11418_v58  ;;  %v11419_v63 = vunpack.i.l.bf16 %v11418_v58  ;;  %v6733_v58 = vld [vmem:[%s13370_s3 + $0x78] sm:$0xff] }
 0x7cc   : > { %v6161_v6 = vpop.f32.mrf.mxu1 }
 0x7cd   : > { %v6162_v19 = vadd.f32 %v13452_v37, %v6161_v6  ;;  %v5970_v6 = vsel %vm2900_vm9, %v5177_v61, %v11420_v62  ;;  %v7021_v62 = vld [vmem:[%s13392_s6 + $0x70] sm:$0xff] }
 0x7cf   : > { %v6231_v11 = vmax.f32 %v6162_v19, 0.0  ;;  %v5969_v19 = vsel %vm2900_vm9, %v5176_v2, %v11419_v63 }
 0x7d0   : > { %v5524_v18 = vpop.f32.mrf.mxu2 }
 0x7d1   : > { %v6259_v13 = vpack.c.bf16 %v6231_v11, %v6230_v8  ;;  %v5149_v14 = vpop.f32.mrf.mxu3 }
 0x7d2   : > { %v11461_v15 = vpack.i.bf16 %v5149_v14, %v5147_v10  ;;  %v11425_v10 = vunpack.i.h.bf16 %v11423_v5  ;;  %v6001_v14 = vsel %vm3013_vm10, %v5969_v19, %v11424_v7  ;;  %v7185_v7 = vld [vmem:[%s13565_s13 + $0x8] sm:$0xff] }
 0x7d3   : > { %10300 = vmatmul.msk.bf16.gmra.mxu0 %vm6292_vm1, %v6259_v13 }
 0x7d4   : > { %v6164_v16 = vpop.f32.mrf.mxu1  ;;  %11462 = vrot.lane.b32.xlu1 %v11461_v15, %s14508_s5  ;;  %v6002_v15 = vsel %vm3013_vm10, %v5970_v6, %v11425_v10  ;;  %v7184_v10 = vld [vmem:[%s13565_s13] sm:$0xff] }
 0x7d5   : > { %v6165_v21 = vadd.f32 %v13452_v37, %v6164_v16 }
 0x7d7   : > { %v6232_v24 = vmax.f32 %v6165_v21, 0.0 }
 0x7d8   : > { %v5526_v17 = vpop.f32.mrf.mxu2 }
 0x7d9   : > { %v11471_v44 = vpack.i.bf16 %v5526_v17, %v5524_v18 }
 0x7db   : > { %11472 = vrot.lane.b32.xlu0 %v11471_v44, %s14517_s8  ;;  %s14518_s8 = sld [smem:[#allocation16_spill]] }
 0x7dc   : > { %v6166_v22 = vpop.f32.mrf.mxu1  ;;  %6735 = vperm.xlu1 %11074, %v6718_v20   ;;  %v7018_v20 = vld [vmem:[%s13392_s6 + $0x58] sm:$0xff] }
 0x7dd   : > { %v6167_v23 = vadd.f32 %v13452_v37, %v6166_v22 }
 0x7df   : > { %v6233_v25 = vmax.f32 %v6167_v23, 0.0  ;;  %v6730_v23 = vld [vmem:[%s13370_s3 + $0x60] sm:$0xff] }
 0x7e1   : > { %v6260_v26 = vpack.c.bf16 %v6233_v25, %v6232_v24  ;;  %v13537_v16 = vld [vmem:[%s14518_s8] ss:$0 sm:$0xff] }
 0x7e3   : > { %10301 = vmatmul.msk.bf16.gmra.mxu0 %vm6292_vm1, %v6260_v26  ;;  %7024 = vperm.xlu0 %11073, %v7007_v0  }
 0x7e4   : > { %v6169_v1 = vpop.f32.mrf.mxu1  ;;  %7027 = vperm.xlu1 %11074, %v7008_v27  }
 0x7e5   : > { %v6170_v32 = vadd.f32 %v13452_v37, %v6169_v1 }
 0x7e7   : > { %v6234_v12 = vmax.f32 %v6170_v32, 0.0  ;;  %v7019_v32 = vld [vmem:[%s13392_s6 + $0x60] sm:$0xff] }
 0x7eb   : > { %6744 = vperm.xlu0 %11073, %v6721_v28  }
 0x7ec   : > { %v6171_v53 = vpop.f32.mrf.mxu1  ;;  %7030 = vperm.xlu1 %11074, %v7009_v30  }
 0x7ed   : > { %v6172_v33 = vadd.f32 %v13452_v37, %v6171_v53 }
 0x7ef   : > { %v6235_v35 = vmax.f32 %v6172_v33, 0.0 }
 0x7f1   : > { %v6261_v36 = vpack.c.bf16 %v6235_v35, %v6234_v12  ;;  %v7020_v35 = vld [vmem:[%s13392_s6 + $0x68] sm:$0xff] }
 0x7f3   : > { %10302 = vmatmul.msk.bf16.gmra.mxu0 %vm6292_vm1, %v6261_v36  ;;  %6747 = vperm.xlu0 %11073, %v6722_v57   ;;  %v5179_v57 = vld [vmem:[%s13281_s9 + $0xd8] sm:$0xff] }
 0x7f4   : > { %v6174_v40 = vpop.f32.mrf.mxu1  ;;  %6750 = vperm.xlu1 %11074, %v6723_v39  }
 0x7f5   : > { %v6175_v45 = vadd.f32 %v13452_v37, %v6174_v40  ;;  %v11438_v40 = vpop.permute.xlu2 %11437 }
 0x7f7   : > { %v6236_v48 = vmax.f32 %v6175_v45, 0.0  ;;  %v11440_v45 = vunpack.i.h.bf16 %v11438_v40 }
 0x7fb   : > { %7039 = vperm.xlu0 %11073, %v7012_v41   ;;  %v5178_v41 = vld [vmem:[%s13281_s9 + $0xd0] sm:$0xff] }
 0x7fc   : > { %v6176_v46 = vpop.f32.mrf.mxu1  ;;  %6753 = vperm.xlu1 %11074, %v6724_v42  }
 0x7fd   : > { %v6177_v47 = vadd.f32 %v13452_v37, %v6176_v46 }
 0x7ff   : > { %v6237_v49 = vmax.f32 %v6177_v47, 0.0 }
 0x801   : > { %v6262_v51 = vpack.c.bf16 %v6237_v49, %v6236_v48  ;;  %v11439_v48 = vunpack.i.l.bf16 %v11438_v40 }
 0x803   : > { %10303 = vmatmul.msk.bf16.gmra.mxu0 %vm6292_vm1, %v6262_v51  ;;  %7042 = vperm.xlu0 %11073, %v7013_v50  }
 0x804   : > { %v6179_v54 = vpop.f32.mrf.mxu1  ;;  %7045 = vperm.xlu1 %11074, %v7014_v52  }
 0x805   : > { %v6180_v38 = vadd.f32 %v13452_v37, %v6179_v54  ;;  %v11433_v27 = vpop.permute.xlu1 %11432 }
 0x806   : > { %v11435_v53 = vunpack.i.h.bf16 %v11433_v27  ;;  %v11434_v36 = vunpack.i.l.bf16 %v11433_v27 }
 0x807   : > { %v6238_v9 = vmax.f32 %v6180_v38, 0.0 }
 0x808   : > { %v5972_v49 = vsel %vm2900_vm9, %v5179_v57, %v11435_v53  ;;  %v5971_v50 = vsel %vm2900_vm9, %v5178_v41, %v11434_v36 }
 0x80b   : > { %6762 = vperm.xlu0 %11073, %v6727_v55  }
 0x80c   : > { %v6181_v56 = vpop.f32.mrf.mxu1  ;;  %7048 = vperm.xlu1 %11074, %v7015_v29  }
 0x80d   : > { %v6182_v59 = vadd.f32 %v13452_v37, %v6181_v56  ;;  %v6004_v56 = vsel %vm3013_vm10, %v5972_v49, %v11440_v45 }
 0x80f   : > { %v6239_v60 = vmax.f32 %v6182_v59, 0.0 }
 0x811   : > { %v6263_v3 = vpack.c.bf16 %v6239_v60, %v6238_v9  ;;  %v6003_v9 = vsel %vm3013_vm10, %v5971_v50, %v11439_v48 }
 0x813   : > { %10304 = vmatmul.msk.bf16.gmra.mxu0 %vm6292_vm1, %v6263_v3  ;;  %6765 = vperm.xlu0 %11073, %v6728_v31  }
 0x814   : > { %v6184_v8 = vpop.f32.mrf.mxu1  ;;  %6768 = vperm.xlu1 %11074, %v6729_v4  }
 0x815   : > { %v11428_v11 = vpop.permute.xlu0 %11427  ;;  %v6185_v24 = vadd.f32 %v13452_v37, %v6184_v8 }
 0x816   : > { %v11430_v18 = vunpack.i.h.bf16 %v11428_v11  ;;  %v11429_v13 = vunpack.i.l.bf16 %v11428_v11 }
 0x817   : > { %v6240_v1 = vmax.f32 %v6185_v24, 0.0  ;;  %v7186_v24 = vld [vmem:[%s13565_s13 + $0x10] sm:$0xff] }
 0x818   : > { %v6034_v17 = vsel %vm6009_vm12, %v6001_v14, %v11429_v13  ;;  %v6035_v44 = vsel %vm6009_vm12, %v6002_v15, %v11430_v18  ;;  %v11481_v14 = vpack.i.bf16 %v7185_v7, %v7184_v10 }
 0x819   : > { %v6054_v21 = vpack.c.bf16 %v6035_v44, %v6034_v17  ;;  %v6350_v22 = vpop.f32.mrf.mxu0 }
 0x81a   : > { %v6351_v25 = vadd.f32 %v13537_v16, %v6350_v22 }
 0x81b   : > { %7057 = vperm.xlu0 %11073, %v7018_v20   ;;  %10285 = vmatmul.msk.bf16.gmra.mxu1 %vm6082_vm13, %v6054_v21  ;;  %v11453_v21 = vpop.permute.xlu2 %11452 }
 0x81c   : > { %v6186_v0 = vpop.f32.mrf.mxu1  ;;  %6771 = vperm.xlu1 %11074, %v6730_v23   ;;  %v6430_v28 = vmax.f32 %v6351_v25, 0.0  ;;  %v7187_v25 = vld [vmem:[%s13565_s13 + $0x18] sm:$0xff] }
 0x81d   : > { %v6187_v26 = vadd.f32 %v13452_v37, %v6186_v0  ;;  %v11455_v0 = vunpack.i.h.bf16 %v11453_v21  ;;  %v11496_v40 = vpack.i.bf16 %v7187_v25, %v7186_v24  ;;  %v7190_v25 = vld [vmem:[%s13565_s13 + $0x30] sm:$0xff] }
 0x81e   : > { %v6462_v42 = vsel %vm6292_vm1, %v6430_v28, -inf  ;;  %v5181_v28 = vld [vmem:[%s13281_s9 + $0xe8] sm:$0xff] }
 0x81f   : > { %v6241_v30 = vmax.f32 %v6187_v26, 0.0  ;;  %v6463_v51 = vrot.slane %v6462_v42, 4  ;;  %v11454_v26 = vunpack.i.l.bf16 %v11453_v21 }
 0x821   : > { %v6264_v33 = vpack.c.bf16 %v6241_v30, %v6240_v1  ;;  %v6352_v12 = vpop.f32.mrf.mxu0  ;;  %v6464_v63 = vmax.f32 %v6462_v42, %v6463_v51  ;;  %v5180_v1 = vld [vmem:[%s13281_s9 + $0xe0] sm:$0xff] }
 0x822   : > { %v6353_v39 = vadd.f32 %v13537_v16, %v6352_v12 }
 0x823   : > { %10305 = vmatmul.msk.bf16.gmra.mxu0 %vm6292_vm1, %v6264_v33  ;;  %7060 = vperm.xlu0 %11073, %v7019_v32   ;;  %v6465_v6 = vrot.slane %v6464_v63, 2 }
 0x824   : > { %v6431_v46 = vmax.f32 %v6353_v39, 0.0  ;;  %v6189_v47 = vpop.f32.mrf.mxu1  ;;  %7063 = vperm.xlu1 %11074, %v7020_v35  }
 0x825   : > { %v6190_v61 = vadd.f32 %v13452_v37, %v6189_v47  ;;  %v6466_v17 = vmax.f32 %v6464_v63, %v6465_v6  ;;  %v7188_v63 = vld [vmem:[%s13565_s13 + $0x20] sm:$0xff] }
 0x826   : > { %v6469_v52 = vsel %vm6292_vm1, %v6431_v46, -inf  ;;  %v11443_v54 = vpop.permute.xlu0 %11442 }
 0x827   : > { %v6470_v55 = vrot.slane %v6469_v52, 4  ;;  %v11445_v29 = vunpack.i.h.bf16 %v11443_v54  ;;  %v11444_v38 = vunpack.i.l.bf16 %v11443_v54  ;;  %v6242_v8 = vmax.f32 %v6190_v61, 0.0 }
 0x828   : > { %v6467_v32 = vrot.slane %v6466_v17, 1 }
 0x829   : > { %v6471_v59 = vmax.f32 %v6469_v52, %v6470_v55  ;;  %v6037_v60 = vsel %vm6009_vm12, %v6004_v56, %v11445_v29  ;;  %v6036_v31 = vsel %vm6009_vm12, %v6003_v9, %v11444_v38 }
 0x82a   : > { %v6055_v3 = vpack.c.bf16 %v6037_v60, %v6036_v31  ;;  %v6468_v50 = vmax.f32 %v6466_v17, %v6467_v32  ;;  %v7189_v31 = vld [vmem:[%s13565_s13 + $0x28] sm:$0xff]  ;;  %v5183_v32 = vld [vmem:[%s13281_s9 + $0xf8] sm:$0xff] }
 0x82b   : > { %v6472_v2 = vrot.slane %v6471_v59, 2  ;;  %6780 = vperm.xlu0 %11073, %v6733_v58  }
 0x82c   : > { %v6191_v4 = vpop.f32.mrf.mxu1  ;;  %7066 = vperm.xlu1 %11074, %v7021_v62   ;;  %10286 = vmatmul.msk.bf16.gmra.mxu1 %vm6082_vm13, %v6055_v3 }
 0x82d   : > { %v6192_v5 = vadd.f32 %v13452_v37, %v6191_v4  ;;  %v6473_v19 = vmax.f32 %v6471_v59, %v6472_v2  ;;  %v6686_v2 = vpack.c.bf16 %v6468_v50, %v6468_v50 }
 0x82f   : > { %v6243_v11 = vmax.f32 %v6192_v5, 0.0  ;;  %v6355_v18 = vpop.f32.mrf.mxu0  ;;  %v6474_v20 = vrot.slane %v6473_v19, 1 }
 0x830   : > { %v6356_v13 = vadd.f32 %v13537_v16, %v6355_v18 }
 0x831   : > { %v6265_v15 = vpack.c.bf16 %v6243_v11, %v6242_v8  ;;  %v6475_v35 = vmax.f32 %v6473_v19, %v6474_v20  ;;  %v11511_v19 = vpack.i.bf16 %v7189_v31, %v7188_v63 }
 0x832   : > { %v6432_v44 = vmax.f32 %v6356_v13, 0.0  ;;  %v6854_v13 = vunpack.c.l.b16 %v6686_v2 }
 0x833   : > { %10306 = vmatmul.msk.bf16.gmra.mxu0 %vm6292_vm1, %v6265_v15  ;;  %v6687_v56 = vpack.c.bf16 %v6475_v35, %v6475_v35  ;;  %v11468_v35 = vpop.permute.xlu2 %11467 }
 0x834   : > { %v6476_v22 = vsel %vm6292_vm1, %v6432_v44, -inf  ;;  %v6194_v23 = vpop.f32.mrf.mxu1  ;;  %11482 = vrot.lane.b32.xlu1 %v11481_v14, %s11823_s12 }
 0x835   : > { %v6477_v27 = vrot.slane %v6476_v22, 4  ;;  %v11448_v30 = vpop.permute.xlu1 %11447  ;;  %v6195_v29 = vadd.f32 %v13452_v37, %v6194_v23  ;;  %v6855_v7 = vunpack.c.l.b16 %v6687_v56 }
 0x836   : > { %v11458_v53 = vpop.permute.xlu0 %11457  ;;  %v11450_v33 = vunpack.i.h.bf16 %v11448_v30  ;;  %v11449_v12 = vunpack.i.l.bf16 %v11448_v30 }
 0x837   : > { %v6478_v57 = vmax.f32 %v6476_v22, %v6477_v27  ;;  %v11460_v36 = vunpack.i.h.bf16 %v11458_v53  ;;  %v6357_v39 = vpop.f32.mrf.mxu0  ;;  %v11459_v41 = vunpack.i.l.bf16 %v11458_v53  ;;  %v6244_v3 = vmax.f32 %v6195_v29, 0.0  ;;  %v7192_v29 = vld [vmem:[%s13565_s13 + $0x40] sm:$0xff] }
 0x838   : > { %v5974_v42 = vsel %vm2900_vm9, %v5181_v28, %v11450_v33  ;;  %v5973_v45 = vsel %vm2900_vm9, %v5180_v1, %v11449_v12  ;;  %v6358_v46 = vadd.f32 %v13537_v16, %v6357_v39  ;;  %v6886_v44 = vsel %vm4944_vm2, %v6855_v7, %v6854_v13 }
 0x839   : > { %v6479_v47 = vrot.slane %v6478_v57, 2  ;;  %v6006_v48 = vsel %vm3013_vm10, %v5974_v42, %v11455_v0  ;;  %v6005_v49 = vsel %vm3013_vm10, %v5973_v45, %v11454_v26  ;;  %v7191_v0 = vld [vmem:[%s13565_s13 + $0x38] sm:$0xff]  ;;  %v11470_v39 = vunpack.i.h.bf16 %v11468_v35 }
 0x83a   : > { %v6433_v51 = vmax.f32 %v6358_v46, 0.0  ;;  %v6038_v52 = vsel %vm6009_vm12, %v6005_v49, %v11459_v41  ;;  %v6039_v54 = vsel %vm6009_vm12, %v6006_v48, %v11460_v36  ;;  %v11526_v12 = vpack.i.bf16 %v7191_v0, %v7190_v25  ;;  %v5182_v36 = vld [vmem:[%s13281_s9 + $0xf0] sm:$0xff]  ;;  %s14520_s9 = sld [smem:[#allocation25_spill]] }
 0x83b   : > { %v6480_v55 = vmax.f32 %v6478_v57, %v6479_v47  ;;  %v6056_v38 = vpack.c.bf16 %v6039_v54, %v6038_v52  ;;  %v11469_v42 = vunpack.i.l.bf16 %v11468_v35 }
 0x83c   : > { %v6483_v58 = vsel %vm6292_vm1, %v6433_v51, -inf  ;;  %v6196_v59 = vpop.f32.mrf.mxu1  ;;  %11497 = vrot.lane.b32.xlu1 %v11496_v40, %s11823_s12 }
 0x83d   : > { %v6481_v9 = vrot.slane %v6480_v55, 1  ;;  %v6484_v60 = vrot.slane %v6483_v58, 4  ;;  %v6197_v62 = vadd.f32 %v13452_v37, %v6196_v59  ;;  %10287 = vmatmul.msk.bf16.gmra.mxu1 %vm6082_vm13, %v6056_v38  ;;  %v7193_v38 = vld [vmem:[%s13565_s13 + $0x48] sm:$0xff] }
 0x83f   : > { %v6482_v61 = vmax.f32 %v6480_v55, %v6481_v9  ;;  %v6485_v4 = vmax.f32 %v6483_v58, %v6484_v60  ;;  %v6245_v5 = vmax.f32 %v6197_v62, 0.0  ;;  %v6360_v10 = vpop.f32.mrf.mxu0 }
 0x840   : > { %v6361_v6 = vadd.f32 %v13537_v16, %v6360_v10  ;;  %s13645_s3 = scalar_lea.vmem %s14520_s9, %s12139_s22  ;;  %s14522_s9 = sld [smem:[#allocation21_spill]] }
 0x841   : > { %v6688_v8 = vpack.c.bf16 %v6482_v61, %v6482_v61  ;;  %v6486_v11 = vrot.slane %v6485_v4, 2  ;;  %v6266_v18 = vpack.c.bf16 %v6245_v5, %v6244_v3 }
 0x842   : > { %v6434_v14 = vmax.f32 %v6361_v6, 0.0 }
 0x843   : > { %v6856_v15 = vunpack.c.l.b16 %v6688_v8  ;;  %v6487_v17 = vmax.f32 %v6485_v4, %v6486_v11  ;;  %10307 = vmatmul.msk.bf16.gmra.mxu0 %vm6292_vm1, %v6266_v18  ;;  %v11541_v4 = vpack.i.bf16 %v7193_v38, %v7192_v29 }
 0x844   : > { %v6490_v20 = vsel %vm6292_vm1, %v6434_v14, -inf  ;;  %v6199_v21 = vpop.f32.mrf.mxu1  ;;  %11512 = vrot.lane.b32.xlu1 %v11511_v19, %s11823_s12  ;;  %v7194_v14 = vld [vmem:[%s13565_s13 + $0x50] sm:$0xff] }
 0x845   : > { %v6887_v22 = vsel %vm4946_vm3, %v6856_v15, %v6886_v44  ;;  %v6488_v23 = vrot.slane %v6487_v17, 1  ;;  %v6491_v24 = vrot.slane %v6490_v20, 4  ;;  %v6200_v40 = vadd.f32 %v13452_v37, %v6199_v21  ;;  %v7195_v15 = vld [vmem:[%s13565_s13 + $0x58] sm:$0xff] }
 0x846   : > { %v11463_v26 = vpop.permute.xlu1 %11462 }
 0x847   : > { %v6492_v27 = vmax.f32 %v6490_v20, %v6491_v24  ;;  %v11465_v1 = vunpack.i.h.bf16 %v11463_v26  ;;  %v6362_v28 = vpop.f32.mrf.mxu0  ;;  %v6489_v30 = vmax.f32 %v6487_v17, %v6488_v23  ;;  %v11464_v53 = vunpack.i.l.bf16 %v11463_v26 }
 0x848   : > { %v6363_v33 = vadd.f32 %v13537_v16, %v6362_v28  ;;  %v6246_v56 = vmax.f32 %v6200_v40, 0.0  ;;  %v11556_v24 = vpack.i.bf16 %v7195_v15, %v7194_v14 }
 0x849   : > { %v6493_v57 = vrot.slane %v6492_v27, 2  ;;  %v5976_v46 = vsel %vm2900_vm9, %v5183_v32, %v11465_v1  ;;  %v6689_v47 = vpack.c.bf16 %v6489_v30, %v6489_v30  ;;  %v5975_v48 = vsel %vm2900_vm9, %v5182_v36, %v11464_v53  ;;  %v7197_v1 = vld [vmem:[%s13565_s13 + $0x68] sm:$0xff] }
 0x84a   : > { %v6435_v41 = vmax.f32 %v6363_v33, 0.0  ;;  %v6008_v9 = vsel %vm3013_vm10, %v5976_v46, %v11470_v39  ;;  %v6007_v31 = vsel %vm3013_vm10, %v5975_v48, %v11469_v42  ;;  %v7199_v42 = vld [vmem:[%s13565_s13 + $0x78] sm:$0xff] }
 0x84b   : > { %v6494_v45 = vmax.f32 %v6492_v27, %v6493_v57  ;;  %v6857_v2 = vunpack.c.l.b16 %v6689_v47 }
 0x84c   : > { %v6497_v49 = vsel %vm6292_vm1, %v6435_v41, -inf  ;;  %v6201_v50 = vpop.f32.mrf.mxu1  ;;  %11527 = vrot.lane.b32.xlu1 %v11526_v12, %s11823_s12  ;;  %v7198_v41 = vld [vmem:[%s13565_s13 + $0x70] sm:$0xff] }
 0x84d   : > { %v6495_v51 = vrot.slane %v6494_v45, 1  ;;  %v6498_v52 = vrot.slane %v6497_v49, 4  ;;  %v6202_v54 = vadd.f32 %v13452_v37, %v6201_v50  ;;  %v11473_v55 = vpop.permute.xlu0 %11472  ;;  %v6888_v13 = vsel %vm4948_vm5, %v6857_v2, %v6887_v22  ;;  %v7196_v22 = vld [vmem:[%s13565_s13 + $0x60] sm:$0xff]  ;;  %s14521_s13 = sld [smem:[#allocation27_spill]] }
 0x84e   : > { %v11475_v58 = vunpack.i.h.bf16 %v11473_v55  ;;  %v11474_v59 = vunpack.i.l.bf16 %v11473_v55  ;;  %v11571_v53 = vpack.i.bf16 %v7197_v1, %v7196_v22 }
 0x84f   : > { %v6496_v60 = vmax.f32 %v6494_v45, %v6495_v51  ;;  %v6499_v62 = vmax.f32 %v6497_v49, %v6498_v52  ;;  %v6247_v63 = vmax.f32 %v6202_v54, 0.0  ;;  %v11586_v49 = vpack.i.bf16 %v7199_v42, %v7198_v41 }
 0x850   : > { %v6040_v61 = vsel %vm6009_vm12, %v6007_v31, %v11474_v59  ;;  %v6041_v3 = vsel %vm6009_vm12, %v6008_v9, %v11475_v58  ;;  %v6365_v37 = vpop.f32.mrf.mxu0  ;;  %v7844_v59 = vld [vmem:[%s13645_s3 + $0x8] sm:$0xff] }
 0x851   : > { %v6690_v5 = vpack.c.bf16 %v6496_v60, %v6496_v60  ;;  %v6500_v10 = vrot.slane %v6499_v62, 2  ;;  %v6267_v7 = vpack.c.bf16 %v6247_v63, %v6246_v56  ;;  %v6057_v6 = vpack.c.bf16 %v6041_v3, %v6040_v61 }
 0x852   : > { %v6366_v19 = vadd.f32 %v13537_v16, %v6365_v37 }
 0x853   : > { %v6858_v8 = vunpack.c.l.b16 %v6690_v5  ;;  %v6501_v11 = vmax.f32 %v6499_v62, %v6500_v10  ;;  %10308 = vmatmul.msk.bf16.gmra.mxu0 %vm6292_vm1, %v6267_v7  ;;  %10288 = vmatmul.msk.bf16.gmra.mxu1 %vm6082_vm13, %v6057_v6  ;;  %v7845_v7 = vld [vmem:[%s13645_s3 + $0x10] sm:$0xff]  ;;  %s13655_s6 = scalar_lea.vmem %s14521_s13, %s12139_s22  ;;  %s14524_s13 = sld [smem:[#allocation18_spill]] }
 0x854   : > { %v6436_v18 = vmax.f32 %v6366_v19, 0.0  ;;  %11542 = vrot.lane.b32.xlu1 %v11541_v4, %s11823_s12  ;;  %v7996_v42 = vld [vmem:[%s13655_s6 + $0x20] sm:$0xff] }
 0x855   : > { %v6889_v17 = vsel %vm4950_vm0, %v6858_v8, %v6888_v13  ;;  %v6502_v44 = vrot.slane %v6501_v11, 1 }
 0x856   : > { %v6504_v20 = vsel %vm6292_vm1, %v6436_v18, -inf }
 0x857   : > { %v6505_v21 = vrot.slane %v6504_v20, 4  ;;  %v6503_v0 = vmax.f32 %v6501_v11, %v6502_v44 }
 0x858   : > { %v13626_v23 = vpop.f32.mrf.mxu0 }
 0x859   : > { %v6506_v25 = vmax.f32 %v6504_v20, %v6505_v21  ;;  %v6691_v28 = vpack.c.bf16 %v6503_v0, %v6503_v0  ;;  %v7995_v0 = vld [vmem:[%s13655_s6 + $0x18] sm:$0xff]  ;;  %v6368_v22 = vadd.f32 %v13537_v16, %v13626_v23 }
 0x85b   : > { %v6507_v26 = vrot.slane %v6506_v25, 2  ;;  %v6859_v35 = vunpack.c.l.b16 %v6691_v28 }
 0x85c   : > { %11557 = vrot.lane.b32.xlu1 %v11556_v24, %s11823_s12 }
 0x85d   : > { %v6508_v27 = vmax.f32 %v6506_v25, %v6507_v26  ;;  %v6890_v45 = vsel %vm4952_vm6, %v6859_v35, %v6889_v17 }
 0x85f   : > { %v6509_v30 = vrot.slane %v6508_v27, 1 }
 0x860   : > { %v6370_v32 = vpop.f32.mrf.mxu0 }
 0x861   : > { %v6510_v33 = vmax.f32 %v6508_v27, %v6509_v30  ;;  %v6371_v12 = vadd.f32 %v13537_v16, %v6370_v32 }
 0x863   : > { %v6692_v57 = vpack.c.bf16 %v6510_v33, %v6510_v33  ;;  %v6438_v36 = vmax.f32 %v6371_v12, 0.0 }
 0x864   : > { %11572 = vrot.lane.b32.xlu1 %v11571_v53, %s11823_s12 }
 0x865   : > { %v6860_v39 = vunpack.c.l.b16 %v6692_v57  ;;  %v6518_v40 = vsel %vm6292_vm1, %v6438_v36, -inf  ;;  %v6437_v36 = vmax.f32 %v6368_v22, 0.0 }
 0x866   : > { %v6519_v46 = vrot.slane %v6518_v40, 4 }
 0x867   : > { %v13638_v47 = vsel %vm4954_vm7, %v6860_v39, %v6890_v45 }
 0x868   : > { %v6372_v48 = vpop.f32.mrf.mxu0  ;;  %v6520_v51 = vmax.f32 %v6518_v40, %v6519_v46  ;;  %v6511_v46 = vsel %vm6292_vm1, %v6437_v36, -inf }
 0x869   : > { %v6373_v50 = vadd.f32 %v13537_v16, %v6372_v48 }
 0x86a   : > { %v6521_v29 = vrot.slane %v6520_v51, 2 }
 0x86b   : > { %v6439_v52 = vmax.f32 %v6373_v50, 0.0 }
 0x86c   : > { %11587 = vrot.lane.b32.xlu1 %v11586_v49, %s11823_s12  ;;  %v6522_v60 = vmax.f32 %v6520_v51, %v6521_v29  ;;  %s11824_s12 = smov 38  }
 0x86d   : > { %v6525_v54 = vsel %vm6292_vm1, %v6439_v52, -inf  ;;  %v6512_v52 = vrot.slane %v6511_v46, 4 }
 0x86e   : > { %v6526_v55 = vrot.slane %v6525_v54, 4  ;;  %v6523_v3 = vrot.slane %v6522_v60, 1 }
 0x870   : > { %v6527_v38 = vmax.f32 %v6525_v54, %v6526_v55  ;;  %v6375_v56 = vpop.f32.mrf.mxu0  ;;  %v6524_v19 = vmax.f32 %v6522_v60, %v6523_v3  ;;  %v6513_v60 = vmax.f32 %v6511_v46, %v6512_v52 }
 0x871   : > { %v6376_v58 = vadd.f32 %v13537_v16, %v6375_v56 }
 0x872   : > { %v6528_v9 = vrot.slane %v6527_v38, 2  ;;  %v6694_v17 = vpack.c.bf16 %v6524_v19, %v6524_v19 }
 0x873   : > { %v6440_v62 = vmax.f32 %v6376_v58, 0.0 }
 0x874   : > { %v6529_v63 = vmax.f32 %v6527_v38, %v6528_v9  ;;  %7855 = vperm.xlu1 %11074, %v7844_v59   ;;  %v6862_v1 = vunpack.c.l.b16 %v6694_v17  ;;  %v7850_v9 = vld [vmem:[%s13645_s3 + $0x38] sm:$0xff] }
 0x875   : > { %v6532_v31 = vsel %vm6292_vm1, %v6440_v62, -inf }
 0x876   : > { %v6530_v2 = vrot.slane %v6529_v63, 1  ;;  %v6533_v61 = vrot.slane %v6532_v31, 4 }
 0x878   : > { %v6534_v37 = vmax.f32 %v6532_v31, %v6533_v61  ;;  %v6377_v4 = vpop.f32.mrf.mxu0  ;;  %v6531_v5 = vmax.f32 %v6529_v63, %v6530_v2 }
 0x879   : > { %v6378_v10 = vadd.f32 %v13537_v16, %v6377_v4  ;;  %v6514_v4 = vrot.slane %v6513_v60, 2 }
 0x87a   : > { %v6535_v6 = vrot.slane %v6534_v37, 2  ;;  %v6695_v18 = vpack.c.bf16 %v6531_v5, %v6531_v5 }
 0x87b   : > { %v6441_v8 = vmax.f32 %v6378_v10, 0.0 }
 0x87c   : > { %v6536_v11 = vmax.f32 %v6534_v37, %v6535_v6  ;;  %7858 = vperm.xlu1 %11074, %v7845_v7   ;;  %v6863_v24 = vunpack.c.l.b16 %v6695_v18 }
 0x87d   : > { %v6539_v13 = vsel %vm6292_vm1, %v6441_v8, -inf }
 0x87e   : > { %v6537_v14 = vrot.slane %v6536_v11, 1  ;;  %v6540_v15 = vrot.slane %v6539_v13, 4  ;;  %v6893_v53 = vsel %vm4944_vm2, %v6863_v24, %v6862_v1 }
 0x880   : > { %v6538_v44 = vmax.f32 %v6536_v11, %v6537_v14  ;;  %v6541_v20 = vmax.f32 %v6539_v13, %v6540_v15  ;;  %v6380_v21 = vpop.f32.mrf.mxu0  ;;  %v6515_v13 = vmax.f32 %v6513_v60, %v6514_v4 }
 0x881   : > { %v6381_v25 = vadd.f32 %v13537_v16, %v6380_v21 }
 0x882   : > { %v6696_v26 = vpack.c.bf16 %v6538_v44, %v6538_v44  ;;  %v6542_v27 = vrot.slane %v6541_v20, 2  ;;  %v6516_v21 = vrot.slane %v6515_v13, 1 }
 0x883   : > { %v6442_v28 = vmax.f32 %v6381_v25, 0.0 }
 0x884   : > { %v6864_v30 = vunpack.c.l.b16 %v6696_v26  ;;  %v6543_v32 = vmax.f32 %v6541_v20, %v6542_v27  ;;  %8010 = vperm.xlu1 %11074, %v7995_v0   ;;  %v13676_v0 = vld [vmem:[%s14516_s23] ss:$0 sm:$0xff] }
 0x885   : > { %v6546_v33 = vsel %vm6292_vm1, %v6442_v28, -inf }
 0x886   : > { %v6894_v12 = vsel %vm4946_vm3, %v6864_v30, %v6893_v53  ;;  %v6544_v35 = vrot.slane %v6543_v32, 1  ;;  %v6547_v57 = vrot.slane %v6546_v33, 4 }
 0x888   : > { %v6548_v39 = vmax.f32 %v6546_v33, %v6547_v57  ;;  %v6382_v40 = vpop.f32.mrf.mxu0  ;;  %v6545_v41 = vmax.f32 %v6543_v32, %v6544_v35  ;;  %v6517_v33 = vmax.f32 %v6515_v13, %v6516_v21 }
 0x889   : > { %v6383_v23 = vadd.f32 %v13537_v16, %v6382_v40 }
 0x88a   : > { %v6549_v45 = vrot.slane %v6548_v39, 2  ;;  %v6697_v50 = vpack.c.bf16 %v6545_v41, %v6545_v41  ;;  %v6693_v46 = vpack.c.bf16 %v6517_v33, %v6517_v33 }
 0x88b   : > { %v6443_v48 = vmax.f32 %v6383_v23, 0.0 }
 0x88c   : > { %v6550_v49 = vmax.f32 %v6548_v39, %v6549_v45  ;;  %8013 = vperm.xlu1 %11074, %v7996_v42   ;;  %v6865_v58 = vunpack.c.l.b16 %v6697_v50 }
 0x88d   : > { %v6553_v51 = vsel %vm6292_vm1, %v6443_v48, -inf }
 0x88e   : > { %v6551_v54 = vrot.slane %v6550_v49, 1  ;;  %v6554_v55 = vrot.slane %v6553_v51, 4  ;;  %v6895_v37 = vsel %vm4948_vm5, %v6865_v58, %v6894_v12 }
 0x890   : > { %v6552_v29 = vmax.f32 %v6550_v49, %v6551_v54  ;;  %v6555_v38 = vmax.f32 %v6553_v51, %v6554_v55  ;;  %v6385_v56 = vpop.f32.mrf.mxu0 }
 0x891   : > { %v6386_v59 = vadd.f32 %v13537_v16, %v6385_v56 }
 0x892   : > { %v6698_v62 = vpack.c.bf16 %v6552_v29, %v6552_v29  ;;  %v6556_v63 = vrot.slane %v6555_v38, 2 }
 0x893   : > { %v6444_v31 = vmax.f32 %v6386_v59, 0.0 }
 0x894   : > { %v6866_v2 = vunpack.c.l.b16 %v6698_v62  ;;  %v6557_v61 = vmax.f32 %v6555_v38, %v6556_v63  ;;  %7873 = vperm.xlu1 %11074, %v7850_v9   ;;  %v6861_v38 = vunpack.c.l.b16 %v6693_v46 }
 0x895   : > { %v6560_v3 = vsel %vm6292_vm1, %v6444_v31, -inf }
 0x896   : > { %v6558_v5 = vrot.slane %v6557_v61, 1  ;;  %v6561_v10 = vrot.slane %v6560_v3, 4  ;;  %v6896_v7 = vsel %vm4950_vm0, %v6866_v2, %v6895_v37  ;;  %v6892_v62 = vsel %vm14452_vm8, %v6861_v38, %v13638_v47 }
 0x898   : > { %v6562_v6 = vmax.f32 %v6560_v3, %v6561_v10  ;;  %v6387_v19 = vpop.f32.mrf.mxu0  ;;  %v6204_v8 = vpop.f32.mrf.mxu1  ;;  %v6559_v11 = vmax.f32 %v6557_v61, %v6558_v5 }
 0x899   : > { %v6388_v18 = vadd.f32 %v13537_v16, %v6387_v19  ;;  %v6205_v26 = vadd.f32 %v13676_v0, %v6204_v8 }
 0x89a   : > { %v6563_v14 = vrot.slane %v6562_v6, 2  ;;  %v6699_v44 = vpack.c.bf16 %v6559_v11, %v6559_v11 }
 0x89b   : > { %v6445_v15 = vmax.f32 %v6388_v18, 0.0  ;;  %v6248_v57 = vmax.f32 %v6205_v26, 0.0 }
 0x89c   : > { %v6564_v17 = vmax.f32 %v6562_v6, %v6563_v14  ;;  %v6867_v30 = vunpack.c.l.b16 %v6699_v44 }
 0x89d   : > { %v6567_v20 = vsel %vm6292_vm1, %v6445_v15, -inf }
 0x89e   : > { %v6565_v24 = vrot.slane %v6564_v17, 1  ;;  %v6568_v25 = vrot.slane %v6567_v20, 4  ;;  %v6897_v45 = vsel %vm4952_vm6, %v6867_v30, %v6896_v7 }
 0x8a0   : > { %v6566_v27 = vmax.f32 %v6564_v17, %v6565_v24  ;;  %v6569_v22 = vmax.f32 %v6567_v20, %v6568_v25  ;;  %v6390_v1 = vpop.f32.mrf.mxu0  ;;  %v6206_v28 = vpop.f32.mrf.mxu1 }
 0x8a1   : > { %v6391_v32 = vadd.f32 %v13537_v16, %v6390_v1  ;;  %v6207_v53 = vadd.f32 %v13676_v0, %v6206_v28 }
 0x8a2   : > { %v6700_v12 = vpack.c.bf16 %v6566_v27, %v6566_v27  ;;  %v6570_v35 = vrot.slane %v6569_v22, 2 }
 0x8a3   : > { %v6446_v36 = vmax.f32 %v6391_v32, 0.0  ;;  %v6249_v39 = vmax.f32 %v6207_v53, 0.0 }
 0x8a4   : > { %v6868_v40 = vunpack.c.l.b16 %v6700_v12  ;;  %v6571_v41 = vmax.f32 %v6569_v22, %v6570_v35 }
 0x8a5   : > { %v6574_v23 = vsel %vm6292_vm1, %v6446_v36, -inf  ;;  %v6268_v42 = vpack.c.bf16 %v6249_v39, %v6248_v57 }
 0x8a6   : > { %v6572_v48 = vrot.slane %v6571_v41, 1  ;;  %v6898_v49 = vsel %vm4954_vm7, %v6868_v40, %v6897_v45  ;;  %v6575_v50 = vrot.slane %v6574_v23, 4 }
 0x8a7   : > { %10309 = vmatmul.msk.bf16.gmra.mxu0 %vm6292_vm1, %v6268_v42 }
 0x8a8   : > { %v6573_v51 = vmax.f32 %v6571_v41, %v6572_v48  ;;  %v6392_v52 = vpop.f32.mrf.mxu0  ;;  %v6576_v56 = vmax.f32 %v6574_v23, %v6575_v50 }
 0x8a9   : > { %v6393_v54 = vadd.f32 %v13537_v16, %v6392_v52  ;;  %v6209_v29 = vpop.f32.mrf.mxu1 }
 0x8aa   : > { %v6701_v55 = vpack.c.bf16 %v6573_v51, %v6573_v51  ;;  %v6577_v31 = vrot.slane %v6576_v56, 2  ;;  %v6210_v37 = vadd.f32 %v13676_v0, %v6209_v29 }
 0x8ab   : > { %v6447_v58 = vmax.f32 %v6393_v54, 0.0 }
 0x8ac   : > { %v6869_v59 = vunpack.c.l.b16 %v6701_v55  ;;  %v6578_v7 = vmax.f32 %v6576_v56, %v6577_v31  ;;  %v6250_v11 = vmax.f32 %v6210_v37, 0.0 }
 0x8ad   : > { %v6581_v9 = vsel %vm6292_vm1, %v6447_v58, -inf }
 0x8ae   : > { %v6582_v60 = vrot.slane %v6581_v9, 4  ;;  %v6899_v63 = vsel %vm14452_vm8, %v6869_v59, %v6898_v49  ;;  %v6579_v15 = vrot.slane %v6578_v7, 1 }
 0x8af   : > { %v13690_v2 = vpack.c.b16 %v6899_v63, %v6892_v62 }
 0x8b0   : > { %v6583_v61 = vmax.f32 %v6581_v9, %v6582_v60  ;;  %v6395_v3 = vpop.f32.mrf.mxu0  ;;  %v6580_v27 = vmax.f32 %v6578_v7, %v6579_v15 }
 0x8b1   : > { %v6396_v4 = vadd.f32 %v13537_v16, %v6395_v3  ;;  %v6211_v10 = vpop.f32.mrf.mxu1 }
 0x8b2   : > { %v6584_v5 = vrot.slane %v6583_v61, 2  ;;  %v6212_v19 = vadd.f32 %v13676_v0, %v6211_v10  ;;  %v6702_v33 = vpack.c.bf16 %v6580_v27, %v6580_v27 }
 0x8b3   : > { %v6448_v6 = vmax.f32 %v6396_v4, 0.0 }
 0x8b4   : > { %v6585_v8 = vmax.f32 %v6583_v61, %v6584_v5  ;;  %v6251_v18 = vmax.f32 %v6212_v19, 0.0  ;;  %v6870_v45 = vunpack.c.l.b16 %v6702_v33 }
 0x8b5   : > { %v6588_v47 = vsel %vm6292_vm1, %v6448_v6, -inf }
 0x8b6   : > { %v6586_v13 = vrot.slane %v6585_v8, 1  ;;  %v6589_v14 = vrot.slane %v6588_v47, 4  ;;  %v6269_v17 = vpack.c.bf16 %v6251_v18, %v6250_v11 }
 0x8b8   : > { %v6590_v44 = vmax.f32 %v6588_v47, %v6589_v14  ;;  %v6397_v20 = vpop.f32.mrf.mxu0  ;;  %v6587_v21 = vmax.f32 %v6585_v8, %v6586_v13  ;;  %10310 = vmatmul.msk.bf16.gmra.mxu0 %vm6292_vm1, %v6269_v17 }
 0x8b9   : > { %v6398_v24 = vadd.f32 %v13537_v16, %v6397_v20 }
 0x8ba   : > { %v6591_v25 = vrot.slane %v6590_v44, 2  ;;  %v6214_v26 = vpop.f32.mrf.mxu1  ;;  %v6703_v28 = vpack.c.bf16 %v6587_v21, %v6587_v21 }
 0x8bb   : > { %v6449_v22 = vmax.f32 %v6398_v24, 0.0  ;;  %v6215_v39 = vadd.f32 %v13676_v0, %v6214_v26 }
 0x8bc   : > { %v6592_v1 = vmax.f32 %v6590_v44, %v6591_v25  ;;  %v6871_v36 = vunpack.c.l.b16 %v6703_v28 }
 0x8bd   : > { %v6595_v30 = vsel %vm6292_vm1, %v6449_v22, -inf  ;;  %v6252_v52 = vmax.f32 %v6215_v39, 0.0 }
 0x8be   : > { %v6593_v32 = vrot.slane %v6592_v1, 1  ;;  %v6596_v53 = vrot.slane %v6595_v30, 4  ;;  %v6900_v51 = vsel %vm4944_vm2, %v6871_v36, %v6870_v45 }
 0x8c0   : > { %v6594_v12 = vmax.f32 %v6592_v1, %v6593_v32  ;;  %v6597_v35 = vmax.f32 %v6595_v30, %v6596_v53  ;;  %v6400_v57 = vpop.f32.mrf.mxu0 }
 0x8c1   : > { %v6401_v40 = vadd.f32 %v13537_v16, %v6400_v57 }
 0x8c2   : > { %v6704_v41 = vpack.c.bf16 %v6594_v12, %v6594_v12  ;;  %v6598_v23 = vrot.slane %v6597_v35, 2  ;;  %v6216_v42 = vpop.f32.mrf.mxu1 }
 0x8c3   : > { %v6450_v46 = vmax.f32 %v6401_v40, 0.0  ;;  %v6217_v48 = vadd.f32 %v13676_v0, %v6216_v42 }
 0x8c4   : > { %v6872_v49 = vunpack.c.l.b16 %v6704_v41  ;;  %v6599_v50 = vmax.f32 %v6597_v35, %v6598_v23 }
 0x8c5   : > { %v6602_v54 = vsel %vm6292_vm1, %v6450_v46, -inf  ;;  %v6253_v55 = vmax.f32 %v6217_v48, 0.0 }
 0x8c6   : > { %v6901_v29 = vsel %vm4946_vm3, %v6872_v49, %v6900_v51  ;;  %v6600_v38 = vrot.slane %v6599_v50, 1  ;;  %v6603_v56 = vrot.slane %v6602_v54, 4 }
 0x8c7   : > { %v6270_v58 = vpack.c.bf16 %v6253_v55, %v6252_v52 }
 0x8c8   : > { %v6604_v59 = vmax.f32 %v6602_v54, %v6603_v56  ;;  %v6402_v9 = vpop.f32.mrf.mxu0  ;;  %v6601_v60 = vmax.f32 %v6599_v50, %v6600_v38 }
 0x8c9   : > { %v6403_v62 = vadd.f32 %v13537_v16, %v6402_v9  ;;  %10311 = vmatmul.msk.bf16.gmra.mxu0 %vm6292_vm1, %v6270_v58 }
 0x8ca   : > { %v6605_v63 = vrot.slane %v6604_v59, 2  ;;  %v6705_v3 = vpack.c.bf16 %v6601_v60, %v6601_v60 }
 0x8cb   : > { %v6451_v31 = vmax.f32 %v6403_v62, 0.0 }
 0x8cc   : > { %v6606_v61 = vmax.f32 %v6604_v59, %v6605_v63  ;;  %v6873_v8 = vunpack.c.l.b16 %v6705_v3 }
 0x8cd   : > { %v6609_v37 = vsel %vm6292_vm1, %v6451_v31, -inf }
 0x8ce   : > { %v6607_v4 = vrot.slane %v6606_v61, 1  ;;  %v6610_v5 = vrot.slane %v6609_v37, 4  ;;  %v6902_v17 = vsel %vm4948_vm5, %v6873_v8, %v6901_v29 }
 0x8d0   : > { %v6608_v10 = vmax.f32 %v6606_v61, %v6607_v4  ;;  %v6611_v7 = vmax.f32 %v6609_v37, %v6610_v5  ;;  %v6405_v6 = vpop.f32.mrf.mxu0  ;;  %v6219_v19 = vpop.f32.mrf.mxu1 }
 0x8d1   : > { %v6406_v11 = vadd.f32 %v13537_v16, %v6405_v6  ;;  %v6220_v25 = vadd.f32 %v13676_v0, %v6219_v19 }
 0x8d2   : > { %v6706_v47 = vpack.c.bf16 %v6608_v10, %v6608_v10  ;;  %v6612_v18 = vrot.slane %v6611_v7, 2 }
 0x8d3   : > { %v6452_v13 = vmax.f32 %v6406_v11, 0.0  ;;  %v6254_v30 = vmax.f32 %v6220_v25, 0.0 }
 0x8d4   : > { %v6874_v14 = vunpack.c.l.b16 %v6706_v47  ;;  %v6613_v15 = vmax.f32 %v6611_v7, %v6612_v18 }
 0x8d5   : > { %v6616_v44 = vsel %vm6292_vm1, %v6452_v13, -inf }
 0x8d6   : > { %v6903_v20 = vsel %vm4950_vm0, %v6874_v14, %v6902_v17  ;;  %v6614_v21 = vrot.slane %v6613_v15, 1  ;;  %v6617_v24 = vrot.slane %v6616_v44, 4 }
 0x8d8   : > { %v6618_v26 = vmax.f32 %v6616_v44, %v6617_v24  ;;  %v6221_v27 = vpop.f32.mrf.mxu1  ;;  %v6615_v22 = vmax.f32 %v6613_v15, %v6614_v21  ;;  %v6407_v42 = vpop.f32.mrf.mxu0 }
 0x8d9   : > { %v6222_v1 = vadd.f32 %v13676_v0, %v6221_v27  ;;  %v6408_v38 = vadd.f32 %v13537_v16, %v6407_v42  ;;  %v11703_v27 = vld [vmem:[%s14518_s8] ss:$0 sm:$0xff]  ;;  %s13849_s8 = scalar_lea.vmem %s14524_s13, %s13361_s16  ;;  %s14525_s16 = sld [smem:[#allocation28_spill]] }
 0x8da   : > { %v6619_v28 = vrot.slane %v6618_v26, 2  ;;  %v6707_v33 = vpack.c.bf16 %v6615_v22, %v6615_v22  ;;  %s13924_s13 = sshll.u32 %s12135_s2, 5  ;;  %s14527_s2 = sld [smem:[#allocation35_spill]] }
 0x8db   : > { %v6255_v32 = vmax.f32 %v6222_v1, 0.0  ;;  %v6453_v61 = vmax.f32 %v6408_v38, 0.0 }
 0x8dc   : > { %v6620_v53 = vmax.f32 %v6618_v26, %v6619_v28  ;;  %v6875_v36 = vunpack.c.l.b16 %v6707_v33 }
 0x8dd   : > { %v6271_v12 = vpack.c.bf16 %v6255_v32, %v6254_v30  ;;  %v6623_v19 = vsel %vm6292_vm1, %v6453_v61, -inf }
 0x8de   : > { %v6621_v35 = vrot.slane %v6620_v53, 1  ;;  %v6904_v41 = vsel %vm4952_vm6, %v6875_v36, %v6903_v20  ;;  %v6624_v13 = vrot.slane %v6623_v19, 4 }
 0x8df   : > { %10312 = vmatmul.msk.bf16.gmra.mxu0 %vm6292_vm1, %v6271_v12 }
 0x8e0   : > { %v6622_v57 = vmax.f32 %v6620_v53, %v6621_v35  ;;  %v6625_v25 = vmax.f32 %v6623_v19, %v6624_v13 }
 0x8e2   : > { %v6708_v39 = vpack.c.bf16 %v6622_v57, %v6622_v57  ;;  %v6626_v12 = vrot.slane %v6625_v25, 2 }
 0x8e4   : > { %v6876_v40 = vunpack.c.l.b16 %v6708_v39 }
 0x8e6   : > { %v13717_v23 = vsel %vm4954_vm7, %v6876_v40, %v6904_v41 }
 0x924   : > { %v6410_v0 = vpop.f32.mrf.mxu0 }
 0x925   : > { %v6411_v52 = vadd.f32 %v13537_v16, %v6410_v0 }
 0x927   : > { %v6454_v59 = vmax.f32 %v6411_v52, 0.0 }
 0x929   : > { %v6630_v37 = vsel %vm6292_vm1, %v6454_v59, -inf }
 0x92c   : > { %v6412_v45 = vpop.f32.mrf.mxu0 }
 0x92d   : > { %v6413_v50 = vadd.f32 %v13537_v16, %v6412_v45 }
 0x92f   : > { %v6455_v29 = vmax.f32 %v6413_v50, 0.0 }
 0x931   : > { %v6637_v63 = vsel %vm6292_vm1, %v6455_v29, -inf }
 0x932   : > { %v6638_v5 = vrot.slane %v6637_v63, 4 }
 0x934   : > { %v6639_v47 = vmax.f32 %v6637_v63, %v6638_v5 }
 0x935   : > { %v6415_v46 = vpop.f32.mrf.mxu0 }
 0x936   : > { %v6416_v51 = vadd.f32 %v13537_v16, %v6415_v46  ;;  %v6640_v20 = vrot.slane %v6639_v47, 2 }
 0x938   : > { %v6456_v56 = vmax.f32 %v6416_v51, 0.0  ;;  %v6641_v53 = vmax.f32 %v6639_v47, %v6640_v20 }
 0x93a   : > { %v6644_v3 = vsel %vm6292_vm1, %v6456_v56, -inf  ;;  %v6642_v42 = vrot.slane %v6641_v53, 1 }
 0x93b   : > { %v6645_v7 = vrot.slane %v6644_v3, 4 }
 0x93c   : > { %v6643_v38 = vmax.f32 %v6641_v53, %v6642_v42 }
 0x93d   : > { %v6417_v48 = vpop.f32.mrf.mxu0  ;;  %v6646_v14 = vmax.f32 %v6644_v3, %v6645_v7 }
 0x93e   : > { %v6418_v54 = vadd.f32 %v13537_v16, %v6417_v48  ;;  %v6627_v48 = vmax.f32 %v6625_v25, %v6626_v12 }
 0x93f   : > { %v6647_v26 = vrot.slane %v6646_v14, 2 }
 0x940   : > { %v6457_v9 = vmax.f32 %v6418_v54, 0.0  ;;  %v6628_v59 = vrot.slane %v6627_v48, 1 }
 0x941   : > { %v6648_v35 = vmax.f32 %v6646_v14, %v6647_v26 }
 0x942   : > { %v6651_v4 = vsel %vm6292_vm1, %v6457_v9, -inf }
 0x943   : > { %v6652_v8 = vrot.slane %v6651_v4, 4 }
 0x945   : > { %v6653_v17 = vmax.f32 %v6651_v4, %v6652_v8 }
 0x946   : > { %v6420_v49 = vpop.f32.mrf.mxu0 }
 0x947   : > { %v6421_v55 = vadd.f32 %v13537_v16, %v6420_v49  ;;  %v6654_v28 = vrot.slane %v6653_v17, 2  ;;  %v6649_v49 = vrot.slane %v6648_v35, 1 }
 0x949   : > { %v6458_v62 = vmax.f32 %v6421_v55, 0.0  ;;  %v6655_v39 = vmax.f32 %v6653_v17, %v6654_v28  ;;  %v6650_v9 = vmax.f32 %v6648_v35, %v6649_v49 }
 0x94b   : > { %v6658_v10 = vsel %vm6292_vm1, %v6458_v62, -inf  ;;  %v6656_v52 = vrot.slane %v6655_v39, 1 }
 0x94c   : > { %v6659_v11 = vrot.slane %v6658_v10, 4 }
 0x94d   : > { %v6657_v63 = vmax.f32 %v6655_v39, %v6656_v52 }
 0x94e   : > { %v6422_v58 = vpop.f32.mrf.mxu0  ;;  %v6660_v44 = vmax.f32 %v6658_v10, %v6659_v11  ;;  %v6712_v10 = vpack.c.bf16 %v6650_v9, %v6650_v9  ;;  %v6736_v11 = vpop.permute.xlu1 %6735 }
 0x94f   : > { %v6423_v60 = vadd.f32 %v13537_v16, %v6422_v58  ;;  %v6631_v16 = vrot.slane %v6630_v37, 4  ;;  %vm6782_vm10 = vcmp.eq.s32.totalorder %v6736_v11, %v12221_v34 }
 0x950   : > { %v6661_v30 = vrot.slane %v6660_v44, 2 }
 0x951   : > { %v6459_v31 = vmax.f32 %v6423_v60, 0.0  ;;  %v6632_v15 = vmax.f32 %v6630_v37, %v6631_v16  ;;  %v6711_v37 = vpack.c.bf16 %v6643_v38, %v6643_v38  ;;  %v6713_v16 = vpack.c.bf16 %v6657_v63, %v6657_v63 }
 0x952   : > { %v6662_v41 = vmax.f32 %v6660_v44, %v6661_v30 }
 0x953   : > { %v6665_v6 = vsel %vm6292_vm1, %v6459_v31, -inf  ;;  %v6633_v1 = vrot.slane %v6632_v15, 2 }
 0x954   : > { %v6666_v18 = vrot.slane %v6665_v6, 4  ;;  %v6663_v55 = vrot.slane %v6662_v41, 1 }
 0x955   : > { %v6634_v36 = vmax.f32 %v6632_v15, %v6633_v1  ;;  %v6880_v15 = vunpack.c.l.b16 %v6712_v10 }
 0x956   : > { %v6667_v21 = vmax.f32 %v6665_v6, %v6666_v18  ;;  %v6664_v3 = vmax.f32 %v6662_v41, %v6663_v55  ;;  %v6629_v6 = vmax.f32 %v6627_v48, %v6628_v59  ;;  %v6879_v18 = vunpack.c.l.b16 %v6711_v37  ;;  %v7028_v39 = vpop.permute.xlu1 %7027 }
 0x957   : > { %v6635_v51 = vrot.slane %v6634_v36, 1  ;;  %vm7072_vm15 = vcmp.eq.s32.totalorder %v7028_v39, %v12221_v34 }
 0x958   : > { %v6668_v33 = vrot.slane %v6667_v21, 2  ;;  %v6714_v47 = vpack.c.bf16 %v6664_v3, %v6664_v3  ;;  %v6709_v44 = vpack.c.bf16 %v6629_v6, %v6629_v6  ;;  %v7088_v48 = vsel %vm7072_vm15, 1.0, %v11818_v43 }
 0x959   : > { %v6636_v62 = vmax.f32 %v6634_v36, %v6635_v51  ;;  %v7025_v36 = vpop.permute.xlu0 %7024 }
 0x95a   : > { %v6669_v0 = vmax.f32 %v6667_v21, %v6668_v33  ;;  %v6881_v21 = vunpack.c.l.b16 %v6713_v16  ;;  %v6882_v25 = vunpack.c.l.b16 %v6714_v47  ;;  %v6877_v30 = vunpack.c.l.b16 %v6709_v44  ;;  %v6739_v33 = vpop.permute.xlu2 %6738 }
 0x95b   : > { %v6710_v19 = vpack.c.bf16 %v6636_v62, %v6636_v62  ;;  %vm7071_vm12 = vcmp.eq.s32.totalorder %v7025_v36, %v12221_v34  ;;  %vm6783_vm11 = vcmp.eq.s32.totalorder %v6739_v33, %v12221_v34 }
 0x95c   : > { %v6425_v24 = vpop.f32.mrf.mxu0  ;;  %v6670_v56 = vrot.slane %v6669_v0, 1  ;;  %v6906_v41 = vsel %vm14452_vm8, %v6877_v30, %v13717_v23  ;;  %v6799_v23 = vsel %vm6783_vm11, 1.0, %v11818_v43 }
 0x95d   : > { %v6426_v22 = vadd.f32 %v11703_v27, %v6425_v24  ;;  %v6878_v20 = vunpack.c.l.b16 %v6710_v19 }
 0x95e   : > { %v6671_v4 = vmax.f32 %v6669_v0, %v6670_v56 }
 0x95f   : > { %v6460_v32 = vmax.f32 %v6426_v22, 0.0  ;;  %v6907_v26 = vsel %vm4944_vm2, %v6879_v18, %v6878_v20 }
 0x960   : > { %v6715_v13 = vpack.c.bf16 %v6671_v4, %v6671_v4  ;;  %v6908_v1 = vsel %vm4946_vm3, %v6880_v15, %v6907_v26 }
 0x961   : > { %v6672_v57 = vsel %vm6292_vm1, %v6460_v32, -inf  ;;  %v6909_v32 = vsel %vm4948_vm5, %v6881_v21, %v6908_v1  ;;  %v6745_v52 = vpop.permute.xlu0 %6744 }
 0x962   : > { %v6673_v40 = vrot.slane %v6672_v57, 4  ;;  %v6910_v12 = vsel %vm4950_vm0, %v6882_v25, %v6909_v32  ;;  %v6742_v49 = vpop.permute.xlu2 %6741  ;;  %vm6785_vm14 = vcmp.eq.s32.totalorder %v6745_v52, %v12221_v34 }
 0x964   : > { %v6674_v45 = vmax.f32 %v6672_v57, %v6673_v40  ;;  %v6427_v46 = vpop.f32.mrf.mxu0 }
 0x965   : > { %v6428_v50 = vadd.f32 %v11703_v27, %v6427_v46  ;;  %v6883_v27 = vunpack.c.l.b16 %v6715_v13  ;;  %v7087_v46 = vsel %vm7071_vm12, 1.0, %v11818_v43  ;;  %vm6784_vm12 = vcmp.eq.s32.totalorder %v6742_v49, %v12221_v34 }
 0x966   : > { %v6675_v54 = vrot.slane %v6674_v45, 2  ;;  %v7103_v51 = vpack.c.bf16 %v7088_v48, %v7087_v46  ;;  %v6800_v56 = vsel %vm6784_vm12, 1.0, %v11818_v43 }
 0x967   : > { %v6461_v29 = vmax.f32 %v6428_v50, 0.0  ;;  %v6911_v57 = vsel %vm4952_vm6, %v6883_v27, %v6910_v12 }
 0x968   : > { %v6676_v58 = vmax.f32 %v6674_v45, %v6675_v54  ;;  %v6798_v45 = vsel %vm6782_vm10, 1.0, %v11818_v43  ;;  %v7031_v54 = vpop.permute.xlu1 %7030 }
 0x969   : > { %v6679_v60 = vsel %vm6292_vm1, %v6461_v29, -inf  ;;  %v6814_v50 = vpack.c.bf16 %v6799_v23, %v6798_v45  ;;  %vm7073_vm10 = vcmp.eq.s32.totalorder %v7031_v54, %v12221_v34  ;;  %v6801_v29 = vsel %vm6785_vm14, 1.0, %v11818_v43  ;;  %v6748_v38 = vpop.permute.xlu0 %6747 }
 0x96a   : > { %v6677_v31 = vrot.slane %v6676_v58, 1  ;;  %v6680_v61 = vrot.slane %v6679_v60, 4  ;;  %v7034_v55 = vpop.permute.xlu2 %7033  ;;  %v6815_v59 = vpack.c.bf16 %v6801_v29, %v6800_v56  ;;  %vm6786_vm11 = vcmp.eq.s32.totalorder %v6748_v38, %v12221_v34 }
 0x96b   : > { %vm7074_vm15 = vcmp.eq.s32.totalorder %v7034_v55, %v12221_v34 }
 0x96c   : > { %v6681_v5 = vmax.f32 %v6679_v60, %v6680_v61  ;;  %v6678_v7 = vmax.f32 %v6676_v58, %v6677_v31  ;;  %v7090_v58 = vsel %vm7074_vm15, 1.0, %v11818_v43  ;;  %v6802_v31 = vsel %vm6786_vm11, 1.0, %v11818_v43 }
 0x96e   : > { %v6682_v8 = vrot.slane %v6681_v5, 2  ;;  %v6716_v17 = vpack.c.bf16 %v6678_v7, %v6678_v7 }
 0x970   : > { %v6683_v14 = vmax.f32 %v6681_v5, %v6682_v8  ;;  %v6884_v28 = vunpack.c.l.b16 %v6716_v17  ;;  %v6751_v60 = vpop.permute.xlu1 %6750 }
 0x971   : > { %v7040_v62 = vpop.permute.xlu0 %7039  ;;  %vm6787_vm14 = vcmp.eq.s32.totalorder %v6751_v60, %v12221_v34 }
 0x972   : > { %v6684_v24 = vrot.slane %v6683_v14, 1  ;;  %v6912_v40 = vsel %vm4954_vm7, %v6884_v28, %v6911_v57  ;;  %v7037_v63 = vpop.permute.xlu2 %7036  ;;  %v6803_v61 = vsel %vm6787_vm14, 1.0, %v11818_v43 }
 0x973   : > { %v6816_v5 = vpack.c.bf16 %v6803_v61, %v6802_v31 }
 0x974   : > { %v6685_v22 = vmax.f32 %v6683_v14, %v6684_v24 }
 0x976   : > { %v6717_v53 = vpack.c.bf16 %v6685_v22, %v6685_v22 }
 0x978   : > { %v6885_v35 = vunpack.c.l.b16 %v6717_v53  ;;  %v6754_v37 = vpop.permute.xlu1 %6753 }
 0x979   : > { %v7043_v6 = vpop.permute.xlu0 %7042  ;;  %vm6788_vm12 = vcmp.eq.s32.totalorder %v6754_v37, %v12221_v34 }
 0x97a   : > { %v6913_v42 = vsel %vm14452_vm8, %v6885_v35, %v6912_v40  ;;  %vm7075_vm8 = vcmp.eq.s32.totalorder %v7037_v63, %v12221_v34  ;;  %v6757_v7 = vpop.permute.xlu2 %6756  ;;  %vm7077_vm15 = vcmp.eq.s32.totalorder %v7043_v6, %v12221_v34  ;;  %v6804_v16 = vsel %vm6788_vm12, 1.0, %v11818_v43 }
 0x97b   : > { %v6915_v0 = vpack.c.b16 %v6913_v42, %v6906_v41  ;;  %v7091_v4 = vsel %vm7075_vm8, 1.0, %v11818_v43  ;;  %vm6789_vm14 = vcmp.eq.s32.totalorder %v6757_v7, %v12221_v34  ;;  %v7093_v8 = vsel %vm7077_vm15, 1.0, %v11818_v43 }
 0x97c   : > { %v6805_v47 = vsel %vm6789_vm14, 1.0, %v11818_v43 }
 0x97d   : > { %6948 = vmatpush.bf16.msra.mxu3 %v6915_v0  ;;  %7141 = vmatpush.bf16.msra.mxu2 %v6915_v0  ;;  %v6817_v13 = vpack.c.bf16 %v6805_v47, %v6804_v16 }
 0x980   : > { %v7046_v19 = vpop.permute.xlu1 %7045 }
 0x981   : > { %6949 = vmatpush.bf16.msra.mxu3 %v13690_v2  ;;  %7142 = vmatpush.bf16.msra.mxu2 %v13690_v2  ;;  %v7089_v2 = vsel %vm7073_vm10, 1.0, %v11818_v43  ;;  %vm7076_vm10 = vcmp.eq.s32.totalorder %v7040_v62, %v12221_v34  ;;  %vm7078_vm11 = vcmp.eq.s32.totalorder %v7046_v19, %v12221_v34  ;;  %v6763_v15 = vpop.permute.xlu0 %6762 }
 0x982   : > { %v7104_v9 = vpack.c.bf16 %v7090_v58, %v7089_v2  ;;  %v7092_v3 = vsel %vm7076_vm10, 1.0, %v11818_v43  ;;  %v7094_v11 = vsel %vm7078_vm11, 1.0, %v11818_v43  ;;  %v6760_v18 = vpop.permute.xlu2 %6759  ;;  %vm6791_vm8 = vcmp.eq.s32.totalorder %v6763_v15, %v12221_v34 }
 0x983   : > { %v7105_v10 = vpack.c.bf16 %v7092_v3, %v7091_v4  ;;  %v7106_v14 = vpack.c.bf16 %v7094_v11, %v7093_v8  ;;  %vm6790_vm12 = vcmp.eq.s32.totalorder %v6760_v18, %v12221_v34  ;;  %v6807_v20 = vsel %vm6791_vm8, 1.0, %v11818_v43 }
 0x984   : > { %10313 = vmatmul.msk.bf16.vlgmr.msra.gmra.mxu3 %vm6292_vm1, %v6814_v50  ;;  %10321 = vmatmul.msk.bf16.vlgmr.msra.gmra.mxu2 %vm6292_vm1, %v7103_v51  ;;  %v6806_v25 = vsel %vm6790_vm12, 1.0, %v11818_v43 }
 0x985   : > { %v6818_v27 = vpack.c.bf16 %v6807_v20, %v6806_v25 }
 0x988   : > { %v7049_v17 = vpop.permute.xlu1 %7048 }
 0x989   : > { %vm7079_vm10 = vcmp.eq.s32.totalorder %v7049_v17, %v12221_v34  ;;  %v6766_v24 = vpop.permute.xlu0 %6765 }
 0x98a   : > { %v7052_v44 = vpop.permute.xlu2 %7051  ;;  %v7095_v21 = vsel %vm7079_vm10, 1.0, %v11818_v43  ;;  %vm6792_vm11 = vcmp.eq.s32.totalorder %v6766_v24, %v12221_v34 }
 0x98b   : > { %vm7080_vm15 = vcmp.eq.s32.totalorder %v7052_v44, %v12221_v34  ;;  %v6808_v32 = vsel %vm6792_vm11, 1.0, %v11818_v43 }
 0x98c   : > { %v7096_v26 = vsel %vm7080_vm15, 1.0, %v11818_v43 }
 0x98d   : > { %v7107_v22 = vpack.c.bf16 %v7096_v26, %v7095_v21  ;;  %v7457_v26 = vld [vmem:[%s14522_s9 + $0x20] sm:$0x7] }
 0x990   : > { %v6769_v1 = vpop.permute.xlu1 %6768 }
 0x991   : > { %v7058_v28 = vpop.permute.xlu0 %7057  ;;  %vm6793_vm14 = vcmp.eq.s32.totalorder %v6769_v1, %v12221_v34  ;;  %v7479_v1 = vunpack.c.l.b16 %v7457_v26  ;;  %v7994_v26 = vld [vmem:[%s13655_s6 + $0x10] sm:$0xff] }
 0x992   : > { %v7055_v30 = vpop.permute.xlu2 %7054  ;;  %vm7082_vm8 = vcmp.eq.s32.totalorder %v7058_v28, %v12221_v34  ;;  %v6809_v53 = vsel %vm6793_vm14, 1.0, %v11818_v43 }
 0x993   : > { %vm7081_vm10 = vcmp.eq.s32.totalorder %v7055_v30, %v12221_v34  ;;  %v7098_v33 = vsel %vm7082_vm8, 1.0, %v11818_v43  ;;  %v6819_v57 = vpack.c.bf16 %v6809_v53, %v6808_v32  ;;  %v7484_v28 = vpack.c.b16 %v7479_v1, %v7479_v1  ;;  %v10861_v32 = vld [vmem:[%s14522_s9 + $0x18] sm:$0xff] }
 0x994   : > { %10314 = vmatmul.msk.bf16.gmra.mxu3 %vm6292_vm1, %v6815_v59  ;;  %10322 = vmatmul.msk.bf16.gmra.mxu2 %vm6292_vm1, %v7104_v9  ;;  %v7097_v35 = vsel %vm7081_vm10, 1.0, %v11818_v43 }
 0x995   : > { %v7108_v36 = vpack.c.bf16 %v7098_v33, %v7097_v35 }
 0x998   : > { %v6772_v12 = vpop.permute.xlu1 %6771 }
 0x999   : > { %v7061_v40 = vpop.permute.xlu0 %7060  ;;  %vm6794_vm12 = vcmp.eq.s32.totalorder %v6772_v12, %v12221_v34 }
 0x99a   : > { %v6775_v39 = vpop.permute.xlu2 %6774  ;;  %vm7083_vm15 = vcmp.eq.s32.totalorder %v7061_v40, %v12221_v34  ;;  %v6810_v42 = vsel %vm6794_vm12, 1.0, %v11818_v43 }
 0x99b   : > { %vm6795_vm14 = vcmp.eq.s32.totalorder %v6775_v39, %v12221_v34  ;;  %v7099_v0 = vsel %vm7083_vm15, 1.0, %v11818_v43 }
 0x99c   : > { %v6811_v46 = vsel %vm6795_vm14, 1.0, %v11818_v43  ;;  %vm7489_vm14 = vcmask 572416  }
 0x99d   : > { %v6820_v23 = vpack.c.bf16 %v6811_v46, %v6810_v42 }
 0x9a0   : > { %v7064_v41 = vpop.permute.xlu1 %7063 }
 0x9a1   : > { %vm7084_vm11 = vcmp.eq.s32.totalorder %v7064_v41, %v12221_v34  ;;  %v6781_v50 = vpop.permute.xlu0 %6780  ;;  %v10858_v41 = vld [vmem:[%s14522_s9] sm:$0xff] }
 0x9a2   : > { %v7100_v45 = vsel %vm7084_vm11, 1.0, %v11818_v43  ;;  %v6778_v48 = vpop.permute.xlu2 %6777  ;;  %vm6797_vm8 = vcmp.eq.s32.totalorder %v6781_v50, %v12221_v34  ;;  %vm7408_vm11 = vcmask 285696  }
 0x9a3   : > { %v7109_v49 = vpack.c.bf16 %v7100_v45, %v7099_v0  ;;  %vm6796_vm12 = vcmp.eq.s32.totalorder %v6778_v48, %v12221_v34  ;;  %v6813_v54 = vsel %vm6797_vm8, 1.0, %v11818_v43 }
 0x9a4   : > { %10315 = vmatmul.msk.bf16.gmra.mxu3 %vm6292_vm1, %v6816_v5  ;;  %10323 = vmatmul.msk.bf16.gmra.mxu2 %vm6292_vm1, %v7105_v10  ;;  %v6812_v29 = vsel %vm6796_vm12, 1.0, %v11818_v43 }
 0x9a5   : > { %v6821_v38 = vpack.c.bf16 %v6813_v54, %v6812_v29 }
 0x9a8   : > { %v7067_v51 = vpop.permute.xlu1 %7066 }
 0x9a9   : > { %vm7085_vm10 = vcmp.eq.s32.totalorder %v7067_v51, %v12221_v34 }
 0x9aa   : > { %v7070_v52 = vpop.permute.xlu2 %7069  ;;  %v7101_v55 = vsel %vm7085_vm10, 1.0, %v11818_v43 }
 0x9ab   : > { %vm7086_vm15 = vcmp.eq.s32.totalorder %v7070_v52, %v12221_v34 }
 0x9ac   : > { %v7102_v2 = vsel %vm7086_vm15, 1.0, %v11818_v43  ;;  %vm14531_vm15 = vcmask 1047559  }
 0x9ad   : > { %v7110_v56 = vpack.c.bf16 %v7102_v2, %v7101_v55 }
 0x9b0   : > { %v11483_v54 = vpop.permute.xlu1 %11482 }
 0x9b1   : > { %v11485_v55 = vunpack.i.h.bf16 %v11483_v54  ;;  %v11484_v29 = vunpack.i.l.bf16 %v11483_v54 }
 0x9b4   : > { %10316 = vmatmul.msk.bf16.gmra.mxu3 %vm6292_vm1, %v6817_v13  ;;  %10324 = vmatmul.msk.bf16.gmra.mxu2 %vm6292_vm1, %v7106_v14 }
 0x9c4   : > { %10317 = vmatmul.msk.bf16.gmra.mxu3 %vm6292_vm1, %v6818_v27  ;;  %10325 = vmatmul.msk.bf16.gmra.mxu2 %vm6292_vm1, %v7107_v22 }
 0x9d4   : > { %10318 = vmatmul.msk.bf16.gmra.mxu3 %vm6292_vm1, %v6819_v57  ;;  %10326 = vmatmul.msk.bf16.gmra.mxu2 %vm6292_vm1, %v7108_v36  ;;  %v10860_v57 = vld [vmem:[%s14522_s9 + $0x10] sm:$0xff]  ;;  %v10859_v36 = vld [vmem:[%s14522_s9 + $0x8] sm:$0xff] }
 0x9e4   : > { %10319 = vmatmul.msk.bf16.gmra.mxu3 %vm6292_vm1, %v6820_v23  ;;  %10327 = vmatmul.msk.bf16.gmra.mxu2 %vm6292_vm1, %v7109_v49 }
 0x9f4   : > { %10320 = vmatmul.msk.bf16.gmra.mxu3 %vm6292_vm1, %v6821_v38  ;;  %10328 = vmatmul.msk.bf16.gmra.mxu2 %vm6292_vm1, %v7110_v56  ;;  %vm14523_vm1 = vcmask 1042432   ;;  %v6991_v38 = vld [vmem:[%s13849_s8] sm:$0xff]  ;;  %v6992_v56 = vld [vmem:[%s13849_s8 + $0x8] sm:$0xff] }
 0x9f5   : > { %v7515_v30 = vsel %vm14523_vm1, %v7484_v28, 0  ;;  %vm14532_vm1 = vmmov %vm14531_vm15 }
 0x9f6   : > { %7520 = vmatpush.bf16.msra.mxu1 %v7515_v30 }
 0x9fa   : > { %7521 = vmatpush.bf16.msra.mxu1 %v10861_v32  ;;  %v7997_v32 = vld [vmem:[%s13655_s6 + $0x28] sm:$0xff] }
 0x9fe   : > { %7522 = vmatpush.bf16.msra.mxu1 %v10860_v57 }
 0xa02   : > { %7523 = vmatpush.bf16.msra.mxu1 %v10859_v36  ;;  %v6995_v36 = vld [vmem:[%s13849_s8 + $0x20] sm:$0xff] }
 0xa06   : > { %7524 = vmatpush.bf16.msra.mxu1 %v10858_v41 }
 0xa07   : > { %v6951_v58 = vpop.f32.mrf.mxu3  ;;  %v7144_v59 = vpop.f32.mrf.mxu2 }
 0xa0f   : > { %v6953_v9 = vpop.f32.mrf.mxu3  ;;  %v7146_v60 = vpop.f32.mrf.mxu2 }
 0xa10   : > { %v11476_v62 = vpack.i.bf16 %v6953_v9, %v6951_v58  ;;  %v11486_v63 = vpack.i.bf16 %v7146_v60, %v7144_v59 }
 0xa12   : > { %11487 = vrot.lane.b32.xlu2 %v11486_v63, %s11824_s12  ;;  %11477 = vrot.lane.b32.xlu0 %v11476_v62, %s14508_s5 }
 0xa17   : > { %v6956_v31 = vpop.f32.mrf.mxu3  ;;  %v7149_v61 = vpop.f32.mrf.mxu2 }
 0xa1f   : > { %v6958_v3 = vpop.f32.mrf.mxu3  ;;  %v7151_v37 = vpop.f32.mrf.mxu2 }
 0xa20   : > { %v11491_v4 = vpack.i.bf16 %v6958_v3, %v6956_v31  ;;  %v11501_v5 = vpack.i.bf16 %v7151_v37, %v7149_v61  ;;  %v7992_v61 = vld [vmem:[%s13655_s6] sm:$0xff] }
 0xa21   : > { %v7843_v3 = vld [vmem:[%s13645_s3] sm:$0xff] }
 0xa22   : > { %11502 = vrot.lane.b32.xlu2 %v11501_v5, %s11824_s12  ;;  %11492 = vrot.lane.b32.xlu0 %v11491_v4, %s14508_s5 }
 0xa27   : > { %v6961_v10 = vpop.f32.mrf.mxu3  ;;  %v7154_v7 = vpop.f32.mrf.mxu2 }
 0xa2f   : > { %v6963_v6 = vpop.f32.mrf.mxu3  ;;  %v7156_v19 = vpop.f32.mrf.mxu2 }
 0xa30   : > { %v11506_v16 = vpack.i.bf16 %v6963_v6, %v6961_v10  ;;  %v11516_v8 = vpack.i.bf16 %v7156_v19, %v7154_v7  ;;  %v7846_v6 = vld [vmem:[%s13645_s3 + $0x18] sm:$0xff]  ;;  %v7993_v19 = vld [vmem:[%s13655_s6 + $0x8] sm:$0xff] }
 0xa32   : > { %11517 = vrot.lane.b32.xlu2 %v11516_v8, %s11824_s12  ;;  %11507 = vrot.lane.b32.xlu0 %v11506_v16, %s14508_s5  ;;  %v11498_v16 = vpop.permute.xlu1 %11497 }
 0xa33   : > { %v11500_v8 = vunpack.i.h.bf16 %v11498_v16 }
 0xa37   : > { %v6966_v11 = vpop.f32.mrf.mxu3  ;;  %v7159_v47 = vpop.f32.mrf.mxu2 }
 0xa3f   : > { %v6968_v18 = vpop.f32.mrf.mxu3  ;;  %v7161_v13 = vpop.f32.mrf.mxu2 }
 0xa40   : > { %v11521_v14 = vpack.i.bf16 %v6968_v18, %v6966_v11  ;;  %v11531_v15 = vpack.i.bf16 %v7161_v13, %v7159_v47  ;;  %v11499_v11 = vunpack.i.l.bf16 %v11498_v16  ;;  %v6993_v18 = vld [vmem:[%s13849_s8 + $0x10] sm:$0xff]  ;;  %v6994_v13 = vld [vmem:[%s13849_s8 + $0x18] sm:$0xff] }
 0xa42   : > { %11532 = vrot.lane.b32.xlu2 %v11531_v15, %s11824_s12  ;;  %11522 = vrot.lane.b32.xlu0 %v11521_v14, %s14508_s5 }
 0xa47   : > { %v6971_v17 = vpop.f32.mrf.mxu3  ;;  %v7164_v44 = vpop.f32.mrf.mxu2 }
 0xa4f   : > { %v6973_v20 = vpop.f32.mrf.mxu3  ;;  %v7166_v21 = vpop.f32.mrf.mxu2 }
 0xa50   : > { %v11536_v24 = vpack.i.bf16 %v6973_v20, %v6971_v17  ;;  %v11546_v25 = vpack.i.bf16 %v7166_v21, %v7164_v44 }
 0xa52   : > { %11547 = vrot.lane.b32.xlu2 %v11546_v25, %s11824_s12  ;;  %11537 = vrot.lane.b32.xlu0 %v11536_v24, %s14508_s5  ;;  %v7847_v25 = vld [vmem:[%s13645_s3 + $0x20] sm:$0xff] }
 0xa57   : > { %v6976_v27 = vpop.f32.mrf.mxu3  ;;  %v7169_v22 = vpop.f32.mrf.mxu2 }
 0xa5f   : > { %v6978_v53 = vpop.f32.mrf.mxu3  ;;  %v7171_v33 = vpop.f32.mrf.mxu2 }
 0xa60   : > { %v11551_v12 = vpack.i.bf16 %v6978_v53, %v6976_v27  ;;  %v11561_v35 = vpack.i.bf16 %v7171_v33, %v7169_v22  ;;  %v7848_v53 = vld [vmem:[%s13645_s3 + $0x28] sm:$0xff]  ;;  %v11513_v33 = vpop.permute.xlu1 %11512 }
 0xa62   : > { %11562 = vrot.lane.b32.xlu2 %v11561_v35, %s11824_s12  ;;  %11552 = vrot.lane.b32.xlu0 %v11551_v12, %s14508_s5  ;;  %v11515_v12 = vunpack.i.h.bf16 %v11513_v33  ;;  %v11514_v35 = vunpack.i.l.bf16 %v11513_v33 }
 0xa67   : > { %v6981_v39 = vpop.f32.mrf.mxu3  ;;  %v7174_v40 = vpop.f32.mrf.mxu2 }
 0xa6c   : > { %v11488_v2 = vpop.permute.xlu2 %11487 }
 0xa6d   : > { %v11490_v60 = vunpack.i.h.bf16 %v11488_v2  ;;  %v11489_v62 = vunpack.i.l.bf16 %v11488_v2 }
 0xa6f   : > { %v6983_v42 = vpop.f32.mrf.mxu3  ;;  %v7176_v0 = vpop.f32.mrf.mxu2 }
 0xa70   : > { %v11566_v45 = vpack.i.bf16 %v6983_v42, %v6981_v39  ;;  %v11576_v46 = vpack.i.bf16 %v7176_v0, %v7174_v40  ;;  %v6996_v39 = vld [vmem:[%s13849_s8 + $0x28] sm:$0xff] }
 0xa72   : > { %11577 = vrot.lane.b32.xlu2 %v11576_v46, %s11824_s12  ;;  %11567 = vrot.lane.b32.xlu0 %v11566_v45, %s14508_s5 }
 0xa77   : > { %v6986_v48 = vpop.f32.mrf.mxu3  ;;  %v7179_v23 = vpop.f32.mrf.mxu2 }
 0xa7c   : > { %v11503_v47 = vpop.permute.xlu2 %11502 }
 0xa7d   : > { %v11505_v44 = vunpack.i.h.bf16 %v11503_v47  ;;  %v11504_v20 = vunpack.i.l.bf16 %v11503_v47 }
 0xa7f   : > { %v6988_v49 = vpop.f32.mrf.mxu3  ;;  %v7181_v50 = vpop.f32.mrf.mxu2 }
 0xa80   : > { %v11581_v51 = vpack.i.bf16 %v6988_v49, %v6986_v48  ;;  %v11591_v52 = vpack.i.bf16 %v7181_v50, %v7179_v23  ;;  %v7998_v23 = vld [vmem:[%s13655_s6 + $0x30] sm:$0xff] }
 0xa81   : > { %v7849_v49 = vld [vmem:[%s13645_s3 + $0x30] sm:$0xff]  ;;  %s11825_s3 = smov 67  }
 0xa82   : > { %11592 = vrot.lane.b32.xlu2 %v11591_v52, %s11824_s12  ;;  %11582 = vrot.lane.b32.xlu0 %v11581_v51, %s14508_s5  ;;  %s13889_s12 = scalar_lea.vmem %s14525_s16, %s12139_s22 }
 0xa83   : > { %v8086_v2 = vld [vmem:[%s13889_s12 + $0x8] sm:$0xff] }
 0xa84   : > { %v11478_v58 = vpop.permute.xlu0 %11477 }
 0xa85   : > { %v11480_v59 = vunpack.i.h.bf16 %v11478_v58  ;;  %v11479_v9 = vunpack.i.l.bf16 %v11478_v58  ;;  %v11528_v58 = vpop.permute.xlu1 %11527 }
 0xa87   : > { %v7393_v63 = vsel %vm2900_vm9, %v6992_v56, %v11480_v59  ;;  %v7392_v31 = vsel %vm2900_vm9, %v6991_v38, %v11479_v9  ;;  %v7999_v56 = vld [vmem:[%s13655_s6 + $0x38] sm:$0xff]  ;;  %v8087_v59 = vld [vmem:[%s13889_s12 + $0x10] sm:$0xff]  ;;  %s14526_s6 = sld [smem:[#allocation33_spill]] }
 0xa88   : > { %v7410_v37 = vsel %vm7408_vm11, %v7393_v63, %v11485_v55  ;;  %v7409_v4 = vsel %vm7408_vm11, %v7392_v31, %v11484_v29  ;;  %v8085_v29 = vld [vmem:[%s13889_s12] sm:$0xff]  ;;  %v8088_v9 = vld [vmem:[%s13889_s12 + $0x18] sm:$0xff]  ;;  %v6997_v31 = vld [vmem:[%s13849_s8 + $0x30] sm:$0xff] }
 0xa89   : > { %v7426_v5 = vsel %vm6082_vm13, %v7410_v37, %v11490_v60  ;;  %v7425_v10 = vsel %vm6082_vm13, %v7409_v4, %v11489_v62  ;;  %v11601_v38 = vpack.i.bf16 %v8086_v2, %v8085_v29  ;;  %v11530_v60 = vunpack.i.h.bf16 %v11528_v58 }
 0xa8a   : > { %v7441_v7 = vpack.c.bf16 %v7426_v5, %v7425_v10  ;;  %8001 = vperm.xlu2 %11075, %v7992_v61   ;;  %7852 = vperm.xlu0 %11073, %v7843_v3   ;;  %v11529_v62 = vunpack.i.l.bf16 %v11528_v58  ;;  %v6998_v61 = vld [vmem:[%s13849_s8 + $0x38] sm:$0xff]  ;;  %v11616_v5 = vpack.i.bf16 %v8088_v9, %v8087_v59 }
 0xa8c   : > { %10345 = vmatmul.msk.bf16.vlgmr.msra.gmra.mxu1 %vm7489_vm14, %v7441_v7  ;;  %v11518_v57 = vpop.permute.xlu2 %11517 }
 0xa8d   : > { %v11520_v0 = vunpack.i.h.bf16 %v11518_v57  ;;  %v11519_v45 = vunpack.i.l.bf16 %v11518_v57  ;;  %s13930_s16 = scalar_lea.vmem %s14526_s6, %s13924_s13  ;;  %s14529_s6 = sld [smem:[#allocation22_spill]] }
 0xa8e   : > { %v8543_v2 = vld [vmem:[%s13930_s16 + $0x10] sm:$0xff] }
 0xa92   : > { %7861 = vperm.xlu2 %11075, %v7846_v6   ;;  %8004 = vperm.xlu0 %11073, %v7993_v19  }
 0xa94   : > { %v11493_v14 = vpop.permute.xlu0 %11492 }
 0xa95   : > { %v11495_v15 = vunpack.i.h.bf16 %v11493_v14  ;;  %v11494_v17 = vunpack.i.l.bf16 %v11493_v14  ;;  %v8090_v14 = vld [vmem:[%s13889_s12 + $0x28] sm:$0xff] }
 0xa97   : > { %v7395_v21 = vsel %vm2900_vm9, %v6994_v13, %v11495_v15  ;;  %v7394_v24 = vsel %vm2900_vm9, %v6993_v18, %v11494_v17  ;;  %v8089_v13 = vld [vmem:[%s13889_s12 + $0x20] sm:$0xff]  ;;  %v11543_v17 = vpop.permute.xlu1 %11542 }
 0xa98   : > { %v7412_v27 = vsel %vm7408_vm11, %v7395_v21, %v11500_v8  ;;  %v7411_v22 = vsel %vm7408_vm11, %v7394_v24, %v11499_v11  ;;  %v11631_v15 = vpack.i.bf16 %v8090_v14, %v8089_v13  ;;  %v11545_v21 = vunpack.i.h.bf16 %v11543_v17 }
 0xa99   : > { %v7427_v1 = vsel %vm6082_vm13, %v7411_v22, %v11504_v20  ;;  %v7428_v28 = vsel %vm6082_vm13, %v7412_v27, %v11505_v44  ;;  %v8091_v44 = vld [vmem:[%s13889_s12 + $0x30] sm:$0xff]  ;;  %v8092_v20 = vld [vmem:[%s13889_s12 + $0x38] sm:$0xff]  ;;  %v11544_v24 = vunpack.i.l.bf16 %v11543_v17  ;;  %v7000_v27 = vld [vmem:[%s13849_s8 + $0x48] sm:$0xff]  ;;  %s13945_s12 = scalar_lea.vmem %s14527_s2, %s13924_s13  ;;  %s11826_s2 = smov 70  }
 0xa9a   : > { %7864 = vperm.xlu2 %11075, %v7847_v25   ;;  %8007 = vperm.xlu0 %11073, %v7994_v26   ;;  %v7442_v30 = vpack.c.bf16 %v7428_v28, %v7427_v1  ;;  %v6999_v26 = vld [vmem:[%s13849_s8 + $0x40] sm:$0xff] }
 0xa9c   : > { %10346 = vmatmul.msk.bf16.gmra.mxu1 %vm7489_vm14, %v7442_v30  ;;  %v11533_v63 = vpop.permute.xlu2 %11532  ;;  %v11646_v30 = vpack.i.bf16 %v8092_v20, %v8091_v44 }
 0xa9d   : > { %v11535_v10 = vunpack.i.h.bf16 %v11533_v63  ;;  %v11534_v7 = vunpack.i.l.bf16 %v11533_v63 }
 0xaa2   : > { %8016 = vperm.xlu2 %11075, %v7997_v32   ;;  %7867 = vperm.xlu0 %11073, %v7848_v53  }
 0xaa4   : > { %v11508_v40 = vpop.permute.xlu0 %11507 }
 0xaa5   : > { %v11510_v41 = vunpack.i.h.bf16 %v11508_v40  ;;  %v11509_v42 = vunpack.i.l.bf16 %v11508_v40 }
 0xaa7   : > { %v7397_v46 = vsel %vm2900_vm9, %v6996_v39, %v11510_v41  ;;  %v7396_v48 = vsel %vm2900_vm9, %v6995_v36, %v11509_v42  ;;  %v8542_v41 = vld [vmem:[%s13930_s16 + $0x8] sm:$0xff]  ;;  %v11558_v42 = vpop.permute.xlu1 %11557 }
 0xaa8   : > { %v7414_v50 = vsel %vm7408_vm11, %v7397_v46, %v11515_v12  ;;  %v7413_v51 = vsel %vm7408_vm11, %v7396_v48, %v11514_v35  ;;  %v7001_v48 = vld [vmem:[%s13849_s8 + $0x50] sm:$0xff] }
 0xaa9   : > { %v7429_v52 = vsel %vm6082_vm13, %v7413_v51, %v11519_v45  ;;  %v7430_v54 = vsel %vm6082_vm13, %v7414_v50, %v11520_v0  ;;  %v11560_v0 = vunpack.i.h.bf16 %v11558_v42  ;;  %v11559_v45 = vunpack.i.l.bf16 %v11558_v42 }
 0xaaa   : > { %8019 = vperm.xlu2 %11075, %v7998_v23   ;;  %7870 = vperm.xlu0 %11073, %v7849_v49   ;;  %v7443_v55 = vpack.c.bf16 %v7430_v54, %v7429_v52  ;;  %v7002_v23 = vld [vmem:[%s13849_s8 + $0x58] sm:$0xff] }
 0xaac   : > { %10347 = vmatmul.msk.bf16.gmra.mxu1 %vm7489_vm14, %v7443_v55  ;;  %v11548_v25 = vpop.permute.xlu2 %11547 }
 0xaad   : > { %v11550_v32 = vunpack.i.h.bf16 %v11548_v25  ;;  %v11549_v53 = vunpack.i.l.bf16 %v11548_v25  ;;  %v7005_v25 = vld [vmem:[%s13849_s8 + $0x70] sm:$0xff] }
 0xab2   : > { %11602 = vrot.lane.b32.xlu2 %v11601_v38, %s11825_s3  ;;  %8022 = vperm.xlu0 %11073, %v7999_v56  }
 0xab4   : > { %v11523_v3 = vpop.permute.xlu0 %11522 }
 0xab5   : > { %v11525_v37 = vunpack.i.h.bf16 %v11523_v3  ;;  %v11524_v4 = vunpack.i.l.bf16 %v11523_v3  ;;  %v7003_v3 = vld [vmem:[%s13849_s8 + $0x60] sm:$0xff] }
 0xab7   : > { %v7399_v6 = vsel %vm2900_vm9, %v6998_v61, %v11525_v37  ;;  %v7398_v19 = vsel %vm2900_vm9, %v6997_v31, %v11524_v4  ;;  %v7004_v37 = vld [vmem:[%s13849_s8 + $0x68] sm:$0xff] }
 0xab8   : > { %v7416_v16 = vsel %vm7408_vm11, %v7399_v6, %v11530_v60  ;;  %v7415_v8 = vsel %vm7408_vm11, %v7398_v19, %v11529_v62  ;;  %v8628_v60 = vld [vmem:[%s13945_s12 + $0x18] sm:$0xff]  ;;  %v11573_v62 = vpop.permute.xlu1 %11572 }
 0xab9   : > { %v7431_v11 = vsel %vm6082_vm13, %v7415_v8, %v11534_v7  ;;  %v7432_v47 = vsel %vm6082_vm13, %v7416_v16, %v11535_v10  ;;  %v11575_v63 = vunpack.i.h.bf16 %v11573_v62  ;;  %v11574_v31 = vunpack.i.l.bf16 %v11573_v62 }
 0xaba   : > { %11617 = vrot.lane.b32.xlu2 %v11616_v5, %s11825_s3  ;;  %v7444_v18 = vpack.c.bf16 %v7432_v47, %v7431_v11 }
 0xabc   : > { %10348 = vmatmul.msk.bf16.gmra.mxu1 %vm7489_vm14, %v7444_v18  ;;  %v11563_v46 = vpop.permute.xlu2 %11562 }
 0xabd   : > { %v11565_v52 = vunpack.i.h.bf16 %v11563_v46  ;;  %v11564_v54 = vunpack.i.l.bf16 %v11563_v46 }
 0xac0   : > { %v11588_v44 = vpop.permute.xlu1 %11587 }
 0xac1   : > { %v11590_v20 = vunpack.i.h.bf16 %v11588_v44 }
 0xac2   : > { %11632 = vrot.lane.b32.xlu2 %v11631_v15, %s11825_s3 }
 0xac4   : > { %v11538_v22 = vpop.permute.xlu0 %11537 }
 0xac5   : > { %v11540_v1 = vunpack.i.h.bf16 %v11538_v22  ;;  %v11539_v28 = vunpack.i.l.bf16 %v11538_v22 }
 0xac7   : > { %v7401_v33 = vsel %vm2900_vm9, %v7000_v27, %v11540_v1  ;;  %v7400_v12 = vsel %vm2900_vm9, %v6999_v26, %v11539_v28  ;;  %v7006_v26 = vld [vmem:[%s13849_s8 + $0x78] sm:$0xff]  ;;  %s14530_s8 = sld [smem:[#allocation24_spill]] }
 0xac8   : > { %v7418_v35 = vsel %vm7408_vm11, %v7401_v33, %v11545_v21  ;;  %v7417_v57 = vsel %vm7408_vm11, %v7400_v12, %v11544_v24  ;;  %v11589_v21 = vunpack.i.l.bf16 %v11588_v44 }
 0xac9   : > { %v7433_v36 = vsel %vm6082_vm13, %v7417_v57, %v11549_v53  ;;  %v7434_v39 = vsel %vm6082_vm13, %v7418_v35, %v11550_v32 }
 0xaca   : > { %11647 = vrot.lane.b32.xlu2 %v11646_v30, %s11825_s3  ;;  %v7445_v40 = vpack.c.bf16 %v7434_v39, %v7433_v36  ;;  %s14528_s3 = sld [smem:[#allocation23_spill]] }
 0xacc   : > { %10349 = vmatmul.msk.bf16.gmra.mxu1 %vm7489_vm14, %v7445_v40  ;;  %v11578_v61 = vpop.permute.xlu2 %11577 }
 0xacd   : > { %v11580_v7 = vunpack.i.h.bf16 %v11578_v61  ;;  %v11579_v6 = vunpack.i.l.bf16 %v11578_v61 }
 0xad0   : > { %v10865_v14 = vld [vmem:[%s14528_s3 + $0x18] sm:$0xff]  ;;  %v10864_v15 = vld [vmem:[%s14528_s3 + $0x10] sm:$0xff]  ;;  %v10863_v17 = vld [vmem:[%s14528_s3 + $0x8] sm:$0xff] }
 0xad1   : > { %7654 = vmatpush.bf16.msrb.mxu0 %v10865_v14  ;;  %v10862_v28 = vld [vmem:[%s14528_s3] sm:$0xff] }
 0xad2   : > { %8549 = vperm.xlu2 %11075, %v8542_v41   ;;  %v11692_v41 = vld [vmem:[%s14529_s6] ss:$0 sm:$0xff]  ;;  %s14540_s6 = sld [smem:[#allocation29_spill]] }
 0xad4   : > { %v11553_v49 = vpop.permute.xlu0 %11552 }
 0xad5   : > { %v11555_v50 = vunpack.i.h.bf16 %v11553_v49  ;;  %v11554_v51 = vunpack.i.l.bf16 %v11553_v49  ;;  %7655 = vmatpush.bf16.msrb.mxu0 %v10864_v15 }
 0xad7   : > { %v7403_v55 = vsel %vm2900_vm9, %v7002_v23, %v11555_v50  ;;  %v7402_v29 = vsel %vm2900_vm9, %v7001_v48, %v11554_v51 }
 0xad8   : > { %v7420_v38 = vsel %vm7408_vm11, %v7403_v55, %v11560_v0  ;;  %v7419_v56 = vsel %vm7408_vm11, %v7402_v29, %v11559_v45 }
 0xad9   : > { %v7435_v58 = vsel %vm6082_vm13, %v7419_v56, %v11564_v54  ;;  %v7436_v59 = vsel %vm6082_vm13, %v7420_v38, %v11565_v52  ;;  %7656 = vmatpush.bf16.msrb.mxu0 %v10863_v17 }
 0xada   : > { %8552 = vperm.xlu2 %11075, %v8543_v2   ;;  %v7446_v9 = vpack.c.bf16 %v7436_v59, %v7435_v58 }
 0xadc   : > { %10350 = vmatmul.msk.bf16.gmra.mxu1 %vm7489_vm14, %v7446_v9  ;;  %v11593_v24 = vpop.permute.xlu2 %11592 }
 0xadd   : > { %v11595_v30 = vunpack.i.h.bf16 %v11593_v24  ;;  %v11594_v32 = vunpack.i.l.bf16 %v11593_v24  ;;  %7657 = vmatpush.bf16.msrb.mxu0 %v10862_v28 }
 0xae2   : > { %8639 = vperm.xlu2 %11075, %v8628_v60  }
 0xae4   : > { %v11568_v4 = vpop.permute.xlu0 %11567 }
 0xae5   : > { %v11570_v5 = vunpack.i.h.bf16 %v11568_v4  ;;  %v11569_v10 = vunpack.i.l.bf16 %v11568_v4 }
 0xae7   : > { %v7405_v19 = vsel %vm2900_vm9, %v7004_v37, %v11570_v5  ;;  %v7404_v16 = vsel %vm2900_vm9, %v7003_v3, %v11569_v10 }
 0xae8   : > { %v7422_v8 = vsel %vm7408_vm11, %v7405_v19, %v11575_v63  ;;  %v7421_v11 = vsel %vm7408_vm11, %v7404_v16, %v11574_v31 }
 0xae9   : > { %v7437_v47 = vsel %vm6082_vm13, %v7421_v11, %v11579_v6  ;;  %v7438_v18 = vsel %vm6082_vm13, %v7422_v8, %v11580_v7 }
 0xaea   : > { %v7447_v13 = vpack.c.bf16 %v7438_v18, %v7437_v47 }
 0xaec   : > { %10351 = vmatmul.msk.bf16.gmra.mxu1 %vm7489_vm14, %v7447_v13 }
 0xaf4   : > { %v11583_v27 = vpop.permute.xlu0 %11582 }
 0xaf5   : > { %v11585_v22 = vunpack.i.h.bf16 %v11583_v27  ;;  %v11584_v1 = vunpack.i.l.bf16 %v11583_v27 }
 0xaf7   : > { %v7407_v53 = vsel %vm2900_vm9, %v7006_v26, %v11585_v22  ;;  %v7406_v33 = vsel %vm2900_vm9, %v7005_v25, %v11584_v1 }
 0xaf8   : > { %v7424_v12 = vsel %vm7408_vm11, %v7407_v53, %v11590_v20  ;;  %v7423_v35 = vsel %vm7408_vm11, %v7406_v33, %v11589_v21  ;;  %vm14533_vm11 = vcmask 130048  }
 0xaf9   : > { %v7439_v57 = vsel %vm6082_vm13, %v7423_v35, %v11594_v32  ;;  %v7440_v36 = vsel %vm6082_vm13, %v7424_v12, %v11595_v30  ;;  %v13980_v12 = vld [vmem:[%s14530_s8] ss:$0 sm:$0xff]  ;;  %s14541_s8 = sld [smem:[#allocation26_spill]] }
 0xafa   : > { %v7448_v39 = vpack.c.bf16 %v7440_v36, %v7439_v57 }
 0xafc   : > { %10352 = vmatmul.msk.bf16.gmra.mxu1 %vm7489_vm14, %v7448_v39 }
 0xb09   : > { %v7526_v40 = vpop.f32.mrf.mxu1 }
 0xb0a   : > { %v7527_v42 = vadd.f32 %v11692_v41, %v7526_v40 }
 0xb0c   : > { %v7566_v46 = vmax.f32 %v7527_v42, 0.0 }
 0xb11   : > { %v7528_v0 = vpop.f32.mrf.mxu1 }
 0xb12   : > { %v7529_v45 = vadd.f32 %v11692_v41, %v7528_v0 }
 0xb14   : > { %v7567_v48 = vmax.f32 %v7529_v45, 0.0 }
 0xb16   : > { %v7582_v23 = vpack.c.bf16 %v7567_v48, %v7566_v46 }
 0xb18   : > { %10369 = vmatmul.msk.bf16.vlgmr.msrb.gmra.mxu0 %vm14454_vm4, %v7582_v23 }
 0xb19   : > { %v7531_v49 = vpop.f32.mrf.mxu1 }
 0xb1a   : > { %v7532_v50 = vadd.f32 %v11692_v41, %v7531_v49 }
 0xb1c   : > { %v7568_v54 = vmax.f32 %v7532_v50, 0.0 }
 0xb21   : > { %v7533_v51 = vpop.f32.mrf.mxu1 }
 0xb22   : > { %v7534_v52 = vadd.f32 %v11692_v41, %v7533_v51 }
 0xb24   : > { %v7569_v55 = vmax.f32 %v7534_v52, 0.0 }
 0xb26   : > { %v7583_v29 = vpack.c.bf16 %v7569_v55, %v7568_v54 }
 0xb28   : > { %10370 = vmatmul.msk.bf16.gmra.mxu0 %vm14454_vm4, %v7583_v29 }
 0xb29   : > { %v7536_v2 = vpop.f32.mrf.mxu1 }
 0xb2a   : > { %v7537_v38 = vadd.f32 %v11692_v41, %v7536_v2 }
 0xb2c   : > { %v7570_v59 = vmax.f32 %v7537_v38, 0.0 }
 0xb31   : > { %v7538_v56 = vpop.f32.mrf.mxu1 }
 0xb32   : > { %v7539_v58 = vadd.f32 %v11692_v41, %v7538_v56 }
 0xb34   : > { %v7571_v9 = vmax.f32 %v7539_v58, 0.0 }
 0xb36   : > { %v7584_v60 = vpack.c.bf16 %v7571_v9, %v7570_v59 }
 0xb38   : > { %10371 = vmatmul.msk.bf16.gmra.mxu0 %vm14454_vm4, %v7584_v60 }
 0xb39   : > { %v7541_v62 = vpop.f32.mrf.mxu1 }
 0xb3a   : > { %v7542_v63 = vadd.f32 %v11692_v41, %v7541_v62 }
 0xb3c   : > { %v7572_v3 = vmax.f32 %v7542_v63, 0.0 }
 0xb41   : > { %v7543_v31 = vpop.f32.mrf.mxu1 }
 0xb42   : > { %v7544_v61 = vadd.f32 %v11692_v41, %v7543_v31 }
 0xb44   : > { %v7573_v37 = vmax.f32 %v7544_v61, 0.0 }
 0xb46   : > { %v7585_v4 = vpack.c.bf16 %v7573_v37, %v7572_v3 }
 0xb48   : > { %10372 = vmatmul.msk.bf16.gmra.mxu0 %vm14454_vm4, %v7585_v4 }
 0xb49   : > { %v7546_v5 = vpop.f32.mrf.mxu1 }
 0xb4a   : > { %v7547_v10 = vadd.f32 %v11692_v41, %v7546_v5 }
 0xb4c   : > { %v7574_v19 = vmax.f32 %v7547_v10, 0.0 }
 0xb51   : > { %v7548_v7 = vpop.f32.mrf.mxu1 }
 0xb52   : > { %v7549_v6 = vadd.f32 %v11692_v41, %v7548_v7 }
 0xb54   : > { %v7575_v16 = vmax.f32 %v7549_v6, 0.0 }
 0xb56   : > { %v7586_v8 = vpack.c.bf16 %v7575_v16, %v7574_v19 }
 0xb58   : > { %10373 = vmatmul.msk.bf16.gmra.mxu0 %vm14454_vm4, %v7586_v8 }
 0xb59   : > { %v7551_v11 = vpop.f32.mrf.mxu1 }
 0xb5a   : > { %v7552_v47 = vadd.f32 %v11692_v41, %v7551_v11 }
 0xb5c   : > { %v7576_v14 = vmax.f32 %v7552_v47, 0.0 }
 0xb61   : > { %v7553_v18 = vpop.f32.mrf.mxu1 }
 0xb62   : > { %v7554_v13 = vadd.f32 %v11692_v41, %v7553_v18 }
 0xb64   : > { %v7577_v15 = vmax.f32 %v7554_v13, 0.0 }
 0xb66   : > { %v7587_v17 = vpack.c.bf16 %v7577_v15, %v7576_v14 }
 0xb68   : > { %10374 = vmatmul.msk.bf16.gmra.mxu0 %vm14454_vm4, %v7587_v17 }
 0xb69   : > { %v7556_v44 = vpop.f32.mrf.mxu1 }
 0xb6a   : > { %v7557_v20 = vadd.f32 %v11692_v41, %v7556_v44 }
 0xb6c   : > { %v7578_v25 = vmax.f32 %v7557_v20, 0.0 }
 0xb71   : > { %v7558_v21 = vpop.f32.mrf.mxu1 }
 0xb72   : > { %v7559_v24 = vadd.f32 %v11692_v41, %v7558_v21 }
 0xb74   : > { %v7579_v26 = vmax.f32 %v7559_v24, 0.0 }
 0xb76   : > { %v7588_v27 = vpack.c.bf16 %v7579_v26, %v7578_v25 }
 0xb78   : > { %10375 = vmatmul.msk.bf16.gmra.mxu0 %vm14454_vm4, %v7588_v27 }
 0xb79   : > { %v7561_v22 = vpop.f32.mrf.mxu1 }
 0xb7a   : > { %v7562_v1 = vadd.f32 %v11692_v41, %v7561_v22 }
 0xb7c   : > { %v7580_v32 = vmax.f32 %v7562_v1, 0.0 }
 0xb81   : > { %v7563_v28 = vpop.f32.mrf.mxu1 }
 0xb82   : > { %v7564_v30 = vadd.f32 %v11692_v41, %v7563_v28 }
 0xb84   : > { %v7581_v53 = vmax.f32 %v7564_v30, 0.0 }
 0xb86   : > { %v7589_v33 = vpack.c.bf16 %v7581_v53, %v7580_v32 }
 0xb88   : > { %10376 = vmatmul.msk.bf16.gmra.mxu0 %vm14454_vm4, %v7589_v33 }
 0xb95   : > { %v7659_v35 = vpop.f32.mrf.mxu0 }
 0xb96   : > { %v7660_v57 = vadd.f32 %v13980_v12, %v7659_v35 }
 0xb98   : > { %v7699_v36 = vmax.f32 %v7660_v57, 0.0 }
 0xb9a   : > { %v7715_v39 = vsel %vm14454_vm4, %v7699_v36, -inf }
 0xb9b   : > { %v7716_v40 = vrot.slane %v7715_v39, 4 }
 0xb9d   : > { %v7661_v42 = vpop.f32.mrf.mxu0  ;;  %v7717_v45 = vmax.f32 %v7715_v39, %v7716_v40 }
 0xb9e   : > { %v7662_v0 = vadd.f32 %v13980_v12, %v7661_v42 }
 0xb9f   : > { %v7718_v23 = vrot.slane %v7717_v45, 2 }
 0xba0   : > { %v7700_v46 = vmax.f32 %v7662_v0, 0.0 }
 0xba1   : > { %v7719_v54 = vmax.f32 %v7717_v45, %v7718_v23 }
 0xba2   : > { %v7722_v41 = vsel %vm14454_vm4, %v7700_v46, -inf }
 0xba3   : > { %v7723_v48 = vrot.slane %v7722_v41, 4  ;;  %v7720_v58 = vrot.slane %v7719_v54, 1 }
 0xba5   : > { %v7724_v49 = vmax.f32 %v7722_v41, %v7723_v48  ;;  %v7664_v50 = vpop.f32.mrf.mxu0  ;;  %v7721_v31 = vmax.f32 %v7719_v54, %v7720_v58 }
 0xba6   : > { %v7665_v51 = vadd.f32 %v13980_v12, %v7664_v50 }
 0xba7   : > { %v7725_v52 = vrot.slane %v7724_v49, 2  ;;  %v7827_v7 = vpack.c.bf16 %v7721_v31, %v7721_v31 }
 0xba8   : > { %v7701_v55 = vmax.f32 %v7665_v51, 0.0 }
 0xba9   : > { %v7726_v29 = vmax.f32 %v7724_v49, %v7725_v52  ;;  %v7911_v13 = vunpack.c.l.b16 %v7827_v7 }
 0xbaa   : > { %v7729_v2 = vsel %vm14454_vm4, %v7701_v55, -inf }
 0xbab   : > { %v7727_v38 = vrot.slane %v7726_v29, 1  ;;  %v7730_v56 = vrot.slane %v7729_v2, 4 }
 0xbad   : > { %v7731_v59 = vmax.f32 %v7729_v2, %v7730_v56  ;;  %v7666_v9 = vpop.f32.mrf.mxu0  ;;  %v7728_v60 = vmax.f32 %v7726_v29, %v7727_v38 }
 0xbae   : > { %v7667_v62 = vadd.f32 %v13980_v12, %v7666_v9 }
 0xbaf   : > { %v7732_v63 = vrot.slane %v7731_v59, 2  ;;  %v7828_v37 = vpack.c.bf16 %v7728_v60, %v7728_v60 }
 0xbb0   : > { %v7702_v61 = vmax.f32 %v7667_v62, 0.0 }
 0xbb1   : > { %v7733_v3 = vmax.f32 %v7731_v59, %v7732_v63  ;;  %v7912_v8 = vunpack.c.l.b16 %v7828_v37 }
 0xbb2   : > { %v7736_v4 = vsel %vm14454_vm4, %v7702_v61, -inf }
 0xbb3   : > { %v7734_v5 = vrot.slane %v7733_v3, 1  ;;  %v7737_v10 = vrot.slane %v7736_v4, 4  ;;  %v7927_v44 = vsel %vm4944_vm2, %v7912_v8, %v7911_v13 }
 0xbb5   : > { %v7735_v6 = vmax.f32 %v7733_v3, %v7734_v5  ;;  %v7738_v19 = vmax.f32 %v7736_v4, %v7737_v10  ;;  %v7669_v16 = vpop.f32.mrf.mxu0 }
 0xbb6   : > { %v7670_v11 = vadd.f32 %v13980_v12, %v7669_v16 }
 0xbb7   : > { %v7829_v47 = vpack.c.bf16 %v7735_v6, %v7735_v6  ;;  %v7739_v18 = vrot.slane %v7738_v19, 2 }
 0xbb8   : > { %v7703_v14 = vmax.f32 %v7670_v11, 0.0 }
 0xbb9   : > { %v7913_v15 = vunpack.c.l.b16 %v7829_v47  ;;  %v7740_v17 = vmax.f32 %v7738_v19, %v7739_v18 }
 0xbba   : > { %v7743_v20 = vsel %vm14454_vm4, %v7703_v14, -inf }
 0xbbb   : > { %v7928_v21 = vsel %vm4946_vm3, %v7913_v15, %v7927_v44  ;;  %v7741_v24 = vrot.slane %v7740_v17, 1  ;;  %v7744_v25 = vrot.slane %v7743_v20, 4 }
 0xbbd   : > { %v7745_v26 = vmax.f32 %v7743_v20, %v7744_v25  ;;  %v7671_v27 = vpop.f32.mrf.mxu0  ;;  %v7742_v22 = vmax.f32 %v7740_v17, %v7741_v24 }
 0xbbe   : > { %v7672_v1 = vadd.f32 %v13980_v12, %v7671_v27 }
 0xbbf   : > { %v7746_v28 = vrot.slane %v7745_v26, 2  ;;  %v7830_v53 = vpack.c.bf16 %v7742_v22, %v7742_v22 }
 0xbc0   : > { %v7704_v30 = vmax.f32 %v7672_v1, 0.0 }
 0xbc1   : > { %v7747_v32 = vmax.f32 %v7745_v26, %v7746_v28  ;;  %v7914_v42 = vunpack.c.l.b16 %v7830_v53 }
 0xbc2   : > { %v7750_v33 = vsel %vm14454_vm4, %v7704_v30, -inf }
 0xbc3   : > { %v7748_v35 = vrot.slane %v7747_v32, 1  ;;  %v7751_v57 = vrot.slane %v7750_v33, 4  ;;  %v7929_v49 = vsel %vm4948_vm5, %v7914_v42, %v7928_v21 }
 0xbc5   : > { %v7749_v36 = vmax.f32 %v7747_v32, %v7748_v35  ;;  %v7752_v39 = vmax.f32 %v7750_v33, %v7751_v57  ;;  %v7674_v40 = vpop.f32.mrf.mxu0 }
 0xbc6   : > { %v7675_v0 = vadd.f32 %v13980_v12, %v7674_v40 }
 0xbc7   : > { %v7831_v45 = vpack.c.bf16 %v7749_v36, %v7749_v36  ;;  %v7753_v46 = vrot.slane %v7752_v39, 2 }
 0xbc8   : > { %v7705_v41 = vmax.f32 %v7675_v0, 0.0 }
 0xbc9   : > { %v7915_v48 = vunpack.c.l.b16 %v7831_v45  ;;  %v7754_v23 = vmax.f32 %v7752_v39, %v7753_v46 }
 0xbca   : > { %v7757_v50 = vsel %vm14454_vm4, %v7705_v41, -inf }
 0xbcb   : > { %v7930_v51 = vsel %vm4950_vm0, %v7915_v48, %v7929_v49  ;;  %v7755_v52 = vrot.slane %v7754_v23, 1  ;;  %v7758_v54 = vrot.slane %v7757_v50, 4 }
 0xbcd   : > { %v7759_v55 = vmax.f32 %v7757_v50, %v7758_v54  ;;  %v7676_v29 = vpop.f32.mrf.mxu0  ;;  %v7756_v2 = vmax.f32 %v7754_v23, %v7755_v52 }
 0xbce   : > { %v7677_v47 = vadd.f32 %v13980_v12, %v7676_v29 }
 0xbcf   : > { %v7760_v38 = vrot.slane %v7759_v55, 2  ;;  %v7832_v58 = vpack.c.bf16 %v7756_v2, %v7756_v2 }
 0xbd0   : > { %v7706_v44 = vmax.f32 %v7677_v47, 0.0 }
 0xbd1   : > { %v7761_v56 = vmax.f32 %v7759_v55, %v7760_v38  ;;  %v7916_v62 = vunpack.c.l.b16 %v7832_v58 }
 0xbd2   : > { %v7764_v28 = vsel %vm14454_vm4, %v7706_v44, -inf }
 0xbd3   : > { %v7762_v59 = vrot.slane %v7761_v56, 1  ;;  %v7931_v61 = vsel %vm4952_vm6, %v7916_v62, %v7930_v51  ;;  %v7765_v57 = vrot.slane %v7764_v28, 4 }
 0xbd5   : > { %v7763_v9 = vmax.f32 %v7761_v56, %v7762_v59  ;;  %v7679_v60 = vpop.f32.mrf.mxu0  ;;  %v7766_v23 = vmax.f32 %v7764_v28, %v7765_v57 }
 0xbd6   : > { %v7680_v6 = vadd.f32 %v13980_v12, %v7679_v60 }
 0xbd7   : > { %v7833_v63 = vpack.c.bf16 %v7763_v9, %v7763_v9  ;;  %v7767_v38 = vrot.slane %v7766_v23, 2 }
 0xbd8   : > { %v7707_v13 = vmax.f32 %v7680_v6, 0.0 }
 0xbd9   : > { %v7917_v31 = vunpack.c.l.b16 %v7833_v63 }
 0xbda   : > { %v7771_v21 = vsel %vm14454_vm4, %v7707_v13, -inf }
 0xbdb   : > { %v14002_v3 = vsel %vm4954_vm7, %v7917_v31, %v7931_v61  ;;  %v7772_v30 = vrot.slane %v7771_v21, 4 }
 0xbdd   : > { %v7681_v37 = vpop.f32.mrf.mxu0  ;;  %v7773_v40 = vmax.f32 %v7771_v21, %v7772_v30 }
 0xbde   : > { %v7682_v10 = vadd.f32 %v13980_v12, %v7681_v37 }
 0xbdf   : > { %v7774_v51 = vrot.slane %v7773_v40, 2 }
 0xbe0   : > { %v7708_v8 = vmax.f32 %v7682_v10, 0.0 }
 0xbe1   : > { %v7775_v59 = vmax.f32 %v7773_v40, %v7774_v51 }
 0xbe2   : > { %v7778_v17 = vsel %vm14454_vm4, %v7708_v8, -inf }
 0xbe3   : > { %v7779_v25 = vrot.slane %v7778_v17, 4 }
 0xbe5   : > { %v7684_v4 = vpop.f32.mrf.mxu0  ;;  %v7780_v35 = vmax.f32 %v7778_v17, %v7779_v25 }
 0xbe6   : > { %v7685_v7 = vadd.f32 %v13980_v12, %v7684_v4  ;;  %v7768_v4 = vmax.f32 %v7766_v23, %v7767_v38  ;;  %v8002_v38 = vpop.permute.xlu2 %8001 }
 0xbe7   : > { %v7781_v46 = vrot.slane %v7780_v35, 2  ;;  %vm8024_vm12 = vcmp.eq.s32.totalorder %v8002_v38, %v12221_v34 }
 0xbe8   : > { %v7709_v18 = vmax.f32 %v7685_v7, 0.0  ;;  %v7776_v7 = vrot.slane %v7775_v59, 1  ;;  %v7769_v13 = vrot.slane %v7768_v4, 1 }
 0xbe9   : > { %v7782_v29 = vmax.f32 %v7780_v35, %v7781_v46 }
 0xbea   : > { %v7785_v20 = vsel %vm14454_vm4, %v7709_v18, -inf  ;;  %v7777_v17 = vmax.f32 %v7775_v59, %v7776_v7  ;;  %v7770_v28 = vmax.f32 %v7768_v4, %v7769_v13 }
 0xbeb   : > { %v7786_v22 = vrot.slane %v7785_v20, 4  ;;  %v7783_v63 = vrot.slane %v7782_v29, 1 }
 0xbec   : > { %v7835_v30 = vpack.c.bf16 %v7777_v17, %v7777_v17 }
 0xbed   : > { %v7686_v5 = vpop.f32.mrf.mxu0  ;;  %v7787_v36 = vmax.f32 %v7785_v20, %v7786_v22 }
 0xbee   : > { %v7687_v19 = vadd.f32 %v13980_v12, %v7686_v5 }
 0xbef   : > { %v7788_v49 = vrot.slane %v7787_v36, 2 }
 0xbf0   : > { %v7710_v14 = vmax.f32 %v7687_v19, 0.0 }
 0xbf1   : > { %v7789_v56 = vmax.f32 %v7787_v36, %v7788_v49 }
 0xbf2   : > { %v7792_v24 = vsel %vm14454_vm4, %v7710_v14, -inf }
 0xbf3   : > { %v7793_v32 = vrot.slane %v7792_v24, 4  ;;  %v7790_v5 = vrot.slane %v7789_v56, 1 }
 0xbf5   : > { %v7689_v16 = vpop.f32.mrf.mxu0  ;;  %v7794_v42 = vmax.f32 %v7792_v24, %v7793_v32  ;;  %v7791_v14 = vmax.f32 %v7789_v56, %v7790_v5  ;;  %v7853_v24 = vpop.permute.xlu0 %7852  ;;  %v8032_v5 = vsel %vm8024_vm12, 1.0, %v11818_v43 }
 0xbf6   : > { %v7690_v11 = vadd.f32 %v13980_v12, %v7689_v16  ;;  %vm7875_vm13 = vcmp.eq.s32.totalorder %v7853_v24, %v12221_v34 }
 0xbf7   : > { %v7795_v52 = vrot.slane %v7794_v42, 2  ;;  %v7837_v22 = vpack.c.bf16 %v7791_v14, %v7791_v14 }
 0xbf8   : > { %v7711_v15 = vmax.f32 %v7690_v11, 0.0  ;;  %v7784_v11 = vmax.f32 %v7782_v29, %v7783_v63  ;;  %v7883_v63 = vsel %vm7875_vm13, 1.0, %v11818_v43 }
 0xbf9   : > { %v7796_v9 = vmax.f32 %v7794_v42, %v7795_v52  ;;  %v7834_v42 = vpack.c.bf16 %v7770_v28, %v7770_v28 }
 0xbfa   : > { %v7799_v26 = vsel %vm14454_vm4, %v7711_v15, -inf }
 0xbfb   : > { %v7800_v53 = vrot.slane %v7799_v26, 4  ;;  %v7797_v6 = vrot.slane %v7796_v9, 1 }
 0xbfd   : > { %v7691_v27 = vpop.f32.mrf.mxu0  ;;  %v7801_v45 = vmax.f32 %v7799_v26, %v7800_v53  ;;  %v7798_v44 = vmax.f32 %v7796_v9, %v7797_v6  ;;  %v7836_v26 = vpack.c.bf16 %v7784_v11, %v7784_v11  ;;  %v8005_v51 = vpop.permute.xlu0 %8004 }
 0xbfe   : > { %v7692_v1 = vadd.f32 %v13980_v12, %v7691_v27  ;;  %vm8025_vm8 = vcmp.eq.s32.totalorder %v8005_v51, %v12221_v34 }
 0xbff   : > { %v7802_v54 = vrot.slane %v7801_v45, 2  ;;  %v7838_v32 = vpack.c.bf16 %v7798_v44, %v7798_v44  ;;  %v7920_v35 = vunpack.c.l.b16 %v7836_v26 }
 0xc00   : > { %v7712_v33 = vmax.f32 %v7692_v1, 0.0 }
 0xc01   : > { %v7803_v62 = vmax.f32 %v7801_v45, %v7802_v54  ;;  %v7922_v45 = vunpack.c.l.b16 %v7838_v32 }
 0xc02   : > { %v7806_v39 = vsel %vm14454_vm4, %v7712_v33, -inf }
 0xc03   : > { %v7807_v0 = vrot.slane %v7806_v39, 4  ;;  %v7804_v16 = vrot.slane %v7803_v62, 1 }
 0xc05   : > { %v7808_v41 = vmax.f32 %v7806_v39, %v7807_v0  ;;  %v7694_v48 = vpop.f32.mrf.mxu0  ;;  %v7805_v25 = vmax.f32 %v7803_v62, %v7804_v16  ;;  %v7921_v39 = vunpack.c.l.b16 %v7837_v22  ;;  %v7919_v0 = vunpack.c.l.b16 %v7835_v30  ;;  %v8008_v6 = vpop.permute.xlu0 %8007 }
 0xc06   : > { %v7695_v50 = vadd.f32 %v13980_v12, %v7694_v48 }
 0xc07   : > { %v7809_v2 = vrot.slane %v7808_v41, 2  ;;  %v7839_v33 = vpack.c.bf16 %v7805_v25, %v7805_v25  ;;  %v7934_v23 = vsel %vm4944_vm2, %v7920_v35, %v7919_v0 }
 0xc08   : > { %v7713_v55 = vmax.f32 %v7695_v50, 0.0  ;;  %v7935_v52 = vsel %vm4946_vm3, %v7921_v39, %v7934_v23 }
 0xc09   : > { %v7810_v31 = vmax.f32 %v7808_v41, %v7809_v2  ;;  %v7856_v41 = vpop.permute.xlu1 %7855  ;;  %v7923_v48 = vunpack.c.l.b16 %v7839_v33  ;;  %v7936_v29 = vsel %vm4948_vm5, %v7922_v45, %v7935_v52 }
 0xc0a   : > { %v7813_v58 = vsel %vm14454_vm4, %v7713_v55, -inf  ;;  %v7918_v55 = vunpack.c.l.b16 %v7834_v42  ;;  %vm7876_vm10 = vcmp.eq.s32.totalorder %v7856_v41, %v12221_v34 }
 0xc0b   : > { %v7814_v60 = vrot.slane %v7813_v58, 4  ;;  %v7811_v47 = vrot.slane %v7810_v31, 1  ;;  %v7937_v56 = vsel %vm4950_vm0, %v7923_v48, %v7936_v29 }
 0xc0d   : > { %v7815_v61 = vmax.f32 %v7813_v58, %v7814_v60  ;;  %v7696_v37 = vpop.f32.mrf.mxu0  ;;  %v7933_v60 = vsel %vm14531_vm15, %v7918_v55, %v14002_v3  ;;  %v7862_v3 = vpop.permute.xlu2 %7861 }
 0xc0e   : > { %v7697_v10 = vadd.f32 %v13980_v12, %v7696_v37  ;;  %v7812_v12 = vmax.f32 %v7810_v31, %v7811_v47  ;;  %v8033_v31 = vsel %vm8025_vm8, 1.0, %v11818_v43  ;;  %v7884_v37 = vsel %vm7876_vm10, 1.0, %v11818_v43 }
 0xc0f   : > { %v7816_v19 = vrot.slane %v7815_v61, 2  ;;  %v8040_v7 = vpack.c.bf16 %v8033_v31, %v8032_v5  ;;  %vm7878_vm13 = vcmp.eq.s32.totalorder %v7862_v3, %v12221_v34  ;;  %vm8026_vm8 = vcmp.eq.s32.totalorder %v8008_v6, %v12221_v34  ;;  %v10871_v31 = vld [vmem:[%s14540_s6 + $0x28] sm:$0xff]  ;;  %v10869_v5 = vld [vmem:[%s14540_s6 + $0x18] sm:$0xff]  ;;  %v8627_v6 = vld [vmem:[%s13945_s12 + $0x10] sm:$0xff] }
 0xc10   : > { %v7714_v8 = vmax.f32 %v7697_v10, 0.0  ;;  %v7840_v57 = vpack.c.bf16 %v7812_v12, %v7812_v12  ;;  %v7891_v10 = vpack.c.bf16 %v7884_v37, %v7883_v63  ;;  %v7886_v16 = vsel %vm7878_vm13, 1.0, %v11818_v43  ;;  %v8625_v37 = vld [vmem:[%s13945_s12] sm:$0xff]  ;;  %v8626_v3 = vld [vmem:[%s13945_s12 + $0x8] sm:$0xff]  ;;  %s14545_s12 = sld [smem:[#allocation32_spill]] }
 0xc11   : > { %v7817_v18 = vmax.f32 %v7815_v61, %v7816_v19  ;;  %v7859_v4 = vpop.permute.xlu1 %7858  ;;  %v8034_v11 = vsel %vm8026_vm8, 1.0, %v11818_v43 }
 0xc12   : > { %v7820_v15 = vsel %vm14454_vm4, %v7714_v8, -inf  ;;  %v7924_v49 = vunpack.c.l.b16 %v7840_v57  ;;  %vm14534_vm4 = vmmov %vm14533_vm11  ;;  %vm7877_vm10 = vcmp.eq.s32.totalorder %v7859_v4, %v12221_v34  ;;  %v8541_v4 = vld [vmem:[%s13930_s16] sm:$0xff] }
 0xc13   : > { %v7818_v20 = vrot.slane %v7817_v18, 1  ;;  %v7821_v21 = vrot.slane %v7820_v15, 4  ;;  %v7885_v47 = vsel %vm7877_vm10, 1.0, %v11818_v43  ;;  %vm14535_vm12 = vmmov %vm14534_vm4 }
 0xc14   : > { %v7938_v59 = vsel %vm4952_vm6, %v7924_v49, %v7937_v56  ;;  %v7892_v13 = vpack.c.bf16 %v7886_v16, %v7885_v47  ;;  %vm14536_vm10 = vmmov %vm14534_vm4 }
 0xc15   : > { %v7822_v27 = vmax.f32 %v7820_v15, %v7821_v21  ;;  %v7819_v1 = vmax.f32 %v7817_v18, %v7818_v20  ;;  %v7865_v8 = vpop.permute.xlu2 %7864  ;;  %v7868_v15 = vpop.permute.xlu0 %7867 }
 0xc16   : > { %vm7879_vm8 = vcmp.eq.s32.totalorder %v7865_v8, %v12221_v34  ;;  %v10867_v8 = vld [vmem:[%s14540_s6 + $0x8] sm:$0xff] }
 0xc17   : > { %v7823_v53 = vrot.slane %v7822_v27, 2  ;;  %v7841_v40 = vpack.c.bf16 %v7819_v1, %v7819_v1  ;;  %v7887_v26 = vsel %vm7879_vm8, 1.0, %v11818_v43  ;;  %vm14539_vm8 = vmmov %vm14536_vm10 }
 0xc19   : > { %v7824_v36 = vmax.f32 %v7822_v27, %v7823_v53  ;;  %v7925_v54 = vunpack.c.l.b16 %v7841_v40  ;;  %v8011_v19 = vpop.permute.xlu1 %8010 }
 0xc1a   : > { %vm8027_vm15 = vcmp.eq.s32.totalorder %v8011_v19, %v12221_v34  ;;  %v8238_v19 = vld [vmem:[%s14540_s6 + $0x40] sm:$0x7] }
 0xc1b   : > { %v7825_v46 = vrot.slane %v7824_v36, 1  ;;  %v7939_v9 = vsel %vm4954_vm7, %v7925_v54, %v7938_v59  ;;  %v8035_v18 = vsel %vm8027_vm15, 1.0, %v11818_v43  ;;  %vm14537_vm15 = vmmov %vm14534_vm4  ;;  %v10872_v59 = vld [vmem:[%s14540_s6 + $0x30] sm:$0xff]  ;;  %v8276_v16 = vunpack.c.l.b16 %v8238_v19 }
 0xc1c   : > { %v8041_v14 = vpack.c.bf16 %v8035_v18, %v8034_v11  ;;  %v10866_v18 = vld [vmem:[%s14540_s6] sm:$0xff] }
 0xc1d   : > { %v7826_v50 = vmax.f32 %v7824_v36, %v7825_v46  ;;  %v8017_v17 = vpop.permute.xlu2 %8016  ;;  %v7871_v24 = vpop.permute.xlu0 %7870  ;;  %v8285_v11 = vpack.c.b16 %v8276_v16, %v8276_v16 }
 0xc1f   : > { %v7842_v2 = vpack.c.bf16 %v7826_v50, %v7826_v50 }
 0xc21   : > { %v7926_v58 = vunpack.c.l.b16 %v7842_v2  ;;  %v8014_v44 = vpop.permute.xlu1 %8013 }
 0xc22   : > { %vm8028_vm13 = vcmp.eq.s32.totalorder %v8014_v44, %v12221_v34 }
 0xc23   : > { %v7940_v62 = vsel %vm14532_vm1, %v7926_v58, %v7939_v9  ;;  %vm8029_vm1 = vcmp.eq.s32.totalorder %v8017_v17, %v12221_v34  ;;  %v8036_v25 = vsel %vm8028_vm13, 1.0, %v11818_v43  ;;  %vm14538_vm13 = vmmov %vm14536_vm10  ;;  %v10873_v58 = vld [vmem:[%s14540_s6 + $0x38] sm:$0xff] }
 0xc24   : > { %v7941_v61 = vpack.c.b16 %v7940_v62, %v7933_v60  ;;  %v8037_v20 = vsel %vm8029_vm1, 1.0, %v11818_v43  ;;  %8310 = vmatpush.bf16.msrb.mxu1 %v10873_v58 }
 0xc25   : > { %v8042_v12 = vpack.c.bf16 %v8037_v20, %v8036_v25  ;;  %v8023_v22 = vpop.permute.xlu0 %8022  ;;  %v8020_v28 = vpop.permute.xlu2 %8019 }
 0xc26   : > { %7962 = vmatpush.bf16.msrb.mxu3 %v7941_v61  ;;  %8063 = vmatpush.bf16.msrb.mxu2 %v7941_v61  ;;  %v10870_v61 = vld [vmem:[%s14540_s6 + $0x20] sm:$0xff] }
 0xc28   : > { %8311 = vmatpush.bf16.msrb.mxu1 %v10872_v59 }
 0xc29   : > { %10377 = vmatmul.msk.bf16.vlgmr.msrb.gmra.mxu3 %vm14533_vm11, %v7891_v10  ;;  %10381 = vmatmul.msk.bf16.vlgmr.msrb.gmra.mxu2 %vm14534_vm4, %v8040_v7  ;;  %vm7880_vm11 = vcmp.eq.s32.totalorder %v7868_v15, %v12221_v34  ;;  %v7874_v1 = vpop.permute.xlu1 %7873  ;;  %v10868_v10 = vld [vmem:[%s14540_s6 + $0x10] sm:$0xff]  ;;  %v8544_v7 = vld [vmem:[%s13930_s16 + $0x18] sm:$0xff]  ;;  %s14544_s16 = sld [smem:[#allocation30_spill]] }
 0xc2a   : > { %v7888_v21 = vsel %vm7880_vm11, 1.0, %v11818_v43  ;;  %vm7882_vm1 = vcmp.eq.s32.totalorder %v7874_v1, %v12221_v34  ;;  %vm8030_vm11 = vcmp.eq.s32.totalorder %v8020_v28, %v12221_v34 }
 0xc2b   : > { %v7893_v27 = vpack.c.bf16 %v7888_v21, %v7887_v26  ;;  %v7890_v53 = vsel %vm7882_vm1, 1.0, %v11818_v43  ;;  %v8038_v33 = vsel %vm8030_vm11, 1.0, %v11818_v43 }
 0xc2c   : > { %8312 = vmatpush.bf16.msrb.mxu1 %v10871_v31 }
 0xc30   : > { %8313 = vmatpush.bf16.msrb.mxu1 %v10870_v61 }
 0xc34   : > { %8314 = vmatpush.bf16.msrb.mxu1 %v10869_v5 }
 0xc38   : > { %8315 = vmatpush.bf16.msrb.mxu1 %v10868_v10 }
 0xc39   : > { %10378 = vmatmul.msk.bf16.gmra.mxu3 %vm14534_vm4, %v7892_v13  ;;  %10382 = vmatmul.msk.bf16.gmra.mxu2 %vm14535_vm12, %v8041_v14  ;;  %vm7881_vm4 = vcmp.eq.s32.totalorder %v7871_v24, %v12221_v34  ;;  %vm8031_vm12 = vcmp.eq.s32.totalorder %v8023_v22, %v12221_v34  ;;  %v11603_v13 = vpop.permute.xlu2 %11602 }
 0xc3a   : > { %v7889_v30 = vsel %vm7881_vm4, 1.0, %v11818_v43  ;;  %v8039_v32 = vsel %vm8031_vm12, 1.0, %v11818_v43  ;;  %v11605_v14 = vunpack.i.h.bf16 %v11603_v13  ;;  %v11604_v15 = vunpack.i.l.bf16 %v11603_v13 }
 0xc3b   : > { %v7894_v35 = vpack.c.bf16 %v7890_v53, %v7889_v30  ;;  %v8043_v57 = vpack.c.bf16 %v8039_v32, %v8038_v33  ;;  %vm8294_vm4 = vcmask 48128  }
 0xc3c   : > { %8316 = vmatpush.bf16.msrb.mxu1 %v10867_v8 }
 0xc40   : > { %8317 = vmatpush.bf16.msrb.mxu1 %v10866_v18 }
 0xc49   : > { %10379 = vmatmul.msk.bf16.gmra.mxu3 %vm14536_vm10, %v7893_v27  ;;  %10383 = vmatmul.msk.bf16.gmra.mxu2 %vm14537_vm15, %v8042_v12  ;;  %vm14542_vm10 = vcmask 1042432   ;;  %vm8197_vm15 = vcmask 547840  }
 0xc4a   : > { %v8308_v47 = vsel %vm14542_vm10, %v8285_v11, 0 }
 0xc4b   : > { %8346 = vmatpush.bf16.msra.mxu0 %v8308_v47 }
 0xc59   : > { %10380 = vmatmul.msk.bf16.gmra.mxu3 %vm14538_vm13, %v7894_v35  ;;  %10384 = vmatmul.msk.bf16.gmra.mxu2 %vm14539_vm8, %v8043_v57  ;;  %v11618_v35 = vpop.permute.xlu2 %11617  ;;  %vm14549_vm8 = vmmov %vm14542_vm10 }
 0xc5a   : > { %v11620_v57 = vunpack.i.h.bf16 %v11618_v35  ;;  %vm14551_vm10 = vmmov %vm14549_vm8 }
 0xcac   : > { %v7964_v36 = vpop.f32.mrf.mxu3  ;;  %v8065_v39 = vpop.f32.mrf.mxu2 }
 0xcb4   : > { %v7966_v40 = vpop.f32.mrf.mxu3  ;;  %v8067_v42 = vpop.f32.mrf.mxu2 }
 0xcb5   : > { %v11596_v0 = vpack.i.bf16 %v7966_v40, %v7964_v36  ;;  %v11606_v45 = vpack.i.bf16 %v8067_v42, %v8065_v39  ;;  %v11619_v36 = vunpack.i.l.bf16 %v11618_v35 }
 0xcb7   : > { %11607 = vrot.lane.b32.xlu0 %v11606_v45, %s11826_s2  ;;  %11597 = vrot.lane.b32.xlu1 %v11596_v0, %s14508_s5 }
 0xcbc   : > { %v7969_v46 = vpop.f32.mrf.mxu3  ;;  %v8070_v41 = vpop.f32.mrf.mxu2 }
 0xcc4   : > { %v7971_v48 = vpop.f32.mrf.mxu3  ;;  %v8072_v23 = vpop.f32.mrf.mxu2 }
 0xcc5   : > { %v11611_v49 = vpack.i.bf16 %v7971_v48, %v7969_v46  ;;  %v11621_v50 = vpack.i.bf16 %v8072_v23, %v8070_v41 }
 0xcc7   : > { %11622 = vrot.lane.b32.xlu0 %v11621_v50, %s11826_s2  ;;  %11612 = vrot.lane.b32.xlu1 %v11611_v49, %s14508_s5 }
 0xccc   : > { %v7974_v51 = vpop.f32.mrf.mxu3  ;;  %v8075_v52 = vpop.f32.mrf.mxu2 }
 0xcd4   : > { %v7976_v54 = vpop.f32.mrf.mxu3  ;;  %v8077_v55 = vpop.f32.mrf.mxu2 }
 0xcd5   : > { %v11626_v29 = vpack.i.bf16 %v7976_v54, %v7974_v51  ;;  %v11636_v2 = vpack.i.bf16 %v8077_v55, %v8075_v52 }
 0xcd7   : > { %11637 = vrot.lane.b32.xlu0 %v11636_v2, %s11826_s2  ;;  %11627 = vrot.lane.b32.xlu1 %v11626_v29, %s14508_s5  ;;  %v11633_v2 = vpop.permute.xlu2 %11632 }
 0xcdc   : > { %v7979_v38 = vpop.f32.mrf.mxu3  ;;  %v8080_v56 = vpop.f32.mrf.mxu2 }
 0xcdf   : > { %v11648_v11 = vpop.permute.xlu2 %11647 }
 0xce0   : > { %v11650_v47 = vunpack.i.h.bf16 %v11648_v11  ;;  %v11649_v18 = vunpack.i.l.bf16 %v11648_v11 }
 0xce4   : > { %v7981_v9 = vpop.f32.mrf.mxu3  ;;  %v8082_v60 = vpop.f32.mrf.mxu2 }
 0xce5   : > { %v11641_v62 = vpack.i.bf16 %v7981_v9, %v7979_v38  ;;  %v11651_v63 = vpack.i.bf16 %v8082_v60, %v8080_v56  ;;  %v11635_v38 = vunpack.i.h.bf16 %v11633_v2  ;;  %v11634_v56 = vunpack.i.l.bf16 %v11633_v2 }
 0xce7   : > { %11652 = vrot.lane.b32.xlu0 %v11651_v63, %s11826_s2  ;;  %11642 = vrot.lane.b32.xlu1 %v11641_v62, %s14508_s5  ;;  %s14096_s2 = scalar_lea.vmem %s14541_s8, %s12139_s22  ;;  %s14543_s22 = sld [smem:[#allocation31_spill]] }
 0xce8   : > { %v7984_v44 = vld [vmem:[%s14096_s2] sm:$0xff]  ;;  %v7985_v20 = vld [vmem:[%s14096_s2 + $0x8] sm:$0xff]  ;;  %v7986_v40 = vld [vmem:[%s14096_s2 + $0x10] sm:$0xff]  ;;  %s14547_s8 = sld [smem:[#allocation36_spill]] }
 0xce9   : > { %v7987_v42 = vld [vmem:[%s14096_s2 + $0x18] sm:$0xff]  ;;  %v7988_v59 = vld [vmem:[%s14096_s2 + $0x20] sm:$0xff]  ;;  %v7989_v9 = vld [vmem:[%s14096_s2 + $0x28] sm:$0xff] }
 0xced   : > { %v10881_v16 = vld [vmem:[%s14543_s22 + $0x38] sm:$0xff]  ;;  %v10880_v8 = vld [vmem:[%s14543_s22 + $0x30] sm:$0xff] }
 0xcee   : > { %8448 = vmatpush.bf16.msra.mxu3 %v10881_v16  ;;  %v10876_v35 = vld [vmem:[%s14543_s22 + $0x10] sm:$0xff] }
 0xcef   : > { %8630 = vperm.xlu0 %11073, %v8625_v37   ;;  %8546 = vperm.xlu1 %11074, %v8541_v4  }
 0xcf2   : > { %8449 = vmatpush.bf16.msra.mxu3 %v10880_v8 }
 0xcf7   : > { %8555 = vperm.xlu0 %11073, %v8544_v7   ;;  %8633 = vperm.xlu1 %11074, %v8626_v3  }
 0xcff   : > { %8636 = vperm.xlu1 %11074, %v8627_v6  }
 0xd29   : > { %v11608_v17 = vpop.permute.xlu0 %11607  ;;  %v11598_v21 = vpop.permute.xlu1 %11597 }
 0xd2a   : > { %v11610_v24 = vunpack.i.h.bf16 %v11608_v17  ;;  %v11609_v25 = vunpack.i.l.bf16 %v11608_v17  ;;  %v11600_v26 = vunpack.i.h.bf16 %v11598_v21  ;;  %v11599_v12 = vunpack.i.l.bf16 %v11598_v21 }
 0xd2c   : > { %v8215_v27 = vpack.c.bf16 %v11610_v24, %v11609_v25  ;;  %v8190_v22 = vsel %vm2900_vm9, %v7985_v20, %v11600_v26  ;;  %v8189_v1 = vsel %vm2900_vm9, %v7984_v44, %v11599_v12 }
 0xd2d   : > { %v8199_v28 = vsel %vm8197_vm15, %v8190_v22, %v11605_v14  ;;  %v8198_v30 = vsel %vm8197_vm15, %v8189_v1, %v11604_v15  ;;  %v7990_v14 = vld [vmem:[%s14096_s2 + $0x30] sm:$0xff]  ;;  %v7991_v15 = vld [vmem:[%s14096_s2 + $0x38] sm:$0xff]  ;;  %s1819_s2 = scalar_lea.vmem %s14547_s8, %s13924_s13 }
 0xd2e   : > { %v8207_v32 = vsel %vm7489_vm14, %v8199_v28, %v11610_v24  ;;  %v8206_v53 = vsel %vm7489_vm14, %v8198_v30, %v11609_v25  ;;  %10417 = vmatmul.msk.bf16.vlgmr.msra.gmra.mxu0 %vm8294_vm4, %v8215_v27  ;;  %v10879_v25 = vld [vmem:[%s14543_s22 + $0x28] sm:$0xff] }
 0xd2f   : > { %v8214_v33 = vpack.c.bf16 %v8207_v32, %v8206_v53  ;;  %8450 = vmatpush.bf16.msra.mxu3 %v10879_v25  ;;  %v10878_v53 = vld [vmem:[%s14543_s22 + $0x20] sm:$0xff] }
 0xd31   : > { %8318 = vmatmul.bf16.vlgmr.msrb.gmra.mxu1 %v8214_v33  ;;  %v10877_v33 = vld [vmem:[%s14543_s22 + $0x18] sm:$0xff] }
 0xd33   : > { %8451 = vmatpush.bf16.msra.mxu3 %v10878_v53 }
 0xd37   : > { %8452 = vmatpush.bf16.msra.mxu3 %v10877_v33 }
 0xd39   : > { %v11623_v39 = vpop.permute.xlu0 %11622  ;;  %v11613_v0 = vpop.permute.xlu1 %11612 }
 0xd3a   : > { %v11625_v45 = vunpack.i.h.bf16 %v11623_v39  ;;  %v11624_v46 = vunpack.i.l.bf16 %v11623_v39  ;;  %v11615_v41 = vunpack.i.h.bf16 %v11613_v0  ;;  %v11614_v48 = vunpack.i.l.bf16 %v11613_v0 }
 0xd3b   : > { %8453 = vmatpush.bf16.msra.mxu3 %v10876_v35 }
 0xd3c   : > { %v8217_v23 = vpack.c.bf16 %v11625_v45, %v11624_v46  ;;  %v8192_v49 = vsel %vm2900_vm9, %v7987_v42, %v11615_v41  ;;  %v8191_v50 = vsel %vm2900_vm9, %v7986_v40, %v11614_v48  ;;  %v11694_v42 = vld [vmem:[%s14544_s16] ss:$0 sm:$0xff]  ;;  %s14548_s16 = sld [smem:[#allocation37_spill]] }
 0xd3d   : > { %v8200_v51 = vsel %vm8197_vm15, %v8191_v50, %v11619_v36  ;;  %v8201_v52 = vsel %vm8197_vm15, %v8192_v49, %v11620_v57  ;;  %v10875_v57 = vld [vmem:[%s14543_s22 + $0x8] sm:$0xff]  ;;  %v10874_v36 = vld [vmem:[%s14543_s22] sm:$0xff] }
 0xd3e   : > { %10418 = vmatmul.msk.bf16.gmra.mxu0 %vm8294_vm4, %v8217_v23  ;;  %v8208_v54 = vsel %vm7489_vm14, %v8200_v51, %v11624_v46  ;;  %v8209_v55 = vsel %vm7489_vm14, %v8201_v52, %v11625_v45 }
 0xd3f   : > { %v8216_v29 = vpack.c.bf16 %v8209_v55, %v8208_v54  ;;  %8454 = vmatpush.bf16.msra.mxu3 %v10875_v57 }
 0xd41   : > { %8323 = vmatmul.bf16.gmra.mxu1 %v8216_v29 }
 0xd43   : > { %8455 = vmatpush.bf16.msra.mxu3 %v10874_v36 }
 0xd49   : > { %v11638_v58 = vpop.permute.xlu0 %11637  ;;  %v11628_v60 = vpop.permute.xlu1 %11627 }
 0xd4a   : > { %v11640_v62 = vunpack.i.h.bf16 %v11638_v58  ;;  %v11639_v63 = vunpack.i.l.bf16 %v11638_v58  ;;  %v11630_v31 = vunpack.i.h.bf16 %v11628_v60  ;;  %v11629_v61 = vunpack.i.l.bf16 %v11628_v60 }
 0xd4c   : > { %v8219_v37 = vpack.c.bf16 %v11640_v62, %v11639_v63  ;;  %v8194_v4 = vsel %vm2900_vm9, %v7989_v9, %v11630_v31  ;;  %v8193_v5 = vsel %vm2900_vm9, %v7988_v59, %v11629_v61 }
 0xd4d   : > { %v8202_v10 = vsel %vm8197_vm15, %v8193_v5, %v11634_v56  ;;  %v8203_v7 = vsel %vm8197_vm15, %v8194_v4, %v11635_v38 }
 0xd4e   : > { %10419 = vmatmul.msk.bf16.gmra.mxu0 %vm8294_vm4, %v8219_v37  ;;  %v8210_v3 = vsel %vm7489_vm14, %v8202_v10, %v11639_v63  ;;  %v8211_v6 = vsel %vm7489_vm14, %v8203_v7, %v11640_v62 }
 0xd4f   : > { %v8218_v19 = vpack.c.bf16 %v8211_v6, %v8210_v3 }
 0xd51   : > { %8328 = vmatmul.bf16.gmra.mxu1 %v8218_v19 }
 0xd59   : > { %v11653_v13 = vpop.permute.xlu0 %11652  ;;  %v11643_v17 = vpop.permute.xlu1 %11642 }
 0xd5a   : > { %v11655_v44 = vunpack.i.h.bf16 %v11653_v13  ;;  %v11654_v20 = vunpack.i.l.bf16 %v11653_v13  ;;  %v11645_v21 = vunpack.i.h.bf16 %v11643_v17  ;;  %v11644_v24 = vunpack.i.l.bf16 %v11643_v17 }
 0xd5c   : > { %v8221_v26 = vpack.c.bf16 %v11655_v44, %v11654_v20  ;;  %v8196_v12 = vsel %vm2900_vm9, %v7991_v15, %v11645_v21  ;;  %v8195_v27 = vsel %vm2900_vm9, %v7990_v14, %v11644_v24 }
 0xd5d   : > { %v8204_v22 = vsel %vm8197_vm15, %v8195_v27, %v11649_v18  ;;  %v8205_v1 = vsel %vm8197_vm15, %v8196_v12, %v11650_v47  ;;  %vm9712_vm15 = vcmask 73728  }
 0xd5e   : > { %10420 = vmatmul.msk.bf16.gmra.mxu0 %vm8294_vm4, %v8221_v26  ;;  %v8212_v28 = vsel %vm7489_vm14, %v8204_v22, %v11654_v20  ;;  %v8213_v30 = vsel %vm7489_vm14, %v8205_v1, %v11655_v44  ;;  %v11695_v26 = vld [vmem:[%s14545_s12] ss:$0 sm:$0xff]  ;;  %s11827_s12 = smov 6  }
 0xd5f   : > { %v8220_v32 = vpack.c.bf16 %v8213_v30, %v8212_v28 }
 0xd61   : > { %8333 = vmatmul.bf16.gmra.mxu1 %v8220_v32 }
 0xdab   : > { %v8348_v39 = vpop.f32.mrf.mxu0 }
 0xdae   : > { %v8319_v40 = vpop.f32.mrf.mxu1 }
 0xdaf   : > { %v8320_v0 = vadd.f32 %v11694_v42, %v8319_v40 }
 0xdb1   : > { %v8349_v41 = vadd.f32 %v8348_v39, %v8320_v0 }
 0xdb3   : > { %v8350_v45 = vpop.f32.mrf.mxu0  ;;  %v8368_v49 = vmax.f32 %v8349_v41, 0.0 }
 0xdb6   : > { %v8321_v46 = vpop.f32.mrf.mxu1 }
 0xdb7   : > { %v8322_v48 = vadd.f32 %v11694_v42, %v8321_v46 }
 0xdb9   : > { %v8351_v23 = vadd.f32 %v8350_v45, %v8322_v48 }
 0xdbb   : > { %v8369_v50 = vmax.f32 %v8351_v23, 0.0  ;;  %v8353_v51 = vpop.f32.mrf.mxu0 }
 0xdbd   : > { %v8376_v52 = vpack.c.bf16 %v8369_v50, %v8368_v49 }
 0xdbe   : > { %v8324_v54 = vpop.f32.mrf.mxu1 }
 0xdbf   : > { %8456 = vmatmul.bf16.vlgmr.msra.gmra.mxu3 %v8376_v52  ;;  %v8325_v55 = vadd.f32 %v11694_v42, %v8324_v54 }
 0xdc1   : > { %v8354_v38 = vadd.f32 %v8353_v51, %v8325_v55 }
 0xdc3   : > { %v8355_v29 = vpop.f32.mrf.mxu0  ;;  %v8370_v59 = vmax.f32 %v8354_v38, 0.0 }
 0xdc6   : > { %v8326_v2 = vpop.f32.mrf.mxu1 }
 0xdc7   : > { %v8327_v56 = vadd.f32 %v11694_v42, %v8326_v2 }
 0xdc9   : > { %v8356_v58 = vadd.f32 %v8355_v29, %v8327_v56 }
 0xdcb   : > { %v8371_v9 = vmax.f32 %v8356_v58, 0.0  ;;  %v8358_v60 = vpop.f32.mrf.mxu0 }
 0xdcd   : > { %v8377_v62 = vpack.c.bf16 %v8371_v9, %v8370_v59 }
 0xdce   : > { %v8329_v63 = vpop.f32.mrf.mxu1 }
 0xdcf   : > { %8461 = vmatmul.bf16.gmra.mxu3 %v8377_v62  ;;  %v8330_v31 = vadd.f32 %v11694_v42, %v8329_v63 }
 0xdd1   : > { %v8359_v4 = vadd.f32 %v8358_v60, %v8330_v31 }
 0xdd3   : > { %v8360_v61 = vpop.f32.mrf.mxu0  ;;  %v8372_v7 = vmax.f32 %v8359_v4, 0.0 }
 0xdd6   : > { %v8331_v37 = vpop.f32.mrf.mxu1 }
 0xdd7   : > { %v8332_v5 = vadd.f32 %v11694_v42, %v8331_v37 }
 0xdd9   : > { %v8361_v10 = vadd.f32 %v8360_v61, %v8332_v5 }
 0xddb   : > { %v8373_v3 = vmax.f32 %v8361_v10, 0.0  ;;  %v8363_v19 = vpop.f32.mrf.mxu0 }
 0xddd   : > { %v8378_v6 = vpack.c.bf16 %v8373_v3, %v8372_v7 }
 0xdde   : > { %v8334_v16 = vpop.f32.mrf.mxu1 }
 0xddf   : > { %8466 = vmatmul.bf16.gmra.mxu3 %v8378_v6  ;;  %v8335_v8 = vadd.f32 %v11694_v42, %v8334_v16 }
 0xde1   : > { %v8364_v47 = vadd.f32 %v8363_v19, %v8335_v8 }
 0xde3   : > { %v8365_v13 = vpop.f32.mrf.mxu0  ;;  %v8374_v15 = vmax.f32 %v8364_v47, 0.0 }
 0xde6   : > { %v8336_v11 = vpop.f32.mrf.mxu1 }
 0xde7   : > { %v8337_v18 = vadd.f32 %v11694_v42, %v8336_v11 }
 0xde9   : > { %v8366_v14 = vadd.f32 %v8365_v13, %v8337_v18 }
 0xdeb   : > { %v8375_v17 = vmax.f32 %v8366_v14, 0.0 }
 0xded   : > { %v8379_v44 = vpack.c.bf16 %v8375_v17, %v8374_v15 }
 0xdef   : > { %8471 = vmatmul.bf16.gmra.mxu3 %v8379_v44 }
 0xe42   : > { %v8457_v20 = vpop.f32.mrf.mxu3 }
 0xe43   : > { %v8458_v1 = vadd.f32 %v11695_v26, %v8457_v20 }
 0xe45   : > { %v8477_v33 = vmax.f32 %v8458_v1, 0.0 }
 0xe47   : > { %v8485_v42 = vrot.slane %v8477_v33, 4 }
 0xe49   : > { %v8486_v49 = vmax.f32 %v8477_v33, %v8485_v42 }
 0xe4a   : > { %v8459_v21 = vpop.f32.mrf.mxu3 }
 0xe4b   : > { %v8460_v12 = vadd.f32 %v11695_v26, %v8459_v21  ;;  %v8487_v38 = vrot.slane %v8486_v49, 2 }
 0xe4d   : > { %v8478_v32 = vmax.f32 %v8460_v12, 0.0  ;;  %v8488_v31 = vmax.f32 %v8486_v49, %v8487_v38  ;;  %v8547_v12 = vpop.permute.xlu1 %8546 }
 0xe4e   : > { %vm8557_vm14 = vcmp.eq.s32.totalorder %v8547_v12, %v12221_v34 }
 0xe4f   : > { %v8491_v36 = vrot.slane %v8478_v32, 4  ;;  %v8489_v19 = vrot.slane %v8488_v31, 1 }
 0xe51   : > { %v8492_v41 = vmax.f32 %v8478_v32, %v8491_v36  ;;  %v8490_v44 = vmax.f32 %v8488_v31, %v8489_v19 }
 0xe52   : > { %v8462_v24 = vpop.f32.mrf.mxu3 }
 0xe53   : > { %v8463_v27 = vadd.f32 %v11695_v26, %v8462_v24  ;;  %v8493_v54 = vrot.slane %v8492_v41, 2  ;;  %v8533_v32 = vpack.c.bf16 %v8490_v44, %v8490_v44 }
 0xe55   : > { %v8479_v53 = vmax.f32 %v8463_v27, 0.0  ;;  %v8494_v9 = vmax.f32 %v8492_v41, %v8493_v54  ;;  %v8575_v42 = vunpack.c.l.b16 %v8533_v32  ;;  %v8550_v41 = vpop.permute.xlu2 %8549  ;;  %v14178_v32 = vld [vmem:[%s14548_s16 + $0x100] sm:$0x77] }
 0xe56   : > { %vm8558_vm1 = vcmp.eq.s32.totalorder %v8550_v41, %v12221_v34  ;;  %v10895_v41 = vld [vmem:[%s14548_s16 + $0x64] sm:$0xf0] }
 0xe57   : > { %v8497_v39 = vrot.slane %v8479_v53, 4  ;;  %v8495_v5 = vrot.slane %v8494_v9, 1  ;;  %v8562_v31 = vsel %vm8558_vm1, 1.0, %v11818_v43 }
 0xe59   : > { %v8498_v23 = vmax.f32 %v8479_v53, %v8497_v39  ;;  %v8496_v18 = vmax.f32 %v8494_v9, %v8495_v5 }
 0xe5a   : > { %v8464_v25 = vpop.f32.mrf.mxu3 }
 0xe5b   : > { %v8465_v28 = vadd.f32 %v11695_v26, %v8464_v25  ;;  %v8499_v29 = vrot.slane %v8498_v23, 2  ;;  %v8534_v27 = vpack.c.bf16 %v8496_v18, %v8496_v18  ;;  %v8676_v18 = vld [vmem:[%s1819_s2] sm:$0xff] }
 0xe5d   : > { %v8480_v35 = vmax.f32 %v8465_v28, 0.0  ;;  %v8500_v63 = vmax.f32 %v8498_v23, %v8499_v29 }
 0xe5f   : > { %v8503_v0 = vrot.slane %v8480_v35, 4  ;;  %v8501_v3 = vrot.slane %v8500_v63, 1 }
 0xe61   : > { %v8504_v50 = vmax.f32 %v8480_v35, %v8503_v0  ;;  %v8502_v17 = vmax.f32 %v8500_v63, %v8501_v3  ;;  %v8576_v35 = vunpack.c.l.b16 %v8534_v27 }
 0xe62   : > { %v8467_v22 = vpop.f32.mrf.mxu3 }
 0xe63   : > { %v8468_v30 = vadd.f32 %v11695_v26, %v8467_v22  ;;  %v8505_v56 = vrot.slane %v8504_v50, 2  ;;  %v8535_v28 = vpack.c.bf16 %v8502_v17, %v8502_v17 }
 0xe65   : > { %v8481_v57 = vmax.f32 %v8468_v30, 0.0  ;;  %v8506_v61 = vmax.f32 %v8504_v50, %v8505_v56  ;;  %v8577_v39 = vunpack.c.l.b16 %v8535_v28 }
 0xe67   : > { %v8509_v46 = vrot.slane %v8481_v57, 4  ;;  %v8507_v16 = vrot.slane %v8506_v61, 1 }
 0xe69   : > { %v8510_v52 = vmax.f32 %v8481_v57, %v8509_v46  ;;  %v8508_v20 = vmax.f32 %v8506_v61, %v8507_v16  ;;  %v8553_v61 = vpop.permute.xlu2 %8552 }
 0xe6a   : > { %v8469_v40 = vpop.f32.mrf.mxu3  ;;  %vm8559_vm11 = vcmp.eq.s32.totalorder %v8553_v61, %v12221_v34  ;;  %v10890_v61 = vld [vmem:[%s14548_s16 + $0x44] sm:$0xf] }
 0xe6b   : > { %v8470_v45 = vadd.f32 %v11695_v26, %v8469_v40  ;;  %v8511_v59 = vrot.slane %v8510_v52, 2  ;;  %v8536_v53 = vpack.c.bf16 %v8508_v20, %v8508_v20  ;;  %v8563_v16 = vsel %vm8559_vm11, 1.0, %v11818_v43 }
 0xe6d   : > { %v8482_v48 = vmax.f32 %v8470_v45, 0.0  ;;  %v8512_v4 = vmax.f32 %v8510_v52, %v8511_v59  ;;  %v8578_v0 = vunpack.c.l.b16 %v8536_v53  ;;  %v8634_v52 = vpop.permute.xlu1 %8633  ;;  %v8882_v53 = vunpack.c.l.b16 %v14178_v32 }
 0xe6e   : > { %vm8642_vm12 = vcmp.eq.s32.totalorder %v8634_v52, %v12221_v34 }
 0xe6f   : > { %v8515_v51 = vrot.slane %v8482_v48, 4  ;;  %v8513_v47 = vrot.slane %v8512_v4, 1 }
 0xe71   : > { %v8516_v55 = vmax.f32 %v8482_v48, %v8515_v51  ;;  %v8514_v25 = vmax.f32 %v8512_v4, %v8513_v47  ;;  %v8583_v48 = vsel %vm4944_vm2, %v8576_v35, %v8575_v42  ;;  %vm14546_vm2 = vcmask 1047559   ;;  %v8640_v3 = vpop.permute.xlu2 %8639  ;;  %v10897_v35 = vld [vmem:[%s14548_s16 + $0x74] sm:$0xf0]  ;;  %v10579_v42 = vld [vmem:[%s14548_s16 + $0xf0] sm:$0xf] }
 0xe72   : > { %v8472_v2 = vpop.f32.mrf.mxu3  ;;  %v8584_v50 = vsel %vm4946_vm3, %v8577_v39, %v8583_v48  ;;  %vm8598_vm3 = vcmask 1043456   ;;  %vm8644_vm13 = vcmp.eq.s32.totalorder %v8640_v3, %v12221_v34  ;;  %v10896_v39 = vld [vmem:[%s14548_s16 + $0x74] sm:$0xf] }
 0xe73   : > { %v8473_v58 = vadd.f32 %v11695_v26, %v8472_v2  ;;  %v8517_v60 = vrot.slane %v8516_v55, 2  ;;  %v8537_v33 = vpack.c.bf16 %v8514_v25, %v8514_v25  ;;  %v8585_v54 = vsel %vm4948_vm5, %v8578_v0, %v8584_v50  ;;  %v8631_v2 = vpop.permute.xlu0 %8630  ;;  %v10509_v50 = vld [vmem:[%s14548_s16 + $0x68] sm:$0xf0] }
 0xe74   : > { %vm8641_vm5 = vcmp.eq.s32.totalorder %v8631_v2, %v12221_v34 }
 0xe75   : > { %v8483_v62 = vmax.f32 %v8473_v58, 0.0  ;;  %v8518_v10 = vmax.f32 %v8516_v55, %v8517_v60  ;;  %v8579_v46 = vunpack.c.l.b16 %v8537_v33  ;;  %v8561_v60 = vsel %vm8557_vm14, 1.0, %v11818_v43  ;;  %v10515_v33 = vld [vmem:[%s14548_s16 + $0x70] sm:$0xf] }
 0xe76   : > { %v8565_v4 = vpack.c.bf16 %v8562_v31, %v8561_v60  ;;  %v10891_v31 = vld [vmem:[%s14548_s16 + $0x44] sm:$0xf0] }
 0xe77   : > { %v8521_v37 = vrot.slane %v8483_v62, 4  ;;  %v8519_v13 = vrot.slane %v8518_v10, 1  ;;  %v8586_v29 = vsel %vm4950_vm0, %v8579_v46, %v8585_v54  ;;  %vm8591_vm0 = vcmask 64512   ;;  %v10507_v46 = vld [vmem:[%s14548_s16 + $0x60] sm:$0xf] }
 0xe78   : > { %v10911_v54 = vld [vmem:[%s14548_s16 + $0xe4] sm:$0xf0] }
 0xe79   : > { %v8522_v7 = vmax.f32 %v8483_v62, %v8521_v37  ;;  %v8520_v22 = vmax.f32 %v8518_v10, %v8519_v13  ;;  %v8646_v62 = vsel %vm8642_vm12, 1.0, %v11818_v43  ;;  %v8645_v37 = vsel %vm8641_vm5, 1.0, %v11818_v43  ;;  %v8677_v13 = vld [vmem:[%s1819_s2 + $0x8] sm:$0xff] }
 0xe7a   : > { %v8474_v6 = vpop.f32.mrf.mxu3  ;;  %v8649_v5 = vpack.c.bf16 %v8646_v62, %v8645_v37 }
 0xe7b   : > { %v8523_v8 = vrot.slane %v8522_v7, 2  ;;  %v8475_v11 = vadd.f32 %v11695_v26, %v8474_v6  ;;  %v8538_v57 = vpack.c.bf16 %v8520_v22, %v8520_v22  ;;  %v8556_v10 = vpop.permute.xlu0 %8555 }
 0xe7d   : > { %v8524_v14 = vmax.f32 %v8522_v7, %v8523_v8  ;;  %v8484_v15 = vmax.f32 %v8475_v11, 0.0  ;;  %v8580_v23 = vunpack.c.l.b16 %v8538_v57  ;;  %v8637_v7 = vpop.permute.xlu1 %8636  ;;  %v8648_v8 = vsel %vm8644_vm13, 1.0, %v11818_v43 }
 0xe7f   : > { %v8525_v21 = vrot.slane %v8524_v14, 1  ;;  %v8527_v24 = vrot.slane %v8484_v15, 4  ;;  %v8587_v56 = vsel %vm4952_vm6, %v8580_v23, %v8586_v29  ;;  %vm8560_vm6 = vcmp.eq.s32.totalorder %v8556_v10, %v12221_v34  ;;  %v10893_v29 = vld [vmem:[%s14548_s16 + $0x54] sm:$0xf0]  ;;  %v10907_v10 = vld [vmem:[%s14548_s16 + $0xc4] sm:$0xf0] }
 0xe80   : > { %v8564_v6 = vsel %vm8560_vm6, 1.0, %v11818_v43  ;;  %v10508_v23 = vor.u32 %v10895_v41, %v10507_v46  ;;  %v10523_v46 = vld [vmem:[%s14548_s16 + $0x80] sm:$0xf]  ;;  %v10899_v41 = vld [vmem:[%s14548_s16 + $0x84] sm:$0xf0] }
 0xe81   : > { %v8528_v1 = vmax.f32 %v8484_v15, %v8527_v24  ;;  %v8526_v30 = vmax.f32 %v8524_v14, %v8525_v21  ;;  %v8566_v11 = vpack.c.bf16 %v8564_v6, %v8563_v16  ;;  %v11661_v14 = vpack.i.bf16 %v8677_v13, %v8676_v18  ;;  %v8679_v15 = vld [vmem:[%s1819_s2 + $0x18] sm:$0xff]  ;;  %v10483_v6 = vld [vmem:[%s14548_s16 + $0x30] sm:$0xf] }
 0xe82   : > { %v10905_v13 = vld [vmem:[%s14548_s16 + $0xb4] sm:$0xf0] }
 0xe83   : > { %v8529_v26 = vrot.slane %v8528_v1, 2  ;;  %v8539_v40 = vpack.c.bf16 %v8526_v30, %v8526_v30  ;;  %11662 = vrot.lane.b32.xlu1 %v11661_v14, %s14508_s5  ;;  %v10475_v14 = vld [vmem:[%s14548_s16 + $0x20] sm:$0xf] }
 0xe85   : > { %v8530_v36 = vmax.f32 %v8528_v1, %v8529_v26  ;;  %v8581_v51 = vunpack.c.l.b16 %v8539_v40  ;;  %v8916_v26 = vpack.c.b16 %v8882_v53, %v8882_v53  ;;  %v10517_v40 = vld [vmem:[%s14548_s16 + $0x78] sm:$0xf0] }
 0xe86   : > { %v10520_v0 = vor.u32 %v10896_v39, %v10517_v40  ;;  %v10459_v39 = vld [vmem:[%s14548_s16] sm:$0xf]  ;;  %v10883_v40 = vld [vmem:[%s14548_s16 + $0x4] sm:$0xf0] }
 0xe87   : > { %v8531_v45 = vrot.slane %v8530_v36, 1  ;;  %v8588_v58 = vsel %vm4954_vm7, %v8581_v51, %v8587_v56  ;;  %vm8643_vm7 = vcmp.eq.s32.totalorder %v8637_v7, %v12221_v34  ;;  %v8678_v34 = vld [vmem:[%s1819_s2 + $0x10] sm:$0xff]  ;;  %v8957_v57 = vsel %vm14549_vm8, %v8916_v26, 0  ;;  %v10571_v51 = vld [vmem:[%s14548_s16 + $0xe0] sm:$0xf]  ;;  %s14553_s2 = sld [smem:[#allocation38_spill]] }
 0xe88   : > { %v8647_v19 = vsel %vm8643_vm7, 1.0, %v11818_v43  ;;  %v11676_v44 = vpack.i.bf16 %v8679_v15, %v8678_v34  ;;  %9007 = vmatpush.bf16.msrb.mxu0 %v8957_v57  ;;  %9019 = vmatpush.bf16.msrb.mxu3 %v10520_v0  ;;  %v10572_v2 = vor.u32 %v10911_v54, %v10571_v51  ;;  %v10501_v56 = vld [vmem:[%s14548_s16 + $0x58] sm:$0xf0]  ;;  %v10887_v34 = vld [vmem:[%s14548_s16 + $0x24] sm:$0xf0]  ;;  %v10460_v0 = vor.u32 %v10883_v40, %v10459_v39 }
 0xe89   : > { %v8532_v49 = vmax.f32 %v8530_v36, %v8531_v45  ;;  %v8650_v47 = vpack.c.bf16 %v8648_v8, %v8647_v19  ;;  %v10516_v36 = vor.u32 %v10897_v35, %v10515_v33  ;;  %v10913_v45 = vld [vmem:[%s14548_s16 + $0xf4] sm:$0xf0]  ;;  %v10888_v8 = vld [vmem:[%s14548_s16 + $0x34] sm:$0xf]  ;;  %v10581_v51 = vld [vmem:[%s14548_s16 + $0xf8] sm:$0xf0] }
 0xe8a   : > { %v10580_v48 = vor.u32 %v10913_v45, %v10579_v42  ;;  %v10889_v19 = vld [vmem:[%s14548_s16 + $0x34] sm:$0xf0]  ;;  %v10882_v42 = vld [vmem:[%s14548_s16 + $0x4] sm:$0xf]  ;;  %v10461_v45 = vld [vmem:[%s14548_s16 + $0x8] sm:$0xf0] }
 0xe8b   : > { %v8540_v55 = vpack.c.bf16 %v8532_v49, %v8532_v49  ;;  %11677 = vrot.lane.b32.xlu1 %v11676_v44, %s14508_s5  ;;  %v10894_v49 = vld [vmem:[%s14548_s16 + $0x64] sm:$0xf]  ;;  %v10484_v16 = vor.u32 %v10889_v19, %v10483_v6  ;;  %v10477_v44 = vld [vmem:[%s14548_s16 + $0x28] sm:$0xf0]  ;;  %v10900_v19 = vld [vmem:[%s14548_s16 + $0x94] sm:$0xf] }
 0xe8c   : > { %v10512_v52 = vor.u32 %v10894_v49, %v10509_v50  ;;  %v10524_v49 = vor.u32 %v10899_v41, %v10523_v46  ;;  %v10912_v50 = vld [vmem:[%s14548_s16 + $0xf4] sm:$0xf] }
 0xe8d   : > { %v8582_v38 = vunpack.c.l.b16 %v8540_v55  ;;  %v10499_v55 = vld [vmem:[%s14548_s16 + $0x50] sm:$0xf]  ;;  %v10584_v54 = vor.u32 %v10912_v50, %v10581_v51 }
 0xe8e   : > { %9020 = vmatpush.bf16.msrb.mxu3 %v10512_v52  ;;  %v10910_v52 = vld [vmem:[%s14548_s16 + $0xe4] sm:$0xf] }
 0xe8f   : > { %v8589_v59 = vsel %vm14546_vm2, %v8582_v38, %v8588_v58  ;;  %v10892_v38 = vld [vmem:[%s14548_s16 + $0x54] sm:$0xf]  ;;  %v10500_v58 = vor.u32 %v10893_v29, %v10499_v55  ;;  %v10573_v55 = vld [vmem:[%s14548_s16 + $0xe8] sm:$0xf0] }
 0xe90   : > { %v8590_v9 = vpack.c.b16 %v8589_v59, %v8589_v59  ;;  %v10563_v59 = vld [vmem:[%s14548_s16 + $0xd0] sm:$0xf]  ;;  %v10504_v60 = vor.u32 %v10892_v38, %v10501_v56  ;;  %v10576_v29 = vor.u32 %v10910_v52, %v10573_v55  ;;  %v10565_v38 = vld [vmem:[%s14548_s16 + $0xd8] sm:$0xf0] }
 0xe92   : > { %v8600_v63 = vsel %vm8598_vm3, %v8590_v9, 0  ;;  %v10909_v9 = vld [vmem:[%s14548_s16 + $0xd4] sm:$0xf0]  ;;  %9021 = vmatpush.bf16.msrb.mxu3 %v10504_v60  ;;  %v10906_v60 = vld [vmem:[%s14548_s16 + $0xc4] sm:$0xf] }
 0xe93   : > { %8609 = vmatpush.bf16.msra.mxu2 %v8600_v63  ;;  %8664 = vmatpush.bf16.msra.mxu1 %v8600_v63  ;;  %v10564_v62 = vor.u32 %v10909_v9, %v10563_v59  ;;  %v10491_v63 = vld [vmem:[%s14548_s16 + $0x40] sm:$0xf] }
 0xe94   : > { %v10492_v37 = vor.u32 %v10891_v31, %v10491_v63 }
 0xe96   : > { %10453 = vmatmul.msk.bf16.vlgmr.msra.gmra.mxu2 %vm8591_vm0, %v8565_v4  ;;  %10455 = vmatmul.msk.bf16.vlgmr.msra.gmra.mxu1 %vm8591_vm0, %v8649_v5  ;;  %v10493_v4 = vld [vmem:[%s14548_s16 + $0x48] sm:$0xf0]  ;;  %v10555_v5 = vld [vmem:[%s14548_s16 + $0xc0] sm:$0xf] }
 0xe97   : > { %8962 = vmatpush.bf16.msrb.mxu2 %v10516_v36  ;;  %8981 = vmatpush.bf16.msrb.mxu1 %v10580_v48  ;;  %v10496_v7 = vor.u32 %v10890_v61, %v10493_v4  ;;  %v10556_v3 = vor.u32 %v10907_v10, %v10555_v5  ;;  %v10904_v61 = vld [vmem:[%s14548_s16 + $0xb4] sm:$0xf]  ;;  %v10902_v4 = vld [vmem:[%s14548_s16 + $0xa4] sm:$0xf]  ;;  %v8883_v5 = vunpack.c.h.b16 %v14178_v32 }
 0xe99   : > { %9022 = vmatpush.bf16.msrb.mxu3 %v10496_v7  ;;  %v10541_v7 = vld [vmem:[%s14548_s16 + $0xa8] sm:$0xf0] }
 0xe9a   : > { %v10544_v6 = vor.u32 %v10902_v4, %v10541_v7 }
 0xe9b   : > { %8963 = vmatpush.bf16.msrb.mxu2 %v10508_v23  ;;  %8982 = vmatpush.bf16.msrb.mxu1 %v10572_v2  ;;  %v10464_v23 = vor.u32 %v10882_v42, %v10461_v45  ;;  %v10908_v2 = vld [vmem:[%s14548_s16 + $0xd4] sm:$0xf] }
 0xe9c   : > { %v10568_v56 = vor.u32 %v10908_v2, %v10565_v38 }
 0xe9f   : > { %8964 = vmatpush.bf16.msrb.mxu2 %v10500_v58  ;;  %8983 = vmatpush.bf16.msrb.mxu1 %v10564_v62  ;;  %v10557_v62 = vld [vmem:[%s14548_s16 + $0xc8] sm:$0xf0] }
 0xea0   : > { %v10560_v63 = vor.u32 %v10906_v60, %v10557_v62 }
 0xea3   : > { %8965 = vmatpush.bf16.msrb.mxu2 %v10492_v37  ;;  %8984 = vmatpush.bf16.msrb.mxu1 %v10556_v3  ;;  %v10549_v37 = vld [vmem:[%s14548_s16 + $0xb8] sm:$0xf0]  ;;  %v8917_v3 = vpack.c.b16 %v8883_v5, %v8883_v5 }
 0xea4   : > { %v10552_v10 = vor.u32 %v10904_v61, %v10549_v37 }
 0xea6   : > { %10454 = vmatmul.msk.bf16.gmra.mxu2 %vm8591_vm0, %v8566_v11  ;;  %10456 = vmatmul.msk.bf16.gmra.mxu1 %vm8591_vm0, %v8650_v47  ;;  %v10485_v11 = vld [vmem:[%s14548_s16 + $0x38] sm:$0xf0]  ;;  %v10547_v47 = vld [vmem:[%s14548_s16 + $0xb0] sm:$0xf] }
 0xea7   : > { %v10488_v18 = vor.u32 %v10888_v8, %v10485_v11  ;;  %v10548_v15 = vor.u32 %v10905_v13, %v10547_v47  ;;  %8966 = vmatpush.bf16.msrb.mxu2 %v10484_v16  ;;  %v10533_v16 = vld [vmem:[%s14548_s16 + $0x98] sm:$0xf0]  ;;  %v8960_v8 = vsel %vm14551_vm10, %v8917_v3, 0  ;;  %v10898_v13 = vld [vmem:[%s14548_s16 + $0x84] sm:$0xf] }
 0xea8   : > { %v10536_v47 = vor.u32 %v10900_v19, %v10533_v16 }
 0xea9   : > { %9023 = vmatpush.bf16.msrb.mxu3 %v10488_v18  ;;  %8985 = vmatpush.bf16.msrb.mxu1 %v10548_v15 }
 0xef5   : > { %v11663_v11 = vpop.permute.xlu1 %11662 }
 0xef6   : > { %v11665_v32 = vunpack.i.h.bf16 %v11663_v11  ;;  %v11664_v18 = vunpack.i.l.bf16 %v11663_v11 }
 0xf13   : > { %v8666_v17 = vpop.f32.mrf.mxu1 }
 0xf19   : > { %v8611_v20 = vpop.f32.mrf.mxu2 }
 0xf1b   : > { %v8668_v43 = vpop.f32.mrf.mxu1 }
 0xf1c   : > { %v11666_v21 = vpack.i.bf16 %v8668_v43, %v8666_v17  ;;  %v10886_v17 = vld [vmem:[%s14548_s16 + $0x24] sm:$0xf]  ;;  %v10476_v43 = vor.u32 %v10887_v34, %v10475_v14  ;;  %v10525_v14 = vld [vmem:[%s14548_s16 + $0x88] sm:$0xf0] }
 0xf1e   : > { %11667 = vrot.lane.b32.xlu2 %v11666_v21, %s11827_s12  ;;  %v10903_v21 = vld [vmem:[%s14548_s16 + $0xa4] sm:$0xf0]  ;;  %8967 = vmatpush.bf16.msrb.mxu2 %v10476_v43  ;;  %v10528_v43 = vor.u32 %v10898_v13, %v10525_v14 }
 0xf21   : > { %v8613_v24 = vpop.f32.mrf.mxu2 }
 0xf22   : > { %v11656_v25 = vpack.i.bf16 %v8613_v24, %v8611_v20  ;;  %v10539_v20 = vld [vmem:[%s14548_s16 + $0xa0] sm:$0xf]  ;;  %v10480_v24 = vor.u32 %v10886_v17, %v10477_v44 }
 0xf23   : > { %v8671_v12 = vpop.f32.mrf.mxu1 }
 0xf24   : > { %11657 = vrot.lane.b32.xlu0 %v11656_v25, %s14508_s5  ;;  %v10540_v25 = vor.u32 %v10903_v21, %v10539_v20  ;;  %9024 = vmatpush.bf16.msrb.mxu3 %v10480_v24 }
 0xf26   : > { %8986 = vmatpush.bf16.msrb.mxu1 %v10540_v25 }
 0xf29   : > { %v8616_v27 = vpop.f32.mrf.mxu2 }
 0xf2b   : > { %v8673_v22 = vpop.f32.mrf.mxu1 }
 0xf2c   : > { %v11681_v1 = vpack.i.bf16 %v8673_v22, %v8671_v12  ;;  %v10467_v12 = vld [vmem:[%s14548_s16 + $0x10] sm:$0xf]  ;;  %v10884_v22 = vld [vmem:[%s14548_s16 + $0x14] sm:$0xf] }
 0xf2e   : > { %11682 = vrot.lane.b32.xlu2 %v11681_v1, %s11827_s12  ;;  %v10469_v1 = vld [vmem:[%s14548_s16 + $0x18] sm:$0xf0]  ;;  %s14554_s12 = sld [smem:[#allocation41_spill]] }
 0xf2f   : > { %v10472_v26 = vor.u32 %v10884_v22, %v10469_v1 }
 0xf31   : > { %v8618_v28 = vpop.f32.mrf.mxu2  ;;  %9025 = vmatpush.bf16.msrb.mxu3 %v10472_v26 }
 0xf32   : > { %v11671_v30 = vpack.i.bf16 %v8618_v28, %v8616_v27  ;;  %v10885_v27 = vld [vmem:[%s14548_s16 + $0x14] sm:$0xf0]  ;;  %v10531_v28 = vld [vmem:[%s14548_s16 + $0x90] sm:$0xf] }
 0xf33   : > { %v10468_v53 = vor.u32 %v10885_v27, %v10467_v12 }
 0xf34   : > { %11672 = vrot.lane.b32.xlu0 %v11671_v30, %s14508_s5  ;;  %v10901_v30 = vld [vmem:[%s14548_s16 + $0x94] sm:$0xf0]  ;;  %s14550_s5 = sld [smem:[#allocation34_spill]] }
 0xf35   : > { %v10532_v33 = vor.u32 %v10901_v30, %v10531_v28  ;;  %8968 = vmatpush.bf16.msrb.mxu2 %v10468_v53  ;;  %9026 = vmatpush.bf16.msrb.mxu3 %v10464_v23  ;;  %v11678_v30 = vpop.permute.xlu1 %11677 }
 0xf36   : > { %v11680_v53 = vunpack.i.h.bf16 %v11678_v30  ;;  %v11679_v26 = vunpack.i.l.bf16 %v11678_v30 }
 0xf37   : > { %8987 = vmatpush.bf16.msrb.mxu1 %v10532_v33 }
 0xf39   : > { %8969 = vmatpush.bf16.msrb.mxu2 %v10460_v0 }
 0xf3a   : > { %s14270_s8 = scalar_lea.vmem %s14550_s5, %s13924_s13  ;;  %s14552_s13 = sld [smem:[#allocation39_spill]] }
 0xf3b   : > { %8988 = vmatpush.bf16.msrb.mxu1 %v10524_v49  ;;  %v8621_v34 = vld [vmem:[%s14270_s8] sm:$0xff]  ;;  %v8622_v15 = vld [vmem:[%s14270_s8 + $0x8] sm:$0xff]  ;;  %v8623_v39 = vld [vmem:[%s14270_s8 + $0x10] sm:$0xff]  ;;  %s14555_s5 = sld [smem:[#allocation40_spill]] }
 0xf3c   : > { %v8624_v40 = vld [vmem:[%s14270_s8 + $0x18] sm:$0xff]  ;;  %s14556_s8 = sld [smem:[#allocation43_spill]] }
 0xf3d   : > { %9038 = vmatpush.bf16.msra.mxu2 %v10584_v54 }
 0xf3f   : > { %9064 = vmatpush.bf16.msra.mxu1 %v8960_v8 }
 0xf40   : > { %v10647_v50 = vld [vmem:[%s14552_s13 + $0x70] sm:$0xf]  ;;  %v10929_v51 = vld [vmem:[%s14552_s13 + $0x74] sm:$0xf0]  ;;  %v10928_v52 = vld [vmem:[%s14552_s13 + $0x74] sm:$0xf] }
 0xf41   : > { %9039 = vmatpush.bf16.msra.mxu2 %v10576_v29  ;;  %v10648_v54 = vor.u32 %v10929_v51, %v10647_v50  ;;  %v10649_v55 = vld [vmem:[%s14552_s13 + $0x78] sm:$0xf0]  ;;  %v10639_v29 = vld [vmem:[%s14552_s13 + $0x60] sm:$0xf]  ;;  %v10927_v2 = vld [vmem:[%s14552_s13 + $0x64] sm:$0xf0] }
 0xf42   : > { %v10652_v38 = vor.u32 %v10928_v52, %v10649_v55  ;;  %v10925_v60 = vld [vmem:[%s14552_s13 + $0x54] sm:$0xf0]  ;;  %v10924_v62 = vld [vmem:[%s14552_s13 + $0x54] sm:$0xf]  ;;  %v10623_v37 = vld [vmem:[%s14552_s13 + $0x40] sm:$0xf] }
 0xf43   : > { %9286 = vmatpush.bf16.msra.mxu0 %v10648_v54  ;;  %v10923_v4 = vld [vmem:[%s14552_s13 + $0x44] sm:$0xf0]  ;;  %v10922_v5 = vld [vmem:[%s14552_s13 + $0x44] sm:$0xf]  ;;  %v10625_v7 = vld [vmem:[%s14552_s13 + $0x48] sm:$0xf0] }
 0xf44   : > { %v10628_v3 = vor.u32 %v10922_v5, %v10625_v7  ;;  %v10921_v19 = vld [vmem:[%s14552_s13 + $0x34] sm:$0xf0]  ;;  %v10920_v16 = vld [vmem:[%s14552_s13 + $0x34] sm:$0xf]  ;;  %v10617_v11 = vld [vmem:[%s14552_s13 + $0x38] sm:$0xf0] }
 0xf45   : > { %9040 = vmatpush.bf16.msra.mxu2 %v10568_v56  ;;  %v10926_v56 = vld [vmem:[%s14552_s13 + $0x64] sm:$0xf]  ;;  %v10711_v30 = vld [vmem:[%s14552_s13 + $0xf0] sm:$0xf]  ;;  %v10697_v51 = vld [vmem:[%s14552_s13 + $0xd8] sm:$0xf0] }
 0xf46   : > { %v10918_v13 = vld [vmem:[%s14552_s13 + $0x24] sm:$0xf]  ;;  %v14345_v52 = vld [vmem:[%s14553_s2] sm:$0x3]  ;;  %v10935_v7 = vld [vmem:[%s14552_s13 + $0xa4] sm:$0xf0] }
 0xf47   : > { %s14557_s2 = sld [smem:[#allocation42_spill]] }
 0xf49   : > { %9041 = vmatpush.bf16.msra.mxu2 %v10560_v63 }
 0xf4d   : > { %9042 = vmatpush.bf16.msra.mxu2 %v10552_v10  ;;  %v10624_v10 = vor.u32 %v10923_v4, %v10623_v37  ;;  %v10681_v4 = vld [vmem:[%s14552_s13 + $0xb8] sm:$0xf0] }
 0xf51   : > { %9043 = vmatpush.bf16.msra.mxu2 %v10544_v6  ;;  %v10615_v6 = vld [vmem:[%s14552_s13 + $0x30] sm:$0xf] }
 0xf52   : > { %v10616_v8 = vor.u32 %v10921_v19, %v10615_v6  ;;  %v10673_v19 = vld [vmem:[%s14552_s13 + $0xa8] sm:$0xf0] }
 0xf55   : > { %9044 = vmatpush.bf16.msra.mxu2 %v10536_v47  ;;  %v10620_v47 = vor.u32 %v10920_v16, %v10617_v11 }
 0xf59   : > { %9045 = vmatpush.bf16.msra.mxu2 %v10528_v43 }
 0xf78   : > { %v14224_v35 = vpop.permute.xlu2 %11667 }
 0xf79   : > { %v11670_v57 = vunpack.i.h.bf16 %v14224_v35  ;;  %v11669_v36 = vunpack.i.l.bf16 %v14224_v35 }
 0xf7b   : > { %v14238_v48 = vpack.c.bf16 %v11670_v57, %v11669_v36 }
 0xf7d   : > { %10585 = vmatmul.msk.bf16.vlgmr.msrb.gmra.mxu0 %vm8294_vm4, %v14238_v48 }
 0xf88   : > { %v14248_v58 = vpop.permute.xlu2 %11682 }
 0xf89   : > { %v11685_v59 = vunpack.i.h.bf16 %v14248_v58  ;;  %v11684_v9 = vunpack.i.l.bf16 %v14248_v58  ;;  %v10641_v58 = vld [vmem:[%s14552_s13 + $0x68] sm:$0xf0] }
 0xf8b   : > { %v14256_v31 = vpack.c.bf16 %v11685_v59, %v11684_v9 }
 0xf8d   : > { %10586 = vmatmul.msk.bf16.gmra.mxu0 %vm8294_vm4, %v14256_v31 }
 0xf96   : > { %v11658_v17 = vpop.permute.xlu0 %11657 }
 0xf97   : > { %v11660_v44 = vunpack.i.h.bf16 %v11658_v17  ;;  %v11659_v20 = vunpack.i.l.bf16 %v11658_v17  ;;  %v10599_v17 = vld [vmem:[%s14552_s13 + $0x10] sm:$0xf] }
 0xf99   : > { %v8729_v21 = vsel %vm2900_vm9, %v8622_v15, %v11660_v44  ;;  %v8733_v24 = vsel %vm2900_vm9, %v11660_v44, %v11665_v32  ;;  %v8728_v25 = vsel %vm2900_vm9, %v8621_v34, %v11659_v20  ;;  %v8732_v12 = vsel %vm2900_vm9, %v11659_v20, %v11664_v18  ;;  %v10607_v32 = vld [vmem:[%s14552_s13 + $0x20] sm:$0xf]  ;;  %v10919_v18 = vld [vmem:[%s14552_s13 + $0x24] sm:$0xf0]  ;;  %v10609_v34 = vld [vmem:[%s14552_s13 + $0x28] sm:$0xf0] }
 0xf9a   : > { %v8737_v27 = vsel %vm8294_vm4, %v8733_v24, %v11670_v57  ;;  %v8736_v22 = vsel %vm8294_vm4, %v8732_v12, %v11669_v36  ;;  %v8740_v1 = vpack.c.bf16 %v8729_v21, %v8728_v25  ;;  %v10608_v14 = vor.u32 %v10919_v18, %v10607_v32  ;;  %v10917_v44 = vld [vmem:[%s14552_s13 + $0x14] sm:$0xf0]  ;;  %v10916_v20 = vld [vmem:[%s14552_s13 + $0x14] sm:$0xf]  ;;  %v10601_v21 = vld [vmem:[%s14552_s13 + $0x18] sm:$0xf0] }
 0xf9b   : > { %v8741_v28 = vpack.c.bf16 %v8737_v27, %v8736_v22  ;;  %v10612_v15 = vor.u32 %v10918_v13, %v10609_v34  ;;  %v10600_v43 = vor.u32 %v10917_v44, %v10599_v17  ;;  %v10604_v24 = vor.u32 %v10916_v20, %v10601_v21  ;;  %v10591_v25 = vld [vmem:[%s14552_s13] sm:$0xf]  ;;  %v10915_v12 = vld [vmem:[%s14552_s13 + $0x4] sm:$0xf0]  ;;  %v10914_v27 = vld [vmem:[%s14552_s13 + $0x4] sm:$0xf] }
 0xf9c   : > { %8970 = vmatmul.bf16.vlgmr.msrb.gmra.mxu2 %v8740_v1  ;;  %9027 = vmatmul.bf16.vlgmr.msrb.gmra.mxu3 %v8740_v1  ;;  %v10592_v22 = vor.u32 %v10915_v12, %v10591_v25  ;;  %v10593_v1 = vld [vmem:[%s14552_s13 + $0x8] sm:$0xf0]  ;;  %v10663_v18 = vld [vmem:[%s14552_s13 + $0x90] sm:$0xf]  ;;  %v10933_v13 = vld [vmem:[%s14552_s13 + $0x94] sm:$0xf0] }
 0xf9d   : > { %8989 = vmatmul.bf16.vlgmr.msrb.gmra.mxu1 %v8741_v28  ;;  %9324 = vmatpush.bf16.msrb.mxu2 %v10652_v38  ;;  %v10938_v38 = vld [vmem:[%s14552_s13 + $0xc4] sm:$0xf]  ;;  %v10664_v44 = vor.u32 %v10933_v13, %v10663_v18  ;;  %v10665_v20 = vld [vmem:[%s14552_s13 + $0x98] sm:$0xf0]  ;;  %v10931_v25 = vld [vmem:[%s14552_s13 + $0x84] sm:$0xf0] }
 0xf9e   : > { %v10930_v12 = vld [vmem:[%s14552_s13 + $0x84] sm:$0xf]  ;;  %v10961_v18 = vld [vmem:[%s14554_s12 + $0x78] sm:$0xff]  ;;  %v10960_v13 = vld [vmem:[%s14554_s12 + $0x70] sm:$0xff] }
 0xfa6   : > { %v11673_v33 = vpop.permute.xlu0 %11672 }
 0xfa7   : > { %v11675_v42 = vunpack.i.h.bf16 %v11673_v33  ;;  %v11674_v0 = vunpack.i.l.bf16 %v11673_v33 }
 0xfa9   : > { %v8735_v57 = vsel %vm2900_vm9, %v11675_v42, %v11680_v53  ;;  %v8734_v35 = vsel %vm2900_vm9, %v11674_v0, %v11679_v26  ;;  %v8730_v36 = vsel %vm2900_vm9, %v8623_v39, %v11674_v0  ;;  %v8731_v45 = vsel %vm2900_vm9, %v8624_v40, %v11675_v42  ;;  %v10945_v53 = vld [vmem:[%s14552_s13 + $0xf4] sm:$0xf0]  ;;  %v10944_v26 = vld [vmem:[%s14552_s13 + $0xf4] sm:$0xf]  ;;  %v10713_v39 = vld [vmem:[%s14552_s13 + $0xf8] sm:$0xf0] }
 0xfaa   : > { %v8743_v46 = vpack.c.bf16 %v8731_v45, %v8730_v36  ;;  %v8738_v41 = vsel %vm8294_vm4, %v8734_v35, %v11684_v9  ;;  %v8739_v23 = vsel %vm8294_vm4, %v8735_v57, %v11685_v59  ;;  %v10644_v59 = vor.u32 %v10926_v56, %v10641_v58  ;;  %v10631_v9 = vld [vmem:[%s14552_s13 + $0x50] sm:$0xf]  ;;  %v10703_v42 = vld [vmem:[%s14552_s13 + $0xe0] sm:$0xf]  ;;  %v10943_v0 = vld [vmem:[%s14552_s13 + $0xe4] sm:$0xf0] }
 0xfab   : > { %v8744_v49 = vpack.c.bf16 %v8739_v23, %v8738_v41  ;;  %v10632_v63 = vor.u32 %v10925_v60, %v10631_v9  ;;  %v10712_v33 = vor.u32 %v10945_v53, %v10711_v30  ;;  %v10716_v40 = vor.u32 %v10944_v26, %v10713_v39  ;;  %v10942_v57 = vld [vmem:[%s14552_s13 + $0xe4] sm:$0xf]  ;;  %v10705_v36 = vld [vmem:[%s14552_s13 + $0xe8] sm:$0xf0]  ;;  %v10941_v41 = vld [vmem:[%s14552_s13 + $0xd4] sm:$0xf0] }
 0xfac   : > { %8975 = vmatmul.bf16.gmra.mxu2 %v8743_v46  ;;  %9032 = vmatmul.bf16.gmra.mxu3 %v8743_v46  ;;  %v10704_v35 = vor.u32 %v10943_v0, %v10703_v42  ;;  %v10708_v45 = vor.u32 %v10942_v57, %v10705_v36  ;;  %v10695_v46 = vld [vmem:[%s14552_s13 + $0xd0] sm:$0xf]  ;;  %v10940_v23 = vld [vmem:[%s14552_s13 + $0xd4] sm:$0xf]  ;;  %v8781_v56 = vperm.slane %v14345_v52, 0  ;;  %vm14558_vm9 = vcmask 523264  }
 0xfad   : > { %8994 = vmatmul.bf16.gmra.mxu1 %v8744_v49  ;;  %9325 = vmatpush.bf16.msrb.mxu2 %v10644_v59  ;;  %v10696_v50 = vor.u32 %v10941_v41, %v10695_v46  ;;  %v10700_v54 = vor.u32 %v10940_v23, %v10697_v51  ;;  %v10679_v60 = vld [vmem:[%s14552_s13 + $0xb0] sm:$0xf] }
 0xfae   : > { %9305 = vmatpush.bf16.msra.mxu3 %v10712_v33  ;;  %9343 = vmatpush.bf16.msrb.mxu1 %v10716_v40 }
 0xfb2   : > { %9306 = vmatpush.bf16.msra.mxu3 %v10704_v35  ;;  %9344 = vmatpush.bf16.msrb.mxu1 %v10708_v45 }
 0xfb6   : > { %9307 = vmatpush.bf16.msra.mxu3 %v10696_v50  ;;  %9345 = vmatpush.bf16.msrb.mxu1 %v10700_v54 }
 0xfbc   : > { %9046 = vmatmul.bf16.vlgmr.msra.gmra.mxu2 %v8741_v28  ;;  %v10596_v28 = vor.u32 %v10914_v27, %v10593_v1 }
 0xfbd   : > { %10587 = vmatmul.msk.bf16.vlgmr.msra.gmra.mxu1 %vm8294_vm4, %v14238_v48  ;;  %v10640_v48 = vor.u32 %v10927_v2, %v10639_v29  ;;  %v10687_v29 = vld [vmem:[%s14552_s13 + $0xc0] sm:$0xf]  ;;  %v10939_v2 = vld [vmem:[%s14552_s13 + $0xc4] sm:$0xf0] }
 0xfbe   : > { %v10688_v58 = vor.u32 %v10939_v2, %v10687_v29 }
 0xfbf   : > { %9287 = vmatpush.bf16.msra.mxu0 %v10640_v48  ;;  %v10689_v48 = vld [vmem:[%s14552_s13 + $0xc8] sm:$0xf0] }
 0xfc0   : > { %v10692_v9 = vor.u32 %v10938_v38, %v10689_v48  ;;  %9308 = vmatpush.bf16.msra.mxu3 %v10688_v58 }
 0xfc2   : > { %9346 = vmatpush.bf16.msrb.mxu1 %v10692_v9 }
 0xfc3   : > { %9288 = vmatpush.bf16.msra.mxu0 %v10632_v63  ;;  %v10936_v63 = vld [vmem:[%s14552_s13 + $0xb4] sm:$0xf] }
 0xfc4   : > { %v10684_v5 = vor.u32 %v10936_v63, %v10681_v4 }
 0xfc6   : > { %9347 = vmatpush.bf16.msrb.mxu1 %v10684_v5 }
 0xfc7   : > { %9289 = vmatpush.bf16.msra.mxu0 %v10624_v10  ;;  %v10671_v10 = vld [vmem:[%s14552_s13 + $0xa0] sm:$0xf] }
 0xfc8   : > { %v10672_v6 = vor.u32 %v10935_v7, %v10671_v10 }
 0xfcb   : > { %9290 = vmatpush.bf16.msra.mxu0 %v10616_v8 }
 0xfcc   : > { %9051 = vmatmul.bf16.gmra.mxu2 %v8744_v49 }
 0xfcd   : > { %10588 = vmatmul.msk.bf16.gmra.mxu1 %vm8294_vm4, %v14256_v31  ;;  %v10633_v31 = vld [vmem:[%s14552_s13 + $0x58] sm:$0xf0] }
 0xfce   : > { %v10636_v61 = vor.u32 %v10924_v62, %v10633_v31  ;;  %v10937_v62 = vld [vmem:[%s14552_s13 + $0xb4] sm:$0xf0] }
 0xfcf   : > { %9291 = vmatpush.bf16.msra.mxu0 %v10608_v14  ;;  %v10680_v37 = vor.u32 %v10937_v62, %v10679_v60  ;;  %v10932_v14 = vld [vmem:[%s14552_s13 + $0x94] sm:$0xf] }
 0xfd0   : > { %9326 = vmatpush.bf16.msrb.mxu2 %v10636_v61 }
 0xfd1   : > { %9309 = vmatpush.bf16.msra.mxu3 %v10680_v37 }
 0xfd3   : > { %9292 = vmatpush.bf16.msra.mxu0 %v10600_v43  ;;  %v10668_v43 = vor.u32 %v10932_v14, %v10665_v20  ;;  %v10958_v20 = vld [vmem:[%s14554_s12 + $0x60] sm:$0xff] }
 0xfd4   : > { %9327 = vmatpush.bf16.msrb.mxu2 %v10628_v3  ;;  %v10934_v3 = vld [vmem:[%s14552_s13 + $0xa4] sm:$0xf] }
 0xfd5   : > { %v10676_v8 = vor.u32 %v10934_v3, %v10673_v19  ;;  %9310 = vmatpush.bf16.msra.mxu3 %v10672_v6 }
 0xfd7   : > { %9293 = vmatpush.bf16.msra.mxu0 %v10592_v22  ;;  %9348 = vmatpush.bf16.msrb.mxu1 %v10676_v8 }
 0xfd8   : > { %9328 = vmatpush.bf16.msrb.mxu2 %v10620_v47 }
 0xfd9   : > { %9311 = vmatpush.bf16.msra.mxu3 %v10664_v44  ;;  %v10952_v44 = vld [vmem:[%s14554_s12 + $0x30] sm:$0xff] }
 0xfdb   : > { %9349 = vmatpush.bf16.msrb.mxu1 %v10668_v43  ;;  %v10951_v43 = vld [vmem:[%s14554_s12 + $0x28] sm:$0xff] }
 0xfdc   : > { %9329 = vmatpush.bf16.msrb.mxu2 %v10612_v15 }
 0xfe0   : > { %9330 = vmatpush.bf16.msrb.mxu2 %v10604_v24  ;;  %v10655_v24 = vld [vmem:[%s14552_s13 + $0x80] sm:$0xf] }
 0xfe1   : > { %v10656_v1 = vor.u32 %v10931_v25, %v10655_v24  ;;  %v10957_v25 = vld [vmem:[%s14554_s12 + $0x58] sm:$0xff] }
 0xfe3   : > { %9312 = vmatpush.bf16.msra.mxu3 %v10656_v1 }
 0xfe4   : > { %9331 = vmatpush.bf16.msrb.mxu2 %v10596_v28  ;;  %v10657_v28 = vld [vmem:[%s14552_s13 + $0x88] sm:$0xf0] }
 0xfe5   : > { %v10660_v53 = vor.u32 %v10930_v12, %v10657_v28  ;;  %v9120_v12 = vld [vmem:[%s14555_s5] sm:$0x3]  ;;  %v10956_v28 = vld [vmem:[%s14554_s12 + $0x50] sm:$0xff]  ;;  %s1723_s5 = sand.u32 1, %s11758_s10  }
 0xfe6   : > { %s1724_s3 = scalar_lea.vmem [#allocation2], %s1723_s5  ;;  %s9715_s9 = scalar_lea.sflag [#allocation3], %s1723_s5 }
 0xfe7   : > { %9350 = vmatpush.bf16.msrb.mxu1 %v10660_v53  ;;  %9568 = vmatpush.bf16.msrb.mxu3 %v10961_v18  ;;  %v10949_v53 = vld [vmem:[%s14554_s12 + $0x18] sm:$0xff]  ;;  %s9725_s6 = sshll.u32 %s1724_s3, 4  ;;  %s9726_s6 = int_to_ptr.vmem [resolvable:$true] %s9725_s6 }
 0xfeb   : > { %9569 = vmatpush.bf16.msrb.mxu3 %v10960_v13 }
 0xffa   : > { %v9009_v55 = vpop.f32.mrf.mxu0 }
0x1002   : > { %v9011_v11 = vpop.f32.mrf.mxu0 }
0x100a   : > { %v9014_v33 = vpop.f32.mrf.mxu0 }
0x1012   : > { %v9016_v46 = vpop.f32.mrf.mxu0 }
0x101a   : > { %v8990_v49 = vpop.f32.mrf.mxu1 }
0x101f   : > { %v8971_v59 = vpop.f32.mrf.mxu2  ;;  %v9028_v42 = vpop.f32.mrf.mxu3 }
0x1020   : > { %v8972_v31 = vadd.f32 %v8971_v59, %v8781_v56 }
0x1022   : > { %v8992_v61 = vpop.f32.mrf.mxu1  ;;  %v8991_v16 = vadd.f32 %v8990_v49, %v8972_v31  ;;  %v8782_v49 = vperm.slane %v14345_v52, 1 }
0x1024   : > { %v9010_v34 = vadd.f32 %v9009_v55, %v8991_v16  ;;  %v9029_v2 = vadd.f32 %v9028_v42, %v8782_v49  ;;  %v9122_v42 = vperm.slane %v9120_v12, 0 }
0x1026   : > { %v9076_v27 = vmax.f32 %v9010_v34, 0.0  ;;  %v10953_v34 = vld [vmem:[%s14554_s12 + $0x38] sm:$0xff] }
0x1027   : > { %v8973_v47 = vpop.f32.mrf.mxu2  ;;  %v9030_v54 = vpop.f32.mrf.mxu3  ;;  %9555 = vmatpush.bf16.msrb.mxu0 %v10953_v34 }
0x1028   : > { %v8974_v32 = vadd.f32 %v8973_v47, %v8781_v56  ;;  %v9031_v48 = vadd.f32 %v9030_v54, %v8782_v49 }
0x102a   : > { %v8993_v15 = vadd.f32 %v8992_v61, %v8974_v32  ;;  %v8995_v17 = vpop.f32.mrf.mxu1 }
0x102b   : > { %9556 = vmatpush.bf16.msrb.mxu0 %v10952_v44 }
0x102c   : > { %v9012_v21 = vadd.f32 %v9011_v11, %v8993_v15  ;;  %v10959_v15 = vld [vmem:[%s14554_s12 + $0x68] sm:$0xff] }
0x102d   : > { %9570 = vmatpush.bf16.msrb.mxu3 %v10959_v15 }
0x102e   : > { %v9078_v22 = vmax.f32 %v9012_v21, 0.0 }
0x102f   : > { %v8976_v30 = vpop.f32.mrf.mxu2  ;;  %v9033_v60 = vpop.f32.mrf.mxu3  ;;  %9557 = vmatpush.bf16.msrb.mxu0 %v10951_v43 }
0x1030   : > { %v9084_v26 = vpack.c.bf16 %v9078_v22, %v9076_v27  ;;  %v8977_v39 = vadd.f32 %v8976_v30, %v8781_v56  ;;  %v9034_v4 = vadd.f32 %v9033_v60, %v8782_v49  ;;  %v10950_v27 = vld [vmem:[%s14554_s12 + $0x20] sm:$0xff]  ;;  %v9123_v22 = vperm.slane %v9120_v12, 1 }
0x1031   : > { %9571 = vmatpush.bf16.msrb.mxu3 %v10958_v20 }
0x1032   : > { %v8997_v40 = vpop.f32.mrf.mxu1  ;;  %9294 = vmatmul.bf16.vlgmr.msra.gmra.mxu0 %v9084_v26  ;;  %9332 = vmatmul.bf16.vlgmr.msrb.gmra.mxu2 %v9084_v26  ;;  %v8996_v0 = vadd.f32 %v8995_v17, %v8977_v39 }
0x1033   : > { %9558 = vmatpush.bf16.msrb.mxu0 %v10950_v27 }
0x1034   : > { %v9015_v36 = vadd.f32 %v9014_v33, %v8996_v0 }
0x1035   : > { %9572 = vmatpush.bf16.msrb.mxu3 %v10957_v25 }
0x1036   : > { %v9080_v50 = vmax.f32 %v9015_v36, 0.0  ;;  %v10948_v36 = vld [vmem:[%s14554_s12 + $0x10] sm:$0xff] }
0x1037   : > { %v8978_v57 = vpop.f32.mrf.mxu2  ;;  %v9035_v5 = vpop.f32.mrf.mxu3  ;;  %9559 = vmatpush.bf16.msrb.mxu0 %v10949_v53  ;;  %v10966_v53 = vld [vmem:[%s14556_s8 + $0x20] sm:$0xff] }
0x1038   : > { %v8979_v35 = vadd.f32 %v8978_v57, %v8781_v56  ;;  %v9036_v7 = vadd.f32 %v9035_v5, %v8782_v49 }
0x1039   : > { %9573 = vmatpush.bf16.msrb.mxu3 %v10956_v28 }
0x103a   : > { %v8998_v45 = vadd.f32 %v8997_v40, %v8979_v35  ;;  %v9066_v41 = vpop.f32.mrf.mxu1  ;;  %v10955_v40 = vld [vmem:[%s14554_s12 + $0x48] sm:$0xff] }
0x103b   : > { %9560 = vmatpush.bf16.msrb.mxu0 %v10948_v36 }
0x103c   : > { %v9017_v23 = vadd.f32 %v9016_v46, %v8998_v45  ;;  %v10954_v45 = vld [vmem:[%s14554_s12 + $0x40] sm:$0xff] }
0x103d   : > { %9574 = vmatpush.bf16.msrb.mxu3 %v10955_v40 }
0x103e   : > { %v9082_v51 = vmax.f32 %v9017_v23, 0.0 }
0x103f   : > { %v9047_v55 = vpop.f32.mrf.mxu2 }
0x1040   : > { %v9086_v29 = vpack.c.bf16 %v9082_v51, %v9080_v50  ;;  %v9048_v38 = vadd.f32 %v9047_v55, %v9029_v2  ;;  %v10947_v55 = vld [vmem:[%s14554_s12 + $0x8] sm:$0xff] }
0x1041   : > { %9575 = vmatpush.bf16.msrb.mxu3 %v10954_v45  ;;  %9561 = vmatpush.bf16.msrb.mxu0 %v10947_v55 }
0x1042   : > { %9299 = vmatmul.bf16.gmra.mxu0 %v9086_v29  ;;  %9337 = vmatmul.bf16.gmra.mxu2 %v9086_v29  ;;  %v9068_v58 = vpop.f32.mrf.mxu1  ;;  %v9067_v56 = vadd.f32 %v9066_v41, %v9048_v38 }
0x1044   : > { %v9077_v63 = vmax.f32 %v9067_v56, 0.0 }
0x1047   : > { %v9049_v59 = vpop.f32.mrf.mxu2 }
0x1048   : > { %v9050_v9 = vadd.f32 %v9049_v59, %v9031_v48 }
0x104a   : > { %v9069_v62 = vadd.f32 %v9068_v58, %v9050_v9  ;;  %v9071_v52 = vpop.f32.mrf.mxu1  ;;  %v10946_v9 = vld [vmem:[%s14554_s12] sm:$0xff] }
0x104b   : > { %9562 = vmatpush.bf16.msrb.mxu0 %v10946_v9 }
0x104c   : > { %v9079_v31 = vmax.f32 %v9069_v62, 0.0 }
0x104e   : > { %v9085_v61 = vpack.c.bf16 %v9079_v31, %v9077_v63 }
0x104f   : > { %v9052_v37 = vpop.f32.mrf.mxu2 }
0x1050   : > { %9313 = vmatmul.bf16.vlgmr.msra.gmra.mxu3 %v9085_v61  ;;  %9351 = vmatmul.bf16.vlgmr.msrb.gmra.mxu1 %v9085_v61  ;;  %v9053_v10 = vadd.f32 %v9052_v37, %v9034_v4 }
0x1052   : > { %v9072_v6 = vadd.f32 %v9071_v52, %v9053_v10  ;;  %v9073_v16 = vpop.f32.mrf.mxu1  ;;  %v10969_v52 = vld [vmem:[%s14556_s8 + $0x38] sm:$0xff] }
0x1053   : > { %9648 = vmatpush.bf16.msra.mxu2 %v10969_v52 }
0x1054   : > { %v9081_v11 = vmax.f32 %v9072_v6, 0.0  ;;  %v10968_v6 = vld [vmem:[%s14556_s8 + $0x30] sm:$0xff] }
0x1057   : > { %v9054_v3 = vpop.f32.mrf.mxu2  ;;  %9649 = vmatpush.bf16.msra.mxu2 %v10968_v6  ;;  %v10963_v6 = vld [vmem:[%s14556_s8 + $0x8] sm:$0xff] }
0x1058   : > { %v9055_v19 = vadd.f32 %v9054_v3, %v9036_v7 }
0x105a   : > { %v9074_v8 = vadd.f32 %v9073_v16, %v9055_v19 }
0x105c   : > { %v9083_v47 = vmax.f32 %v9074_v8, 0.0 }
0x105e   : > { %v9087_v32 = vpack.c.bf16 %v9083_v47, %v9081_v11 }
0x1060   : > { %9318 = vmatmul.bf16.gmra.mxu3 %v9087_v32  ;;  %9356 = vmatmul.bf16.gmra.mxu1 %v9087_v32 }
0x10af   : > { %v9295_v17 = vpop.f32.mrf.mxu0 }
0x10b0   : > { %v9296_v46 = vadd.f32 %v9295_v17, %v9122_v42  ;;  %v10967_v17 = vld [vmem:[%s14556_s8 + $0x28] sm:$0xff] }
0x10b1   : > { %9650 = vmatpush.bf16.msra.mxu2 %v10967_v17 }
0x10b5   : > { %v9333_v14 = vpop.f32.mrf.mxu2  ;;  %9651 = vmatpush.bf16.msra.mxu2 %v10966_v53 }
0x10b6   : > { %v9334_v26 = vadd.f32 %v9333_v14, %v9123_v22 }
0x10b7   : > { %v9297_v1 = vpop.f32.mrf.mxu0 }
0x10b8   : > { %v9298_v49 = vadd.f32 %v9297_v1, %v9122_v42 }
0x10bd   : > { %v9335_v21 = vpop.f32.mrf.mxu2 }
0x10be   : > { %v9336_v39 = vadd.f32 %v9335_v21, %v9123_v22 }
0x10bf   : > { %v9300_v50 = vpop.f32.mrf.mxu0 }
0x10c0   : > { %v9301_v63 = vadd.f32 %v9300_v50, %v9122_v42 }
0x10c5   : > { %v9338_v0 = vpop.f32.mrf.mxu2 }
0x10c6   : > { %v9339_v51 = vadd.f32 %v9338_v0, %v9123_v22 }
0x10c7   : > { %v9302_v8 = vpop.f32.mrf.mxu0 }
0x10c8   : > { %v9303_v44 = vadd.f32 %v9302_v8, %v9122_v42  ;;  %v10972_v8 = vld [vmem:[%s12071_s20 + $0x10] sm:$0xff] }
0x10cd   : > { %v9352_v24 = vpop.f32.mrf.mxu1  ;;  %v9340_v60 = vpop.f32.mrf.mxu2 }
0x10ce   : > { %v9353_v57 = vadd.f32 %v9352_v24, %v9334_v26  ;;  %v9341_v5 = vadd.f32 %v9340_v60, %v9123_v22 }
0x10d0   : > { %v9363_v41 = vmax.f32 %v9353_v57, 0.0 }
0x10d2   : > { %v9376_v48 = vrot.slane %v9363_v41, 4 }
0x10d3   : > { %v9314_v30 = vpop.f32.mrf.mxu3 }
0x10d4   : > { %v9315_v29 = vadd.f32 %v9314_v30, %v9296_v46  ;;  %v9377_v37 = vmax.f32 %v9363_v41, %v9376_v48  ;;  %v10965_v46 = vld [vmem:[%s14556_s8 + $0x18] sm:$0xff] }
0x10d5   : > { %v9354_v33 = vpop.f32.mrf.mxu1  ;;  %9652 = vmatpush.bf16.msra.mxu2 %v10965_v46 }
0x10d6   : > { %v9355_v35 = vadd.f32 %v9354_v33, %v9336_v39  ;;  %v9362_v62 = vmax.f32 %v9315_v29, 0.0  ;;  %v9378_v13 = vrot.slane %v9377_v37, 2 }
0x10d8   : > { %v9365_v54 = vmax.f32 %v9355_v35, 0.0  ;;  %v9370_v19 = vrot.slane %v9362_v62, 4  ;;  %v9379_v12 = vmax.f32 %v9377_v37, %v9378_v13 }
0x10da   : > { %v9388_v59 = vrot.slane %v9365_v54, 4  ;;  %v9371_v20 = vmax.f32 %v9362_v62, %v9370_v19  ;;  %v9380_v42 = vrot.slane %v9379_v12, 1  ;;  %v10962_v19 = vld [vmem:[%s14556_s8] sm:$0xff] }
0x10db   : > { %v9316_v23 = vpop.f32.mrf.mxu3 }
0x10dc   : > { %v9317_v38 = vadd.f32 %v9316_v23, %v9298_v49  ;;  %v9389_v10 = vmax.f32 %v9365_v54, %v9388_v59  ;;  %v9372_v26 = vrot.slane %v9371_v20, 2  ;;  %v9381_v54 = vmax.f32 %v9379_v12, %v9380_v42 }
0x10dd   : > { %v9357_v2 = vpop.f32.mrf.mxu1 }
0x10de   : > { %v9358_v58 = vadd.f32 %v9357_v2, %v9339_v51  ;;  %v9364_v31 = vmax.f32 %v9317_v38, 0.0  ;;  %v9390_v14 = vrot.slane %v9389_v10, 2  ;;  %v9373_v41 = vmax.f32 %v9371_v20, %v9372_v26  ;;  %v10970_v20 = vld [vmem:[%s12071_s20] sm:$0xff] }
0x10e0   : > { %v9367_v56 = vmax.f32 %v9358_v58, 0.0  ;;  %v9382_v11 = vrot.slane %v9364_v31, 4  ;;  %v9391_v22 = vmax.f32 %v9389_v10, %v9390_v14  ;;  %v10964_v58 = vld [vmem:[%s14556_s8 + $0x10] sm:$0xff]  ;;  %v9374_v48 = vrot.slane %v9373_v41, 1 }
0x10e1   : > { %9653 = vmatpush.bf16.msra.mxu2 %v10964_v58 }
0x10e2   : > { %v9400_v61 = vrot.slane %v9367_v56, 4  ;;  %v9383_v43 = vmax.f32 %v9364_v31, %v9382_v11  ;;  %v9392_v57 = vrot.slane %v9391_v22, 1  ;;  %v9458_v11 = vld [vmem:[%s14557_s2] sm:$0x1]  ;;  %s9723_s2 = scalar_lea.hbm %s12081_s4, %s12104_s0  ;;  %s11724_s0 = scalar_lea.hbm %s12081_s4, 2 }
0x10e3   : > { %v9319_v4 = vpop.f32.mrf.mxu3  ;;  %s9727_s8 = sshll.u32 %s9723_s2, 4  ;;  %s9728_s8 = int_to_ptr.hbm [resolvable:$true] %s9727_s8 }
0x10e4   : > { %v9401_v7 = vmax.f32 %v9367_v56, %v9400_v61  ;;  %v9320_v3 = vadd.f32 %v9319_v4, %v9301_v63  ;;  %v9384_v33 = vrot.slane %v9383_v43, 2  ;;  %v9393_v55 = vmax.f32 %v9391_v22, %v9392_v57  ;;  %v9671_v22 = vld [vmem:[%s12076_s27] sm:$0x1]  ;;  %s11718_s12 = sshra.s32 %s9728_s8, 4  ;;  %s11719_s12 = int_to_ptr.hbm [resolvable:$true] %s11718_s12 }
0x10e5   : > { %v9359_v16 = vpop.f32.mrf.mxu1  ;;  %v9375_v61 = vmax.f32 %v9373_v41, %v9374_v48  ;;  %9654 = vmatpush.bf16.msra.mxu2 %v10963_v6  ;;  %s11720_s13 = scalar_lea.hbm %s11719_s12, 1  ;;  %p11725_p0 = scmp.lt.s32.totalorder %s11719_s12, %s12081_s4 }
0x10e6   : > { %v9402_v47 = vrot.slane %v9401_v7, 2  ;;  %v9366_v32 = vmax.f32 %v9320_v3, 0.0  ;;  %v9360_v18 = vadd.f32 %v9359_v16, %v9341_v5  ;;  %v9385_v23 = vmax.f32 %v9383_v43, %v9384_v33  ;;  %v10973_v16 = vld [vmem:[%s12071_s20 + $0x18] sm:$0xff]  ;;  %v9599_v43 = vld [vmem:[%s12066_s30] sm:$0x1]  ;;  %p11721_p11 = scmp.ne.s32.totalorder %s11719_s12, %s11720_s13  ;;  %p11726_p1 = scmp.lt.s32.totalorder %s11724_s0, %s11720_s13 }
0x10e7   : > { %9703 = vmatpush.bf16.msra.mxu1 %v10973_v16 }
0x10e8   : > { %v9394_v34 = vrot.slane %v9366_v32, 4  ;;  %v9369_v15 = vmax.f32 %v9360_v18, 0.0  ;;  %v9403_v21 = vmax.f32 %v9401_v7, %v9402_v47  ;;  %v9386_v59 = vrot.slane %v9385_v23, 1  ;;  %p11722_p12 = pnand %p11721_p11, %p12121_p5  ;;  %p11727_p2 = por %p11726_p1, %p11725_p0 }
0x10e9   : > { %9655 = vmatpush.bf16.msra.mxu2 %v10962_v19 }
0x10ea   : > { %v9395_v24 = vmax.f32 %v9366_v32, %v9394_v34  ;;  %v9412_v25 = vrot.slane %v9369_v15, 4  ;;  %v9404_v39 = vrot.slane %v9403_v21, 1  ;;  %v9387_v52 = vmax.f32 %v9385_v23, %v9386_v59  ;;  %p11723_p13 = pneg %p11722_p12 }
0x10eb   : > { %v9321_v27 = vpop.f32.mrf.mxu3  ;;  %9704 = vmatpush.bf16.msra.mxu1 %v10972_v8 }
0x10ec   : > { %v9396_v1 = vrot.slane %v9395_v24, 2  ;;  %v9413_v28 = vmax.f32 %v9369_v15, %v9412_v25  ;;  %v9322_v30 = vadd.f32 %v9321_v27, %v9303_v44  ;;  %v9405_v49 = vmax.f32 %v9403_v21, %v9404_v39  ;;  %v10971_v44 = vld [vmem:[%s12071_s20 + $0x8] sm:$0xff]  ;;  %p11728_p3 = pnand %p11727_p2, %p11723_p13 }
0x10ee   : > { %v9414_v40 = vrot.slane %v9413_v28, 2  ;;  %v9368_v0 = vmax.f32 %v9322_v30, 0.0  ;;  %v9397_v35 = vmax.f32 %v9395_v24, %v9396_v1  ;;  %v9421_v56 = vmax.f32 %v9381_v54, %v9405_v49 }
0x10ef   : > { %9705 = vmatpush.bf16.msra.mxu1 %v10971_v44 }
0x10f0   : > { %v9415_v36 = vmax.f32 %v9413_v28, %v9414_v40  ;;  %v9406_v45 = vrot.slane %v9368_v0, 4  ;;  %v9398_v29 = vrot.slane %v9397_v35, 1 }
0x10f2   : > { %v9416_v50 = vrot.slane %v9415_v36, 1  ;;  %v9407_v51 = vmax.f32 %v9368_v0, %v9406_v45  ;;  %v9399_v62 = vmax.f32 %v9397_v35, %v9398_v29 }
0x10f3   : > { %9706 = vmatpush.bf16.msra.mxu1 %v10970_v20 }
0x10f4   : > { %v9417_v2 = vmax.f32 %v9415_v36, %v9416_v50  ;;  %v9408_v38 = vrot.slane %v9407_v51, 2  ;;  %v9418_v5 = vmax.f32 %v9375_v61, %v9399_v62 }
0x10f6   : > { %v9422_v9 = vmax.f32 %v9393_v55, %v9417_v2  ;;  %v9409_v60 = vmax.f32 %v9407_v51, %v9408_v38 }
0x10f8   : > { %v9423_v63 = vmax.f32 %v9421_v56, %v9422_v9  ;;  %v9410_v31 = vrot.slane %v9409_v60, 1 }
0x10fa   : > { %v9425_v37 = vpack.c.bf16 %v9423_v63, %v9423_v63  ;;  %v9411_v4 = vmax.f32 %v9409_v60, %v9410_v31 }
0x10fc   : > { %v9419_v10 = vmax.f32 %v9387_v52, %v9411_v4  ;;  %9576 = vmatmul.bf16.vlgmr.msrb.gmra.mxu3 %v9425_v37 }
0x10fe   : > { %v9420_v7 = vmax.f32 %v9418_v5, %v9419_v10 }
0x1100   : > { %v9424_v3 = vpack.c.bf16 %v9420_v7, %v9420_v7 }
0x1102   : > { %9563 = vmatmul.bf16.vlgmr.msrb.gmra.mxu0 %v9424_v3 }
0x117f   : > { %v9564_v47 = vpop.f32.mrf.mxu0  ;;  %v9577_v32 = vpop.f32.mrf.mxu3 }
0x1180   : > { %v9565_v18 = vadd.f32 %v9564_v47, %v9458_v11 }
0x1182   : > { %v9578_v13 = vadd.f32 %v9577_v32, %v9565_v18 }
0x1184   : > { %v9581_v14 = vmax.f32 %v9578_v13, 0.0 }
0x1186   : > { %v9582_v34 = vpack.c.bf16 %v9581_v14, %v9581_v14 }
0x1187   : > { %v9566_v15 = vpop.f32.mrf.mxu0  ;;  %v9579_v17 = vpop.f32.mrf.mxu3 }
0x1188   : > { %9656 = vmatmul.bf16.vlgmr.msra.gmra.mxu2 %v9582_v34 }
0x120b   : > { %v9657_v21 = vpop.f32.mrf.mxu2 }
0x120c   : > { %v9658_v24 = vadd.f32 %v9657_v21, %v9599_v43 }
0x120e   : > { %v9661_v25 = vmax.f32 %v9658_v24, 0.0 }
0x1210   : > { %v9662_v12 = vpack.c.bf16 %v9661_v25, %v9661_v25 }
0x1212   : > { %10829 = vmatmul.msk.bf16.vlgmr.msra.gmra.mxu1 %vm14558_vm9, %v9662_v12 }
0x1213   : > { %v9659_v27 = vpop.f32.mrf.mxu2 }
0x128f   : > { %v9708_v1 = vpop.f32.mrf.mxu1 }
0x1290   : > { %v9709_v28 = vadd.f32 %v9708_v1, %v9671_v22 }
0x1292   : > { %9713 = vst.msk [vmem:[%s1724_s3] sm:$0x1] %vm9712_vm15, %v9709_v28 }
0x1293   : > { %11731 = shalt.err (!%p11728_p3)
}
0x1294   : > { %10974 = dma.vmem_to_hbm [thread:$0]  (%p12121_p5), %s9726_s6, 16, %s9728_s8, %s9715_s9  }
0x1297   : > { %v9710_v30 = vpop.f32.mrf.mxu1 }
0x1298 PF: > { %p10980_p4 = scmp.ge.s32.totalorder %s11766_s15, 2  ;;  %s9739_s3 = sand.u32 1, %s11754_s7  }
0x1299   : > { %s9740_s5 = scalar_lea.sflag [#allocation3], %s9739_s3 }
0x129a   : > { %p10977_p7 = pnand %p10980_p4, %p12125_p6 }
0x129c   : > { %p10978_p8 = pneg %p10977_p7 }
0x129e   : > { %11749 = dma.done.wait (%p10978_p8), %s9740_s5, 16  }
0x129f   : > { %11751 = vsyncadd (%p10978_p8), %s9740_s5, 4294967280  ;;  %p109_p9 = scmp.ge.s32.totalorder %s12108_s18, 4   ;;  %s14559_s7 = smov %s11758_s10 }
0x12a0   : > { %s14560_s10 = smov %s11762_s11  ;;  %s14561_s11 = smov %s12119_s26 }
0x12a1   : > { %s14562_s15 = smov %s12108_s18  ;;  %111 = sbr.rel (!%p109_p9) target bundleno = 99 (0x63), region = 354 }
0x12a6   :  { %9745 = vsyncpa [#allocation3], 1 }
0x12a7   :  { %9747 = vsyncpa [#allocation3 + $0x1], 1 }

</bundles_post_ra>
